<compile_context>
chip_gen: v6e
topology: v6e:2x2x1
jax: 0.10.0
libtpu: 0.0.40
codegen_flags: <defaults>
</compile_context>

<pallas_src>
import functools

import jax
import jax.numpy as jnp
from jax.experimental import pallas as pl
from jax.experimental.pallas import tpu as pltpu


# ----------------------------- helpers ---------------------------------------

def _rup(x, m):
    return (x + m - 1) // m * m


def _choose_tk(K):
    """Largest multiple of 128 that divides K and is <= 1024; else full K."""
    if K <= 1024:
        return K
    best = None
    t = 128
    while t <= 1024:
        if K % t == 0:
            best = t
        t += 128
    return best if best is not None else K


# ----------------------------- Pallas kernels --------------------------------

def _mm_bias_kernel(*refs, act, nk, has_res):
    # out = maybe_relu( sum_k(A_k @ B_k) + bias [+ residual] )
    # A/B tiles are bf16, accumulation is f32 in VMEM scratch.
    if has_res:
        a_ref, b_ref, c_ref, r_ref, o_ref, acc_ref = refs
    else:
        a_ref, b_ref, c_ref, o_ref, acc_ref = refs
        r_ref = None
    k = pl.program_id(2)

    @pl.when(k == 0)
    def _():
        acc_ref[...] = jnp.zeros_like(acc_ref)

    acc_ref[...] += jnp.dot(a_ref[...], b_ref[...],
                            preferred_element_type=jnp.float32)

    @pl.when(k == nk - 1)
    def _():
        out = acc_ref[...] + c_ref[...]
        if has_res:
            out = out + r_ref[...].astype(jnp.float32)
        if act:
            out = jnp.maximum(out, 0.0)
        o_ref[...] = out.astype(o_ref.dtype)


def _max9_kernel(p_ref, o_ref):
    # p: (9, rows, 128) stacked 3x3 window taps -> max over taps
    o_ref[...] = jnp.max(p_ref[...], axis=0)


def _pool_fc_kernel(x_ref, w_ref, b_ref, o_ref):
    # x: (N, H*W, 512) -> mean over spatial, then Linear(512, 1) (padded to 128)
    emb = jnp.mean(x_ref[...].astype(jnp.float32), axis=1)          # (N, 512)
    o_ref[...] = (jnp.dot(emb, w_ref[...], preferred_element_type=jnp.float32)
                  + b_ref[...])


# ------------------------------- wrappers -------------------------------------

def pallas_matmul_bias(a, b, bias, act, residual=None, out_dtype=jnp.bfloat16):
    """maybe_relu((a @ b) + bias [+ residual]).
    a:(M,K) bf16, b:(K,Nc) bf16 (BN scale pre-folded), bias:(1,Nc) f32."""
    M, K = a.shape
    Nc = b.shape[1]

    tm = min(512, _rup(M, 16))
    Mp = _rup(M, tm)
    if Nc <= 128:
        tn = Nc
    elif Nc % 256 == 0:
        tn = 256
    else:
        tn = 128
    tk = _choose_tk(K)
    nk = K // tk

    if Mp != M:
        a = jnp.pad(a, ((0, Mp - M), (0, 0)))
        if residual is not None:
            residual = jnp.pad(residual, ((0, Mp - M), (0, 0)))

    has_res = residual is not None
    in_specs = [
        pl.BlockSpec((tm, tk), lambda i, j, k: (i, k)),   # A tile
        pl.BlockSpec((tk, tn), lambda i, j, k: (k, j)),   # B tile
        pl.BlockSpec((1, tn), lambda i, j, k: (0, j)),    # bias
    ]
    args = [a, b, bias]
    if has_res:
        in_specs.append(pl.BlockSpec((tm, tn), lambda i, j, k: (i, j)))
        args.append(residual)

    out = pl.pallas_call(
        functools.partial(_mm_bias_kernel, act=act, nk=nk, has_res=has_res),
        out_shape=jax.ShapeDtypeStruct((Mp, Nc), out_dtype),
        grid=(Mp // tm, Nc // tn, nk),
        in_specs=in_specs,
        out_specs=pl.BlockSpec((tm, tn), lambda i, j, k: (i, j)),
        scratch_shapes=[pltpu.VMEM((tm, tn), jnp.float32)],
        compiler_params=pltpu.CompilerParams(
            dimension_semantics=("parallel", "parallel", "arbitrary"),
            vmem_limit_bytes=32 * 1024 * 1024),
    )(*args)
    return out[:M] if Mp != M else out


def _im2col(x, kh, kw, stride, pad):
    # x: (N, H, W, C) NHWC -> (N*Ho*Wo, kh*kw*C), column order (kh, kw, C).
    # kh/kw/stride/pad are static Python ints.
    N, H, W, C = x.shape
    Ho = (H + 2 * pad - kh) // stride + 1
    Wo = (W + 2 * pad - kw) // stride + 1
    xp = jnp.pad(x, ((0, 0), (pad, pad), (pad, pad), (0, 0)))
    cols = []
    for i in range(kh):
        for j in range(kw):
            cols.append(xp[:, i:i + stride * (Ho - 1) + 1:stride,
                           j:j + stride * (Wo - 1) + 1:stride, :])
    cols = jnp.concatenate(cols, axis=-1)          # (N, Ho, Wo, kh*kw*C)
    return cols.reshape(N * Ho * Wo, kh * kw * C), (N, Ho, Wo)


def conv_bn_act(x, w_mat, bias, kh, kw, stride, pad, relu, residual=None):
    """conv (via im2col + MXU matmul) with folded BN, optional fused residual
    add and ReLU.  x: NHWC bf16.  w_mat: (kh*kw*cin, cout) bf16, BN-scale folded."""
    cols, (N, Ho, Wo) = _im2col(x, kh, kw, stride, pad)
    cout = w_mat.shape[1]
    res2d = residual.reshape(N * Ho * Wo, cout) if residual is not None else None
    out = pallas_matmul_bias(cols, w_mat, bias, act=relu, residual=res2d,
                             out_dtype=jnp.bfloat16)
    return out.reshape(N, Ho, Wo, cout)


def pallas_max9(p):
    """Elementwise max over axis 0 of (9, M, C), gridded and lane-dense."""
    _, M, C = p.shape
    L = M * C
    if L % 128 == 0:
        R, Cw = L // 128, 128
    else:
        R, Cw = M, C
    p2 = p.reshape(9, R, Cw)
    tr = min(2048, _rup(R, 8))
    Rp = _rup(R, tr)
    if Rp != R:
        p2 = jnp.pad(p2, ((0, 0), (0, Rp - R), (0, 0)))
    out = pl.pallas_call(
        _max9_kernel,
        out_shape=jax.ShapeDtypeStruct((Rp, Cw), p.dtype),
        grid=(Rp // tr,),
        in_specs=[pl.BlockSpec((9, tr, Cw), lambda i: (0, i, 0))],
        out_specs=pl.BlockSpec((tr, Cw), lambda i: (i, 0)),
        compiler_params=pltpu.CompilerParams(
            dimension_semantics=("parallel",)),
    )(p2)
    if Rp != R:
        out = out[:R]
    return out.reshape(M, C)


def pallas_maxpool_3x3_s2_p1(x):
    # NOTE: the 9 shifted taps are still materialized by XLA strided slices;
    # a windowed-read kernel would cut this HBM traffic further.
    N, H, W, C = x.shape
    Ho = (H + 2 - 3) // 2 + 1
    Wo = (W + 2 - 3) // 2 + 1
    neg = float(jnp.finfo(x.dtype).min)
    xp = jnp.pad(x, ((0, 0), (1, 1), (1, 1), (0, 0)), constant_values=neg)
    taps = []
    for i in range(3):
        for j in range(3):
            taps.append(xp[:, i:i + 2 * (Ho - 1) + 1:2,
                           j:j + 2 * (Wo - 1) + 1:2, :].reshape(N * Ho * Wo, C))
    p = jnp.stack(taps, axis=0)                    # (9, N*Ho*Wo, C)
    out = pallas_max9(p)
    return out.reshape(N, Ho, Wo, C)


def pallas_pool_fc(x3, w_pad, b_pad):
    """Fused adaptive-avg-pool(1x1) + Linear(512,1). x3: (N, H*W, 512) bf16."""
    N = x3.shape[0]
    out = pl.pallas_call(
        _pool_fc_kernel,
        out_shape=jax.ShapeDtypeStruct((N, w_pad.shape[1]), jnp.float32),
    )(x3, w_pad, b_pad)
    return out[:, :1]                               # real fc has 1 output


# ----------------------------- model definition --------------------------------

_BN_EPS = 1e-5
# (cin, cout, stride) per stage; static config (never traced).
_STAGES = [(64, 64, 1), (64, 128, 2), (128, 256, 2), (256, 512, 2)]


def _bn_folded(key, c):
    k1, k2, k3, k4 = jax.random.split(key, 4)
    gamma = 1.0 + 0.1 * jax.random.normal(k1, (c,), jnp.float32)
    beta = 0.1 * jax.random.normal(k2, (c,), jnp.float32)
    mean = 0.1 * jax.random.normal(k3, (c,), jnp.float32)
    var = 0.5 + 0.5 * jnp.abs(jax.random.normal(k4, (c,), jnp.float32))
    scale = gamma / jnp.sqrt(var + _BN_EPS)
    bias = beta - mean * scale
    return scale, bias


def _fold_conv_bn(key, cout, cin, k):
    """Conv weight (OIHW) + folded BN -> pre-transposed bf16 (k*k*cin, cout)
    with BN scale folded into the columns, plus f32 bias (1, cout)."""
    kw_, kb_ = jax.random.split(key)
    std = (2.0 / (cin * k * k)) ** 0.5
    w = jax.random.normal(kw_, (cout, cin, k, k), jnp.float32) * std
    scale, bias = _bn_folded(kb_, cout)
    w_mat = jnp.transpose(w, (2, 3, 1, 0)).reshape(k * k * cin, cout)
    w_mat = (w_mat * scale[None, :]).astype(jnp.bfloat16)
    return w_mat, bias.reshape(1, cout).astype(jnp.float32)


def init_params(key):
    keys = iter(jax.random.split(key, 64))
    p = {}
    p["conv1_w"], p["conv1_b"] = _fold_conv_bn(next(keys), 64, 3, 7)

    layers = []
    for cin, cout, stride in _STAGES:
        blocks = []
        for bi in range(2):
            s = stride if bi == 0 else 1
            ci = cin if bi == 0 else cout
            bp = {}
            bp["w1"], bp["b1"] = _fold_conv_bn(next(keys), cout, ci, 3)
            bp["w2"], bp["b2"] = _fold_conv_bn(next(keys), cout, cout, 3)
            if s != 1 or ci != cout:
                bp["dsw"], bp["dsb"] = _fold_conv_bn(next(keys), cout, ci, 1)
            blocks.append(bp)
        layers.append(blocks)
    p["layers"] = layers

    # self.fc = nn.Linear(512, 1) -- pre-padded to lane width 128.
    kw_, kb_ = jax.random.split(next(keys))
    lim = 1.0 / (512.0 ** 0.5)
    fc_w = jax.random.uniform(kw_, (1, 512), jnp.float32, -lim, lim)
    fc_b = jax.random.uniform(kb_, (1,), jnp.float32, -lim, lim)
    p["fc_w"] = jnp.zeros((512, 128), jnp.float32).at[:, 0].set(fc_w[0])
    p["fc_b"] = jnp.zeros((1, 128), jnp.float32).at[0, 0].set(fc_b[0])
    return p


def basic_block(x, bp, stride):
    out = conv_bn_act(x, bp["w1"], bp["b1"], 3, 3, stride, 1, relu=True)
    if "dsw" in bp:
        identity = conv_bn_act(x, bp["dsw"], bp["dsb"], 1, 1, stride, 0,
                               relu=False)
    else:
        identity = x
    # conv2 + BN + residual add + ReLU fused in the matmul epilogue.
    out = conv_bn_act(out, bp["w2"], bp["b2"], 3, 3, 1, 1, relu=True,
                      residual=identity)
    return out


def resnet18_transfer_forward(x_nchw, params):
    # input: NCHW (PyTorch); internally NHWC bf16.
    x = jnp.transpose(x_nchw, (0, 2, 3, 1)).astype(jnp.bfloat16)
    x = conv_bn_act(x, params["conv1_w"], params["conv1_b"], 7, 7, 2, 3,
                    relu=True)
    x = pallas_maxpool_3x3_s2_p1(x)
    for blocks, (cin, cout, stride) in zip(params["layers"], _STAGES):
        for bi, bp in enumerate(blocks):
            s = stride if bi == 0 else 1
            x = basic_block(x, bp, s)
    N, H, W, C = x.shape
    # x.view(-1, 512) after adaptive avg pool, then fc -> fused kernel.
    out = pallas_pool_fc(x.reshape(N, H * W, C), params["fc_w"], params["fc_b"])
    return out                                               # (N, 1) f32


# ----------------------------------- main --------------------------------------

if __name__ == "__main__":
    key = jax.random.PRNGKey(0)
    k_param, k_x = jax.random.split(key)
    params = init_params(k_param)

    # small but architecture-consistent input: (batch=2, C=3, H=W=32)
    x = jax.random.normal(k_x, (2, 3, 32, 32), jnp.float32)

    fwd = jax.jit(resnet18_transfer_forward)
    y = fwd(x, params)
    y = jax.block_until_ready(y)

    assert y.shape == (2, 1), y.shape
    assert jnp.all(jnp.isfinite(y))
    print("KERNEL_OK")
</pallas_src>

<mosaic_0001>
module attributes {stable_mosaic.version = 11 : i64} {
  func.func @_mm_bias_kernel(%arg0: i32, %arg1: i32, %arg2: i32, %arg3: memref<512x147xbf16, #tpu.memory_space<vmem>>, %arg4: memref<147x64xbf16, #tpu.memory_space<vmem>>, %arg5: memref<1x64xf32, #tpu.memory_space<vmem>>, %arg6: memref<512x64xbf16, #tpu.memory_space<vmem>>, %arg7: memref<512x64xf32, #tpu.memory_space<vmem>>) attributes {dimension_semantics = [#tpu.dimension_semantics<parallel>, #tpu.dimension_semantics<parallel>, #tpu.dimension_semantics<arbitrary>], iteration_bounds = array<i64: 1, 1, 1>, scalar_prefetch = 0 : i64, scratch_operands = 1 : i64, tpu.core_type = #tpu.core_type<tc>, window_params = [{transform_indices = @transform_0, window_bounds = array<i64: 512, 147>}, {transform_indices = @transform_1, window_bounds = array<i64: 147, 64>}, {transform_indices = @transform_2, window_bounds = array<i64: 1, 64>}, {transform_indices = @transform_3, window_bounds = array<i64: 512, 64>}]} {
    %c0_i32 = arith.constant 0 : i32
    %0 = arith.cmpi eq, %arg2, %c0_i32 : i32
    %1 = arith.extui %0 : i1 to i32
    %c0_i32_0 = arith.constant 0 : i32
    %2 = arith.cmpi ne, %1, %c0_i32_0 : i32
    scf.if %2 {
      %cst_10 = arith.constant 0.000000e+00 : f32
      %12 = vector.broadcast %cst_10 : f32 to vector<512x64xf32>
      %c0_11 = arith.constant 0 : index
      %c0_12 = arith.constant 0 : index
      %13 = vector.load %arg7[%c0_11, %c0_12] : memref<512x64xf32, #tpu.memory_space<vmem>>, vector<512x64xf32>
      tpu.vector_store %arg7[%c0_11, %c0_12], %12 {strides = array<i32>} : memref<512x64xf32, #tpu.memory_space<vmem>>, vector<512x64xf32>,
    } else {
    }
    %c0 = arith.constant 0 : index
    %c0_1 = arith.constant 0 : index
    %3 = vector.load %arg7[%c0, %c0_1] : memref<512x64xf32, #tpu.memory_space<vmem>>, vector<512x64xf32>
    %c0_2 = arith.constant 0 : index
    %c0_3 = arith.constant 0 : index
    %4 = vector.load %arg3[%c0_2, %c0_3] : memref<512x147xbf16, #tpu.memory_space<vmem>>, vector<512x147xbf16>
    %c0_4 = arith.constant 0 : index
    %c0_5 = arith.constant 0 : index
    %5 = vector.load %arg4[%c0_4, %c0_5] : memref<147x64xbf16, #tpu.memory_space<vmem>>, vector<147x64xbf16>
    %cst = arith.constant dense<0.000000e+00> : vector<512x64xf32>
    %6 = tpu.matmul %4, %5, %cst {dimension_numbers = #tpu.dot_dimension_numbers<[1], [0], [0], [1], [0, 0, 1, 1], [], []>} : vector<512x147xbf16>, vector<147x64xbf16>, vector<512x64xf32> -> vector<512x64xf32>
    %7 = arith.addf %3, %6 : vector<512x64xf32>
    %c0_6 = arith.constant 0 : index
    %c0_7 = arith.constant 0 : index
    %8 = vector.load %arg7[%c0_6, %c0_7] : memref<512x64xf32, #tpu.memory_space<vmem>>, vector<512x64xf32>
    tpu.vector_store %arg7[%c0_6, %c0_7], %7 {strides = array<i32>} : memref<512x64xf32, #tpu.memory_space<vmem>>, vector<512x64xf32>,
    %c0_i32_8 = arith.constant 0 : i32
    %9 = arith.cmpi eq, %arg2, %c0_i32_8 : i32
    %10 = arith.extui %9 : i1 to i32
    %c0_i32_9 = arith.constant 0 : i32
    %11 = arith.cmpi ne, %10, %c0_i32_9 : i32
    scf.if %11 {
      %c0_10 = arith.constant 0 : index
      %c0_11 = arith.constant 0 : index
      %12 = vector.load %arg7[%c0_10, %c0_11] : memref<512x64xf32, #tpu.memory_space<vmem>>, vector<512x64xf32>
      %c0_12 = arith.constant 0 : index
      %c0_13 = arith.constant 0 : index
      %13 = vector.load %arg5[%c0_12, %c0_13] : memref<1x64xf32, #tpu.memory_space<vmem>>, vector<1x64xf32>
      %14 = vector.broadcast %13 : vector<1x64xf32> to vector<512x64xf32>
      %15 = arith.addf %12, %14 : vector<512x64xf32>
      %cst_14 = arith.constant 0.000000e+00 : f32
      %16 = vector.broadcast %cst_14 : f32 to vector<512x64xf32>
      %17 = arith.maximumf %15, %16 : vector<512x64xf32>
      %18 = arith.truncf %17 : vector<512x64xf32> to vector<512x64xbf16>
      %c0_15 = arith.constant 0 : index
      %c0_16 = arith.constant 0 : index
      %19 = vector.load %arg6[%c0_15, %c0_16] : memref<512x64xbf16, #tpu.memory_space<vmem>>, vector<512x64xbf16>
      tpu.vector_store %arg6[%c0_15, %c0_16], %18 {strides = array<i32>} : memref<512x64xbf16, #tpu.memory_space<vmem>>, vector<512x64xbf16>,
    } else {
    }
    return
  }
  func.func @transform_0(%arg0: i32, %arg1: i32, %arg2: i32) -> (i32, i32) {
    %c0_i32 = arith.constant 0 : i32
    return %arg0, %arg2 : i32, i32
  }
  func.func @transform_1(%arg0: i32, %arg1: i32, %arg2: i32) -> (i32, i32) {
    %c0_i32 = arith.constant 0 : i32
    return %arg2, %arg1 : i32, i32
  }
  func.func @transform_2(%arg0: i32, %arg1: i32, %arg2: i32) -> (i32, i32) {
    %c0_i32 = arith.constant 0 : i32
    %c0_i32_0 = arith.constant 0 : i32
    return %c0_i32, %arg1 : i32, i32
  }
  func.func @transform_3(%arg0: i32, %arg1: i32, %arg2: i32) -> (i32, i32) {
    %c0_i32 = arith.constant 0 : i32
    return %arg0, %arg1 : i32, i32
  }
}

module attributes {stable_mosaic.version = 11 : i64} {
  func.func @_max9_kernel(%arg0: i32, %arg1: memref<9x64x128xbf16, #tpu.memory_space<vmem>>, %arg2: memref<64x128xbf16, #tpu.memory_space<vmem>>) attributes {dimension_semantics = [#tpu.dimension_semantics<parallel>], iteration_bounds = array<i64: 1>, scalar_prefetch = 0 : i64, scratch_operands = 0 : i64, tpu.core_type = #tpu.core_type<tc>, window_params = [{transform_indices = @transform_0, window_bounds = array<i64: 9, 64, 128>}, {transform_indices = @transform_1, window_bounds = array<i64: 64, 128>}]} {
    %c0 = arith.constant 0 : index
    %c0_0 = arith.constant 0 : index
    %c0_1 = arith.constant 0 : index
    %0 = vector.load %arg1[%c0, %c0_0, %c0_1] : memref<9x64x128xbf16, #tpu.memory_space<vmem>>, vector<9x64x128xbf16>
    %cst = arith.constant dense<0xFF80> : vector<64x128xbf16>
    %1 = vector.multi_reduction <maximumf>, %0, %cst [0] : vector<9x64x128xbf16> to vector<64x128xbf16>
    %c0_2 = arith.constant 0 : index
    %c0_3 = arith.constant 0 : index
    %2 = vector.load %arg2[%c0_2, %c0_3] : memref<64x128xbf16, #tpu.memory_space<vmem>>, vector<64x128xbf16>
    tpu.vector_store %arg2[%c0_2, %c0_3], %1 {strides = array<i32>} : memref<64x128xbf16, #tpu.memory_space<vmem>>, vector<64x128xbf16>,
    return
  }
  func.func @transform_0(%arg0: i32) -> (i32, i32, i32) {
    %c0_i32 = arith.constant 0 : i32
    %c0_i32_0 = arith.constant 0 : i32
    %c0_i32_1 = arith.constant 0 : i32
    return %c0_i32, %arg0, %c0_i32_0 : i32, i32, i32
  }
  func.func @transform_1(%arg0: i32) -> (i32, i32) {
    %c0_i32 = arith.constant 0 : i32
    %c0_i32_0 = arith.constant 0 : i32
    return %arg0, %c0_i32 : i32, i32
  }
}

module attributes {stable_mosaic.version = 11 : i64} {
  func.func @_mm_bias_kernel(%arg0: i32, %arg1: i32, %arg2: i32, %arg3: memref<128x576xbf16, #tpu.memory_space<vmem>>, %arg4: memref<576x64xbf16, #tpu.memory_space<vmem>>, %arg5: memref<1x64xf32, #tpu.memory_space<vmem>>, %arg6: memref<128x64xbf16, #tpu.memory_space<vmem>>, %arg7: memref<128x64xf32, #tpu.memory_space<vmem>>) attributes {dimension_semantics = [#tpu.dimension_semantics<parallel>, #tpu.dimension_semantics<parallel>, #tpu.dimension_semantics<arbitrary>], iteration_bounds = array<i64: 1, 1, 1>, scalar_prefetch = 0 : i64, scratch_operands = 1 : i64, tpu.core_type = #tpu.core_type<tc>, window_params = [{transform_indices = @transform_0, window_bounds = array<i64: 128, 576>}, {transform_indices = @transform_1, window_bounds = array<i64: 576, 64>}, {transform_indices = @transform_2, window_bounds = array<i64: 1, 64>}, {transform_indices = @transform_3, window_bounds = array<i64: 128, 64>}]} {
    %c0_i32 = arith.constant 0 : i32
    %0 = arith.cmpi eq, %arg2, %c0_i32 : i32
    %1 = arith.extui %0 : i1 to i32
    %c0_i32_0 = arith.constant 0 : i32
    %2 = arith.cmpi ne, %1, %c0_i32_0 : i32
    scf.if %2 {
      %cst_10 = arith.constant 0.000000e+00 : f32
      %12 = vector.broadcast %cst_10 : f32 to vector<128x64xf32>
      %c0_11 = arith.constant 0 : index
      %c0_12 = arith.constant 0 : index
      %13 = vector.load %arg7[%c0_11, %c0_12] : memref<128x64xf32, #tpu.memory_space<vmem>>, vector<128x64xf32>
      tpu.vector_store %arg7[%c0_11, %c0_12], %12 {strides = array<i32>} : memref<128x64xf32, #tpu.memory_space<vmem>>, vector<128x64xf32>,
    } else {
    }
    %c0 = arith.constant 0 : index
    %c0_1 = arith.constant 0 : index
    %3 = vector.load %arg7[%c0, %c0_1] : memref<128x64xf32, #tpu.memory_space<vmem>>, vector<128x64xf32>
    %c0_2 = arith.constant 0 : index
    %c0_3 = arith.constant 0 : index
    %4 = vector.load %arg3[%c0_2, %c0_3] : memref<128x576xbf16, #tpu.memory_space<vmem>>, vector<128x576xbf16>
    %c0_4 = arith.constant 0 : index
    %c0_5 = arith.constant 0 : index
    %5 = vector.load %arg4[%c0_4, %c0_5] : memref<576x64xbf16, #tpu.memory_space<vmem>>, vector<576x64xbf16>
    %cst = arith.constant dense<0.000000e+00> : vector<128x64xf32>
    %6 = tpu.matmul %4, %5, %cst {dimension_numbers = #tpu.dot_dimension_numbers<[1], [0], [0], [1], [0, 0, 1, 1], [], []>} : vector<128x576xbf16>, vector<576x64xbf16>, vector<128x64xf32> -> vector<128x64xf32>
    %7 = arith.addf %3, %6 : vector<128x64xf32>
    %c0_6 = arith.constant 0 : index
    %c0_7 = arith.constant 0 : index
    %8 = vector.load %arg7[%c0_6, %c0_7] : memref<128x64xf32, #tpu.memory_space<vmem>>, vector<128x64xf32>
    tpu.vector_store %arg7[%c0_6, %c0_7], %7 {strides = array<i32>} : memref<128x64xf32, #tpu.memory_space<vmem>>, vector<128x64xf32>,
    %c0_i32_8 = arith.constant 0 : i32
    %9 = arith.cmpi eq, %arg2, %c0_i32_8 : i32
    %10 = arith.extui %9 : i1 to i32
    %c0_i32_9 = arith.constant 0 : i32
    %11 = arith.cmpi ne, %10, %c0_i32_9 : i32
    scf.if %11 {
      %c0_10 = arith.constant 0 : index
      %c0_11 = arith.constant 0 : index
      %12 = vector.load %arg7[%c0_10, %c0_11] : memref<128x64xf32, #tpu.memory_space<vmem>>, vector<128x64xf32>
      %c0_12 = arith.constant 0 : index
      %c0_13 = arith.constant 0 : index
      %13 = vector.load %arg5[%c0_12, %c0_13] : memref<1x64xf32, #tpu.memory_space<vmem>>, vector<1x64xf32>
      %14 = vector.broadcast %13 : vector<1x64xf32> to vector<128x64xf32>
      %15 = arith.addf %12, %14 : vector<128x64xf32>
      %cst_14 = arith.constant 0.000000e+00 : f32
      %16 = vector.broadcast %cst_14 : f32 to vector<128x64xf32>
      %17 = arith.maximumf %15, %16 : vector<128x64xf32>
      %18 = arith.truncf %17 : vector<128x64xf32> to vector<128x64xbf16>
      %c0_15 = arith.constant 0 : index
      %c0_16 = arith.constant 0 : index
      %19 = vector.load %arg6[%c0_15, %c0_16] : memref<128x64xbf16, #tpu.memory_space<vmem>>, vector<128x64xbf16>
      tpu.vector_store %arg6[%c0_15, %c0_16], %18 {strides = array<i32>} : memref<128x64xbf16, #tpu.memory_space<vmem>>, vector<128x64xbf16>,
    } else {
    }
    return
  }
  func.func @transform_0(%arg0: i32, %arg1: i32, %arg2: i32) -> (i32, i32) {
    %c0_i32 = arith.constant 0 : i32
    return %arg0, %arg2 : i32, i32
  }
  func.func @transform_1(%arg0: i32, %arg1: i32, %arg2: i32) -> (i32, i32) {
    %c0_i32 = arith.constant 0 : i32
    return %arg2, %arg1 : i32, i32
  }
  func.func @transform_2(%arg0: i32, %arg1: i32, %arg2: i32) -> (i32, i32) {
    %c0_i32 = arith.constant 0 : i32
    %c0_i32_0 = arith.constant 0 : i32
    return %c0_i32, %arg1 : i32, i32
  }
  func.func @transform_3(%arg0: i32, %arg1: i32, %arg2: i32) -> (i32, i32) {
    %c0_i32 = arith.constant 0 : i32
    return %arg0, %arg1 : i32, i32
  }
}

module attributes {stable_mosaic.version = 11 : i64} {
  func.func @_mm_bias_kernel(%arg0: i32, %arg1: i32, %arg2: i32, %arg3: memref<128x576xbf16, #tpu.memory_space<vmem>>, %arg4: memref<576x64xbf16, #tpu.memory_space<vmem>>, %arg5: memref<1x64xf32, #tpu.memory_space<vmem>>, %arg6: memref<128x64xbf16, #tpu.memory_space<vmem>>, %arg7: memref<128x64xbf16, #tpu.memory_space<vmem>>, %arg8: memref<128x64xf32, #tpu.memory_space<vmem>>) attributes {dimension_semantics = [#tpu.dimension_semantics<parallel>, #tpu.dimension_semantics<parallel>, #tpu.dimension_semantics<arbitrary>], iteration_bounds = array<i64: 1, 1, 1>, scalar_prefetch = 0 : i64, scratch_operands = 1 : i64, tpu.core_type = #tpu.core_type<tc>, window_params = [{transform_indices = @transform_0, window_bounds = array<i64: 128, 576>}, {transform_indices = @transform_1, window_bounds = array<i64: 576, 64>}, {transform_indices = @transform_2, window_bounds = array<i64: 1, 64>}, {transform_indices = @transform_3, window_bounds = array<i64: 128, 64>}, {transform_indices = @transform_4, window_bounds = array<i64: 128, 64>}]} {
    %c0_i32 = arith.constant 0 : i32
    %0 = arith.cmpi eq, %arg2, %c0_i32 : i32
    %1 = arith.extui %0 : i1 to i32
    %c0_i32_0 = arith.constant 0 : i32
    %2 = arith.cmpi ne, %1, %c0_i32_0 : i32
    scf.if %2 {
      %cst_10 = arith.constant 0.000000e+00 : f32
      %12 = vector.broadcast %cst_10 : f32 to vector<128x64xf32>
      %c0_11 = arith.constant 0 : index
      %c0_12 = arith.constant 0 : index
      %13 = vector.load %arg8[%c0_11, %c0_12] : memref<128x64xf32, #tpu.memory_space<vmem>>, vector<128x64xf32>
      tpu.vector_store %arg8[%c0_11, %c0_12], %12 {strides = array<i32>} : memref<128x64xf32, #tpu.memory_space<vmem>>, vector<128x64xf32>,
    } else {
    }
    %c0 = arith.constant 0 : index
    %c0_1 = arith.constant 0 : index
    %3 = vector.load %arg8[%c0, %c0_1] : memref<128x64xf32, #tpu.memory_space<vmem>>, vector<128x64xf32>
    %c0_2 = arith.constant 0 : index
    %c0_3 = arith.constant 0 : index
    %4 = vector.load %arg3[%c0_2, %c0_3] : memref<128x576xbf16, #tpu.memory_space<vmem>>, vector<128x576xbf16>
    %c0_4 = arith.constant 0 : index
    %c0_5 = arith.constant 0 : index
    %5 = vector.load %arg4[%c0_4, %c0_5] : memref<576x64xbf16, #tpu.memory_space<vmem>>, vector<576x64xbf16>
    %cst = arith.constant dense<0.000000e+00> : vector<128x64xf32>
    %6 = tpu.matmul %4, %5, %cst {dimension_numbers = #tpu.dot_dimension_numbers<[1], [0], [0], [1], [0, 0, 1, 1], [], []>} : vector<128x576xbf16>, vector<576x64xbf16>, vector<128x64xf32> -> vector<128x64xf32>
    %7 = arith.addf %3, %6 : vector<128x64xf32>
    %c0_6 = arith.constant 0 : index
    %c0_7 = arith.constant 0 : index
    %8 = vector.load %arg8[%c0_6, %c0_7] : memref<128x64xf32, #tpu.memory_space<vmem>>, vector<128x64xf32>
    tpu.vector_store %arg8[%c0_6, %c0_7], %7 {strides = array<i32>} : memref<128x64xf32, #tpu.memory_space<vmem>>, vector<128x64xf32>,
    %c0_i32_8 = arith.constant 0 : i32
    %9 = arith.cmpi eq, %arg2, %c0_i32_8 : i32
    %10 = arith.extui %9 : i1 to i32
    %c0_i32_9 = arith.constant 0 : i32
    %11 = arith.cmpi ne, %10, %c0_i32_9 : i32
    scf.if %11 {
      %c0_10 = arith.constant 0 : index
      %c0_11 = arith.constant 0 : index
      %12 = vector.load %arg8[%c0_10, %c0_11] : memref<128x64xf32, #tpu.memory_space<vmem>>, vector<128x64xf32>
      %c0_12 = arith.constant 0 : index
      %c0_13 = arith.constant 0 : index
      %13 = vector.load %arg5[%c0_12, %c0_13] : memref<1x64xf32, #tpu.memory_space<vmem>>, vector<1x64xf32>
      %14 = vector.broadcast %13 : vector<1x64xf32> to vector<128x64xf32>
      %15 = arith.addf %12, %14 : vector<128x64xf32>
      %c0_14 = arith.constant 0 : index
      %c0_15 = arith.constant 0 : index
      %16 = vector.load %arg6[%c0_14, %c0_15] : memref<128x64xbf16, #tpu.memory_space<vmem>>, vector<128x64xbf16>
      %17 = arith.extf %16 : vector<128x64xbf16> to vector<128x64xf32>
      %18 = arith.addf %15, %17 : vector<128x64xf32>
      %cst_16 = arith.constant 0.000000e+00 : f32
      %19 = vector.broadcast %cst_16 : f32 to vector<128x64xf32>
      %20 = arith.maximumf %18, %19 : vector<128x64xf32>
      %21 = arith.truncf %20 : vector<128x64xf32> to vector<128x64xbf16>
      %c0_17 = arith.constant 0 : index
      %c0_18 = arith.constant 0 : index
      %22 = vector.load %arg7[%c0_17, %c0_18] : memref<128x64xbf16, #tpu.memory_space<vmem>>, vector<128x64xbf16>
      tpu.vector_store %arg7[%c0_17, %c0_18], %21 {strides = array<i32>} : memref<128x64xbf16, #tpu.memory_space<vmem>>, vector<128x64xbf16>,
    } else {
    }
    return
  }
  func.func @transform_0(%arg0: i32, %arg1: i32, %arg2: i32) -> (i32, i32) {
    %c0_i32 = arith.constant 0 : i32
    return %arg0, %arg2 : i32, i32
  }
  func.func @transform_1(%arg0: i32, %arg1: i32, %arg2: i32) -> (i32, i32) {
    %c0_i32 = arith.constant 0 : i32
    return %arg2, %arg1 : i32, i32
  }
  func.func @transform_2(%arg0: i32, %arg1: i32, %arg2: i32) -> (i32, i32) {
    %c0_i32 = arith.constant 0 : i32
    %c0_i32_0 = arith.constant 0 : i32
    return %c0_i32, %arg1 : i32, i32
  }
  func.func @transform_3(%arg0: i32, %arg1: i32, %arg2: i32) -> (i32, i32) {
    %c0_i32 = arith.constant 0 : i32
    return %arg0, %arg1 : i32, i32
  }
  func.func @transform_4(%arg0: i32, %arg1: i32, %arg2: i32) -> (i32, i32) {
    %c0_i32 = arith.constant 0 : i32
    return %arg0, %arg1 : i32, i32
  }
}

module attributes {stable_mosaic.version = 11 : i64} {
  func.func @_mm_bias_kernel(%arg0: i32, %arg1: i32, %arg2: i32, %arg3: memref<32x576xbf16, #tpu.memory_space<vmem>>, %arg4: memref<576x128xbf16, #tpu.memory_space<vmem>>, %arg5: memref<1x128xf32, #tpu.memory_space<vmem>>, %arg6: memref<32x128xbf16, #tpu.memory_space<vmem>>, %arg7: memref<32x128xf32, #tpu.memory_space<vmem>>) attributes {dimension_semantics = [#tpu.dimension_semantics<parallel>, #tpu.dimension_semantics<parallel>, #tpu.dimension_semantics<arbitrary>], iteration_bounds = array<i64: 1, 1, 1>, scalar_prefetch = 0 : i64, scratch_operands = 1 : i64, tpu.core_type = #tpu.core_type<tc>, window_params = [{transform_indices = @transform_0, window_bounds = array<i64: 32, 576>}, {transform_indices = @transform_1, window_bounds = array<i64: 576, 128>}, {transform_indices = @transform_2, window_bounds = array<i64: 1, 128>}, {transform_indices = @transform_3, window_bounds = array<i64: 32, 128>}]} {
    %c0_i32 = arith.constant 0 : i32
    %0 = arith.cmpi eq, %arg2, %c0_i32 : i32
    %1 = arith.extui %0 : i1 to i32
    %c0_i32_0 = arith.constant 0 : i32
    %2 = arith.cmpi ne, %1, %c0_i32_0 : i32
    scf.if %2 {
      %cst_10 = arith.constant 0.000000e+00 : f32
      %12 = vector.broadcast %cst_10 : f32 to vector<32x128xf32>
      %c0_11 = arith.constant 0 : index
      %c0_12 = arith.constant 0 : index
      %13 = vector.load %arg7[%c0_11, %c0_12] : memref<32x128xf32, #tpu.memory_space<vmem>>, vector<32x128xf32>
      tpu.vector_store %arg7[%c0_11, %c0_12], %12 {strides = array<i32>} : memref<32x128xf32, #tpu.memory_space<vmem>>, vector<32x128xf32>,
    } else {
    }
    %c0 = arith.constant 0 : index
    %c0_1 = arith.constant 0 : index
    %3 = vector.load %arg7[%c0, %c0_1] : memref<32x128xf32, #tpu.memory_space<vmem>>, vector<32x128xf32>
    %c0_2 = arith.constant 0 : index
    %c0_3 = arith.constant 0 : index
    %4 = vector.load %arg3[%c0_2, %c0_3] : memref<32x576xbf16, #tpu.memory_space<vmem>>, vector<32x576xbf16>
    %c0_4 = arith.constant 0 : index
    %c0_5 = arith.constant 0 : index
    %5 = vector.load %arg4[%c0_4, %c0_5] : memref<576x128xbf16, #tpu.memory_space<vmem>>, vector<576x128xbf16>
    %cst = arith.constant dense<0.000000e+00> : vector<32x128xf32>
    %6 = tpu.matmul %4, %5, %cst {dimension_numbers = #tpu.dot_dimension_numbers<[1], [0], [0], [1], [0, 0, 1, 1], [], []>} : vector<32x576xbf16>, vector<576x128xbf16>, vector<32x128xf32> -> vector<32x128xf32>
    %7 = arith.addf %3, %6 : vector<32x128xf32>
    %c0_6 = arith.constant 0 : index
    %c0_7 = arith.constant 0 : index
    %8 = vector.load %arg7[%c0_6, %c0_7] : memref<32x128xf32, #tpu.memory_space<vmem>>, vector<32x128xf32>
    tpu.vector_store %arg7[%c0_6, %c0_7], %7 {strides = array<i32>} : memref<32x128xf32, #tpu.memory_space<vmem>>, vector<32x128xf32>,
    %c0_i32_8 = arith.constant 0 : i32
    %9 = arith.cmpi eq, %arg2, %c0_i32_8 : i32
    %10 = arith.extui %9 : i1 to i32
    %c0_i32_9 = arith.constant 0 : i32
    %11 = arith.cmpi ne, %10, %c0_i32_9 : i32
    scf.if %11 {
      %c0_10 = arith.constant 0 : index
      %c0_11 = arith.constant 0 : index
      %12 = vector.load %arg7[%c0_10, %c0_11] : memref<32x128xf32, #tpu.memory_space<vmem>>, vector<32x128xf32>
      %c0_12 = arith.constant 0 : index
      %c0_13 = arith.constant 0 : index
      %13 = vector.load %arg5[%c0_12, %c0_13] : memref<1x128xf32, #tpu.memory_space<vmem>>, vector<1x128xf32>
      %14 = vector.broadcast %13 : vector<1x128xf32> to vector<32x128xf32>
      %15 = arith.addf %12, %14 : vector<32x128xf32>
      %cst_14 = arith.constant 0.000000e+00 : f32
      %16 = vector.broadcast %cst_14 : f32 to vector<32x128xf32>
      %17 = arith.maximumf %15, %16 : vector<32x128xf32>
      %18 = arith.truncf %17 : vector<32x128xf32> to vector<32x128xbf16>
      %c0_15 = arith.constant 0 : index
      %c0_16 = arith.constant 0 : index
      %19 = vector.load %arg6[%c0_15, %c0_16] : memref<32x128xbf16, #tpu.memory_space<vmem>>, vector<32x128xbf16>
      tpu.vector_store %arg6[%c0_15, %c0_16], %18 {strides = array<i32>} : memref<32x128xbf16, #tpu.memory_space<vmem>>, vector<32x128xbf16>,
    } else {
    }
    return
  }
  func.func @transform_0(%arg0: i32, %arg1: i32, %arg2: i32) -> (i32, i32) {
    %c0_i32 = arith.constant 0 : i32
    return %arg0, %arg2 : i32, i32
  }
  func.func @transform_1(%arg0: i32, %arg1: i32, %arg2: i32) -> (i32, i32) {
    %c0_i32 = arith.constant 0 : i32
    return %arg2, %arg1 : i32, i32
  }
  func.func @transform_2(%arg0: i32, %arg1: i32, %arg2: i32) -> (i32, i32) {
    %c0_i32 = arith.constant 0 : i32
    %c0_i32_0 = arith.constant 0 : i32
    return %c0_i32, %arg1 : i32, i32
  }
  func.func @transform_3(%arg0: i32, %arg1: i32, %arg2: i32) -> (i32, i32) {
    %c0_i32 = arith.constant 0 : i32
    return %arg0, %arg1 : i32, i32
  }
}

module attributes {stable_mosaic.version = 11 : i64} {
  func.func @_mm_bias_kernel(%arg0: i32, %arg1: i32, %arg2: i32, %arg3: memref<32x384xbf16, #tpu.memory_space<vmem>>, %arg4: memref<384x128xbf16, #tpu.memory_space<vmem>>, %arg5: memref<1x128xf32, #tpu.memory_space<vmem>>, %arg6: memref<32x128xbf16, #tpu.memory_space<vmem>>, %arg7: memref<32x128xf32, #tpu.memory_space<vmem>>) attributes {dimension_semantics = [#tpu.dimension_semantics<parallel>, #tpu.dimension_semantics<parallel>, #tpu.dimension_semantics<arbitrary>], iteration_bounds = array<i64: 1, 1, 3>, scalar_prefetch = 0 : i64, scratch_operands = 1 : i64, tpu.core_type = #tpu.core_type<tc>, window_params = [{transform_indices = @transform_0, window_bounds = array<i64: 32, 384>}, {transform_indices = @transform_1, window_bounds = array<i64: 384, 128>}, {transform_indices = @transform_2, window_bounds = array<i64: 1, 128>}, {transform_indices = @transform_3, window_bounds = array<i64: 32, 128>}]} {
    %c0_i32 = arith.constant 0 : i32
    %0 = arith.cmpi eq, %arg2, %c0_i32 : i32
    %1 = arith.extui %0 : i1 to i32
    %c0_i32_0 = arith.constant 0 : i32
    %2 = arith.cmpi ne, %1, %c0_i32_0 : i32
    scf.if %2 {
      %cst_9 = arith.constant 0.000000e+00 : f32
      %12 = vector.broadcast %cst_9 : f32 to vector<32x128xf32>
      %c0_10 = arith.constant 0 : index
      %c0_11 = arith.constant 0 : index
      %13 = vector.load %arg7[%c0_10, %c0_11] : memref<32x128xf32, #tpu.memory_space<vmem>>, vector<32x128xf32>
      tpu.vector_store %arg7[%c0_10, %c0_11], %12 {strides = array<i32>} : memref<32x128xf32, #tpu.memory_space<vmem>>, vector<32x128xf32>,
    } else {
    }
    %c0 = arith.constant 0 : index
    %c0_1 = arith.constant 0 : index
    %3 = vector.load %arg7[%c0, %c0_1] : memref<32x128xf32, #tpu.memory_space<vmem>>, vector<32x128xf32>
    %c0_2 = arith.constant 0 : index
    %c0_3 = arith.constant 0 : index
    %4 = vector.load %arg3[%c0_2, %c0_3] : memref<32x384xbf16, #tpu.memory_space<vmem>>, vector<32x384xbf16>
    %c0_4 = arith.constant 0 : index
    %c0_5 = arith.constant 0 : index
    %5 = vector.load %arg4[%c0_4, %c0_5] : memref<384x128xbf16, #tpu.memory_space<vmem>>, vector<384x128xbf16>
    %cst = arith.constant dense<0.000000e+00> : vector<32x128xf32>
    %6 = tpu.matmul %4, %5, %cst {dimension_numbers = #tpu.dot_dimension_numbers<[1], [0], [0], [1], [0, 0, 1, 1], [], []>} : vector<32x384xbf16>, vector<384x128xbf16>, vector<32x128xf32> -> vector<32x128xf32>
    %7 = arith.addf %3, %6 : vector<32x128xf32>
    %c0_6 = arith.constant 0 : index
    %c0_7 = arith.constant 0 : index
    %8 = vector.load %arg7[%c0_6, %c0_7] : memref<32x128xf32, #tpu.memory_space<vmem>>, vector<32x128xf32>
    tpu.vector_store %arg7[%c0_6, %c0_7], %7 {strides = array<i32>} : memref<32x128xf32, #tpu.memory_space<vmem>>, vector<32x128xf32>,
    %c2_i32 = arith.constant 2 : i32
    %9 = arith.cmpi eq, %arg2, %c2_i32 : i32
    %10 = arith.extui %9 : i1 to i32
    %c0_i32_8 = arith.constant 0 : i32
    %11 = arith.cmpi ne, %10, %c0_i32_8 : i32
    scf.if %11 {
      %c0_9 = arith.constant 0 : index
      %c0_10 = arith.constant 0 : index
      %12 = vector.load %arg7[%c0_9, %c0_10] : memref<32x128xf32, #tpu.memory_space<vmem>>, vector<32x128xf32>
      %c0_11 = arith.constant 0 : index
      %c0_12 = arith.constant 0 : index
      %13 = vector.load %arg5[%c0_11, %c0_12] : memref<1x128xf32, #tpu.memory_space<vmem>>, vector<1x128xf32>
      %14 = vector.broadcast %13 : vector<1x128xf32> to vector<32x128xf32>
      %15 = arith.addf %12, %14 : vector<32x128xf32>
      %cst_13 = arith.constant 0.000000e+00 : f32
      %16 = vector.broadcast %cst_13 : f32 to vector<32x128xf32>
      %17 = arith.maximumf %15, %16 : vector<32x128xf32>
      %18 = arith.truncf %17 : vector<32x128xf32> to vector<32x128xbf16>
      %c0_14 = arith.constant 0 : index
      %c0_15 = arith.constant 0 : index
      %19 = vector.load %arg6[%c0_14, %c0_15] : memref<32x128xbf16, #tpu.memory_space<vmem>>, vector<32x128xbf16>
      tpu.vector_store %arg6[%c0_14, %c0_15], %18 {strides = array<i32>} : memref<32x128xbf16, #tpu.memory_space<vmem>>, vector<32x128xbf16>,
    } else {
    }
    return
  }
  func.func @transform_0(%arg0: i32, %arg1: i32, %arg2: i32) -> (i32, i32) {
    %c0_i32 = arith.constant 0 : i32
    return %arg0, %arg2 : i32, i32
  }
  func.func @transform_1(%arg0: i32, %arg1: i32, %arg2: i32) -> (i32, i32) {
    %c0_i32 = arith.constant 0 : i32
    return %arg2, %arg1 : i32, i32
  }
  func.func @transform_2(%arg0: i32, %arg1: i32, %arg2: i32) -> (i32, i32) {
    %c0_i32 = arith.constant 0 : i32
    %c0_i32_0 = arith.constant 0 : i32
    return %c0_i32, %arg1 : i32, i32
  }
  func.func @transform_3(%arg0: i32, %arg1: i32, %arg2: i32) -> (i32, i32) {
    %c0_i32 = arith.constant 0 : i32
    return %arg0, %arg1 : i32, i32
  }
}

module attributes {stable_mosaic.version = 11 : i64} {
  func.func @_mm_bias_kernel(%arg0: i32, %arg1: i32, %arg2: i32, %arg3: memref<32x384xbf16, #tpu.memory_space<vmem>>, %arg4: memref<384x128xbf16, #tpu.memory_space<vmem>>, %arg5: memref<1x128xf32, #tpu.memory_space<vmem>>, %arg6: memref<32x128xbf16, #tpu.memory_space<vmem>>, %arg7: memref<32x128xbf16, #tpu.memory_space<vmem>>, %arg8: memref<32x128xf32, #tpu.memory_space<vmem>>) attributes {dimension_semantics = [#tpu.dimension_semantics<parallel>, #tpu.dimension_semantics<parallel>, #tpu.dimension_semantics<arbitrary>], iteration_bounds = array<i64: 1, 1, 3>, scalar_prefetch = 0 : i64, scratch_operands = 1 : i64, tpu.core_type = #tpu.core_type<tc>, window_params = [{transform_indices = @transform_0, window_bounds = array<i64: 32, 384>}, {transform_indices = @transform_1, window_bounds = array<i64: 384, 128>}, {transform_indices = @transform_2, window_bounds = array<i64: 1, 128>}, {transform_indices = @transform_3, window_bounds = array<i64: 32, 128>}, {transform_indices = @transform_4, window_bounds = array<i64: 32, 128>}]} {
    %c0_i32 = arith.constant 0 : i32
    %0 = arith.cmpi eq, %arg2, %c0_i32 : i32
    %1 = arith.extui %0 : i1 to i32
    %c0_i32_0 = arith.constant 0 : i32
    %2 = arith.cmpi ne, %1, %c0_i32_0 : i32
    scf.if %2 {
      %cst_9 = arith.constant 0.000000e+00 : f32
      %12 = vector.broadcast %cst_9 : f32 to vector<32x128xf32>
      %c0_10 = arith.constant 0 : index
      %c0_11 = arith.constant 0 : index
      %13 = vector.load %arg8[%c0_10, %c0_11] : memref<32x128xf32, #tpu.memory_space<vmem>>, vector<32x128xf32>
      tpu.vector_store %arg8[%c0_10, %c0_11], %12 {strides = array<i32>} : memref<32x128xf32, #tpu.memory_space<vmem>>, vector<32x128xf32>,
    } else {
    }
    %c0 = arith.constant 0 : index
    %c0_1 = arith.constant 0 : index
    %3 = vector.load %arg8[%c0, %c0_1] : memref<32x128xf32, #tpu.memory_space<vmem>>, vector<32x128xf32>
    %c0_2 = arith.constant 0 : index
    %c0_3 = arith.constant 0 : index
    %4 = vector.load %arg3[%c0_2, %c0_3] : memref<32x384xbf16, #tpu.memory_space<vmem>>, vector<32x384xbf16>
    %c0_4 = arith.constant 0 : index
    %c0_5 = arith.constant 0 : index
    %5 = vector.load %arg4[%c0_4, %c0_5] : memref<384x128xbf16, #tpu.memory_space<vmem>>, vector<384x128xbf16>
    %cst = arith.constant dense<0.000000e+00> : vector<32x128xf32>
    %6 = tpu.matmul %4, %5, %cst {dimension_numbers = #tpu.dot_dimension_numbers<[1], [0], [0], [1], [0, 0, 1, 1], [], []>} : vector<32x384xbf16>, vector<384x128xbf16>, vector<32x128xf32> -> vector<32x128xf32>
    %7 = arith.addf %3, %6 : vector<32x128xf32>
    %c0_6 = arith.constant 0 : index
    %c0_7 = arith.constant 0 : index
    %8 = vector.load %arg8[%c0_6, %c0_7] : memref<32x128xf32, #tpu.memory_space<vmem>>, vector<32x128xf32>
    tpu.vector_store %arg8[%c0_6, %c0_7], %7 {strides = array<i32>} : memref<32x128xf32, #tpu.memory_space<vmem>>, vector<32x128xf32>,
    %c2_i32 = arith.constant 2 : i32
    %9 = arith.cmpi eq, %arg2, %c2_i32 : i32
    %10 = arith.extui %9 : i1 to i32
    %c0_i32_8 = arith.constant 0 : i32
    %11 = arith.cmpi ne, %10, %c0_i32_8 : i32
    scf.if %11 {
      %c0_9 = arith.constant 0 : index
      %c0_10 = arith.constant 0 : index
      %12 = vector.load %arg8[%c0_9, %c0_10] : memref<32x128xf32, #tpu.memory_space<vmem>>, vector<32x128xf32>
      %c0_11 = arith.constant 0 : index
      %c0_12 = arith.constant 0 : index
      %13 = vector.load %arg5[%c0_11, %c0_12] : memref<1x128xf32, #tpu.memory_space<vmem>>, vector<1x128xf32>
      %14 = vector.broadcast %13 : vector<1x128xf32> to vector<32x128xf32>
      %15 = arith.addf %12, %14 : vector<32x128xf32>
      %c0_13 = arith.constant 0 : index
      %c0_14 = arith.constant 0 : index
      %16 = vector.load %arg6[%c0_13, %c0_14] : memref<32x128xbf16, #tpu.memory_space<vmem>>, vector<32x128xbf16>
      %17 = arith.extf %16 : vector<32x128xbf16> to vector<32x128xf32>
      %18 = arith.addf %15, %17 : vector<32x128xf32>
      %cst_15 = arith.constant 0.000000e+00 : f32
      %19 = vector.broadcast %cst_15 : f32 to vector<32x128xf32>
      %20 = arith.maximumf %18, %19 : vector<32x128xf32>
      %21 = arith.truncf %20 : vector<32x128xf32> to vector<32x128xbf16>
      %c0_16 = arith.constant 0 : index
      %c0_17 = arith.constant 0 : index
      %22 = vector.load %arg7[%c0_16, %c0_17] : memref<32x128xbf16, #tpu.memory_space<vmem>>, vector<32x128xbf16>
      tpu.vector_store %arg7[%c0_16, %c0_17], %21 {strides = array<i32>} : memref<32x128xbf16, #tpu.memory_space<vmem>>, vector<32x128xbf16>,
    } else {
    }
    return
  }
  func.func @transform_0(%arg0: i32, %arg1: i32, %arg2: i32) -> (i32, i32) {
    %c0_i32 = arith.constant 0 : i32
    return %arg0, %arg2 : i32, i32
  }
  func.func @transform_1(%arg0: i32, %arg1: i32, %arg2: i32) -> (i32, i32) {
    %c0_i32 = arith.constant 0 : i32
    return %arg2, %arg1 : i32, i32
  }
  func.func @transform_2(%arg0: i32, %arg1: i32, %arg2: i32) -> (i32, i32) {
    %c0_i32 = arith.constant 0 : i32
    %c0_i32_0 = arith.constant 0 : i32
    return %c0_i32, %arg1 : i32, i32
  }
  func.func @transform_3(%arg0: i32, %arg1: i32, %arg2: i32) -> (i32, i32) {
    %c0_i32 = arith.constant 0 : i32
    return %arg0, %arg1 : i32, i32
  }
  func.func @transform_4(%arg0: i32, %arg1: i32, %arg2: i32) -> (i32, i32) {
    %c0_i32 = arith.constant 0 : i32
    return %arg0, %arg1 : i32, i32
  }
}

module attributes {stable_mosaic.version = 11 : i64} {
  func.func @_mm_bias_kernel(%arg0: i32, %arg1: i32, %arg2: i32, %arg3: memref<32x64xbf16, #tpu.memory_space<vmem>>, %arg4: memref<64x128xbf16, #tpu.memory_space<vmem>>, %arg5: memref<1x128xf32, #tpu.memory_space<vmem>>, %arg6: memref<32x128xbf16, #tpu.memory_space<vmem>>, %arg7: memref<32x128xf32, #tpu.memory_space<vmem>>) attributes {dimension_semantics = [#tpu.dimension_semantics<parallel>, #tpu.dimension_semantics<parallel>, #tpu.dimension_semantics<arbitrary>], iteration_bounds = array<i64: 1, 1, 1>, scalar_prefetch = 0 : i64, scratch_operands = 1 : i64, tpu.core_type = #tpu.core_type<tc>, window_params = [{transform_indices = @transform_0, window_bounds = array<i64: 32, 64>}, {transform_indices = @transform_1, window_bounds = array<i64: 64, 128>}, {transform_indices = @transform_2, window_bounds = array<i64: 1, 128>}, {transform_indices = @transform_3, window_bounds = array<i64: 32, 128>}]} {
    %c0_i32 = arith.constant 0 : i32
    %0 = arith.cmpi eq, %arg2, %c0_i32 : i32
    %1 = arith.extui %0 : i1 to i32
    %c0_i32_0 = arith.constant 0 : i32
    %2 = arith.cmpi ne, %1, %c0_i32_0 : i32
    scf.if %2 {
      %cst_10 = arith.constant 0.000000e+00 : f32
      %12 = vector.broadcast %cst_10 : f32 to vector<32x128xf32>
      %c0_11 = arith.constant 0 : index
      %c0_12 = arith.constant 0 : index
      %13 = vector.load %arg7[%c0_11, %c0_12] : memref<32x128xf32, #tpu.memory_space<vmem>>, vector<32x128xf32>
      tpu.vector_store %arg7[%c0_11, %c0_12], %12 {strides = array<i32>} : memref<32x128xf32, #tpu.memory_space<vmem>>, vector<32x128xf32>,
    } else {
    }
    %c0 = arith.constant 0 : index
    %c0_1 = arith.constant 0 : index
    %3 = vector.load %arg7[%c0, %c0_1] : memref<32x128xf32, #tpu.memory_space<vmem>>, vector<32x128xf32>
    %c0_2 = arith.constant 0 : index
    %c0_3 = arith.constant 0 : index
    %4 = vector.load %arg3[%c0_2, %c0_3] : memref<32x64xbf16, #tpu.memory_space<vmem>>, vector<32x64xbf16>
    %c0_4 = arith.constant 0 : index
    %c0_5 = arith.constant 0 : index
    %5 = vector.load %arg4[%c0_4, %c0_5] : memref<64x128xbf16, #tpu.memory_space<vmem>>, vector<64x128xbf16>
    %cst = arith.constant dense<0.000000e+00> : vector<32x128xf32>
    %6 = tpu.matmul %4, %5, %cst {dimension_numbers = #tpu.dot_dimension_numbers<[1], [0], [0], [1], [0, 0, 1, 1], [], []>} : vector<32x64xbf16>, vector<64x128xbf16>, vector<32x128xf32> -> vector<32x128xf32>
    %7 = arith.addf %3, %6 : vector<32x128xf32>
    %c0_6 = arith.constant 0 : index
    %c0_7 = arith.constant 0 : index
    %8 = vector.load %arg7[%c0_6, %c0_7] : memref<32x128xf32, #tpu.memory_space<vmem>>, vector<32x128xf32>
    tpu.vector_store %arg7[%c0_6, %c0_7], %7 {strides = array<i32>} : memref<32x128xf32, #tpu.memory_space<vmem>>, vector<32x128xf32>,
    %c0_i32_8 = arith.constant 0 : i32
    %9 = arith.cmpi eq, %arg2, %c0_i32_8 : i32
    %10 = arith.extui %9 : i1 to i32
    %c0_i32_9 = arith.constant 0 : i32
    %11 = arith.cmpi ne, %10, %c0_i32_9 : i32
    scf.if %11 {
      %c0_10 = arith.constant 0 : index
      %c0_11 = arith.constant 0 : index
      %12 = vector.load %arg7[%c0_10, %c0_11] : memref<32x128xf32, #tpu.memory_space<vmem>>, vector<32x128xf32>
      %c0_12 = arith.constant 0 : index
      %c0_13 = arith.constant 0 : index
      %13 = vector.load %arg5[%c0_12, %c0_13] : memref<1x128xf32, #tpu.memory_space<vmem>>, vector<1x128xf32>
      %14 = vector.broadcast %13 : vector<1x128xf32> to vector<32x128xf32>
      %15 = arith.addf %12, %14 : vector<32x128xf32>
      %16 = arith.truncf %15 : vector<32x128xf32> to vector<32x128xbf16>
      %c0_14 = arith.constant 0 : index
      %c0_15 = arith.constant 0 : index
      %17 = vector.load %arg6[%c0_14, %c0_15] : memref<32x128xbf16, #tpu.memory_space<vmem>>, vector<32x128xbf16>
      tpu.vector_store %arg6[%c0_14, %c0_15], %16 {strides = array<i32>} : memref<32x128xbf16, #tpu.memory_space<vmem>>, vector<32x128xbf16>,
    } else {
    }
    return
  }
  func.func @transform_0(%arg0: i32, %arg1: i32, %arg2: i32) -> (i32, i32) {
    %c0_i32 = arith.constant 0 : i32
    return %arg0, %arg2 : i32, i32
  }
  func.func @transform_1(%arg0: i32, %arg1: i32, %arg2: i32) -> (i32, i32) {
    %c0_i32 = arith.constant 0 : i32
    return %arg2, %arg1 : i32, i32
  }
  func.func @transform_2(%arg0: i32, %arg1: i32, %arg2: i32) -> (i32, i32) {
    %c0_i32 = arith.constant 0 : i32
    %c0_i32_0 = arith.constant 0 : i32
    return %c0_i32, %arg1 : i32, i32
  }
  func.func @transform_3(%arg0: i32, %arg1: i32, %arg2: i32) -> (i32, i32) {
    %c0_i32 = arith.constant 0 : i32
    return %arg0, %arg1 : i32, i32
  }
}

module attributes {stable_mosaic.version = 11 : i64} {
  func.func @_mm_bias_kernel(%arg0: i32, %arg1: i32, %arg2: i32, %arg3: memref<16x384xbf16, #tpu.memory_space<vmem>>, %arg4: memref<384x256xbf16, #tpu.memory_space<vmem>>, %arg5: memref<1x256xf32, #tpu.memory_space<vmem>>, %arg6: memref<16x256xbf16, #tpu.memory_space<vmem>>, %arg7: memref<16x256xf32, #tpu.memory_space<vmem>>) attributes {dimension_semantics = [#tpu.dimension_semantics<parallel>, #tpu.dimension_semantics<parallel>, #tpu.dimension_semantics<arbitrary>], iteration_bounds = array<i64: 1, 1, 3>, scalar_prefetch = 0 : i64, scratch_operands = 1 : i64, tpu.core_type = #tpu.core_type<tc>, window_params = [{transform_indices = @transform_0, window_bounds = array<i64: 16, 384>}, {transform_indices = @transform_1, window_bounds = array<i64: 384, 256>}, {transform_indices = @transform_2, window_bounds = array<i64: 1, 256>}, {transform_indices = @transform_3, window_bounds = array<i64: 16, 256>}]} {
    %c0_i32 = arith.constant 0 : i32
    %0 = arith.cmpi eq, %arg2, %c0_i32 : i32
    %1 = arith.extui %0 : i1 to i32
    %c0_i32_0 = arith.constant 0 : i32
    %2 = arith.cmpi ne, %1, %c0_i32_0 : i32
    scf.if %2 {
      %cst_9 = arith.constant 0.000000e+00 : f32
      %12 = vector.broadcast %cst_9 : f32 to vector<16x256xf32>
      %c0_10 = arith.constant 0 : index
      %c0_11 = arith.constant 0 : index
      %13 = vector.load %arg7[%c0_10, %c0_11] : memref<16x256xf32, #tpu.memory_space<vmem>>, vector<16x256xf32>
      tpu.vector_store %arg7[%c0_10, %c0_11], %12 {strides = array<i32>} : memref<16x256xf32, #tpu.memory_space<vmem>>, vector<16x256xf32>,
    } else {
    }
    %c0 = arith.constant 0 : index
    %c0_1 = arith.constant 0 : index
    %3 = vector.load %arg7[%c0, %c0_1] : memref<16x256xf32, #tpu.memory_space<vmem>>, vector<16x256xf32>
    %c0_2 = arith.constant 0 : index
    %c0_3 = arith.constant 0 : index
    %4 = vector.load %arg3[%c0_2, %c0_3] : memref<16x384xbf16, #tpu.memory_space<vmem>>, vector<16x384xbf16>
    %c0_4 = arith.constant 0 : index
    %c0_5 = arith.constant 0 : index
    %5 = vector.load %arg4[%c0_4, %c0_5] : memref<384x256xbf16, #tpu.memory_space<vmem>>, vector<384x256xbf16>
    %cst = arith.constant dense<0.000000e+00> : vector<16x256xf32>
    %6 = tpu.matmul %4, %5, %cst {dimension_numbers = #tpu.dot_dimension_numbers<[1], [0], [0], [1], [0, 0, 1, 1], [], []>} : vector<16x384xbf16>, vector<384x256xbf16>, vector<16x256xf32> -> vector<16x256xf32>
    %7 = arith.addf %3, %6 : vector<16x256xf32>
    %c0_6 = arith.constant 0 : index
    %c0_7 = arith.constant 0 : index
    %8 = vector.load %arg7[%c0_6, %c0_7] : memref<16x256xf32, #tpu.memory_space<vmem>>, vector<16x256xf32>
    tpu.vector_store %arg7[%c0_6, %c0_7], %7 {strides = array<i32>} : memref<16x256xf32, #tpu.memory_space<vmem>>, vector<16x256xf32>,
    %c2_i32 = arith.constant 2 : i32
    %9 = arith.cmpi eq, %arg2, %c2_i32 : i32
    %10 = arith.extui %9 : i1 to i32
    %c0_i32_8 = arith.constant 0 : i32
    %11 = arith.cmpi ne, %10, %c0_i32_8 : i32
    scf.if %11 {
      %c0_9 = arith.constant 0 : index
      %c0_10 = arith.constant 0 : index
      %12 = vector.load %arg7[%c0_9, %c0_10] : memref<16x256xf32, #tpu.memory_space<vmem>>, vector<16x256xf32>
      %c0_11 = arith.constant 0 : index
      %c0_12 = arith.constant 0 : index
      %13 = vector.load %arg5[%c0_11, %c0_12] : memref<1x256xf32, #tpu.memory_space<vmem>>, vector<1x256xf32>
      %14 = vector.broadcast %13 : vector<1x256xf32> to vector<16x256xf32>
      %15 = arith.addf %12, %14 : vector<16x256xf32>
      %cst_13 = arith.constant 0.000000e+00 : f32
      %16 = vector.broadcast %cst_13 : f32 to vector<16x256xf32>
      %17 = arith.maximumf %15, %16 : vector<16x256xf32>
      %18 = arith.truncf %17 : vector<16x256xf32> to vector<16x256xbf16>
      %c0_14 = arith.constant 0 : index
      %c0_15 = arith.constant 0 : index
      %19 = vector.load %arg6[%c0_14, %c0_15] : memref<16x256xbf16, #tpu.memory_space<vmem>>, vector<16x256xbf16>
      tpu.vector_store %arg6[%c0_14, %c0_15], %18 {strides = array<i32>} : memref<16x256xbf16, #tpu.memory_space<vmem>>, vector<16x256xbf16>,
    } else {
    }
    return
  }
  func.func @transform_0(%arg0: i32, %arg1: i32, %arg2: i32) -> (i32, i32) {
    %c0_i32 = arith.constant 0 : i32
    return %arg0, %arg2 : i32, i32
  }
  func.func @transform_1(%arg0: i32, %arg1: i32, %arg2: i32) -> (i32, i32) {
    %c0_i32 = arith.constant 0 : i32
    return %arg2, %arg1 : i32, i32
  }
  func.func @transform_2(%arg0: i32, %arg1: i32, %arg2: i32) -> (i32, i32) {
    %c0_i32 = arith.constant 0 : i32
    %c0_i32_0 = arith.constant 0 : i32
    return %c0_i32, %arg1 : i32, i32
  }
  func.func @transform_3(%arg0: i32, %arg1: i32, %arg2: i32) -> (i32, i32) {
    %c0_i32 = arith.constant 0 : i32
    return %arg0, %arg1 : i32, i32
  }
}

module attributes {stable_mosaic.version = 11 : i64} {
  func.func @_mm_bias_kernel(%arg0: i32, %arg1: i32, %arg2: i32, %arg3: memref<16x128xbf16, #tpu.memory_space<vmem>>, %arg4: memref<128x256xbf16, #tpu.memory_space<vmem>>, %arg5: memref<1x256xf32, #tpu.memory_space<vmem>>, %arg6: memref<16x256xbf16, #tpu.memory_space<vmem>>, %arg7: memref<16x256xf32, #tpu.memory_space<vmem>>) attributes {dimension_semantics = [#tpu.dimension_semantics<parallel>, #tpu.dimension_semantics<parallel>, #tpu.dimension_semantics<arbitrary>], iteration_bounds = array<i64: 1, 1, 1>, scalar_prefetch = 0 : i64, scratch_operands = 1 : i64, tpu.core_type = #tpu.core_type<tc>, window_params = [{transform_indices = @transform_0, window_bounds = array<i64: 16, 128>}, {transform_indices = @transform_1, window_bounds = array<i64: 128, 256>}, {transform_indices = @transform_2, window_bounds = array<i64: 1, 256>}, {transform_indices = @transform_3, window_bounds = array<i64: 16, 256>}]} {
    %c0_i32 = arith.constant 0 : i32
    %0 = arith.cmpi eq, %arg2, %c0_i32 : i32
    %1 = arith.extui %0 : i1 to i32
    %c0_i32_0 = arith.constant 0 : i32
    %2 = arith.cmpi ne, %1, %c0_i32_0 : i32
    scf.if %2 {
      %cst_10 = arith.constant 0.000000e+00 : f32
      %12 = vector.broadcast %cst_10 : f32 to vector<16x256xf32>
      %c0_11 = arith.constant 0 : index
      %c0_12 = arith.constant 0 : index
      %13 = vector.load %arg7[%c0_11, %c0_12] : memref<16x256xf32, #tpu.memory_space<vmem>>, vector<16x256xf32>
      tpu.vector_store %arg7[%c0_11, %c0_12], %12 {strides = array<i32>} : memref<16x256xf32, #tpu.memory_space<vmem>>, vector<16x256xf32>,
    } else {
    }
    %c0 = arith.constant 0 : index
    %c0_1 = arith.constant 0 : index
    %3 = vector.load %arg7[%c0, %c0_1] : memref<16x256xf32, #tpu.memory_space<vmem>>, vector<16x256xf32>
    %c0_2 = arith.constant 0 : index
    %c0_3 = arith.constant 0 : index
    %4 = vector.load %arg3[%c0_2, %c0_3] : memref<16x128xbf16, #tpu.memory_space<vmem>>, vector<16x128xbf16>
    %c0_4 = arith.constant 0 : index
    %c0_5 = arith.constant 0 : index
    %5 = vector.load %arg4[%c0_4, %c0_5] : memref<128x256xbf16, #tpu.memory_space<vmem>>, vector<128x256xbf16>
    %cst = arith.constant dense<0.000000e+00> : vector<16x256xf32>
    %6 = tpu.matmul %4, %5, %cst {dimension_numbers = #tpu.dot_dimension_numbers<[1], [0], [0], [1], [0, 0, 1, 1], [], []>} : vector<16x128xbf16>, vector<128x256xbf16>, vector<16x256xf32> -> vector<16x256xf32>
    %7 = arith.addf %3, %6 : vector<16x256xf32>
    %c0_6 = arith.constant 0 : index
    %c0_7 = arith.constant 0 : index
    %8 = vector.load %arg7[%c0_6, %c0_7] : memref<16x256xf32, #tpu.memory_space<vmem>>, vector<16x256xf32>
    tpu.vector_store %arg7[%c0_6, %c0_7], %7 {strides = array<i32>} : memref<16x256xf32, #tpu.memory_space<vmem>>, vector<16x256xf32>,
    %c0_i32_8 = arith.constant 0 : i32
    %9 = arith.cmpi eq, %arg2, %c0_i32_8 : i32
    %10 = arith.extui %9 : i1 to i32
    %c0_i32_9 = arith.constant 0 : i32
    %11 = arith.cmpi ne, %10, %c0_i32_9 : i32
    scf.if %11 {
      %c0_10 = arith.constant 0 : index
      %c0_11 = arith.constant 0 : index
      %12 = vector.load %arg7[%c0_10, %c0_11] : memref<16x256xf32, #tpu.memory_space<vmem>>, vector<16x256xf32>
      %c0_12 = arith.constant 0 : index
      %c0_13 = arith.constant 0 : index
      %13 = vector.load %arg5[%c0_12, %c0_13] : memref<1x256xf32, #tpu.memory_space<vmem>>, vector<1x256xf32>
      %14 = vector.broadcast %13 : vector<1x256xf32> to vector<16x256xf32>
      %15 = arith.addf %12, %14 : vector<16x256xf32>
      %16 = arith.truncf %15 : vector<16x256xf32> to vector<16x256xbf16>
      %c0_14 = arith.constant 0 : index
      %c0_15 = arith.constant 0 : index
      %17 = vector.load %arg6[%c0_14, %c0_15] : memref<16x256xbf16, #tpu.memory_space<vmem>>, vector<16x256xbf16>
      tpu.vector_store %arg6[%c0_14, %c0_15], %16 {strides = array<i32>} : memref<16x256xbf16, #tpu.memory_space<vmem>>, vector<16x256xbf16>,
    } else {
    }
    return
  }
  func.func @transform_0(%arg0: i32, %arg1: i32, %arg2: i32) -> (i32, i32) {
    %c0_i32 = arith.constant 0 : i32
    return %arg0, %arg2 : i32, i32
  }
  func.func @transform_1(%arg0: i32, %arg1: i32, %arg2: i32) -> (i32, i32) {
    %c0_i32 = arith.constant 0 : i32
    return %arg2, %arg1 : i32, i32
  }
  func.func @transform_2(%arg0: i32, %arg1: i32, %arg2: i32) -> (i32, i32) {
    %c0_i32 = arith.constant 0 : i32
    %c0_i32_0 = arith.constant 0 : i32
    return %c0_i32, %arg1 : i32, i32
  }
  func.func @transform_3(%arg0: i32, %arg1: i32, %arg2: i32) -> (i32, i32) {
    %c0_i32 = arith.constant 0 : i32
    return %arg0, %arg1 : i32, i32
  }
}

module attributes {stable_mosaic.version = 11 : i64} {
  func.func @_mm_bias_kernel(%arg0: i32, %arg1: i32, %arg2: i32, %arg3: memref<16x768xbf16, #tpu.memory_space<vmem>>, %arg4: memref<768x256xbf16, #tpu.memory_space<vmem>>, %arg5: memref<1x256xf32, #tpu.memory_space<vmem>>, %arg6: memref<16x256xbf16, #tpu.memory_space<vmem>>, %arg7: memref<16x256xbf16, #tpu.memory_space<vmem>>, %arg8: memref<16x256xf32, #tpu.memory_space<vmem>>) attributes {dimension_semantics = [#tpu.dimension_semantics<parallel>, #tpu.dimension_semantics<parallel>, #tpu.dimension_semantics<arbitrary>], iteration_bounds = array<i64: 1, 1, 3>, scalar_prefetch = 0 : i64, scratch_operands = 1 : i64, tpu.core_type = #tpu.core_type<tc>, window_params = [{transform_indices = @transform_0, window_bounds = array<i64: 16, 768>}, {transform_indices = @transform_1, window_bounds = array<i64: 768, 256>}, {transform_indices = @transform_2, window_bounds = array<i64: 1, 256>}, {transform_indices = @transform_3, window_bounds = array<i64: 16, 256>}, {transform_indices = @transform_4, window_bounds = array<i64: 16, 256>}]} {
    %c0_i32 = arith.constant 0 : i32
    %0 = arith.cmpi eq, %arg2, %c0_i32 : i32
    %1 = arith.extui %0 : i1 to i32
    %c0_i32_0 = arith.constant 0 : i32
    %2 = arith.cmpi ne, %1, %c0_i32_0 : i32
    scf.if %2 {
      %cst_9 = arith.constant 0.000000e+00 : f32
      %12 = vector.broadcast %cst_9 : f32 to vector<16x256xf32>
      %c0_10 = arith.constant 0 : index
      %c0_11 = arith.constant 0 : index
      %13 = vector.load %arg8[%c0_10, %c0_11] : memref<16x256xf32, #tpu.memory_space<vmem>>, vector<16x256xf32>
      tpu.vector_store %arg8[%c0_10, %c0_11], %12 {strides = array<i32>} : memref<16x256xf32, #tpu.memory_space<vmem>>, vector<16x256xf32>,
    } else {
    }
    %c0 = arith.constant 0 : index
    %c0_1 = arith.constant 0 : index
    %3 = vector.load %arg8[%c0, %c0_1] : memref<16x256xf32, #tpu.memory_space<vmem>>, vector<16x256xf32>
    %c0_2 = arith.constant 0 : index
    %c0_3 = arith.constant 0 : index
    %4 = vector.load %arg3[%c0_2, %c0_3] : memref<16x768xbf16, #tpu.memory_space<vmem>>, vector<16x768xbf16>
    %c0_4 = arith.constant 0 : index
    %c0_5 = arith.constant 0 : index
    %5 = vector.load %arg4[%c0_4, %c0_5] : memref<768x256xbf16, #tpu.memory_space<vmem>>, vector<768x256xbf16>
    %cst = arith.constant dense<0.000000e+00> : vector<16x256xf32>
    %6 = tpu.matmul %4, %5, %cst {dimension_numbers = #tpu.dot_dimension_numbers<[1], [0], [0], [1], [0, 0, 1, 1], [], []>} : vector<16x768xbf16>, vector<768x256xbf16>, vector<16x256xf32> -> vector<16x256xf32>
    %7 = arith.addf %3, %6 : vector<16x256xf32>
    %c0_6 = arith.constant 0 : index
    %c0_7 = arith.constant 0 : index
    %8 = vector.load %arg8[%c0_6, %c0_7] : memref<16x256xf32, #tpu.memory_space<vmem>>, vector<16x256xf32>
    tpu.vector_store %arg8[%c0_6, %c0_7], %7 {strides = array<i32>} : memref<16x256xf32, #tpu.memory_space<vmem>>, vector<16x256xf32>,
    %c2_i32 = arith.constant 2 : i32
    %9 = arith.cmpi eq, %arg2, %c2_i32 : i32
    %10 = arith.extui %9 : i1 to i32
    %c0_i32_8 = arith.constant 0 : i32
    %11 = arith.cmpi ne, %10, %c0_i32_8 : i32
    scf.if %11 {
      %c0_9 = arith.constant 0 : index
      %c0_10 = arith.constant 0 : index
      %12 = vector.load %arg8[%c0_9, %c0_10] : memref<16x256xf32, #tpu.memory_space<vmem>>, vector<16x256xf32>
      %c0_11 = arith.constant 0 : index
      %c0_12 = arith.constant 0 : index
      %13 = vector.load %arg5[%c0_11, %c0_12] : memref<1x256xf32, #tpu.memory_space<vmem>>, vector<1x256xf32>
      %14 = vector.broadcast %13 : vector<1x256xf32> to vector<16x256xf32>
      %15 = arith.addf %12, %14 : vector<16x256xf32>
      %c0_13 = arith.constant 0 : index
      %c0_14 = arith.constant 0 : index
      %16 = vector.load %arg6[%c0_13, %c0_14] : memref<16x256xbf16, #tpu.memory_space<vmem>>, vector<16x256xbf16>
      %17 = arith.extf %16 : vector<16x256xbf16> to vector<16x256xf32>
      %18 = arith.addf %15, %17 : vector<16x256xf32>
      %cst_15 = arith.constant 0.000000e+00 : f32
      %19 = vector.broadcast %cst_15 : f32 to vector<16x256xf32>
      %20 = arith.maximumf %18, %19 : vector<16x256xf32>
      %21 = arith.truncf %20 : vector<16x256xf32> to vector<16x256xbf16>
      %c0_16 = arith.constant 0 : index
      %c0_17 = arith.constant 0 : index
      %22 = vector.load %arg7[%c0_16, %c0_17] : memref<16x256xbf16, #tpu.memory_space<vmem>>, vector<16x256xbf16>
      tpu.vector_store %arg7[%c0_16, %c0_17], %21 {strides = array<i32>} : memref<16x256xbf16, #tpu.memory_space<vmem>>, vector<16x256xbf16>,
    } else {
    }
    return
  }
  func.func @transform_0(%arg0: i32, %arg1: i32, %arg2: i32) -> (i32, i32) {
    %c0_i32 = arith.constant 0 : i32
    return %arg0, %arg2 : i32, i32
  }
  func.func @transform_1(%arg0: i32, %arg1: i32, %arg2: i32) -> (i32, i32) {
    %c0_i32 = arith.constant 0 : i32
    return %arg2, %arg1 : i32, i32
  }
  func.func @transform_2(%arg0: i32, %arg1: i32, %arg2: i32) -> (i32, i32) {
    %c0_i32 = arith.constant 0 : i32
    %c0_i32_0 = arith.constant 0 : i32
    return %c0_i32, %arg1 : i32, i32
  }
  func.func @transform_3(%arg0: i32, %arg1: i32, %arg2: i32) -> (i32, i32) {
    %c0_i32 = arith.constant 0 : i32
    return %arg0, %arg1 : i32, i32
  }
  func.func @transform_4(%arg0: i32, %arg1: i32, %arg2: i32) -> (i32, i32) {
    %c0_i32 = arith.constant 0 : i32
    return %arg0, %arg1 : i32, i32
  }
}

module attributes {stable_mosaic.version = 11 : i64} {
  func.func @_mm_bias_kernel(%arg0: i32, %arg1: i32, %arg2: i32, %arg3: memref<16x768xbf16, #tpu.memory_space<vmem>>, %arg4: memref<768x256xbf16, #tpu.memory_space<vmem>>, %arg5: memref<1x256xf32, #tpu.memory_space<vmem>>, %arg6: memref<16x256xbf16, #tpu.memory_space<vmem>>, %arg7: memref<16x256xf32, #tpu.memory_space<vmem>>) attributes {dimension_semantics = [#tpu.dimension_semantics<parallel>, #tpu.dimension_semantics<parallel>, #tpu.dimension_semantics<arbitrary>], iteration_bounds = array<i64: 1, 1, 3>, scalar_prefetch = 0 : i64, scratch_operands = 1 : i64, tpu.core_type = #tpu.core_type<tc>, window_params = [{transform_indices = @transform_0, window_bounds = array<i64: 16, 768>}, {transform_indices = @transform_1, window_bounds = array<i64: 768, 256>}, {transform_indices = @transform_2, window_bounds = array<i64: 1, 256>}, {transform_indices = @transform_3, window_bounds = array<i64: 16, 256>}]} {
    %c0_i32 = arith.constant 0 : i32
    %0 = arith.cmpi eq, %arg2, %c0_i32 : i32
    %1 = arith.extui %0 : i1 to i32
    %c0_i32_0 = arith.constant 0 : i32
    %2 = arith.cmpi ne, %1, %c0_i32_0 : i32
    scf.if %2 {
      %cst_9 = arith.constant 0.000000e+00 : f32
      %12 = vector.broadcast %cst_9 : f32 to vector<16x256xf32>
      %c0_10 = arith.constant 0 : index
      %c0_11 = arith.constant 0 : index
      %13 = vector.load %arg7[%c0_10, %c0_11] : memref<16x256xf32, #tpu.memory_space<vmem>>, vector<16x256xf32>
      tpu.vector_store %arg7[%c0_10, %c0_11], %12 {strides = array<i32>} : memref<16x256xf32, #tpu.memory_space<vmem>>, vector<16x256xf32>,
    } else {
    }
    %c0 = arith.constant 0 : index
    %c0_1 = arith.constant 0 : index
    %3 = vector.load %arg7[%c0, %c0_1] : memref<16x256xf32, #tpu.memory_space<vmem>>, vector<16x256xf32>
    %c0_2 = arith.constant 0 : index
    %c0_3 = arith.constant 0 : index
    %4 = vector.load %arg3[%c0_2, %c0_3] : memref<16x768xbf16, #tpu.memory_space<vmem>>, vector<16x768xbf16>
    %c0_4 = arith.constant 0 : index
    %c0_5 = arith.constant 0 : index
    %5 = vector.load %arg4[%c0_4, %c0_5] : memref<768x256xbf16, #tpu.memory_space<vmem>>, vector<768x256xbf16>
    %cst = arith.constant dense<0.000000e+00> : vector<16x256xf32>
    %6 = tpu.matmul %4, %5, %cst {dimension_numbers = #tpu.dot_dimension_numbers<[1], [0], [0], [1], [0, 0, 1, 1], [], []>} : vector<16x768xbf16>, vector<768x256xbf16>, vector<16x256xf32> -> vector<16x256xf32>
    %7 = arith.addf %3, %6 : vector<16x256xf32>
    %c0_6 = arith.constant 0 : index
    %c0_7 = arith.constant 0 : index
    %8 = vector.load %arg7[%c0_6, %c0_7] : memref<16x256xf32, #tpu.memory_space<vmem>>, vector<16x256xf32>
    tpu.vector_store %arg7[%c0_6, %c0_7], %7 {strides = array<i32>} : memref<16x256xf32, #tpu.memory_space<vmem>>, vector<16x256xf32>,
    %c2_i32 = arith.constant 2 : i32
    %9 = arith.cmpi eq, %arg2, %c2_i32 : i32
    %10 = arith.extui %9 : i1 to i32
    %c0_i32_8 = arith.constant 0 : i32
    %11 = arith.cmpi ne, %10, %c0_i32_8 : i32
    scf.if %11 {
      %c0_9 = arith.constant 0 : index
      %c0_10 = arith.constant 0 : index
      %12 = vector.load %arg7[%c0_9, %c0_10] : memref<16x256xf32, #tpu.memory_space<vmem>>, vector<16x256xf32>
      %c0_11 = arith.constant 0 : index
      %c0_12 = arith.constant 0 : index
      %13 = vector.load %arg5[%c0_11, %c0_12] : memref<1x256xf32, #tpu.memory_space<vmem>>, vector<1x256xf32>
      %14 = vector.broadcast %13 : vector<1x256xf32> to vector<16x256xf32>
      %15 = arith.addf %12, %14 : vector<16x256xf32>
      %cst_13 = arith.constant 0.000000e+00 : f32
      %16 = vector.broadcast %cst_13 : f32 to vector<16x256xf32>
      %17 = arith.maximumf %15, %16 : vector<16x256xf32>
      %18 = arith.truncf %17 : vector<16x256xf32> to vector<16x256xbf16>
      %c0_14 = arith.constant 0 : index
      %c0_15 = arith.constant 0 : index
      %19 = vector.load %arg6[%c0_14, %c0_15] : memref<16x256xbf16, #tpu.memory_space<vmem>>, vector<16x256xbf16>
      tpu.vector_store %arg6[%c0_14, %c0_15], %18 {strides = array<i32>} : memref<16x256xbf16, #tpu.memory_space<vmem>>, vector<16x256xbf16>,
    } else {
    }
    return
  }
  func.func @transform_0(%arg0: i32, %arg1: i32, %arg2: i32) -> (i32, i32) {
    %c0_i32 = arith.constant 0 : i32
    return %arg0, %arg2 : i32, i32
  }
  func.func @transform_1(%arg0: i32, %arg1: i32, %arg2: i32) -> (i32, i32) {
    %c0_i32 = arith.constant 0 : i32
    return %arg2, %arg1 : i32, i32
  }
  func.func @transform_2(%arg0: i32, %arg1: i32, %arg2: i32) -> (i32, i32) {
    %c0_i32 = arith.constant 0 : i32
    %c0_i32_0 = arith.constant 0 : i32
    return %c0_i32, %arg1 : i32, i32
  }
  func.func @transform_3(%arg0: i32, %arg1: i32, %arg2: i32) -> (i32, i32) {
    %c0_i32 = arith.constant 0 : i32
    return %arg0, %arg1 : i32, i32
  }
}

module attributes {stable_mosaic.version = 11 : i64} {
  func.func @_mm_bias_kernel(%arg0: i32, %arg1: i32, %arg2: i32, %arg3: memref<16x768xbf16, #tpu.memory_space<vmem>>, %arg4: memref<768x256xbf16, #tpu.memory_space<vmem>>, %arg5: memref<1x256xf32, #tpu.memory_space<vmem>>, %arg6: memref<16x256xbf16, #tpu.memory_space<vmem>>, %arg7: memref<16x256xf32, #tpu.memory_space<vmem>>) attributes {dimension_semantics = [#tpu.dimension_semantics<parallel>, #tpu.dimension_semantics<parallel>, #tpu.dimension_semantics<arbitrary>], iteration_bounds = array<i64: 1, 2, 3>, scalar_prefetch = 0 : i64, scratch_operands = 1 : i64, tpu.core_type = #tpu.core_type<tc>, window_params = [{transform_indices = @transform_0, window_bounds = array<i64: 16, 768>}, {transform_indices = @transform_1, window_bounds = array<i64: 768, 256>}, {transform_indices = @transform_2, window_bounds = array<i64: 1, 256>}, {transform_indices = @transform_3, window_bounds = array<i64: 16, 256>}]} {
    %c0_i32 = arith.constant 0 : i32
    %0 = arith.cmpi eq, %arg2, %c0_i32 : i32
    %1 = arith.extui %0 : i1 to i32
    %c0_i32_0 = arith.constant 0 : i32
    %2 = arith.cmpi ne, %1, %c0_i32_0 : i32
    scf.if %2 {
      %cst_9 = arith.constant 0.000000e+00 : f32
      %12 = vector.broadcast %cst_9 : f32 to vector<16x256xf32>
      %c0_10 = arith.constant 0 : index
      %c0_11 = arith.constant 0 : index
      %13 = vector.load %arg7[%c0_10, %c0_11] : memref<16x256xf32, #tpu.memory_space<vmem>>, vector<16x256xf32>
      tpu.vector_store %arg7[%c0_10, %c0_11], %12 {strides = array<i32>} : memref<16x256xf32, #tpu.memory_space<vmem>>, vector<16x256xf32>,
    } else {
    }
    %c0 = arith.constant 0 : index
    %c0_1 = arith.constant 0 : index
    %3 = vector.load %arg7[%c0, %c0_1] : memref<16x256xf32, #tpu.memory_space<vmem>>, vector<16x256xf32>
    %c0_2 = arith.constant 0 : index
    %c0_3 = arith.constant 0 : index
    %4 = vector.load %arg3[%c0_2, %c0_3] : memref<16x768xbf16, #tpu.memory_space<vmem>>, vector<16x768xbf16>
    %c0_4 = arith.constant 0 : index
    %c0_5 = arith.constant 0 : index
    %5 = vector.load %arg4[%c0_4, %c0_5] : memref<768x256xbf16, #tpu.memory_space<vmem>>, vector<768x256xbf16>
    %cst = arith.constant dense<0.000000e+00> : vector<16x256xf32>
    %6 = tpu.matmul %4, %5, %cst {dimension_numbers = #tpu.dot_dimension_numbers<[1], [0], [0], [1], [0, 0, 1, 1], [], []>} : vector<16x768xbf16>, vector<768x256xbf16>, vector<16x256xf32> -> vector<16x256xf32>
    %7 = arith.addf %3, %6 : vector<16x256xf32>
    %c0_6 = arith.constant 0 : index
    %c0_7 = arith.constant 0 : index
    %8 = vector.load %arg7[%c0_6, %c0_7] : memref<16x256xf32, #tpu.memory_space<vmem>>, vector<16x256xf32>
    tpu.vector_store %arg7[%c0_6, %c0_7], %7 {strides = array<i32>} : memref<16x256xf32, #tpu.memory_space<vmem>>, vector<16x256xf32>,
    %c2_i32 = arith.constant 2 : i32
    %9 = arith.cmpi eq, %arg2, %c2_i32 : i32
    %10 = arith.extui %9 : i1 to i32
    %c0_i32_8 = arith.constant 0 : i32
    %11 = arith.cmpi ne, %10, %c0_i32_8 : i32
    scf.if %11 {
      %c0_9 = arith.constant 0 : index
      %c0_10 = arith.constant 0 : index
      %12 = vector.load %arg7[%c0_9, %c0_10] : memref<16x256xf32, #tpu.memory_space<vmem>>, vector<16x256xf32>
      %c0_11 = arith.constant 0 : index
      %c0_12 = arith.constant 0 : index
      %13 = vector.load %arg5[%c0_11, %c0_12] : memref<1x256xf32, #tpu.memory_space<vmem>>, vector<1x256xf32>
      %14 = vector.broadcast %13 : vector<1x256xf32> to vector<16x256xf32>
      %15 = arith.addf %12, %14 : vector<16x256xf32>
      %cst_13 = arith.constant 0.000000e+00 : f32
      %16 = vector.broadcast %cst_13 : f32 to vector<16x256xf32>
      %17 = arith.maximumf %15, %16 : vector<16x256xf32>
      %18 = arith.truncf %17 : vector<16x256xf32> to vector<16x256xbf16>
      %c0_14 = arith.constant 0 : index
      %c0_15 = arith.constant 0 : index
      %19 = vector.load %arg6[%c0_14, %c0_15] : memref<16x256xbf16, #tpu.memory_space<vmem>>, vector<16x256xbf16>
      tpu.vector_store %arg6[%c0_14, %c0_15], %18 {strides = array<i32>} : memref<16x256xbf16, #tpu.memory_space<vmem>>, vector<16x256xbf16>,
    } else {
    }
    return
  }
  func.func @transform_0(%arg0: i32, %arg1: i32, %arg2: i32) -> (i32, i32) {
    %c0_i32 = arith.constant 0 : i32
    return %arg0, %arg2 : i32, i32
  }
  func.func @transform_1(%arg0: i32, %arg1: i32, %arg2: i32) -> (i32, i32) {
    %c0_i32 = arith.constant 0 : i32
    return %arg2, %arg1 : i32, i32
  }
  func.func @transform_2(%arg0: i32, %arg1: i32, %arg2: i32) -> (i32, i32) {
    %c0_i32 = arith.constant 0 : i32
    %c0_i32_0 = arith.constant 0 : i32
    return %c0_i32, %arg1 : i32, i32
  }
  func.func @transform_3(%arg0: i32, %arg1: i32, %arg2: i32) -> (i32, i32) {
    %c0_i32 = arith.constant 0 : i32
    return %arg0, %arg1 : i32, i32
  }
}

module attributes {stable_mosaic.version = 11 : i64} {
  func.func @_mm_bias_kernel(%arg0: i32, %arg1: i32, %arg2: i32, %arg3: memref<16x256xbf16, #tpu.memory_space<vmem>>, %arg4: memref<256x256xbf16, #tpu.memory_space<vmem>>, %arg5: memref<1x256xf32, #tpu.memory_space<vmem>>, %arg6: memref<16x256xbf16, #tpu.memory_space<vmem>>, %arg7: memref<16x256xf32, #tpu.memory_space<vmem>>) attributes {dimension_semantics = [#tpu.dimension_semantics<parallel>, #tpu.dimension_semantics<parallel>, #tpu.dimension_semantics<arbitrary>], iteration_bounds = array<i64: 1, 2, 1>, scalar_prefetch = 0 : i64, scratch_operands = 1 : i64, tpu.core_type = #tpu.core_type<tc>, window_params = [{transform_indices = @transform_0, window_bounds = array<i64: 16, 256>}, {transform_indices = @transform_1, window_bounds = array<i64: 256, 256>}, {transform_indices = @transform_2, window_bounds = array<i64: 1, 256>}, {transform_indices = @transform_3, window_bounds = array<i64: 16, 256>}]} {
    %c0_i32 = arith.constant 0 : i32
    %0 = arith.cmpi eq, %arg2, %c0_i32 : i32
    %1 = arith.extui %0 : i1 to i32
    %c0_i32_0 = arith.constant 0 : i32
    %2 = arith.cmpi ne, %1, %c0_i32_0 : i32
    scf.if %2 {
      %cst_10 = arith.constant 0.000000e+00 : f32
      %12 = vector.broadcast %cst_10 : f32 to vector<16x256xf32>
      %c0_11 = arith.constant 0 : index
      %c0_12 = arith.constant 0 : index
      %13 = vector.load %arg7[%c0_11, %c0_12] : memref<16x256xf32, #tpu.memory_space<vmem>>, vector<16x256xf32>
      tpu.vector_store %arg7[%c0_11, %c0_12], %12 {strides = array<i32>} : memref<16x256xf32, #tpu.memory_space<vmem>>, vector<16x256xf32>,
    } else {
    }
    %c0 = arith.constant 0 : index
    %c0_1 = arith.constant 0 : index
    %3 = vector.load %arg7[%c0, %c0_1] : memref<16x256xf32, #tpu.memory_space<vmem>>, vector<16x256xf32>
    %c0_2 = arith.constant 0 : index
    %c0_3 = arith.constant 0 : index
    %4 = vector.load %arg3[%c0_2, %c0_3] : memref<16x256xbf16, #tpu.memory_space<vmem>>, vector<16x256xbf16>
    %c0_4 = arith.constant 0 : index
    %c0_5 = arith.constant 0 : index
    %5 = vector.load %arg4[%c0_4, %c0_5] : memref<256x256xbf16, #tpu.memory_space<vmem>>, vector<256x256xbf16>
    %cst = arith.constant dense<0.000000e+00> : vector<16x256xf32>
    %6 = tpu.matmul %4, %5, %cst {dimension_numbers = #tpu.dot_dimension_numbers<[1], [0], [0], [1], [0, 0, 1, 1], [], []>} : vector<16x256xbf16>, vector<256x256xbf16>, vector<16x256xf32> -> vector<16x256xf32>
    %7 = arith.addf %3, %6 : vector<16x256xf32>
    %c0_6 = arith.constant 0 : index
    %c0_7 = arith.constant 0 : index
    %8 = vector.load %arg7[%c0_6, %c0_7] : memref<16x256xf32, #tpu.memory_space<vmem>>, vector<16x256xf32>
    tpu.vector_store %arg7[%c0_6, %c0_7], %7 {strides = array<i32>} : memref<16x256xf32, #tpu.memory_space<vmem>>, vector<16x256xf32>,
    %c0_i32_8 = arith.constant 0 : i32
    %9 = arith.cmpi eq, %arg2, %c0_i32_8 : i32
    %10 = arith.extui %9 : i1 to i32
    %c0_i32_9 = arith.constant 0 : i32
    %11 = arith.cmpi ne, %10, %c0_i32_9 : i32
    scf.if %11 {
      %c0_10 = arith.constant 0 : index
      %c0_11 = arith.constant 0 : index
      %12 = vector.load %arg7[%c0_10, %c0_11] : memref<16x256xf32, #tpu.memory_space<vmem>>, vector<16x256xf32>
      %c0_12 = arith.constant 0 : index
      %c0_13 = arith.constant 0 : index
      %13 = vector.load %arg5[%c0_12, %c0_13] : memref<1x256xf32, #tpu.memory_space<vmem>>, vector<1x256xf32>
      %14 = vector.broadcast %13 : vector<1x256xf32> to vector<16x256xf32>
      %15 = arith.addf %12, %14 : vector<16x256xf32>
      %16 = arith.truncf %15 : vector<16x256xf32> to vector<16x256xbf16>
      %c0_14 = arith.constant 0 : index
      %c0_15 = arith.constant 0 : index
      %17 = vector.load %arg6[%c0_14, %c0_15] : memref<16x256xbf16, #tpu.memory_space<vmem>>, vector<16x256xbf16>
      tpu.vector_store %arg6[%c0_14, %c0_15], %16 {strides = array<i32>} : memref<16x256xbf16, #tpu.memory_space<vmem>>, vector<16x256xbf16>,
    } else {
    }
    return
  }
  func.func @transform_0(%arg0: i32, %arg1: i32, %arg2: i32) -> (i32, i32) {
    %c0_i32 = arith.constant 0 : i32
    return %arg0, %arg2 : i32, i32
  }
  func.func @transform_1(%arg0: i32, %arg1: i32, %arg2: i32) -> (i32, i32) {
    %c0_i32 = arith.constant 0 : i32
    return %arg2, %arg1 : i32, i32
  }
  func.func @transform_2(%arg0: i32, %arg1: i32, %arg2: i32) -> (i32, i32) {
    %c0_i32 = arith.constant 0 : i32
    %c0_i32_0 = arith.constant 0 : i32
    return %c0_i32, %arg1 : i32, i32
  }
  func.func @transform_3(%arg0: i32, %arg1: i32, %arg2: i32) -> (i32, i32) {
    %c0_i32 = arith.constant 0 : i32
    return %arg0, %arg1 : i32, i32
  }
}

module attributes {stable_mosaic.version = 11 : i64} {
  func.func @_mm_bias_kernel(%arg0: i32, %arg1: i32, %arg2: i32, %arg3: memref<16x768xbf16, #tpu.memory_space<vmem>>, %arg4: memref<768x256xbf16, #tpu.memory_space<vmem>>, %arg5: memref<1x256xf32, #tpu.memory_space<vmem>>, %arg6: memref<16x256xbf16, #tpu.memory_space<vmem>>, %arg7: memref<16x256xf32, #tpu.memory_space<vmem>>) attributes {dimension_semantics = [#tpu.dimension_semantics<parallel>, #tpu.dimension_semantics<parallel>, #tpu.dimension_semantics<arbitrary>], iteration_bounds = array<i64: 1, 2, 6>, scalar_prefetch = 0 : i64, scratch_operands = 1 : i64, tpu.core_type = #tpu.core_type<tc>, window_params = [{transform_indices = @transform_0, window_bounds = array<i64: 16, 768>}, {transform_indices = @transform_1, window_bounds = array<i64: 768, 256>}, {transform_indices = @transform_2, window_bounds = array<i64: 1, 256>}, {transform_indices = @transform_3, window_bounds = array<i64: 16, 256>}]} {
    %c0_i32 = arith.constant 0 : i32
    %0 = arith.cmpi eq, %arg2, %c0_i32 : i32
    %1 = arith.extui %0 : i1 to i32
    %c0_i32_0 = arith.constant 0 : i32
    %2 = arith.cmpi ne, %1, %c0_i32_0 : i32
    scf.if %2 {
      %cst_9 = arith.constant 0.000000e+00 : f32
      %12 = vector.broadcast %cst_9 : f32 to vector<16x256xf32>
      %c0_10 = arith.constant 0 : index
      %c0_11 = arith.constant 0 : index
      %13 = vector.load %arg7[%c0_10, %c0_11] : memref<16x256xf32, #tpu.memory_space<vmem>>, vector<16x256xf32>
      tpu.vector_store %arg7[%c0_10, %c0_11], %12 {strides = array<i32>} : memref<16x256xf32, #tpu.memory_space<vmem>>, vector<16x256xf32>,
    } else {
    }
    %c0 = arith.constant 0 : index
    %c0_1 = arith.constant 0 : index
    %3 = vector.load %arg7[%c0, %c0_1] : memref<16x256xf32, #tpu.memory_space<vmem>>, vector<16x256xf32>
    %c0_2 = arith.constant 0 : index
    %c0_3 = arith.constant 0 : index
    %4 = vector.load %arg3[%c0_2, %c0_3] : memref<16x768xbf16, #tpu.memory_space<vmem>>, vector<16x768xbf16>
    %c0_4 = arith.constant 0 : index
    %c0_5 = arith.constant 0 : index
    %5 = vector.load %arg4[%c0_4, %c0_5] : memref<768x256xbf16, #tpu.memory_space<vmem>>, vector<768x256xbf16>
    %cst = arith.constant dense<0.000000e+00> : vector<16x256xf32>
    %6 = tpu.matmul %4, %5, %cst {dimension_numbers = #tpu.dot_dimension_numbers<[1], [0], [0], [1], [0, 0, 1, 1], [], []>} : vector<16x768xbf16>, vector<768x256xbf16>, vector<16x256xf32> -> vector<16x256xf32>
    %7 = arith.addf %3, %6 : vector<16x256xf32>
    %c0_6 = arith.constant 0 : index
    %c0_7 = arith.constant 0 : index
    %8 = vector.load %arg7[%c0_6, %c0_7] : memref<16x256xf32, #tpu.memory_space<vmem>>, vector<16x256xf32>
    tpu.vector_store %arg7[%c0_6, %c0_7], %7 {strides = array<i32>} : memref<16x256xf32, #tpu.memory_space<vmem>>, vector<16x256xf32>,
    %c5_i32 = arith.constant 5 : i32
    %9 = arith.cmpi eq, %arg2, %c5_i32 : i32
    %10 = arith.extui %9 : i1 to i32
    %c0_i32_8 = arith.constant 0 : i32
    %11 = arith.cmpi ne, %10, %c0_i32_8 : i32
    scf.if %11 {
      %c0_9 = arith.constant 0 : index
      %c0_10 = arith.constant 0 : index
      %12 = vector.load %arg7[%c0_9, %c0_10] : memref<16x256xf32, #tpu.memory_space<vmem>>, vector<16x256xf32>
      %c0_11 = arith.constant 0 : index
      %c0_12 = arith.constant 0 : index
      %13 = vector.load %arg5[%c0_11, %c0_12] : memref<1x256xf32, #tpu.memory_space<vmem>>, vector<1x256xf32>
      %14 = vector.broadcast %13 : vector<1x256xf32> to vector<16x256xf32>
      %15 = arith.addf %12, %14 : vector<16x256xf32>
      %cst_13 = arith.constant 0.000000e+00 : f32
      %16 = vector.broadcast %cst_13 : f32 to vector<16x256xf32>
      %17 = arith.maximumf %15, %16 : vector<16x256xf32>
      %18 = arith.truncf %17 : vector<16x256xf32> to vector<16x256xbf16>
      %c0_14 = arith.constant 0 : index
      %c0_15 = arith.constant 0 : index
      %19 = vector.load %arg6[%c0_14, %c0_15] : memref<16x256xbf16, #tpu.memory_space<vmem>>, vector<16x256xbf16>
      tpu.vector_store %arg6[%c0_14, %c0_15], %18 {strides = array<i32>} : memref<16x256xbf16, #tpu.memory_space<vmem>>, vector<16x256xbf16>,
    } else {
    }
    return
  }
  func.func @transform_0(%arg0: i32, %arg1: i32, %arg2: i32) -> (i32, i32) {
    %c0_i32 = arith.constant 0 : i32
    return %arg0, %arg2 : i32, i32
  }
  func.func @transform_1(%arg0: i32, %arg1: i32, %arg2: i32) -> (i32, i32) {
    %c0_i32 = arith.constant 0 : i32
    return %arg2, %arg1 : i32, i32
  }
  func.func @transform_2(%arg0: i32, %arg1: i32, %arg2: i32) -> (i32, i32) {
    %c0_i32 = arith.constant 0 : i32
    %c0_i32_0 = arith.constant 0 : i32
    return %c0_i32, %arg1 : i32, i32
  }
  func.func @transform_3(%arg0: i32, %arg1: i32, %arg2: i32) -> (i32, i32) {
    %c0_i32 = arith.constant 0 : i32
    return %arg0, %arg1 : i32, i32
  }
}

module attributes {stable_mosaic.version = 11 : i64} {
  func.func @_mm_bias_kernel(%arg0: i32, %arg1: i32, %arg2: i32, %arg3: memref<16x768xbf16, #tpu.memory_space<vmem>>, %arg4: memref<768x256xbf16, #tpu.memory_space<vmem>>, %arg5: memref<1x256xf32, #tpu.memory_space<vmem>>, %arg6: memref<16x256xbf16, #tpu.memory_space<vmem>>, %arg7: memref<16x256xbf16, #tpu.memory_space<vmem>>, %arg8: memref<16x256xf32, #tpu.memory_space<vmem>>) attributes {dimension_semantics = [#tpu.dimension_semantics<parallel>, #tpu.dimension_semantics<parallel>, #tpu.dimension_semantics<arbitrary>], iteration_bounds = array<i64: 1, 2, 6>, scalar_prefetch = 0 : i64, scratch_operands = 1 : i64, tpu.core_type = #tpu.core_type<tc>, window_params = [{transform_indices = @transform_0, window_bounds = array<i64: 16, 768>}, {transform_indices = @transform_1, window_bounds = array<i64: 768, 256>}, {transform_indices = @transform_2, window_bounds = array<i64: 1, 256>}, {transform_indices = @transform_3, window_bounds = array<i64: 16, 256>}, {transform_indices = @transform_4, window_bounds = array<i64: 16, 256>}]} {
    %c0_i32 = arith.constant 0 : i32
    %0 = arith.cmpi eq, %arg2, %c0_i32 : i32
    %1 = arith.extui %0 : i1 to i32
    %c0_i32_0 = arith.constant 0 : i32
    %2 = arith.cmpi ne, %1, %c0_i32_0 : i32
    scf.if %2 {
      %cst_9 = arith.constant 0.000000e+00 : f32
      %12 = vector.broadcast %cst_9 : f32 to vector<16x256xf32>
      %c0_10 = arith.constant 0 : index
      %c0_11 = arith.constant 0 : index
      %13 = vector.load %arg8[%c0_10, %c0_11] : memref<16x256xf32, #tpu.memory_space<vmem>>, vector<16x256xf32>
      tpu.vector_store %arg8[%c0_10, %c0_11], %12 {strides = array<i32>} : memref<16x256xf32, #tpu.memory_space<vmem>>, vector<16x256xf32>,
    } else {
    }
    %c0 = arith.constant 0 : index
    %c0_1 = arith.constant 0 : index
    %3 = vector.load %arg8[%c0, %c0_1] : memref<16x256xf32, #tpu.memory_space<vmem>>, vector<16x256xf32>
    %c0_2 = arith.constant 0 : index
    %c0_3 = arith.constant 0 : index
    %4 = vector.load %arg3[%c0_2, %c0_3] : memref<16x768xbf16, #tpu.memory_space<vmem>>, vector<16x768xbf16>
    %c0_4 = arith.constant 0 : index
    %c0_5 = arith.constant 0 : index
    %5 = vector.load %arg4[%c0_4, %c0_5] : memref<768x256xbf16, #tpu.memory_space<vmem>>, vector<768x256xbf16>
    %cst = arith.constant dense<0.000000e+00> : vector<16x256xf32>
    %6 = tpu.matmul %4, %5, %cst {dimension_numbers = #tpu.dot_dimension_numbers<[1], [0], [0], [1], [0, 0, 1, 1], [], []>} : vector<16x768xbf16>, vector<768x256xbf16>, vector<16x256xf32> -> vector<16x256xf32>
    %7 = arith.addf %3, %6 : vector<16x256xf32>
    %c0_6 = arith.constant 0 : index
    %c0_7 = arith.constant 0 : index
    %8 = vector.load %arg8[%c0_6, %c0_7] : memref<16x256xf32, #tpu.memory_space<vmem>>, vector<16x256xf32>
    tpu.vector_store %arg8[%c0_6, %c0_7], %7 {strides = array<i32>} : memref<16x256xf32, #tpu.memory_space<vmem>>, vector<16x256xf32>,
    %c5_i32 = arith.constant 5 : i32
    %9 = arith.cmpi eq, %arg2, %c5_i32 : i32
    %10 = arith.extui %9 : i1 to i32
    %c0_i32_8 = arith.constant 0 : i32
    %11 = arith.cmpi ne, %10, %c0_i32_8 : i32
    scf.if %11 {
      %c0_9 = arith.constant 0 : index
      %c0_10 = arith.constant 0 : index
      %12 = vector.load %arg8[%c0_9, %c0_10] : memref<16x256xf32, #tpu.memory_space<vmem>>, vector<16x256xf32>
      %c0_11 = arith.constant 0 : index
      %c0_12 = arith.constant 0 : index
      %13 = vector.load %arg5[%c0_11, %c0_12] : memref<1x256xf32, #tpu.memory_space<vmem>>, vector<1x256xf32>
      %14 = vector.broadcast %13 : vector<1x256xf32> to vector<16x256xf32>
      %15 = arith.addf %12, %14 : vector<16x256xf32>
      %c0_13 = arith.constant 0 : index
      %c0_14 = arith.constant 0 : index
      %16 = vector.load %arg6[%c0_13, %c0_14] : memref<16x256xbf16, #tpu.memory_space<vmem>>, vector<16x256xbf16>
      %17 = arith.extf %16 : vector<16x256xbf16> to vector<16x256xf32>
      %18 = arith.addf %15, %17 : vector<16x256xf32>
      %cst_15 = arith.constant 0.000000e+00 : f32
      %19 = vector.broadcast %cst_15 : f32 to vector<16x256xf32>
      %20 = arith.maximumf %18, %19 : vector<16x256xf32>
      %21 = arith.truncf %20 : vector<16x256xf32> to vector<16x256xbf16>
      %c0_16 = arith.constant 0 : index
      %c0_17 = arith.constant 0 : index
      %22 = vector.load %arg7[%c0_16, %c0_17] : memref<16x256xbf16, #tpu.memory_space<vmem>>, vector<16x256xbf16>
      tpu.vector_store %arg7[%c0_16, %c0_17], %21 {strides = array<i32>} : memref<16x256xbf16, #tpu.memory_space<vmem>>, vector<16x256xbf16>,
    } else {
    }
    return
  }
  func.func @transform_0(%arg0: i32, %arg1: i32, %arg2: i32) -> (i32, i32) {
    %c0_i32 = arith.constant 0 : i32
    return %arg0, %arg2 : i32, i32
  }
  func.func @transform_1(%arg0: i32, %arg1: i32, %arg2: i32) -> (i32, i32) {
    %c0_i32 = arith.constant 0 : i32
    return %arg2, %arg1 : i32, i32
  }
  func.func @transform_2(%arg0: i32, %arg1: i32, %arg2: i32) -> (i32, i32) {
    %c0_i32 = arith.constant 0 : i32
    %c0_i32_0 = arith.constant 0 : i32
    return %c0_i32, %arg1 : i32, i32
  }
  func.func @transform_3(%arg0: i32, %arg1: i32, %arg2: i32) -> (i32, i32) {
    %c0_i32 = arith.constant 0 : i32
    return %arg0, %arg1 : i32, i32
  }
  func.func @transform_4(%arg0: i32, %arg1: i32, %arg2: i32) -> (i32, i32) {
    %c0_i32 = arith.constant 0 : i32
    return %arg0, %arg1 : i32, i32
  }
}

module attributes {stable_mosaic.version = 11 : i64} {
  func.func @_pool_fc_kernel(%arg0: memref<2x1x512xbf16, #tpu.memory_space<vmem>>, %arg1: memref<512x128xf32, #tpu.memory_space<vmem>>, %arg2: memref<1x128xf32, #tpu.memory_space<vmem>>, %arg3: memref<2x128xf32, #tpu.memory_space<vmem>>) attributes {dimension_semantics = [], scalar_prefetch = 0 : i64, scratch_operands = 0 : i64, tpu.core_type = #tpu.core_type<tc>} {
    %c0 = arith.constant 0 : index
    %c0_0 = arith.constant 0 : index
    %c0_1 = arith.constant 0 : index
    %0 = vector.load %arg0[%c0, %c0_0, %c0_1] : memref<2x1x512xbf16, #tpu.memory_space<vmem>>, vector<2x1x512xbf16>
    %1 = arith.extf %0 : vector<2x1x512xbf16> to vector<2x1x512xf32>
    %cst = arith.constant dense<0.000000e+00> : vector<2x512xf32>
    %2 = vector.multi_reduction <add>, %1, %cst [1] : vector<2x1x512xf32> to vector<2x512xf32>
    %cst_2 = arith.constant 1.000000e+00 : f32
    %3 = vector.broadcast %cst_2 : f32 to vector<2x512xf32>
    %4 = arith.divf %2, %3 : vector<2x512xf32>
    %c0_3 = arith.constant 0 : index
    %c0_4 = arith.constant 0 : index
    %5 = vector.load %arg1[%c0_3, %c0_4] : memref<512x128xf32, #tpu.memory_space<vmem>>, vector<512x128xf32>
    %cst_5 = arith.constant dense<0.000000e+00> : vector<2x128xf32>
    %6 = tpu.matmul %4, %5, %cst_5 {dimension_numbers = #tpu.dot_dimension_numbers<[1], [0], [0], [1], [0, 0, 1, 1], [], []>} : vector<2x512xf32>, vector<512x128xf32>, vector<2x128xf32> -> vector<2x128xf32>
    %c0_6 = arith.constant 0 : index
    %c0_7 = arith.constant 0 : index
    %7 = vector.load %arg2[%c0_6, %c0_7] : memref<1x128xf32, #tpu.memory_space<vmem>>, vector<1x128xf32>
    %8 = vector.broadcast %7 : vector<1x128xf32> to vector<2x128xf32>
    %9 = arith.addf %6, %8 : vector<2x128xf32>
    %c0_8 = arith.constant 0 : index
    %c0_9 = arith.constant 0 : index
    %10 = vector.load %arg3[%c0_8, %c0_9] : memref<2x128xf32, #tpu.memory_space<vmem>>, vector<2x128xf32>
    tpu.vector_store %arg3[%c0_8, %c0_9], %9 {strides = array<i32>} : memref<2x128xf32, #tpu.memory_space<vmem>>, vector<2x128xf32>,
    return
  }
}

</mosaic_0001>

<bundles_post_ra>
// kernel: resnet18_transfer_forward.23
= control target key start
LH: loop header
LB: loop body
LE: loop exit
PB: predicated region body
PF: predicated region fallthrough
CT: control target
= control target key end

     0   :  { %vm81_vm0 = vcmask 1043456   ;;  %s712_s0 = inlined_call_operand.vmem [shape: bf16[9,64,128], index: 0, kind: input, shape index: {}]   ;;  %s713_s1 = inlined_call_operand.vmem [shape: bf16[64,128], index: 1, kind: output, shape index: {}]  }
   0x1   :  { %v9_v0 = vld [vmem:[%s712_s0] sm:$0xf]  ;;  %v10_v3 = vld [vmem:[%s712_s0 + $0x4] sm:$0xf]  ;;  %v11_v39 = vld [vmem:[%s712_s0 + $0x8] sm:$0xf] }
   0x2   :  { %v17_v1 = vld [vmem:[%s712_s0 + $0x20] sm:$0xf]  ;;  %v18_v4 = vld [vmem:[%s712_s0 + $0x24] sm:$0xf]  ;;  %v84_v7 = vsel %vm81_vm0, %v9_v0, 4286644096 }
   0x3   :  { %v25_v2 = vld [vmem:[%s712_s0 + $0x40] sm:$0xf]  ;;  %v26_v5 = vld [vmem:[%s712_s0 + $0x44] sm:$0xf]  ;;  %v87_v8 = vsel %vm81_vm0, %v17_v1, 4286644096 }
   0x4   :  { %v33_v6 = vld [vmem:[%s712_s0 + $0x60] sm:$0xf]  ;;  %v91_v9 = vsel %vm81_vm0, %v25_v2, 4286644096  ;;  %v89_v11 = vmax.bf16 %v87_v8, %v84_v7  ;;  %v34_v12 = vld [vmem:[%s712_s0 + $0x64] sm:$0xf] }
   0x5   :  { %v41_v10 = vld [vmem:[%s712_s0 + $0x80] sm:$0xf]  ;;  %v95_v14 = vsel %vm81_vm0, %v33_v6, 4286644096  ;;  %v119_v16 = vsel %vm81_vm0, %v10_v3, 4286644096 }
   0x6   :  { %v49_v13 = vld [vmem:[%s712_s0 + $0xa0] sm:$0xf]  ;;  %v93_v15 = vmax.bf16 %v91_v9, %v89_v11  ;;  %v122_v17 = vsel %vm81_vm0, %v18_v4, 4286644096  ;;  %v126_v18 = vsel %vm81_vm0, %v26_v5, 4286644096 }
   0x7   :  { %v42_v19 = vld [vmem:[%s712_s0 + $0x84] sm:$0xf]  ;;  %v99_v20 = vsel %vm81_vm0, %v41_v10, 4286644096  ;;  %v124_v21 = vmax.bf16 %v122_v17, %v119_v16  ;;  %v57_v23 = vld [vmem:[%s712_s0 + $0xc0] sm:$0xf] }
   0x8   :  { %v50_v22 = vld [vmem:[%s712_s0 + $0xa4] sm:$0xf]  ;;  %v97_v24 = vmax.bf16 %v95_v14, %v93_v15  ;;  %v130_v25 = vsel %vm81_vm0, %v34_v12, 4286644096  ;;  %v103_v27 = vsel %vm81_vm0, %v49_v13, 4286644096 }
   0x9   :  { %v58_v26 = vld [vmem:[%s712_s0 + $0xc4] sm:$0xf]  ;;  %v128_v28 = vmax.bf16 %v126_v18, %v124_v21  ;;  %v65_v29 = vld [vmem:[%s712_s0 + $0xe0] sm:$0xf]  ;;  %v134_v32 = vsel %vm81_vm0, %v42_v19, 4286644096 }
   0xa   :  { %v73_v30 = vld [vmem:[%s712_s0 + $0x100] sm:$0xf]  ;;  %v101_v31 = vmax.bf16 %v99_v20, %v97_v24  ;;  %v66_v33 = vld [vmem:[%s712_s0 + $0xe4] sm:$0xf]  ;;  %v107_v34 = vsel %vm81_vm0, %v57_v23, 4286644096 }
   0xb   :  { %v132_v35 = vmax.bf16 %v130_v25, %v128_v28  ;;  %v138_v36 = vsel %vm81_vm0, %v50_v22, 4286644096  ;;  %v74_v37 = vld [vmem:[%s712_s0 + $0x104] sm:$0xf]  ;;  %v19_v40 = vld [vmem:[%s712_s0 + $0x28] sm:$0xf] }
   0xc   :  { %v105_v38 = vmax.bf16 %v103_v27, %v101_v31  ;;  %v27_v41 = vld [vmem:[%s712_s0 + $0x48] sm:$0xf]  ;;  %v111_v42 = vsel %vm81_vm0, %v65_v29, 4286644096  ;;  %v115_v43 = vsel %vm81_vm0, %v73_v30, 4286644096 }
   0xd   :  { %v136_v44 = vmax.bf16 %v134_v32, %v132_v35  ;;  %v142_v45 = vsel %vm81_vm0, %v58_v26, 4286644096  ;;  %v12_v47 = vld [vmem:[%s712_s0 + $0xc] sm:$0xf]  ;;  %v35_v48 = vld [vmem:[%s712_s0 + $0x68] sm:$0xf] }
   0xe   :  { %v109_v46 = vmax.bf16 %v107_v34, %v105_v38  ;;  %v43_v49 = vld [vmem:[%s712_s0 + $0x88] sm:$0xf]  ;;  %v154_v51 = vsel %vm81_vm0, %v11_v39, 4286644096  ;;  %v157_v52 = vsel %vm81_vm0, %v19_v40, 4286644096 }
   0xf   :  { %v140_v50 = vmax.bf16 %v138_v36, %v136_v44  ;;  %v161_v53 = vsel %vm81_vm0, %v27_v41, 4286644096  ;;  %v146_v55 = vsel %vm81_vm0, %v66_v33, 4286644096  ;;  %v20_v56 = vld [vmem:[%s712_s0 + $0x2c] sm:$0xf]  ;;  %v159_v58 = vmax.bf16 %v157_v52, %v154_v51 }
  0x10   :  { %v113_v54 = vmax.bf16 %v111_v42, %v109_v46  ;;  %v28_v57 = vld [vmem:[%s712_s0 + $0x4c] sm:$0xf]  ;;  %v150_v60 = vsel %vm81_vm0, %v74_v37, 4286644096  ;;  %v165_v62 = vsel %vm81_vm0, %v35_v48, 4286644096 }
  0x11   :  { %v144_v59 = vmax.bf16 %v142_v45, %v140_v50  ;;  %v36_v61 = vld [vmem:[%s712_s0 + $0x6c] sm:$0xf]  ;;  %v51_v63 = vld [vmem:[%s712_s0 + $0xa8] sm:$0xf]  ;;  %v163_v0 = vmax.bf16 %v161_v53, %v159_v58  ;;  %v169_v1 = vsel %vm81_vm0, %v43_v49, 4286644096 }
  0x12   :  { %v189_v2 = vsel %vm81_vm0, %v12_v47, 4286644096  ;;  %v117_v3 = vmax.bf16 %v115_v43, %v113_v54  ;;  %v192_v5 = vsel %vm81_vm0, %v20_v56, 4286644096  ;;  %v196_v6 = vsel %vm81_vm0, %v28_v57, 4286644096 }
  0x13   :  { %v148_v4 = vmax.bf16 %v146_v55, %v144_v59  ;;  %v44_v7 = vld [vmem:[%s712_s0 + $0x8c] sm:$0xf]  ;;  %v59_v8 = vld [vmem:[%s712_s0 + $0xc8] sm:$0xf]  ;;  %v167_v9 = vmax.bf16 %v165_v62, %v163_v0  ;;  %v194_v10 = vmax.bf16 %v192_v5, %v189_v2  ;;  %v173_v12 = vsel %vm81_vm0, %v51_v63, 4286644096 }
  0x14   :  { %v200_v13 = vsel %vm81_vm0, %v36_v61, 4286644096  ;;  %v52_v14 = vld [vmem:[%s712_s0 + $0xac] sm:$0xf]  ;;  %v67_v16 = vld [vmem:[%s712_s0 + $0xe8] sm:$0xf] }
  0x15   :  { %v152_v11 = vmax.bf16 %v150_v60, %v148_v4  ;;  %v60_v15 = vld [vmem:[%s712_s0 + $0xcc] sm:$0xf]  ;;  %v171_v17 = vmax.bf16 %v169_v1, %v167_v9  ;;  %v198_v18 = vmax.bf16 %v196_v6, %v194_v10  ;;  %v75_v20 = vld [vmem:[%s712_s0 + $0x108] sm:$0xf]  ;;  %v177_v21 = vsel %vm81_vm0, %v59_v8, 4286644096 }
  0x16   :  { %v204_v22 = vsel %vm81_vm0, %v44_v7, 4286644096  ;;  %v68_v23 = vld [vmem:[%s712_s0 + $0xec] sm:$0xf]  ;;  %v13_v26 = vld [vmem:[%s712_s0 + $0x10] sm:$0xf] }
  0x17   :  { %v395_v19 = vcombine.low %v117_v3, %v152_v11  ;;  %v175_v24 = vmax.bf16 %v173_v12, %v171_v17  ;;  %v202_v25 = vmax.bf16 %v200_v13, %v198_v18  ;;  %v21_v27 = vld [vmem:[%s712_s0 + $0x30] sm:$0xf]  ;;  %v76_v29 = vld [vmem:[%s712_s0 + $0x10c] sm:$0xf]  ;;  %v181_v30 = vsel %vm81_vm0, %v67_v16, 4286644096 }
  0x18   :  { %v29_v28 = vld [vmem:[%s712_s0 + $0x50] sm:$0xf]  ;;  %v208_v31 = vsel %vm81_vm0, %v52_v14, 4286644096  ;;  %v185_v33 = vsel %vm81_vm0, %v75_v20, 4286644096 }
  0x19   :  { %379 = vst [vmem:[%s713_s1] sm:$0xff] %v395_v19   ;;  %v179_v32 = vmax.bf16 %v177_v21, %v175_v24  ;;  %v206_v34 = vmax.bf16 %v204_v22, %v202_v25  ;;  %v212_v35 = vsel %vm81_vm0, %v60_v15, 4286644096  ;;  %v37_v36 = vld [vmem:[%s712_s0 + $0x70] sm:$0xf]  ;;  %v224_v37 = vsel %vm81_vm0, %v13_v26, 4286644096 }
  0x1a   :  { %v227_v38 = vsel %vm81_vm0, %v21_v27, 4286644096  ;;  %v231_v39 = vsel %vm81_vm0, %v29_v28, 4286644096  ;;  %v14_v42 = vld [vmem:[%s712_s0 + $0x14] sm:$0xf] }
  0x1b   :  { %v183_v40 = vmax.bf16 %v181_v30, %v179_v32  ;;  %v210_v41 = vmax.bf16 %v208_v31, %v206_v34  ;;  %v22_v43 = vld [vmem:[%s712_s0 + $0x34] sm:$0xf]  ;;  %v45_v44 = vld [vmem:[%s712_s0 + $0x90] sm:$0xf]  ;;  %v229_v45 = vmax.bf16 %v227_v38, %v224_v37  ;;  %v216_v46 = vsel %vm81_vm0, %v68_v23, 4286644096 }
  0x1c   :  { %v30_v47 = vld [vmem:[%s712_s0 + $0x54] sm:$0xf]  ;;  %v235_v48 = vsel %vm81_vm0, %v37_v36, 4286644096  ;;  %v220_v50 = vsel %vm81_vm0, %v76_v29, 4286644096 }
  0x1d   :  { %v214_v49 = vmax.bf16 %v212_v35, %v210_v41  ;;  %v38_v51 = vld [vmem:[%s712_s0 + $0x74] sm:$0xf]  ;;  %v53_v52 = vld [vmem:[%s712_s0 + $0xb0] sm:$0xf]  ;;  %v233_v53 = vmax.bf16 %v231_v39, %v229_v45  ;;  %v187_v54 = vmax.bf16 %v185_v33, %v183_v40  ;;  %v239_v55 = vsel %vm81_vm0, %v45_v44, 4286644096 }
  0x1e   :  { %v259_v56 = vsel %vm81_vm0, %v14_v42, 4286644096  ;;  %v262_v57 = vsel %vm81_vm0, %v22_v43, 4286644096  ;;  %v46_v59 = vld [vmem:[%s712_s0 + $0x94] sm:$0xf] }
  0x1f   :  { %v218_v58 = vmax.bf16 %v216_v46, %v214_v49  ;;  %v61_v60 = vld [vmem:[%s712_s0 + $0xd0] sm:$0xf]  ;;  %v237_v61 = vmax.bf16 %v235_v48, %v233_v53  ;;  %v264_v62 = vmax.bf16 %v262_v57, %v259_v56  ;;  %v266_v63 = vsel %vm81_vm0, %v30_v47, 4286644096  ;;  %v54_v3 = vld [vmem:[%s712_s0 + $0xb4] sm:$0xf] }
  0x20   :  { %v243_v0 = vsel %vm81_vm0, %v53_v52, 4286644096  ;;  %v270_v1 = vsel %vm81_vm0, %v38_v51, 4286644096  ;;  %v62_v4 = vld [vmem:[%s712_s0 + $0xd4] sm:$0xf] }
  0x21   :  { %v222_v2 = vmax.bf16 %v220_v50, %v218_v58  ;;  %v69_v5 = vld [vmem:[%s712_s0 + $0xf0] sm:$0xf]  ;;  %v241_v6 = vmax.bf16 %v239_v55, %v237_v61  ;;  %v268_v7 = vmax.bf16 %v266_v63, %v264_v62  ;;  %v247_v9 = vsel %vm81_vm0, %v61_v60, 4286644096  ;;  %v70_v12 = vld [vmem:[%s712_s0 + $0xf4] sm:$0xf] }
  0x22   :  { %v77_v8 = vld [vmem:[%s712_s0 + $0x110] sm:$0xf]  ;;  %v274_v10 = vsel %vm81_vm0, %v46_v59, 4286644096  ;;  %v15_v15 = vld [vmem:[%s712_s0 + $0x18] sm:$0xf] }
  0x23   :  { %v396_v11 = vcombine.low %v187_v54, %v222_v2  ;;  %v245_v13 = vmax.bf16 %v243_v0, %v241_v6  ;;  %v272_v14 = vmax.bf16 %v270_v1, %v268_v7  ;;  %v23_v16 = vld [vmem:[%s712_s0 + $0x38] sm:$0xf]  ;;  %v78_v18 = vld [vmem:[%s712_s0 + $0x114] sm:$0xf]  ;;  %v251_v19 = vsel %vm81_vm0, %v69_v5, 4286644096 }
  0x24   :  { %v31_v17 = vld [vmem:[%s712_s0 + $0x58] sm:$0xf]  ;;  %v278_v20 = vsel %vm81_vm0, %v54_v3, 4286644096  ;;  %v282_v23 = vsel %vm81_vm0, %v62_v4, 4286644096 }
  0x25   :  { %397 = vst [vmem:[%s713_s1 + $0x8] sm:$0xff] %v396_v11   ;;  %v249_v21 = vmax.bf16 %v247_v9, %v245_v13  ;;  %v276_v22 = vmax.bf16 %v274_v10, %v272_v14  ;;  %v16_v24 = vld [vmem:[%s712_s0 + $0x1c] sm:$0xf]  ;;  %v39_v25 = vld [vmem:[%s712_s0 + $0x78] sm:$0xf] }
  0x26   :  { %v294_v26 = vsel %vm81_vm0, %v15_v15, 4286644096  ;;  %v297_v27 = vsel %vm81_vm0, %v23_v16, 4286644096  ;;  %v301_v28 = vsel %vm81_vm0, %v31_v17, 4286644096 }
  0x27   :  { %v253_v29 = vmax.bf16 %v251_v19, %v249_v21  ;;  %v255_v30 = vsel %vm81_vm0, %v77_v8, 4286644096  ;;  %v280_v31 = vmax.bf16 %v278_v20, %v276_v22  ;;  %v24_v32 = vld [vmem:[%s712_s0 + $0x3c] sm:$0xf]  ;;  %v47_v33 = vld [vmem:[%s712_s0 + $0x98] sm:$0xf]  ;;  %v299_v34 = vmax.bf16 %v297_v27, %v294_v26 }
  0x28   :  { %v286_v35 = vsel %vm81_vm0, %v70_v12, 4286644096  ;;  %v32_v36 = vld [vmem:[%s712_s0 + $0x5c] sm:$0xf]  ;;  %v305_v37 = vsel %vm81_vm0, %v39_v25, 4286644096 }
  0x29   :  { %v284_v38 = vmax.bf16 %v282_v23, %v280_v31  ;;  %v290_v39 = vsel %vm81_vm0, %v78_v18, 4286644096  ;;  %v40_v40 = vld [vmem:[%s712_s0 + $0x7c] sm:$0xf]  ;;  %v55_v41 = vld [vmem:[%s712_s0 + $0xb8] sm:$0xf]  ;;  %v303_v42 = vmax.bf16 %v301_v28, %v299_v34  ;;  %v257_v43 = vmax.bf16 %v255_v30, %v253_v29 }
  0x2a   :  { %v309_v44 = vsel %vm81_vm0, %v47_v33, 4286644096  ;;  %v329_v45 = vsel %vm81_vm0, %v16_v24, 4286644096  ;;  %v332_v46 = vsel %vm81_vm0, %v24_v32, 4286644096 }
  0x2b   :  { %v288_v47 = vmax.bf16 %v286_v35, %v284_v38  ;;  %v48_v48 = vld [vmem:[%s712_s0 + $0x9c] sm:$0xf]  ;;  %v63_v49 = vld [vmem:[%s712_s0 + $0xd8] sm:$0xf]  ;;  %v307_v50 = vmax.bf16 %v305_v37, %v303_v42  ;;  %v334_v51 = vmax.bf16 %v332_v46, %v329_v45  ;;  %v336_v52 = vsel %vm81_vm0, %v32_v36, 4286644096 }
  0x2c   :  { %v313_v53 = vsel %vm81_vm0, %v55_v41, 4286644096  ;;  %v340_v54 = vsel %vm81_vm0, %v40_v40, 4286644096  ;;  %v56_v56 = vld [vmem:[%s712_s0 + $0xbc] sm:$0xf] }
  0x2d   :  { %v292_v55 = vmax.bf16 %v290_v39, %v288_v47  ;;  %v71_v57 = vld [vmem:[%s712_s0 + $0xf8] sm:$0xf]  ;;  %v311_v58 = vmax.bf16 %v309_v44, %v307_v50  ;;  %v338_v59 = vmax.bf16 %v336_v52, %v334_v51  ;;  %v317_v60 = vsel %vm81_vm0, %v63_v49, 4286644096  ;;  %v64_v63 = vld [vmem:[%s712_s0 + $0xdc] sm:$0xf] }
  0x2e   :  { %v344_v61 = vsel %vm81_vm0, %v48_v48, 4286644096  ;;  %v321_v2 = vsel %vm81_vm0, %v71_v57, 4286644096  ;;  %v348_v3 = vsel %vm81_vm0, %v56_v56, 4286644096 }
  0x2f   :  { %v398_v62 = vcombine.low %v257_v43, %v292_v55  ;;  %v315_v0 = vmax.bf16 %v313_v53, %v311_v58  ;;  %v342_v1 = vmax.bf16 %v340_v54, %v338_v59  ;;  %v72_v4 = vld [vmem:[%s712_s0 + $0xfc] sm:$0xf]  ;;  %v79_v5 = vld [vmem:[%s712_s0 + $0x118] sm:$0xf]  ;;  %v352_v8 = vsel %vm81_vm0, %v64_v63, 4286644096 }
  0x30   :  { %v80_v9 = vld [vmem:[%s712_s0 + $0x11c] sm:$0xf]  ;;  %v325_v12 = vsel %vm81_vm0, %v79_v5, 4286644096  ;;  %v356_v13 = vsel %vm81_vm0, %v72_v4, 4286644096 }
  0x31   :  { %399 = vst [vmem:[%s713_s1 + $0x10] sm:$0xff] %v398_v62   ;;  %v319_v6 = vmax.bf16 %v317_v60, %v315_v0  ;;  %v346_v7 = vmax.bf16 %v344_v61, %v342_v1  ;;  %v360_v15 = vsel %vm81_vm0, %v80_v9, 4286644096 }
  0x33   :  { %v323_v10 = vmax.bf16 %v321_v2, %v319_v6  ;;  %v350_v11 = vmax.bf16 %v348_v3, %v346_v7 }
  0x35   :  { %v354_v14 = vmax.bf16 %v352_v8, %v350_v11  ;;  %v327_v16 = vmax.bf16 %v325_v12, %v323_v10 }
  0x37   :  { %v358_v17 = vmax.bf16 %v356_v13, %v354_v14 }
  0x39   :  { %v362_v18 = vmax.bf16 %v360_v15, %v358_v17 }
  0x3b   :  { %v400_v19 = vcombine.low %v327_v16, %v362_v18 }
  0x3d   :  { %401 = vst [vmem:[%s713_s1 + $0x18] sm:$0xff] %v400_v19  }

// kernel: resnet18_transfer_forward.22
= control target key start
LH: loop header
LB: loop body
LE: loop exit
PB: predicated region body
PF: predicated region fallthrough
CT: control target
= control target key end

     0   :  { %v1990_v0 = vmov 0   ;;  %vm576_vm0 = vcmask 154624   ;;  %vm673_vm1 = vcmask 1040384   ;;  %vm674_vm2 = vcmask 1041408   ;;  %s2793_s1 = inlined_call_operand.vmem [shape: bf16[147,64], index: 1, kind: input, shape index: {}]   ;;  %s2794_s0 = inlined_call_operand.vmem [shape: bf16[512,147], index: 0, kind: input, shape index: {}]   ;;  %s2795_s2 = inlined_call_operand.vmem [shape: f32[1,64], index: 2, kind: input, shape index: {}]   ;;  %s2796_s3 = inlined_call_operand.vmem [shape: bf16[512,64], index: 3, kind: output, shape index: {}]  }
   0x1   :  { %680 = vmatprep.subr.bf16.mxu0 %v1990_v0  ;;  %1860 = vmatprep.subr.bf16.mxu1 %v1990_v0  ;;  %v1883_v1 = vld [vmem:[%s2793_s1 + $0x38] sm:$0xff]   ;;  %v1884_v2 = vld [vmem:[%s2793_s1 + $0x30] sm:$0xff]   ;;  %v1885_v3 = vld [vmem:[%s2793_s1 + $0x28] sm:$0xff]   ;;  %v1991_v10 = vmov 65535   ;;  %vm19_vm3 = vcmask 523264   ;;  %v1992_v17 = vmov 0.0  }
   0x2   :  { %681 = vmatpush1.bf16.msra.mxu0 %v1883_v1  ;;  %1870 = vmatpush1.bf16.msra.mxu1 %v1883_v1  ;;  %v1886_v4 = vld [vmem:[%s2793_s1 + $0x20] sm:$0xff]   ;;  %v1887_v7 = vld [vmem:[%s2793_s1 + $0x18] sm:$0xff]   ;;  %v1888_v8 = vld [vmem:[%s2793_s1 + $0x10] sm:$0xff]   ;;  %v675_v11 = vsel %vm673_vm1, 4294967295, %v1991_v10  ;;  %20 = vst.msk [vmem:[#allocation2] sm:$0xff] %vm19_vm3, %v1992_v17  ;;  %vm1556_vm4 = vcmask 519168  }
   0x3   :  { %682 = vmatprep.subr.bf16.mxu0 %v1990_v0  ;;  %1861 = vmatprep.subr.bf16.mxu1 %v1990_v0  ;;  %v1895_v5 = vld [vmem:[%s2794_s0 + $0x4] ss:$8 sps:$4 sm:$0xff]   ;;  %v1891_v13 = vld [vmem:[%s2793_s1 + $0x48] ss:$0 sps:$4 sm:$0x33]   ;;  %v676_v14 = vsel %vm674_vm2, %v675_v11, 0 }
   0x4   :  { %1699 = vmatprep.mubr.msk.bf16.mxu0 %vm576_vm0, %v1895_v5  ;;  %v1898_v6 = vld [vmem:[%s2794_s0 + $0x104] ss:$8 sps:$4 sm:$0xff]   ;;  %v678_v15 = vand.u32 %v1891_v13, %v676_v14  ;;  %21 = vst.msk [vmem:[#allocation2 + $0x8] sm:$0xff] %vm19_vm3, %v1992_v17  ;;  %22 = vst.msk [vmem:[#allocation2 + $0x10] sm:$0xff] %vm19_vm3, %v1992_v17  ;;  %v1893_v18 = vld [vmem:[%s2794_s0] ss:$8 sps:$4 sm:$0xff]  }
   0x5   :  { %1715 = vmatprep.mubr.msk.bf16.mxu1 %vm576_vm0, %v1898_v6  ;;  %v1889_v9 = vld [vmem:[%s2793_s1 + $0x8] sm:$0xff]   ;;  %v1890_v12 = vld [vmem:[%s2793_s1] sm:$0xff]   ;;  %23 = vst.msk [vmem:[#allocation2 + $0x18] sm:$0xff] %vm19_vm3, %v1992_v17  ;;  %24 = vst.msk [vmem:[#allocation2 + $0x20] sm:$0xff] %vm19_vm3, %v1992_v17 }
   0x6   :  { %683 = vmatpush1.bf16.msra.mxu0 %v1884_v2  ;;  %1871 = vmatpush1.bf16.msra.mxu1 %v1884_v2  ;;  %v2051_v16 = vld [vmem:[%s2793_s1 + $0x40] sm:$0xff]   ;;  %25 = vst.msk [vmem:[#allocation2 + $0x28] sm:$0xff] %vm19_vm3, %v1992_v17  ;;  %26 = vst.msk [vmem:[#allocation2 + $0x30] sm:$0xff] %vm19_vm3, %v1992_v17  ;;  %v1899_v20 = vld [vmem:[%s2794_s0 + $0x14] ss:$8 sps:$4 sm:$0xff]  }
   0x7   :  { %684 = vmatprep.subr.bf16.mxu0 %v1990_v0  ;;  %1862 = vmatprep.subr.bf16.mxu1 %v1990_v0  ;;  %27 = vst.msk [vmem:[#allocation2 + $0x38] sm:$0xff] %vm19_vm3, %v1992_v17  ;;  %28 = vst.msk [vmem:[#allocation2 + $0x40] sm:$0xff] %vm19_vm3, %v1992_v17  ;;  %v1896_v19 = vld [vmem:[%s2794_s0 + $0x100] ss:$8 sps:$4 sm:$0xff]   ;;  %v1901_v21 = vld [vmem:[%s2794_s0 + $0x114] ss:$8 sps:$4 sm:$0xff]  }
   0x8   :  { %29 = vst.msk [vmem:[#allocation2 + $0x48] sm:$0xff] %vm19_vm3, %v1992_v17  ;;  %30 = vst.msk [vmem:[#allocation2 + $0x50] sm:$0xff] %vm19_vm3, %v1992_v17  ;;  %v1903_v22 = vld [vmem:[%s2794_s0 + $0x10] ss:$8 sps:$4 sm:$0xff]   ;;  %v1905_v24 = vld [vmem:[%s2794_s0 + $0x24] ss:$8 sps:$4 sm:$0xff]  }
   0x9   :  { %31 = vst.msk [vmem:[#allocation2 + $0x58] sm:$0xff] %vm19_vm3, %v1992_v17  ;;  %32 = vst.msk [vmem:[#allocation2 + $0x60] sm:$0xff] %vm19_vm3, %v1992_v17  ;;  %v1904_v23 = vld [vmem:[%s2794_s0 + $0x110] ss:$8 sps:$4 sm:$0xff]   ;;  %v1907_v25 = vld [vmem:[%s2794_s0 + $0x124] ss:$8 sps:$4 sm:$0xff]  }
   0xa   :  { %685 = vmatpush1.bf16.msra.mxu0 %v1885_v3  ;;  %1872 = vmatpush1.bf16.msra.mxu1 %v1885_v3  ;;  %33 = vst.msk [vmem:[#allocation2 + $0x68] sm:$0xff] %vm19_vm3, %v1992_v17  ;;  %34 = vst.msk [vmem:[#allocation2 + $0x70] sm:$0xff] %vm19_vm3, %v1992_v17  ;;  %v1909_v26 = vld [vmem:[%s2794_s0 + $0x20] ss:$8 sps:$4 sm:$0xff]   ;;  %v1911_v28 = vld [vmem:[%s2794_s0 + $0x34] ss:$8 sps:$4 sm:$0xff]  }
   0xb   :  { %686 = vmatprep.subr.bf16.mxu0 %v1990_v0  ;;  %1863 = vmatprep.subr.bf16.mxu1 %v1990_v0  ;;  %35 = vst.msk [vmem:[#allocation2 + $0x78] sm:$0xff] %vm19_vm3, %v1992_v17  ;;  %36 = vst.msk [vmem:[#allocation2 + $0x80] sm:$0xff] %vm19_vm3, %v1992_v17  ;;  %v1910_v27 = vld [vmem:[%s2794_s0 + $0x120] ss:$8 sps:$4 sm:$0xff]   ;;  %v1913_v29 = vld [vmem:[%s2794_s0 + $0x134] ss:$8 sps:$4 sm:$0xff]  }
   0xc   :  { %37 = vst.msk [vmem:[#allocation2 + $0x88] sm:$0xff] %vm19_vm3, %v1992_v17  ;;  %38 = vst.msk [vmem:[#allocation2 + $0x90] sm:$0xff] %vm19_vm3, %v1992_v17  ;;  %v1915_v30 = vld [vmem:[%s2794_s0 + $0x30] ss:$8 sps:$4 sm:$0xff]   ;;  %v1917_v32 = vld [vmem:[%s2794_s0 + $0x44] ss:$8 sps:$4 sm:$0xff]  }
   0xd   :  { %39 = vst.msk [vmem:[#allocation2 + $0x98] sm:$0xff] %vm19_vm3, %v1992_v17  ;;  %40 = vst.msk [vmem:[#allocation2 + $0xa0] sm:$0xff] %vm19_vm3, %v1992_v17  ;;  %v1916_v31 = vld [vmem:[%s2794_s0 + $0x130] ss:$8 sps:$4 sm:$0xff]   ;;  %v1919_v33 = vld [vmem:[%s2794_s0 + $0x144] ss:$8 sps:$4 sm:$0xff]  }
   0xe   :  { %687 = vmatpush1.bf16.msra.mxu0 %v1886_v4  ;;  %1873 = vmatpush1.bf16.msra.mxu1 %v1886_v4  ;;  %41 = vst.msk [vmem:[#allocation2 + $0xa8] sm:$0xff] %vm19_vm3, %v1992_v17  ;;  %42 = vst.msk [vmem:[#allocation2 + $0xb0] sm:$0xff] %vm19_vm3, %v1992_v17  ;;  %v1921_v34 = vld [vmem:[%s2794_s0 + $0x40] ss:$8 sps:$4 sm:$0xff]   ;;  %v1923_v36 = vld [vmem:[%s2794_s0 + $0x54] ss:$8 sps:$4 sm:$0xff]  }
   0xf   :  { %688 = vmatprep.subr.bf16.mxu0 %v1990_v0  ;;  %1864 = vmatprep.subr.bf16.mxu1 %v1990_v0  ;;  %43 = vst.msk [vmem:[#allocation2 + $0xb8] sm:$0xff] %vm19_vm3, %v1992_v17  ;;  %44 = vst.msk [vmem:[#allocation2 + $0xc0] sm:$0xff] %vm19_vm3, %v1992_v17  ;;  %v1922_v35 = vld [vmem:[%s2794_s0 + $0x140] ss:$8 sps:$4 sm:$0xff]   ;;  %v1925_v37 = vld [vmem:[%s2794_s0 + $0x154] ss:$8 sps:$4 sm:$0xff]  }
  0x10   :  { %45 = vst.msk [vmem:[#allocation2 + $0xc8] sm:$0xff] %vm19_vm3, %v1992_v17  ;;  %46 = vst.msk [vmem:[#allocation2 + $0xd0] sm:$0xff] %vm19_vm3, %v1992_v17  ;;  %v1927_v38 = vld [vmem:[%s2794_s0 + $0x50] ss:$8 sps:$4 sm:$0xff]   ;;  %v1929_v40 = vld [vmem:[%s2794_s0 + $0x64] ss:$8 sps:$4 sm:$0xff]  }
  0x11   :  { %47 = vst.msk [vmem:[#allocation2 + $0xd8] sm:$0xff] %vm19_vm3, %v1992_v17  ;;  %48 = vst.msk [vmem:[#allocation2 + $0xe0] sm:$0xff] %vm19_vm3, %v1992_v17  ;;  %v1928_v39 = vld [vmem:[%s2794_s0 + $0x150] ss:$8 sps:$4 sm:$0xff]   ;;  %v1931_v41 = vld [vmem:[%s2794_s0 + $0x164] ss:$8 sps:$4 sm:$0xff]  }
  0x12   :  { %689 = vmatpush1.bf16.msra.mxu0 %v1887_v7  ;;  %1874 = vmatpush1.bf16.msra.mxu1 %v1887_v7  ;;  %49 = vst.msk [vmem:[#allocation2 + $0xe8] sm:$0xff] %vm19_vm3, %v1992_v17  ;;  %50 = vst.msk [vmem:[#allocation2 + $0xf0] sm:$0xff] %vm19_vm3, %v1992_v17  ;;  %v1933_v42 = vld [vmem:[%s2794_s0 + $0x60] ss:$8 sps:$4 sm:$0xff]   ;;  %v1935_v44 = vld [vmem:[%s2794_s0 + $0x74] ss:$8 sps:$4 sm:$0xff]  }
  0x13   :  { %690 = vmatprep.subr.bf16.mxu0 %v1990_v0  ;;  %1865 = vmatprep.subr.bf16.mxu1 %v1990_v0  ;;  %51 = vst.msk [vmem:[#allocation2 + $0xf8] sm:$0xff] %vm19_vm3, %v1992_v17  ;;  %52 = vst.msk [vmem:[#allocation2 + $0x100] sm:$0xff] %vm19_vm3, %v1992_v17  ;;  %v1934_v43 = vld [vmem:[%s2794_s0 + $0x160] ss:$8 sps:$4 sm:$0xff]   ;;  %v1937_v45 = vld [vmem:[%s2794_s0 + $0x174] ss:$8 sps:$4 sm:$0xff]  }
  0x14   :  { %53 = vst.msk [vmem:[#allocation2 + $0x108] sm:$0xff] %vm19_vm3, %v1992_v17  ;;  %54 = vst.msk [vmem:[#allocation2 + $0x110] sm:$0xff] %vm19_vm3, %v1992_v17  ;;  %v1939_v46 = vld [vmem:[%s2794_s0 + $0x70] ss:$8 sps:$4 sm:$0xff]   ;;  %v1941_v48 = vld [vmem:[%s2794_s0 + $0x84] ss:$8 sps:$4 sm:$0xff]  }
  0x15   :  { %55 = vst.msk [vmem:[#allocation2 + $0x118] sm:$0xff] %vm19_vm3, %v1992_v17  ;;  %56 = vst.msk [vmem:[#allocation2 + $0x120] sm:$0xff] %vm19_vm3, %v1992_v17  ;;  %v1940_v47 = vld [vmem:[%s2794_s0 + $0x170] ss:$8 sps:$4 sm:$0xff]   ;;  %v1943_v49 = vld [vmem:[%s2794_s0 + $0x184] ss:$8 sps:$4 sm:$0xff]  }
  0x16   :  { %691 = vmatpush1.bf16.msra.mxu0 %v1888_v8  ;;  %1875 = vmatpush1.bf16.msra.mxu1 %v1888_v8  ;;  %57 = vst.msk [vmem:[#allocation2 + $0x128] sm:$0xff] %vm19_vm3, %v1992_v17  ;;  %58 = vst.msk [vmem:[#allocation2 + $0x130] sm:$0xff] %vm19_vm3, %v1992_v17  ;;  %v1945_v50 = vld [vmem:[%s2794_s0 + $0x80] ss:$8 sps:$4 sm:$0xff]   ;;  %v1947_v52 = vld [vmem:[%s2794_s0 + $0x94] ss:$8 sps:$4 sm:$0xff]  }
  0x17   :  { %692 = vmatprep.subr.bf16.mxu0 %v1990_v0  ;;  %1866 = vmatprep.subr.bf16.mxu1 %v1990_v0  ;;  %59 = vst.msk [vmem:[#allocation2 + $0x138] sm:$0xff] %vm19_vm3, %v1992_v17  ;;  %60 = vst.msk [vmem:[#allocation2 + $0x140] sm:$0xff] %vm19_vm3, %v1992_v17  ;;  %v1946_v51 = vld [vmem:[%s2794_s0 + $0x180] ss:$8 sps:$4 sm:$0xff]   ;;  %v1949_v53 = vld [vmem:[%s2794_s0 + $0x194] ss:$8 sps:$4 sm:$0xff]  }
  0x18   :  { %61 = vst.msk [vmem:[#allocation2 + $0x148] sm:$0xff] %vm19_vm3, %v1992_v17  ;;  %62 = vst.msk [vmem:[#allocation2 + $0x150] sm:$0xff] %vm19_vm3, %v1992_v17  ;;  %v1951_v54 = vld [vmem:[%s2794_s0 + $0x90] ss:$8 sps:$4 sm:$0xff]   ;;  %v1953_v56 = vld [vmem:[%s2794_s0 + $0xa4] ss:$8 sps:$4 sm:$0xff]  }
  0x19   :  { %63 = vst.msk [vmem:[#allocation2 + $0x158] sm:$0xff] %vm19_vm3, %v1992_v17  ;;  %64 = vst.msk [vmem:[#allocation2 + $0x160] sm:$0xff] %vm19_vm3, %v1992_v17  ;;  %v1952_v55 = vld [vmem:[%s2794_s0 + $0x190] ss:$8 sps:$4 sm:$0xff]   ;;  %v1955_v57 = vld [vmem:[%s2794_s0 + $0x1a4] ss:$8 sps:$4 sm:$0xff]  }
  0x1a   :  { %693 = vmatpush1.bf16.msra.mxu0 %v1889_v9  ;;  %1876 = vmatpush1.bf16.msra.mxu1 %v1889_v9  ;;  %65 = vst.msk [vmem:[#allocation2 + $0x168] sm:$0xff] %vm19_vm3, %v1992_v17  ;;  %66 = vst.msk [vmem:[#allocation2 + $0x170] sm:$0xff] %vm19_vm3, %v1992_v17  ;;  %v1957_v58 = vld [vmem:[%s2794_s0 + $0xa0] ss:$8 sps:$4 sm:$0xff]   ;;  %v1959_v60 = vld [vmem:[%s2794_s0 + $0xb4] ss:$8 sps:$4 sm:$0xff]  }
  0x1b   :  { %694 = vmatprep.subr.bf16.mxu0 %v1990_v0  ;;  %1867 = vmatprep.subr.bf16.mxu1 %v1990_v0  ;;  %67 = vst.msk [vmem:[#allocation2 + $0x178] sm:$0xff] %vm19_vm3, %v1992_v17  ;;  %68 = vst.msk [vmem:[#allocation2 + $0x180] sm:$0xff] %vm19_vm3, %v1992_v17  ;;  %v1958_v59 = vld [vmem:[%s2794_s0 + $0x1a0] ss:$8 sps:$4 sm:$0xff]   ;;  %v1961_v61 = vld [vmem:[%s2794_s0 + $0x1b4] ss:$8 sps:$4 sm:$0xff]  }
  0x1c   :  { %69 = vst.msk [vmem:[#allocation2 + $0x188] sm:$0xff] %vm19_vm3, %v1992_v17  ;;  %70 = vst.msk [vmem:[#allocation2 + $0x190] sm:$0xff] %vm19_vm3, %v1992_v17  ;;  %v1963_v62 = vld [vmem:[%s2794_s0 + $0xb0] ss:$8 sps:$4 sm:$0xff]   ;;  %v1967_v1 = vld [vmem:[%s2794_s0 + $0x1c4] ss:$8 sps:$4 sm:$0xff]  }
  0x1d   :  { %71 = vst.msk [vmem:[#allocation2 + $0x198] sm:$0xff] %vm19_vm3, %v1992_v17  ;;  %72 = vst.msk [vmem:[#allocation2 + $0x1a0] sm:$0xff] %vm19_vm3, %v1992_v17  ;;  %v1964_v63 = vld [vmem:[%s2794_s0 + $0x1b0] ss:$8 sps:$4 sm:$0xff]   ;;  %v1969_v2 = vld [vmem:[%s2794_s0 + $0xc0] ss:$8 sps:$4 sm:$0xff]  }
  0x1e   :  { %695 = vmatpush1.bf16.msra.mxu0 %v1890_v12  ;;  %1877 = vmatpush1.bf16.msra.mxu1 %v1890_v12  ;;  %73 = vst.msk [vmem:[#allocation2 + $0x1a8] sm:$0xff] %vm19_vm3, %v1992_v17  ;;  %74 = vst.msk [vmem:[#allocation2 + $0x1b0] sm:$0xff] %vm19_vm3, %v1992_v17  ;;  %v1970_v3 = vld [vmem:[%s2794_s0 + $0x1c0] ss:$8 sps:$4 sm:$0xff]   ;;  %v1971_v4 = vld [vmem:[%s2794_s0 + $0xd4] ss:$8 sps:$4 sm:$0xff]  }
  0x1f   :  { %708 = vmatprep.subr.bf16.mxu0 %v1990_v0  ;;  %1868 = vmatprep.subr.bf16.mxu1 %v1990_v0  ;;  %75 = vst.msk [vmem:[#allocation2 + $0x1b8] sm:$0xff] %vm19_vm3, %v1992_v17  ;;  %76 = vst.msk [vmem:[#allocation2 + $0x1c0] sm:$0xff] %vm19_vm3, %v1992_v17  ;;  %v1973_v5 = vld [vmem:[%s2794_s0 + $0x1d4] ss:$8 sps:$4 sm:$0xff]   ;;  %v1975_v6 = vld [vmem:[%s2794_s0 + $0xd0] ss:$8 sps:$4 sm:$0xff]  }
  0x20   :  { %77 = vst.msk [vmem:[#allocation2 + $0x1c8] sm:$0xff] %vm19_vm3, %v1992_v17  ;;  %78 = vst.msk [vmem:[#allocation2 + $0x1d0] sm:$0xff] %vm19_vm3, %v1992_v17  ;;  %v1976_v7 = vld [vmem:[%s2794_s0 + $0x1d0] ss:$8 sps:$4 sm:$0xff]   ;;  %v1977_v8 = vld [vmem:[%s2794_s0 + $0xe4] ss:$8 sps:$4 sm:$0xff]  }
  0x21   :  { %79 = vst.msk [vmem:[#allocation2 + $0x1d8] sm:$0xff] %vm19_vm3, %v1992_v17  ;;  %80 = vst.msk [vmem:[#allocation2 + $0x1e0] sm:$0xff] %vm19_vm3, %v1992_v17  ;;  %v1979_v9 = vld [vmem:[%s2794_s0 + $0x1e4] ss:$8 sps:$4 sm:$0xff]   ;;  %v1981_v10 = vld [vmem:[%s2794_s0 + $0xe0] ss:$8 sps:$4 sm:$0xff]  }
  0x22   :  { %709 = vmatpush2.bf16.msra.mxu0 %v678_v15  ;;  %1878 = vmatpush2.bf16.msra.mxu1 %v678_v15  ;;  %81 = vst.msk [vmem:[#allocation2 + $0x1e8] sm:$0xff] %vm19_vm3, %v1992_v17  ;;  %82 = vst.msk [vmem:[#allocation2 + $0x1f0] sm:$0xff] %vm19_vm3, %v1992_v17  ;;  %v1982_v11 = vld [vmem:[%s2794_s0 + $0x1e0] ss:$8 sps:$4 sm:$0xff]   ;;  %v1983_v12 = vld [vmem:[%s2794_s0 + $0xf4] ss:$8 sps:$4 sm:$0xff]  }
  0x23   :  { %710 = vmatprep.subr.bf16.mxu0 %v1990_v0  ;;  %1869 = vmatprep.subr.bf16.mxu1 %v1990_v0  ;;  %83 = vst.msk [vmem:[#allocation2 + $0x1f8] sm:$0xff] %vm19_vm3, %v1992_v17  ;;  %v1965_v0 = vld [vmem:[%s2794_s0 + $0xc4] ss:$8 sps:$4 sm:$0xff]   ;;  %v1985_v13 = vld [vmem:[%s2794_s0 + $0x1f4] ss:$8 sps:$4 sm:$0xff]  }
  0x24   :  { %v1987_v14 = vld [vmem:[%s2794_s0 + $0xf0] ss:$8 sps:$4 sm:$0xff]   ;;  %v116_v17 = vld [vmem:[#allocation2 + $0x100] sm:$0xff] }
  0x25   :  { %v1988_v15 = vld [vmem:[%s2794_s0 + $0x1f0] ss:$8 sps:$4 sm:$0xff]  }
  0x26   :  { %711 = vmatpush2.bf16.msra.mxu0 %v2051_v16  ;;  %1879 = vmatpush2.bf16.msra.mxu1 %v2051_v16  ;;  %v84_v16 = vld [vmem:[#allocation2] sm:$0xff] }
  0x29   :  { %713 = vmatmul.mubr.bf16.vlgmr.msra.gmra.mxu0 %v1893_v18  ;;  %841 = vmatmul.mubr.bf16.vlgmr.msra.gmra.mxu1 %v1896_v19 }
  0x2a   :  { %1700 = vmatprep.mubr.msk.bf16.mxu0 %vm576_vm0, %v1899_v20  ;;  %1716 = vmatprep.mubr.msk.bf16.mxu1 %vm576_vm0, %v1901_v21 }
  0x31   :  { %721 = vmatmul.mubr.bf16.gmra.mxu0 %v1903_v22  ;;  %849 = vmatmul.mubr.bf16.gmra.mxu1 %v1904_v23 }
  0x32   :  { %1701 = vmatprep.mubr.msk.bf16.mxu0 %vm576_vm0, %v1905_v24  ;;  %1717 = vmatprep.mubr.msk.bf16.mxu1 %vm576_vm0, %v1907_v25  ;;  %v85_v24 = vld [vmem:[#allocation2 + $0x8] sm:$0xff] }
  0x33   :  { %v117_v25 = vld [vmem:[#allocation2 + $0x108] sm:$0xff] }
  0x39   :  { %729 = vmatmul.mubr.bf16.gmra.mxu0 %v1909_v26  ;;  %857 = vmatmul.mubr.bf16.gmra.mxu1 %v1910_v27 }
  0x3a   :  { %1702 = vmatprep.mubr.msk.bf16.mxu0 %vm576_vm0, %v1911_v28  ;;  %1718 = vmatprep.mubr.msk.bf16.mxu1 %vm576_vm0, %v1913_v29 }
  0x41   :  { %737 = vmatmul.mubr.bf16.gmra.mxu0 %v1915_v30  ;;  %865 = vmatmul.mubr.bf16.gmra.mxu1 %v1916_v31 }
  0x42   :  { %1703 = vmatprep.mubr.msk.bf16.mxu0 %vm576_vm0, %v1917_v32  ;;  %1719 = vmatprep.mubr.msk.bf16.mxu1 %vm576_vm0, %v1919_v33  ;;  %v86_v32 = vld [vmem:[#allocation2 + $0x10] sm:$0xff] }
  0x43   :  { %v118_v33 = vld [vmem:[#allocation2 + $0x110] sm:$0xff] }
  0x49   :  { %745 = vmatmul.mubr.bf16.gmra.mxu0 %v1921_v34  ;;  %873 = vmatmul.mubr.bf16.gmra.mxu1 %v1922_v35  ;;  %v2406_v34 = vld [vmem:[%s2795_s2] ss:$0 sm:$0xff] }
  0x4a   :  { %1704 = vmatprep.mubr.msk.bf16.mxu0 %vm576_vm0, %v1923_v36  ;;  %1720 = vmatprep.mubr.msk.bf16.mxu1 %vm576_vm0, %v1925_v37 }
  0x51   :  { %753 = vmatmul.mubr.bf16.gmra.mxu0 %v1927_v38  ;;  %881 = vmatmul.mubr.bf16.gmra.mxu1 %v1928_v39  ;;  %v87_v39 = vld [vmem:[#allocation2 + $0x18] sm:$0xff] }
  0x52   :  { %1705 = vmatprep.mubr.msk.bf16.mxu0 %vm576_vm0, %v1929_v40  ;;  %1721 = vmatprep.mubr.msk.bf16.mxu1 %vm576_vm0, %v1931_v41 }
  0x59   :  { %761 = vmatmul.mubr.bf16.gmra.mxu0 %v1933_v42  ;;  %889 = vmatmul.mubr.bf16.gmra.mxu1 %v1934_v43 }
  0x5a   :  { %1706 = vmatprep.mubr.msk.bf16.mxu0 %vm576_vm0, %v1935_v44  ;;  %1722 = vmatprep.mubr.msk.bf16.mxu1 %vm576_vm0, %v1937_v45  ;;  %v119_v44 = vld [vmem:[#allocation2 + $0x118] sm:$0xff] }
  0x61   :  { %769 = vmatmul.mubr.bf16.gmra.mxu0 %v1939_v46  ;;  %897 = vmatmul.mubr.bf16.gmra.mxu1 %v1940_v47 }
  0x62   :  { %1707 = vmatprep.mubr.msk.bf16.mxu0 %vm576_vm0, %v1941_v48  ;;  %1723 = vmatprep.mubr.msk.bf16.mxu1 %vm576_vm0, %v1943_v49 }
  0x69   :  { %777 = vmatmul.mubr.bf16.gmra.mxu0 %v1945_v50  ;;  %905 = vmatmul.mubr.bf16.gmra.mxu1 %v1946_v51 }
  0x6a   :  { %1708 = vmatprep.mubr.msk.bf16.mxu0 %vm576_vm0, %v1947_v52  ;;  %1724 = vmatprep.mubr.msk.bf16.mxu1 %vm576_vm0, %v1949_v53  ;;  %v88_v53 = vld [vmem:[#allocation2 + $0x20] sm:$0xff] }
  0x71   :  { %785 = vmatmul.mubr.bf16.gmra.mxu0 %v1951_v54  ;;  %913 = vmatmul.mubr.bf16.gmra.mxu1 %v1952_v55 }
  0x72   :  { %1709 = vmatprep.mubr.msk.bf16.mxu0 %vm576_vm0, %v1953_v56  ;;  %1725 = vmatprep.mubr.msk.bf16.mxu1 %vm576_vm0, %v1955_v57 }
  0x79   :  { %793 = vmatmul.mubr.bf16.gmra.mxu0 %v1957_v58  ;;  %921 = vmatmul.mubr.bf16.gmra.mxu1 %v1958_v59  ;;  %v120_v58 = vld [vmem:[#allocation2 + $0x120] sm:$0xff] }
  0x7a   :  { %1710 = vmatprep.mubr.msk.bf16.mxu0 %vm576_vm0, %v1959_v60  ;;  %1726 = vmatprep.mubr.msk.bf16.mxu1 %vm576_vm0, %v1961_v61 }
  0x81   :  { %801 = vmatmul.mubr.bf16.gmra.mxu0 %v1963_v62  ;;  %929 = vmatmul.mubr.bf16.gmra.mxu1 %v1964_v63 }
  0x82   :  { %1711 = vmatprep.mubr.msk.bf16.mxu0 %vm576_vm0, %v1965_v0  ;;  %1727 = vmatprep.mubr.msk.bf16.mxu1 %vm576_vm0, %v1967_v1 }
  0x89   :  { %809 = vmatmul.mubr.bf16.gmra.mxu0 %v1969_v2  ;;  %937 = vmatmul.mubr.bf16.gmra.mxu1 %v1970_v3 }
  0x8a   :  { %1712 = vmatprep.mubr.msk.bf16.mxu0 %vm576_vm0, %v1971_v4  ;;  %1728 = vmatprep.mubr.msk.bf16.mxu1 %vm576_vm0, %v1973_v5  ;;  %v89_v5 = vld [vmem:[#allocation2 + $0x28] sm:$0xff] }
  0x91   :  { %817 = vmatmul.mubr.bf16.gmra.mxu0 %v1975_v6  ;;  %945 = vmatmul.mubr.bf16.gmra.mxu1 %v1976_v7 }
  0x92   :  { %1713 = vmatprep.mubr.msk.bf16.mxu0 %vm576_vm0, %v1977_v8  ;;  %1729 = vmatprep.mubr.msk.bf16.mxu1 %vm576_vm0, %v1979_v9 }
  0x99   :  { %825 = vmatmul.mubr.bf16.gmra.mxu0 %v1981_v10  ;;  %953 = vmatmul.mubr.bf16.gmra.mxu1 %v1982_v11  ;;  %v121_v10 = vld [vmem:[#allocation2 + $0x128] sm:$0xff] }
  0x9a   :  { %1714 = vmatprep.mubr.msk.bf16.mxu0 %vm576_vm0, %v1983_v12  ;;  %1730 = vmatprep.mubr.msk.bf16.mxu1 %vm576_vm0, %v1985_v13 }
  0xa1   :  { %833 = vmatmul.mubr.bf16.gmra.mxu0 %v1987_v14  ;;  %961 = vmatmul.mubr.bf16.gmra.mxu1 %v1988_v15 }
  0xe9   :  { %v714_v18 = vpop.f32.mrf.mxu0  ;;  %v842_v19 = vpop.f32.mrf.mxu1 }
  0xea   :  { %v969_v20 = vadd.f32 %v714_v18, %v84_v16  ;;  %v1001_v21 = vadd.f32 %v842_v19, %v116_v17 }
  0xeb   :  { %v716_v22 = vpop.f32.mrf.mxu0  ;;  %v844_v23 = vpop.f32.mrf.mxu1 }
  0xec   :  { %1034 = vst.msk [vmem:[#allocation2] sm:$0xff] %vm19_vm3, %v969_v20  ;;  %1066 = vst.msk [vmem:[#allocation2 + $0x100] sm:$0xff] %vm19_vm3, %v1001_v21  ;;  %v90_v21 = vld [vmem:[#allocation2 + $0x30] sm:$0xff] }
  0xed   :  { %v717_v26 = vpop.f32.mrf.mxu0  ;;  %v845_v27 = vpop.f32.mrf.mxu1 }
  0xee   :  { %v970_v28 = vadd.f32 %v717_v26, %v85_v24  ;;  %v1002_v29 = vadd.f32 %v845_v27, %v117_v25  ;;  %v122_v26 = vld [vmem:[#allocation2 + $0x130] sm:$0xff] }
  0xef   :  { %v719_v30 = vpop.f32.mrf.mxu0  ;;  %v847_v31 = vpop.f32.mrf.mxu1 }
  0xf0   :  { %1035 = vst.msk [vmem:[#allocation2 + $0x8] sm:$0xff] %vm19_vm3, %v970_v28  ;;  %1067 = vst.msk [vmem:[#allocation2 + $0x108] sm:$0xff] %vm19_vm3, %v1002_v29 }
  0xf1   :  { %v722_v35 = vpop.f32.mrf.mxu0  ;;  %v850_v36 = vpop.f32.mrf.mxu1 }
  0xf2   :  { %v971_v37 = vadd.f32 %v722_v35, %v86_v32  ;;  %v1003_v38 = vadd.f32 %v850_v36, %v118_v33 }
  0xf3   :  { %v1101_v40 = vld [vmem:[#allocation2] sm:$0xff]  ;;  %v724_v42 = vpop.f32.mrf.mxu0  ;;  %v852_v43 = vpop.f32.mrf.mxu1 }
  0xf4   :  { %v1133_v41 = vld [vmem:[#allocation2 + $0x100] sm:$0xff]  ;;  %v1172_v45 = vadd.f32 %v2406_v34, %v1101_v40  ;;  %1036 = vst.msk [vmem:[#allocation2 + $0x10] sm:$0xff] %vm19_vm3, %v971_v37  ;;  %1068 = vst.msk [vmem:[#allocation2 + $0x110] sm:$0xff] %vm19_vm3, %v1003_v38  ;;  %v91_v38 = vld [vmem:[#allocation2 + $0x38] sm:$0xff] }
  0xf5   :  { %v1204_v46 = vadd.f32 %v2406_v34, %v1133_v41  ;;  %v725_v47 = vpop.f32.mrf.mxu0  ;;  %v853_v48 = vpop.f32.mrf.mxu1  ;;  %v123_v43 = vld [vmem:[#allocation2 + $0x138] sm:$0xff] }
  0xf6   :  { %v1236_v49 = vmax.f32 %v1172_v45, 0.0  ;;  %v972_v51 = vadd.f32 %v725_v47, %v87_v39  ;;  %v1004_v52 = vadd.f32 %v853_v48, %v119_v44 }
  0xf7   :  { %v1268_v50 = vmax.f32 %v1204_v46, 0.0  ;;  %v1102_v54 = vld [vmem:[#allocation2 + $0x8] sm:$0xff]  ;;  %v727_v56 = vpop.f32.mrf.mxu0  ;;  %v855_v57 = vpop.f32.mrf.mxu1 }
  0xf8   :  { %v1134_v55 = vld [vmem:[#allocation2 + $0x108] sm:$0xff]  ;;  %v1796_v59 = vpack.c.bf16 %v1236_v49, %v1236_v49  ;;  %v1173_v61 = vadd.f32 %v2406_v34, %v1102_v54  ;;  %1037 = vst.msk [vmem:[#allocation2 + $0x18] sm:$0xff] %vm19_vm3, %v972_v51  ;;  %1069 = vst.msk [vmem:[#allocation2 + $0x118] sm:$0xff] %vm19_vm3, %v1004_v52  ;;  %v92_v54 = vld [vmem:[#allocation2 + $0x40] sm:$0xff] }
  0xf9   :  { %v1828_v60 = vpack.c.bf16 %v1268_v50, %v1268_v50  ;;  %v1205_v62 = vadd.f32 %v2406_v34, %v1134_v55  ;;  %v730_v63 = vpop.f32.mrf.mxu0  ;;  %v858_v0 = vpop.f32.mrf.mxu1 }
  0xfa   :  { %1557 = vst.msk [vmem:[%s2796_s3] sm:$0xf] %vm1556_vm4, %v1796_v59  ;;  %v1237_v1 = vmax.f32 %v1173_v61, 0.0  ;;  %v973_v3 = vadd.f32 %v730_v63, %v88_v53  ;;  %v1005_v4 = vadd.f32 %v858_v0, %v120_v58  ;;  %v124_v59 = vld [vmem:[#allocation2 + $0x140] sm:$0xff] }
  0xfb   :  { %1589 = vst.msk [vmem:[%s2796_s3 + $0x80] sm:$0xf] %vm1556_vm4, %v1828_v60  ;;  %v1269_v2 = vmax.f32 %v1205_v62, 0.0  ;;  %v1103_v6 = vld [vmem:[#allocation2 + $0x10] sm:$0xff]  ;;  %v732_v8 = vpop.f32.mrf.mxu0  ;;  %v860_v9 = vpop.f32.mrf.mxu1 }
  0xfc   :  { %v1135_v7 = vld [vmem:[#allocation2 + $0x110] sm:$0xff]  ;;  %v1797_v11 = vpack.c.bf16 %v1237_v1, %v1237_v1  ;;  %v1174_v13 = vadd.f32 %v2406_v34, %v1103_v6  ;;  %1038 = vst.msk [vmem:[#allocation2 + $0x20] sm:$0xff] %vm19_vm3, %v973_v3  ;;  %1070 = vst.msk [vmem:[#allocation2 + $0x120] sm:$0xff] %vm19_vm3, %v1005_v4  ;;  %v93_v6 = vld [vmem:[#allocation2 + $0x48] sm:$0xff] }
  0xfd   :  { %v1829_v12 = vpack.c.bf16 %v1269_v2, %v1269_v2  ;;  %v1206_v14 = vadd.f32 %v2406_v34, %v1135_v7  ;;  %v733_v15 = vpop.f32.mrf.mxu0  ;;  %v861_v16 = vpop.f32.mrf.mxu1 }
  0xfe   :  { %1558 = vst.msk [vmem:[%s2796_s3 + $0x4] sm:$0xf] %vm1556_vm4, %v1797_v11  ;;  %v1238_v17 = vmax.f32 %v1174_v13, 0.0  ;;  %v974_v19 = vadd.f32 %v733_v15, %v89_v5  ;;  %v1006_v20 = vadd.f32 %v861_v16, %v121_v10  ;;  %v125_v11 = vld [vmem:[#allocation2 + $0x148] sm:$0xff] }
  0xff   :  { %1590 = vst.msk [vmem:[%s2796_s3 + $0x84] sm:$0xf] %vm1556_vm4, %v1829_v12  ;;  %v1270_v18 = vmax.f32 %v1206_v14, 0.0  ;;  %v1104_v22 = vld [vmem:[#allocation2 + $0x18] sm:$0xff]  ;;  %v735_v24 = vpop.f32.mrf.mxu0  ;;  %v863_v25 = vpop.f32.mrf.mxu1 }
 0x100   :  { %v1136_v23 = vld [vmem:[#allocation2 + $0x118] sm:$0xff]  ;;  %v1798_v27 = vpack.c.bf16 %v1238_v17, %v1238_v17  ;;  %v1175_v29 = vadd.f32 %v2406_v34, %v1104_v22  ;;  %1039 = vst.msk [vmem:[#allocation2 + $0x28] sm:$0xff] %vm19_vm3, %v974_v19  ;;  %1071 = vst.msk [vmem:[#allocation2 + $0x128] sm:$0xff] %vm19_vm3, %v1006_v20  ;;  %v94_v22 = vld [vmem:[#allocation2 + $0x50] sm:$0xff] }
 0x101   :  { %v1830_v28 = vpack.c.bf16 %v1270_v18, %v1270_v18  ;;  %v1207_v30 = vadd.f32 %v2406_v34, %v1136_v23  ;;  %v738_v31 = vpop.f32.mrf.mxu0  ;;  %v866_v32 = vpop.f32.mrf.mxu1 }
 0x102   :  { %1559 = vst.msk [vmem:[%s2796_s3 + $0x8] sm:$0xf] %vm1556_vm4, %v1798_v27  ;;  %v1239_v33 = vmax.f32 %v1175_v29, 0.0  ;;  %v975_v36 = vadd.f32 %v738_v31, %v90_v21  ;;  %v1007_v37 = vadd.f32 %v866_v32, %v122_v26  ;;  %v126_v27 = vld [vmem:[#allocation2 + $0x150] sm:$0xff] }
 0x103   :  { %1591 = vst.msk [vmem:[%s2796_s3 + $0x88] sm:$0xf] %vm1556_vm4, %v1830_v28  ;;  %v1271_v35 = vmax.f32 %v1207_v30, 0.0  ;;  %v1105_v39 = vld [vmem:[#allocation2 + $0x20] sm:$0xff]  ;;  %v740_v41 = vpop.f32.mrf.mxu0  ;;  %v868_v42 = vpop.f32.mrf.mxu1 }
 0x104   :  { %v1137_v40 = vld [vmem:[#allocation2 + $0x120] sm:$0xff]  ;;  %v1799_v44 = vpack.c.bf16 %v1239_v33, %v1239_v33  ;;  %v1176_v46 = vadd.f32 %v2406_v34, %v1105_v39  ;;  %1040 = vst.msk [vmem:[#allocation2 + $0x30] sm:$0xff] %vm19_vm3, %v975_v36  ;;  %1072 = vst.msk [vmem:[#allocation2 + $0x130] sm:$0xff] %vm19_vm3, %v1007_v37  ;;  %v95_v39 = vld [vmem:[#allocation2 + $0x58] sm:$0xff] }
 0x105   :  { %v1831_v45 = vpack.c.bf16 %v1271_v35, %v1271_v35  ;;  %v1208_v47 = vadd.f32 %v2406_v34, %v1137_v40  ;;  %v741_v48 = vpop.f32.mrf.mxu0  ;;  %v869_v49 = vpop.f32.mrf.mxu1 }
 0x106   :  { %1560 = vst.msk [vmem:[%s2796_s3 + $0xc] sm:$0xf] %vm1556_vm4, %v1799_v44  ;;  %v1240_v50 = vmax.f32 %v1176_v46, 0.0  ;;  %v976_v52 = vadd.f32 %v741_v48, %v91_v38  ;;  %v1008_v53 = vadd.f32 %v869_v49, %v123_v43  ;;  %v127_v44 = vld [vmem:[#allocation2 + $0x158] sm:$0xff] }
 0x107   :  { %1592 = vst.msk [vmem:[%s2796_s3 + $0x8c] sm:$0xf] %vm1556_vm4, %v1831_v45  ;;  %v1272_v51 = vmax.f32 %v1208_v47, 0.0  ;;  %v1106_v55 = vld [vmem:[#allocation2 + $0x28] sm:$0xff]  ;;  %v743_v57 = vpop.f32.mrf.mxu0  ;;  %v871_v58 = vpop.f32.mrf.mxu1 }
 0x108   :  { %v1138_v56 = vld [vmem:[#allocation2 + $0x128] sm:$0xff]  ;;  %v1800_v60 = vpack.c.bf16 %v1240_v50, %v1240_v50  ;;  %v1177_v62 = vadd.f32 %v2406_v34, %v1106_v55  ;;  %1041 = vst.msk [vmem:[#allocation2 + $0x38] sm:$0xff] %vm19_vm3, %v976_v52  ;;  %1073 = vst.msk [vmem:[#allocation2 + $0x138] sm:$0xff] %vm19_vm3, %v1008_v53  ;;  %v96_v55 = vld [vmem:[#allocation2 + $0x60] sm:$0xff] }
 0x109   :  { %v1832_v61 = vpack.c.bf16 %v1272_v51, %v1272_v51  ;;  %v1209_v63 = vadd.f32 %v2406_v34, %v1138_v56  ;;  %v746_v0 = vpop.f32.mrf.mxu0  ;;  %v874_v1 = vpop.f32.mrf.mxu1 }
 0x10a   :  { %1561 = vst.msk [vmem:[%s2796_s3 + $0x10] sm:$0xf] %vm1556_vm4, %v1800_v60  ;;  %v1241_v2 = vmax.f32 %v1177_v62, 0.0  ;;  %v977_v4 = vadd.f32 %v746_v0, %v92_v54  ;;  %v1009_v5 = vadd.f32 %v874_v1, %v124_v59  ;;  %v128_v60 = vld [vmem:[#allocation2 + $0x160] sm:$0xff] }
 0x10b   :  { %1593 = vst.msk [vmem:[%s2796_s3 + $0x90] sm:$0xf] %vm1556_vm4, %v1832_v61  ;;  %v1273_v3 = vmax.f32 %v1209_v63, 0.0  ;;  %v1107_v7 = vld [vmem:[#allocation2 + $0x30] sm:$0xff]  ;;  %v748_v9 = vpop.f32.mrf.mxu0  ;;  %v876_v10 = vpop.f32.mrf.mxu1 }
 0x10c   :  { %v1139_v8 = vld [vmem:[#allocation2 + $0x130] sm:$0xff]  ;;  %v1801_v12 = vpack.c.bf16 %v1241_v2, %v1241_v2  ;;  %v1178_v14 = vadd.f32 %v2406_v34, %v1107_v7  ;;  %1042 = vst.msk [vmem:[#allocation2 + $0x40] sm:$0xff] %vm19_vm3, %v977_v4  ;;  %1074 = vst.msk [vmem:[#allocation2 + $0x140] sm:$0xff] %vm19_vm3, %v1009_v5  ;;  %v97_v7 = vld [vmem:[#allocation2 + $0x68] sm:$0xff] }
 0x10d   :  { %v1833_v13 = vpack.c.bf16 %v1273_v3, %v1273_v3  ;;  %v1210_v15 = vadd.f32 %v2406_v34, %v1139_v8  ;;  %v749_v16 = vpop.f32.mrf.mxu0  ;;  %v877_v17 = vpop.f32.mrf.mxu1 }
 0x10e   :  { %1562 = vst.msk [vmem:[%s2796_s3 + $0x14] sm:$0xf] %vm1556_vm4, %v1801_v12  ;;  %v1242_v18 = vmax.f32 %v1178_v14, 0.0  ;;  %v978_v20 = vadd.f32 %v749_v16, %v93_v6  ;;  %v1010_v21 = vadd.f32 %v877_v17, %v125_v11  ;;  %v129_v12 = vld [vmem:[#allocation2 + $0x168] sm:$0xff] }
 0x10f   :  { %1594 = vst.msk [vmem:[%s2796_s3 + $0x94] sm:$0xf] %vm1556_vm4, %v1833_v13  ;;  %v1274_v19 = vmax.f32 %v1210_v15, 0.0  ;;  %v1108_v23 = vld [vmem:[#allocation2 + $0x38] sm:$0xff]  ;;  %v751_v25 = vpop.f32.mrf.mxu0  ;;  %v879_v26 = vpop.f32.mrf.mxu1 }
 0x110   :  { %v1140_v24 = vld [vmem:[#allocation2 + $0x138] sm:$0xff]  ;;  %v1802_v28 = vpack.c.bf16 %v1242_v18, %v1242_v18  ;;  %v1179_v30 = vadd.f32 %v2406_v34, %v1108_v23  ;;  %1043 = vst.msk [vmem:[#allocation2 + $0x48] sm:$0xff] %vm19_vm3, %v978_v20  ;;  %1075 = vst.msk [vmem:[#allocation2 + $0x148] sm:$0xff] %vm19_vm3, %v1010_v21  ;;  %v98_v23 = vld [vmem:[#allocation2 + $0x70] sm:$0xff] }
 0x111   :  { %v1834_v29 = vpack.c.bf16 %v1274_v19, %v1274_v19  ;;  %v1211_v31 = vadd.f32 %v2406_v34, %v1140_v24  ;;  %v754_v32 = vpop.f32.mrf.mxu0  ;;  %v882_v33 = vpop.f32.mrf.mxu1 }
 0x112   :  { %1563 = vst.msk [vmem:[%s2796_s3 + $0x18] sm:$0xf] %vm1556_vm4, %v1802_v28  ;;  %v1243_v35 = vmax.f32 %v1179_v30, 0.0  ;;  %v979_v37 = vadd.f32 %v754_v32, %v94_v22  ;;  %v1011_v38 = vadd.f32 %v882_v33, %v126_v27  ;;  %v130_v28 = vld [vmem:[#allocation2 + $0x170] sm:$0xff] }
 0x113   :  { %1595 = vst.msk [vmem:[%s2796_s3 + $0x98] sm:$0xf] %vm1556_vm4, %v1834_v29  ;;  %v1275_v36 = vmax.f32 %v1211_v31, 0.0  ;;  %v1109_v40 = vld [vmem:[#allocation2 + $0x40] sm:$0xff]  ;;  %v756_v42 = vpop.f32.mrf.mxu0  ;;  %v884_v43 = vpop.f32.mrf.mxu1 }
 0x114   :  { %v1141_v41 = vld [vmem:[#allocation2 + $0x140] sm:$0xff]  ;;  %v1803_v45 = vpack.c.bf16 %v1243_v35, %v1243_v35  ;;  %v1180_v47 = vadd.f32 %v2406_v34, %v1109_v40  ;;  %1044 = vst.msk [vmem:[#allocation2 + $0x50] sm:$0xff] %vm19_vm3, %v979_v37  ;;  %1076 = vst.msk [vmem:[#allocation2 + $0x150] sm:$0xff] %vm19_vm3, %v1011_v38  ;;  %v99_v40 = vld [vmem:[#allocation2 + $0x78] sm:$0xff] }
 0x115   :  { %v1835_v46 = vpack.c.bf16 %v1275_v36, %v1275_v36  ;;  %v1212_v48 = vadd.f32 %v2406_v34, %v1141_v41  ;;  %v757_v49 = vpop.f32.mrf.mxu0  ;;  %v885_v50 = vpop.f32.mrf.mxu1 }
 0x116   :  { %1564 = vst.msk [vmem:[%s2796_s3 + $0x1c] sm:$0xf] %vm1556_vm4, %v1803_v45  ;;  %v1244_v51 = vmax.f32 %v1180_v47, 0.0  ;;  %v980_v53 = vadd.f32 %v757_v49, %v95_v39  ;;  %v1012_v54 = vadd.f32 %v885_v50, %v127_v44  ;;  %v131_v45 = vld [vmem:[#allocation2 + $0x178] sm:$0xff] }
 0x117   :  { %1596 = vst.msk [vmem:[%s2796_s3 + $0x9c] sm:$0xf] %vm1556_vm4, %v1835_v46  ;;  %v1276_v52 = vmax.f32 %v1212_v48, 0.0  ;;  %v1110_v56 = vld [vmem:[#allocation2 + $0x48] sm:$0xff]  ;;  %v759_v58 = vpop.f32.mrf.mxu0  ;;  %v887_v59 = vpop.f32.mrf.mxu1 }
 0x118   :  { %v1142_v57 = vld [vmem:[#allocation2 + $0x148] sm:$0xff]  ;;  %v1804_v61 = vpack.c.bf16 %v1244_v51, %v1244_v51  ;;  %v1181_v63 = vadd.f32 %v2406_v34, %v1110_v56  ;;  %1045 = vst.msk [vmem:[#allocation2 + $0x58] sm:$0xff] %vm19_vm3, %v980_v53  ;;  %1077 = vst.msk [vmem:[#allocation2 + $0x158] sm:$0xff] %vm19_vm3, %v1012_v54  ;;  %v100_v56 = vld [vmem:[#allocation2 + $0x80] sm:$0xff] }
 0x119   :  { %v1836_v62 = vpack.c.bf16 %v1276_v52, %v1276_v52  ;;  %v1213_v0 = vadd.f32 %v2406_v34, %v1142_v57  ;;  %v762_v1 = vpop.f32.mrf.mxu0  ;;  %v890_v2 = vpop.f32.mrf.mxu1 }
 0x11a   :  { %1565 = vst.msk [vmem:[%s2796_s3 + $0x20] sm:$0xf] %vm1556_vm4, %v1804_v61  ;;  %v1245_v3 = vmax.f32 %v1181_v63, 0.0  ;;  %v981_v5 = vadd.f32 %v762_v1, %v96_v55  ;;  %v1013_v6 = vadd.f32 %v890_v2, %v128_v60  ;;  %v132_v61 = vld [vmem:[#allocation2 + $0x180] sm:$0xff] }
 0x11b   :  { %1597 = vst.msk [vmem:[%s2796_s3 + $0xa0] sm:$0xf] %vm1556_vm4, %v1836_v62  ;;  %v1277_v4 = vmax.f32 %v1213_v0, 0.0  ;;  %v1111_v8 = vld [vmem:[#allocation2 + $0x50] sm:$0xff]  ;;  %v764_v10 = vpop.f32.mrf.mxu0  ;;  %v892_v11 = vpop.f32.mrf.mxu1 }
 0x11c   :  { %v1143_v9 = vld [vmem:[#allocation2 + $0x150] sm:$0xff]  ;;  %v1805_v13 = vpack.c.bf16 %v1245_v3, %v1245_v3  ;;  %v1182_v15 = vadd.f32 %v2406_v34, %v1111_v8  ;;  %1046 = vst.msk [vmem:[#allocation2 + $0x60] sm:$0xff] %vm19_vm3, %v981_v5  ;;  %1078 = vst.msk [vmem:[#allocation2 + $0x160] sm:$0xff] %vm19_vm3, %v1013_v6  ;;  %v101_v8 = vld [vmem:[#allocation2 + $0x88] sm:$0xff] }
 0x11d   :  { %v1837_v14 = vpack.c.bf16 %v1277_v4, %v1277_v4  ;;  %v1214_v16 = vadd.f32 %v2406_v34, %v1143_v9  ;;  %v765_v17 = vpop.f32.mrf.mxu0  ;;  %v893_v18 = vpop.f32.mrf.mxu1 }
 0x11e   :  { %1566 = vst.msk [vmem:[%s2796_s3 + $0x24] sm:$0xf] %vm1556_vm4, %v1805_v13  ;;  %v1246_v19 = vmax.f32 %v1182_v15, 0.0  ;;  %v982_v21 = vadd.f32 %v765_v17, %v97_v7  ;;  %v1014_v22 = vadd.f32 %v893_v18, %v129_v12  ;;  %v133_v13 = vld [vmem:[#allocation2 + $0x188] sm:$0xff] }
 0x11f   :  { %1598 = vst.msk [vmem:[%s2796_s3 + $0xa4] sm:$0xf] %vm1556_vm4, %v1837_v14  ;;  %v1278_v20 = vmax.f32 %v1214_v16, 0.0  ;;  %v1112_v24 = vld [vmem:[#allocation2 + $0x58] sm:$0xff]  ;;  %v767_v26 = vpop.f32.mrf.mxu0  ;;  %v895_v27 = vpop.f32.mrf.mxu1 }
 0x120   :  { %v1144_v25 = vld [vmem:[#allocation2 + $0x158] sm:$0xff]  ;;  %v1806_v29 = vpack.c.bf16 %v1246_v19, %v1246_v19  ;;  %v1183_v31 = vadd.f32 %v2406_v34, %v1112_v24  ;;  %1047 = vst.msk [vmem:[#allocation2 + $0x68] sm:$0xff] %vm19_vm3, %v982_v21  ;;  %1079 = vst.msk [vmem:[#allocation2 + $0x168] sm:$0xff] %vm19_vm3, %v1014_v22  ;;  %v102_v24 = vld [vmem:[#allocation2 + $0x90] sm:$0xff] }
 0x121   :  { %v1838_v30 = vpack.c.bf16 %v1278_v20, %v1278_v20  ;;  %v1215_v32 = vadd.f32 %v2406_v34, %v1144_v25  ;;  %v770_v33 = vpop.f32.mrf.mxu0  ;;  %v898_v35 = vpop.f32.mrf.mxu1 }
 0x122   :  { %1567 = vst.msk [vmem:[%s2796_s3 + $0x28] sm:$0xf] %vm1556_vm4, %v1806_v29  ;;  %v1247_v36 = vmax.f32 %v1183_v31, 0.0  ;;  %v983_v38 = vadd.f32 %v770_v33, %v98_v23  ;;  %v1015_v39 = vadd.f32 %v898_v35, %v130_v28  ;;  %v134_v29 = vld [vmem:[#allocation2 + $0x190] sm:$0xff] }
 0x123   :  { %1599 = vst.msk [vmem:[%s2796_s3 + $0xa8] sm:$0xf] %vm1556_vm4, %v1838_v30  ;;  %v1279_v37 = vmax.f32 %v1215_v32, 0.0  ;;  %v1113_v41 = vld [vmem:[#allocation2 + $0x60] sm:$0xff]  ;;  %v772_v43 = vpop.f32.mrf.mxu0  ;;  %v900_v44 = vpop.f32.mrf.mxu1 }
 0x124   :  { %v1145_v42 = vld [vmem:[#allocation2 + $0x160] sm:$0xff]  ;;  %v1807_v46 = vpack.c.bf16 %v1247_v36, %v1247_v36  ;;  %v1184_v48 = vadd.f32 %v2406_v34, %v1113_v41  ;;  %1048 = vst.msk [vmem:[#allocation2 + $0x70] sm:$0xff] %vm19_vm3, %v983_v38  ;;  %1080 = vst.msk [vmem:[#allocation2 + $0x170] sm:$0xff] %vm19_vm3, %v1015_v39  ;;  %v103_v41 = vld [vmem:[#allocation2 + $0x98] sm:$0xff] }
 0x125   :  { %v1839_v47 = vpack.c.bf16 %v1279_v37, %v1279_v37  ;;  %v1216_v49 = vadd.f32 %v2406_v34, %v1145_v42  ;;  %v773_v50 = vpop.f32.mrf.mxu0  ;;  %v901_v51 = vpop.f32.mrf.mxu1 }
 0x126   :  { %1568 = vst.msk [vmem:[%s2796_s3 + $0x2c] sm:$0xf] %vm1556_vm4, %v1807_v46  ;;  %v1248_v52 = vmax.f32 %v1184_v48, 0.0  ;;  %v984_v54 = vadd.f32 %v773_v50, %v99_v40  ;;  %v1016_v55 = vadd.f32 %v901_v51, %v131_v45  ;;  %v135_v46 = vld [vmem:[#allocation2 + $0x198] sm:$0xff] }
 0x127   :  { %1600 = vst.msk [vmem:[%s2796_s3 + $0xac] sm:$0xf] %vm1556_vm4, %v1839_v47  ;;  %v1280_v53 = vmax.f32 %v1216_v49, 0.0  ;;  %v1114_v57 = vld [vmem:[#allocation2 + $0x68] sm:$0xff]  ;;  %v775_v59 = vpop.f32.mrf.mxu0  ;;  %v903_v60 = vpop.f32.mrf.mxu1 }
 0x128   :  { %v1146_v58 = vld [vmem:[#allocation2 + $0x168] sm:$0xff]  ;;  %v1808_v62 = vpack.c.bf16 %v1248_v52, %v1248_v52  ;;  %v1185_v0 = vadd.f32 %v2406_v34, %v1114_v57  ;;  %1049 = vst.msk [vmem:[#allocation2 + $0x78] sm:$0xff] %vm19_vm3, %v984_v54  ;;  %1081 = vst.msk [vmem:[#allocation2 + $0x178] sm:$0xff] %vm19_vm3, %v1016_v55  ;;  %v104_v57 = vld [vmem:[#allocation2 + $0xa0] sm:$0xff] }
 0x129   :  { %v1840_v63 = vpack.c.bf16 %v1280_v53, %v1280_v53  ;;  %v1217_v1 = vadd.f32 %v2406_v34, %v1146_v58  ;;  %v778_v2 = vpop.f32.mrf.mxu0  ;;  %v906_v3 = vpop.f32.mrf.mxu1 }
 0x12a   :  { %1569 = vst.msk [vmem:[%s2796_s3 + $0x30] sm:$0xf] %vm1556_vm4, %v1808_v62  ;;  %v1249_v4 = vmax.f32 %v1185_v0, 0.0  ;;  %v985_v6 = vadd.f32 %v778_v2, %v100_v56  ;;  %v1017_v7 = vadd.f32 %v906_v3, %v132_v61  ;;  %v136_v62 = vld [vmem:[#allocation2 + $0x1a0] sm:$0xff] }
 0x12b   :  { %1601 = vst.msk [vmem:[%s2796_s3 + $0xb0] sm:$0xf] %vm1556_vm4, %v1840_v63  ;;  %v1281_v5 = vmax.f32 %v1217_v1, 0.0  ;;  %v1115_v9 = vld [vmem:[#allocation2 + $0x70] sm:$0xff]  ;;  %v780_v11 = vpop.f32.mrf.mxu0  ;;  %v908_v12 = vpop.f32.mrf.mxu1 }
 0x12c   :  { %v1147_v10 = vld [vmem:[#allocation2 + $0x170] sm:$0xff]  ;;  %v1809_v14 = vpack.c.bf16 %v1249_v4, %v1249_v4  ;;  %v1186_v16 = vadd.f32 %v2406_v34, %v1115_v9  ;;  %1050 = vst.msk [vmem:[#allocation2 + $0x80] sm:$0xff] %vm19_vm3, %v985_v6  ;;  %1082 = vst.msk [vmem:[#allocation2 + $0x180] sm:$0xff] %vm19_vm3, %v1017_v7  ;;  %v105_v9 = vld [vmem:[#allocation2 + $0xa8] sm:$0xff] }
 0x12d   :  { %v1841_v15 = vpack.c.bf16 %v1281_v5, %v1281_v5  ;;  %v1218_v17 = vadd.f32 %v2406_v34, %v1147_v10  ;;  %v781_v18 = vpop.f32.mrf.mxu0  ;;  %v909_v19 = vpop.f32.mrf.mxu1 }
 0x12e   :  { %1570 = vst.msk [vmem:[%s2796_s3 + $0x34] sm:$0xf] %vm1556_vm4, %v1809_v14  ;;  %v1250_v20 = vmax.f32 %v1186_v16, 0.0  ;;  %v986_v22 = vadd.f32 %v781_v18, %v101_v8  ;;  %v1018_v23 = vadd.f32 %v909_v19, %v133_v13  ;;  %v137_v14 = vld [vmem:[#allocation2 + $0x1a8] sm:$0xff] }
 0x12f   :  { %1602 = vst.msk [vmem:[%s2796_s3 + $0xb4] sm:$0xf] %vm1556_vm4, %v1841_v15  ;;  %v1282_v21 = vmax.f32 %v1218_v17, 0.0  ;;  %v1116_v25 = vld [vmem:[#allocation2 + $0x78] sm:$0xff]  ;;  %v783_v27 = vpop.f32.mrf.mxu0  ;;  %v911_v28 = vpop.f32.mrf.mxu1 }
 0x130   :  { %v1148_v26 = vld [vmem:[#allocation2 + $0x178] sm:$0xff]  ;;  %v1810_v30 = vpack.c.bf16 %v1250_v20, %v1250_v20  ;;  %v1187_v32 = vadd.f32 %v2406_v34, %v1116_v25  ;;  %1051 = vst.msk [vmem:[#allocation2 + $0x88] sm:$0xff] %vm19_vm3, %v986_v22  ;;  %1083 = vst.msk [vmem:[#allocation2 + $0x188] sm:$0xff] %vm19_vm3, %v1018_v23  ;;  %v106_v25 = vld [vmem:[#allocation2 + $0xb0] sm:$0xff] }
 0x131   :  { %v1842_v31 = vpack.c.bf16 %v1282_v21, %v1282_v21  ;;  %v1219_v33 = vadd.f32 %v2406_v34, %v1148_v26  ;;  %v786_v35 = vpop.f32.mrf.mxu0  ;;  %v914_v36 = vpop.f32.mrf.mxu1 }
 0x132   :  { %1571 = vst.msk [vmem:[%s2796_s3 + $0x38] sm:$0xf] %vm1556_vm4, %v1810_v30  ;;  %v1251_v37 = vmax.f32 %v1187_v32, 0.0  ;;  %v987_v39 = vadd.f32 %v786_v35, %v102_v24  ;;  %v1019_v40 = vadd.f32 %v914_v36, %v134_v29  ;;  %v138_v30 = vld [vmem:[#allocation2 + $0x1b0] sm:$0xff] }
 0x133   :  { %1603 = vst.msk [vmem:[%s2796_s3 + $0xb8] sm:$0xf] %vm1556_vm4, %v1842_v31  ;;  %v1283_v38 = vmax.f32 %v1219_v33, 0.0  ;;  %v1117_v42 = vld [vmem:[#allocation2 + $0x80] sm:$0xff]  ;;  %v788_v44 = vpop.f32.mrf.mxu0  ;;  %v916_v45 = vpop.f32.mrf.mxu1 }
 0x134   :  { %v1149_v43 = vld [vmem:[#allocation2 + $0x180] sm:$0xff]  ;;  %v1811_v47 = vpack.c.bf16 %v1251_v37, %v1251_v37  ;;  %v1188_v49 = vadd.f32 %v2406_v34, %v1117_v42  ;;  %1052 = vst.msk [vmem:[#allocation2 + $0x90] sm:$0xff] %vm19_vm3, %v987_v39  ;;  %1084 = vst.msk [vmem:[#allocation2 + $0x190] sm:$0xff] %vm19_vm3, %v1019_v40  ;;  %v107_v42 = vld [vmem:[#allocation2 + $0xb8] sm:$0xff] }
 0x135   :  { %v1843_v48 = vpack.c.bf16 %v1283_v38, %v1283_v38  ;;  %v1220_v50 = vadd.f32 %v2406_v34, %v1149_v43  ;;  %v789_v51 = vpop.f32.mrf.mxu0  ;;  %v917_v52 = vpop.f32.mrf.mxu1 }
 0x136   :  { %1572 = vst.msk [vmem:[%s2796_s3 + $0x3c] sm:$0xf] %vm1556_vm4, %v1811_v47  ;;  %v1252_v53 = vmax.f32 %v1188_v49, 0.0  ;;  %v988_v55 = vadd.f32 %v789_v51, %v103_v41  ;;  %v1020_v56 = vadd.f32 %v917_v52, %v135_v46  ;;  %v139_v47 = vld [vmem:[#allocation2 + $0x1b8] sm:$0xff] }
 0x137   :  { %1604 = vst.msk [vmem:[%s2796_s3 + $0xbc] sm:$0xf] %vm1556_vm4, %v1843_v48  ;;  %v1284_v54 = vmax.f32 %v1220_v50, 0.0  ;;  %v1118_v58 = vld [vmem:[#allocation2 + $0x88] sm:$0xff]  ;;  %v791_v60 = vpop.f32.mrf.mxu0  ;;  %v919_v61 = vpop.f32.mrf.mxu1 }
 0x138   :  { %v1150_v59 = vld [vmem:[#allocation2 + $0x188] sm:$0xff]  ;;  %v1812_v63 = vpack.c.bf16 %v1252_v53, %v1252_v53  ;;  %v1189_v1 = vadd.f32 %v2406_v34, %v1118_v58  ;;  %1053 = vst.msk [vmem:[#allocation2 + $0x98] sm:$0xff] %vm19_vm3, %v988_v55  ;;  %1085 = vst.msk [vmem:[#allocation2 + $0x198] sm:$0xff] %vm19_vm3, %v1020_v56  ;;  %v108_v58 = vld [vmem:[#allocation2 + $0xc0] sm:$0xff] }
 0x139   :  { %v1844_v0 = vpack.c.bf16 %v1284_v54, %v1284_v54  ;;  %v1221_v2 = vadd.f32 %v2406_v34, %v1150_v59  ;;  %v794_v3 = vpop.f32.mrf.mxu0  ;;  %v922_v4 = vpop.f32.mrf.mxu1 }
 0x13a   :  { %1573 = vst.msk [vmem:[%s2796_s3 + $0x40] sm:$0xf] %vm1556_vm4, %v1812_v63  ;;  %v1253_v5 = vmax.f32 %v1189_v1, 0.0  ;;  %v989_v7 = vadd.f32 %v794_v3, %v104_v57  ;;  %v1021_v8 = vadd.f32 %v922_v4, %v136_v62  ;;  %v140_v63 = vld [vmem:[#allocation2 + $0x1c0] sm:$0xff] }
 0x13b   :  { %1605 = vst.msk [vmem:[%s2796_s3 + $0xc0] sm:$0xf] %vm1556_vm4, %v1844_v0  ;;  %v1285_v6 = vmax.f32 %v1221_v2, 0.0  ;;  %v1119_v10 = vld [vmem:[#allocation2 + $0x90] sm:$0xff]  ;;  %v796_v12 = vpop.f32.mrf.mxu0  ;;  %v924_v13 = vpop.f32.mrf.mxu1 }
 0x13c   :  { %v1151_v11 = vld [vmem:[#allocation2 + $0x190] sm:$0xff]  ;;  %v1813_v15 = vpack.c.bf16 %v1253_v5, %v1253_v5  ;;  %v1190_v17 = vadd.f32 %v2406_v34, %v1119_v10  ;;  %1054 = vst.msk [vmem:[#allocation2 + $0xa0] sm:$0xff] %vm19_vm3, %v989_v7  ;;  %1086 = vst.msk [vmem:[#allocation2 + $0x1a0] sm:$0xff] %vm19_vm3, %v1021_v8  ;;  %v109_v10 = vld [vmem:[#allocation2 + $0xc8] sm:$0xff] }
 0x13d   :  { %v1845_v16 = vpack.c.bf16 %v1285_v6, %v1285_v6  ;;  %v1222_v18 = vadd.f32 %v2406_v34, %v1151_v11  ;;  %v797_v19 = vpop.f32.mrf.mxu0  ;;  %v925_v20 = vpop.f32.mrf.mxu1 }
 0x13e   :  { %1574 = vst.msk [vmem:[%s2796_s3 + $0x44] sm:$0xf] %vm1556_vm4, %v1813_v15  ;;  %v1254_v21 = vmax.f32 %v1190_v17, 0.0  ;;  %v990_v23 = vadd.f32 %v797_v19, %v105_v9  ;;  %v1022_v24 = vadd.f32 %v925_v20, %v137_v14  ;;  %v141_v15 = vld [vmem:[#allocation2 + $0x1c8] sm:$0xff] }
 0x13f   :  { %1606 = vst.msk [vmem:[%s2796_s3 + $0xc4] sm:$0xf] %vm1556_vm4, %v1845_v16  ;;  %v1286_v22 = vmax.f32 %v1222_v18, 0.0  ;;  %v1120_v26 = vld [vmem:[#allocation2 + $0x98] sm:$0xff]  ;;  %v799_v28 = vpop.f32.mrf.mxu0  ;;  %v927_v29 = vpop.f32.mrf.mxu1 }
 0x140   :  { %v1152_v27 = vld [vmem:[#allocation2 + $0x198] sm:$0xff]  ;;  %v1814_v31 = vpack.c.bf16 %v1254_v21, %v1254_v21  ;;  %v1191_v33 = vadd.f32 %v2406_v34, %v1120_v26  ;;  %1055 = vst.msk [vmem:[#allocation2 + $0xa8] sm:$0xff] %vm19_vm3, %v990_v23  ;;  %1087 = vst.msk [vmem:[#allocation2 + $0x1a8] sm:$0xff] %vm19_vm3, %v1022_v24  ;;  %v110_v26 = vld [vmem:[#allocation2 + $0xd0] sm:$0xff] }
 0x141   :  { %v1846_v32 = vpack.c.bf16 %v1286_v22, %v1286_v22  ;;  %v1223_v35 = vadd.f32 %v2406_v34, %v1152_v27  ;;  %v802_v36 = vpop.f32.mrf.mxu0  ;;  %v930_v37 = vpop.f32.mrf.mxu1 }
 0x142   :  { %1575 = vst.msk [vmem:[%s2796_s3 + $0x48] sm:$0xf] %vm1556_vm4, %v1814_v31  ;;  %v1255_v38 = vmax.f32 %v1191_v33, 0.0  ;;  %v991_v40 = vadd.f32 %v802_v36, %v106_v25  ;;  %v1023_v41 = vadd.f32 %v930_v37, %v138_v30  ;;  %v142_v31 = vld [vmem:[#allocation2 + $0x1d0] sm:$0xff] }
 0x143   :  { %1607 = vst.msk [vmem:[%s2796_s3 + $0xc8] sm:$0xf] %vm1556_vm4, %v1846_v32  ;;  %v1287_v39 = vmax.f32 %v1223_v35, 0.0  ;;  %v1121_v43 = vld [vmem:[#allocation2 + $0xa0] sm:$0xff]  ;;  %v804_v45 = vpop.f32.mrf.mxu0  ;;  %v932_v46 = vpop.f32.mrf.mxu1 }
 0x144   :  { %v1153_v44 = vld [vmem:[#allocation2 + $0x1a0] sm:$0xff]  ;;  %v1815_v48 = vpack.c.bf16 %v1255_v38, %v1255_v38  ;;  %v1192_v50 = vadd.f32 %v2406_v34, %v1121_v43  ;;  %1056 = vst.msk [vmem:[#allocation2 + $0xb0] sm:$0xff] %vm19_vm3, %v991_v40  ;;  %1088 = vst.msk [vmem:[#allocation2 + $0x1b0] sm:$0xff] %vm19_vm3, %v1023_v41  ;;  %v111_v43 = vld [vmem:[#allocation2 + $0xd8] sm:$0xff] }
 0x145   :  { %v1847_v49 = vpack.c.bf16 %v1287_v39, %v1287_v39  ;;  %v1224_v51 = vadd.f32 %v2406_v34, %v1153_v44  ;;  %v805_v52 = vpop.f32.mrf.mxu0  ;;  %v933_v53 = vpop.f32.mrf.mxu1 }
 0x146   :  { %1576 = vst.msk [vmem:[%s2796_s3 + $0x4c] sm:$0xf] %vm1556_vm4, %v1815_v48  ;;  %v1256_v54 = vmax.f32 %v1192_v50, 0.0  ;;  %v992_v56 = vadd.f32 %v805_v52, %v107_v42  ;;  %v1024_v57 = vadd.f32 %v933_v53, %v139_v47  ;;  %v143_v48 = vld [vmem:[#allocation2 + $0x1d8] sm:$0xff] }
 0x147   :  { %1608 = vst.msk [vmem:[%s2796_s3 + $0xcc] sm:$0xf] %vm1556_vm4, %v1847_v49  ;;  %v1288_v55 = vmax.f32 %v1224_v51, 0.0  ;;  %v1122_v59 = vld [vmem:[#allocation2 + $0xa8] sm:$0xff]  ;;  %v807_v61 = vpop.f32.mrf.mxu0  ;;  %v935_v62 = vpop.f32.mrf.mxu1 }
 0x148   :  { %v1154_v60 = vld [vmem:[#allocation2 + $0x1a8] sm:$0xff]  ;;  %v1816_v0 = vpack.c.bf16 %v1256_v54, %v1256_v54  ;;  %v1193_v2 = vadd.f32 %v2406_v34, %v1122_v59  ;;  %1057 = vst.msk [vmem:[#allocation2 + $0xb8] sm:$0xff] %vm19_vm3, %v992_v56  ;;  %1089 = vst.msk [vmem:[#allocation2 + $0x1b8] sm:$0xff] %vm19_vm3, %v1024_v57  ;;  %v112_v59 = vld [vmem:[#allocation2 + $0xe0] sm:$0xff] }
 0x149   :  { %v1848_v1 = vpack.c.bf16 %v1288_v55, %v1288_v55  ;;  %v1225_v3 = vadd.f32 %v2406_v34, %v1154_v60  ;;  %v810_v4 = vpop.f32.mrf.mxu0  ;;  %v938_v5 = vpop.f32.mrf.mxu1 }
 0x14a   :  { %1577 = vst.msk [vmem:[%s2796_s3 + $0x50] sm:$0xf] %vm1556_vm4, %v1816_v0  ;;  %v1257_v6 = vmax.f32 %v1193_v2, 0.0  ;;  %v993_v8 = vadd.f32 %v810_v4, %v108_v58  ;;  %v1025_v9 = vadd.f32 %v938_v5, %v140_v63  ;;  %v144_v0 = vld [vmem:[#allocation2 + $0x1e0] sm:$0xff] }
 0x14b   :  { %1609 = vst.msk [vmem:[%s2796_s3 + $0xd0] sm:$0xf] %vm1556_vm4, %v1848_v1  ;;  %v1289_v7 = vmax.f32 %v1225_v3, 0.0  ;;  %v1123_v11 = vld [vmem:[#allocation2 + $0xb0] sm:$0xff]  ;;  %v812_v13 = vpop.f32.mrf.mxu0  ;;  %v940_v14 = vpop.f32.mrf.mxu1  ;;  %v2704_v4 = vld [vmem:[%s2795_s2] ss:$0 sm:$0xff] }
 0x14c   :  { %v1155_v12 = vld [vmem:[#allocation2 + $0x1b0] sm:$0xff]  ;;  %v1817_v16 = vpack.c.bf16 %v1257_v6, %v1257_v6  ;;  %v1194_v18 = vadd.f32 %v2406_v34, %v1123_v11  ;;  %1058 = vst.msk [vmem:[#allocation2 + $0xc0] sm:$0xff] %vm19_vm3, %v993_v8  ;;  %1090 = vst.msk [vmem:[#allocation2 + $0x1c0] sm:$0xff] %vm19_vm3, %v1025_v9  ;;  %v113_v11 = vld [vmem:[#allocation2 + $0xe8] sm:$0xff] }
 0x14d   :  { %v1849_v17 = vpack.c.bf16 %v1289_v7, %v1289_v7  ;;  %v1226_v19 = vadd.f32 %v2406_v34, %v1155_v12  ;;  %v813_v20 = vpop.f32.mrf.mxu0  ;;  %v941_v21 = vpop.f32.mrf.mxu1 }
 0x14e   :  { %1578 = vst.msk [vmem:[%s2796_s3 + $0x54] sm:$0xf] %vm1556_vm4, %v1817_v16  ;;  %v1258_v22 = vmax.f32 %v1194_v18, 0.0  ;;  %v994_v24 = vadd.f32 %v813_v20, %v109_v10  ;;  %v1026_v25 = vadd.f32 %v941_v21, %v141_v15  ;;  %v145_v16 = vld [vmem:[#allocation2 + $0x1e8] sm:$0xff] }
 0x14f   :  { %1610 = vst.msk [vmem:[%s2796_s3 + $0xd4] sm:$0xf] %vm1556_vm4, %v1849_v17  ;;  %v1290_v23 = vmax.f32 %v1226_v19, 0.0  ;;  %v1124_v27 = vld [vmem:[#allocation2 + $0xb8] sm:$0xff]  ;;  %v815_v29 = vpop.f32.mrf.mxu0  ;;  %v943_v30 = vpop.f32.mrf.mxu1 }
 0x150   :  { %v1156_v28 = vld [vmem:[#allocation2 + $0x1b8] sm:$0xff]  ;;  %v1818_v32 = vpack.c.bf16 %v1258_v22, %v1258_v22  ;;  %v1195_v35 = vadd.f32 %v2406_v34, %v1124_v27  ;;  %1059 = vst.msk [vmem:[#allocation2 + $0xc8] sm:$0xff] %vm19_vm3, %v994_v24  ;;  %1091 = vst.msk [vmem:[#allocation2 + $0x1c8] sm:$0xff] %vm19_vm3, %v1026_v25  ;;  %v114_v27 = vld [vmem:[#allocation2 + $0xf0] sm:$0xff] }
 0x151   :  { %v1850_v33 = vpack.c.bf16 %v1290_v23, %v1290_v23  ;;  %v1227_v36 = vadd.f32 %v2406_v34, %v1156_v28  ;;  %v818_v37 = vpop.f32.mrf.mxu0  ;;  %v946_v38 = vpop.f32.mrf.mxu1 }
 0x152   :  { %1579 = vst.msk [vmem:[%s2796_s3 + $0x58] sm:$0xf] %vm1556_vm4, %v1818_v32  ;;  %v1259_v39 = vmax.f32 %v1195_v35, 0.0  ;;  %v995_v41 = vadd.f32 %v818_v37, %v110_v26  ;;  %v1027_v42 = vadd.f32 %v946_v38, %v142_v31  ;;  %v146_v32 = vld [vmem:[#allocation2 + $0x1f0] sm:$0xff] }
 0x153   :  { %1611 = vst.msk [vmem:[%s2796_s3 + $0xd8] sm:$0xf] %vm1556_vm4, %v1850_v33  ;;  %v1291_v40 = vmax.f32 %v1227_v36, 0.0  ;;  %v1125_v44 = vld [vmem:[#allocation2 + $0xc0] sm:$0xff]  ;;  %v820_v46 = vpop.f32.mrf.mxu0  ;;  %v948_v47 = vpop.f32.mrf.mxu1 }
 0x154   :  { %v1157_v45 = vld [vmem:[#allocation2 + $0x1c0] sm:$0xff]  ;;  %v1819_v49 = vpack.c.bf16 %v1259_v39, %v1259_v39  ;;  %v1196_v51 = vadd.f32 %v2406_v34, %v1125_v44  ;;  %1060 = vst.msk [vmem:[#allocation2 + $0xd0] sm:$0xff] %vm19_vm3, %v995_v41  ;;  %1092 = vst.msk [vmem:[#allocation2 + $0x1d0] sm:$0xff] %vm19_vm3, %v1027_v42  ;;  %v115_v44 = vld [vmem:[#allocation2 + $0xf8] sm:$0xff] }
 0x155   :  { %v1851_v50 = vpack.c.bf16 %v1291_v40, %v1291_v40  ;;  %v1228_v52 = vadd.f32 %v2406_v34, %v1157_v45  ;;  %v821_v53 = vpop.f32.mrf.mxu0  ;;  %v949_v54 = vpop.f32.mrf.mxu1 }
 0x156   :  { %1580 = vst.msk [vmem:[%s2796_s3 + $0x5c] sm:$0xf] %vm1556_vm4, %v1819_v49  ;;  %v1260_v55 = vmax.f32 %v1196_v51, 0.0  ;;  %v996_v57 = vadd.f32 %v821_v53, %v111_v43  ;;  %v1028_v58 = vadd.f32 %v949_v54, %v143_v48  ;;  %v147_v49 = vld [vmem:[#allocation2 + $0x1f8] sm:$0xff] }
 0x157   :  { %1612 = vst.msk [vmem:[%s2796_s3 + $0xdc] sm:$0xf] %vm1556_vm4, %v1851_v50  ;;  %v1292_v56 = vmax.f32 %v1228_v52, 0.0  ;;  %v1126_v60 = vld [vmem:[#allocation2 + $0xc8] sm:$0xff]  ;;  %v823_v62 = vpop.f32.mrf.mxu0  ;;  %v951_v63 = vpop.f32.mrf.mxu1 }
 0x158   :  { %v1158_v61 = vld [vmem:[#allocation2 + $0x1c8] sm:$0xff]  ;;  %v1820_v1 = vpack.c.bf16 %v1260_v55, %v1260_v55  ;;  %v1197_v3 = vadd.f32 %v2406_v34, %v1126_v60  ;;  %1061 = vst.msk [vmem:[#allocation2 + $0xd8] sm:$0xff] %vm19_vm3, %v996_v57  ;;  %1093 = vst.msk [vmem:[#allocation2 + $0x1d8] sm:$0xff] %vm19_vm3, %v1028_v58 }
 0x159   :  { %v1852_v2 = vpack.c.bf16 %v1292_v56, %v1292_v56  ;;  %v1229_v5 = vadd.f32 %v2704_v4, %v1158_v61  ;;  %v826_v6 = vpop.f32.mrf.mxu0  ;;  %v954_v7 = vpop.f32.mrf.mxu1 }
 0x15a   :  { %1581 = vst.msk [vmem:[%s2796_s3 + $0x60] sm:$0xf] %vm1556_vm4, %v1820_v1  ;;  %v1261_v34 = vmax.f32 %v1197_v3, 0.0  ;;  %v997_v9 = vadd.f32 %v826_v6, %v112_v59  ;;  %v1029_v10 = vadd.f32 %v954_v7, %v144_v0 }
 0x15b   :  { %1613 = vst.msk [vmem:[%s2796_s3 + $0xe0] sm:$0xf] %vm1556_vm4, %v1852_v2  ;;  %v1293_v8 = vmax.f32 %v1229_v5, 0.0  ;;  %v1127_v12 = vld [vmem:[#allocation2 + $0xd0] sm:$0xff]  ;;  %v828_v14 = vpop.f32.mrf.mxu0  ;;  %v956_v15 = vpop.f32.mrf.mxu1 }
 0x15c   :  { %v1159_v13 = vld [vmem:[#allocation2 + $0x1d0] sm:$0xff]  ;;  %v1821_v17 = vpack.c.bf16 %v1261_v34, %v1261_v34  ;;  %v1198_v19 = vadd.f32 %v2704_v4, %v1127_v12  ;;  %1062 = vst.msk [vmem:[#allocation2 + $0xe0] sm:$0xff] %vm19_vm3, %v997_v9  ;;  %1094 = vst.msk [vmem:[#allocation2 + $0x1e0] sm:$0xff] %vm19_vm3, %v1029_v10 }
 0x15d   :  { %v1853_v18 = vpack.c.bf16 %v1293_v8, %v1293_v8  ;;  %v1230_v20 = vadd.f32 %v2704_v4, %v1159_v13  ;;  %v829_v21 = vpop.f32.mrf.mxu0  ;;  %v957_v22 = vpop.f32.mrf.mxu1 }
 0x15e   :  { %1582 = vst.msk [vmem:[%s2796_s3 + $0x64] sm:$0xf] %vm1556_vm4, %v1821_v17  ;;  %v1262_v23 = vmax.f32 %v1198_v19, 0.0  ;;  %v998_v25 = vadd.f32 %v829_v21, %v113_v11  ;;  %v1030_v26 = vadd.f32 %v957_v22, %v145_v16 }
 0x15f   :  { %1614 = vst.msk [vmem:[%s2796_s3 + $0xe4] sm:$0xf] %vm1556_vm4, %v1853_v18  ;;  %v1294_v24 = vmax.f32 %v1230_v20, 0.0  ;;  %v1128_v28 = vld [vmem:[#allocation2 + $0xd8] sm:$0xff]  ;;  %v831_v30 = vpop.f32.mrf.mxu0  ;;  %v959_v31 = vpop.f32.mrf.mxu1 }
 0x160   :  { %v1160_v29 = vld [vmem:[#allocation2 + $0x1d8] sm:$0xff]  ;;  %v1822_v33 = vpack.c.bf16 %v1262_v23, %v1262_v23  ;;  %v1199_v36 = vadd.f32 %v2704_v4, %v1128_v28  ;;  %1063 = vst.msk [vmem:[#allocation2 + $0xe8] sm:$0xff] %vm19_vm3, %v998_v25  ;;  %1095 = vst.msk [vmem:[#allocation2 + $0x1e8] sm:$0xff] %vm19_vm3, %v1030_v26 }
 0x161   :  { %v1854_v35 = vpack.c.bf16 %v1294_v24, %v1294_v24  ;;  %v1231_v37 = vadd.f32 %v2704_v4, %v1160_v29  ;;  %v834_v38 = vpop.f32.mrf.mxu0  ;;  %v962_v39 = vpop.f32.mrf.mxu1 }
 0x162   :  { %1583 = vst.msk [vmem:[%s2796_s3 + $0x68] sm:$0xf] %vm1556_vm4, %v1822_v33  ;;  %v1263_v40 = vmax.f32 %v1199_v36, 0.0  ;;  %v999_v42 = vadd.f32 %v834_v38, %v114_v27  ;;  %v1031_v43 = vadd.f32 %v962_v39, %v146_v32 }
 0x163   :  { %1615 = vst.msk [vmem:[%s2796_s3 + $0xe8] sm:$0xf] %vm1556_vm4, %v1854_v35  ;;  %v1295_v41 = vmax.f32 %v1231_v37, 0.0  ;;  %v1129_v45 = vld [vmem:[#allocation2 + $0xe0] sm:$0xff]  ;;  %v836_v47 = vpop.f32.mrf.mxu0  ;;  %v964_v48 = vpop.f32.mrf.mxu1 }
 0x164   :  { %v1161_v46 = vld [vmem:[#allocation2 + $0x1e0] sm:$0xff]  ;;  %v1823_v50 = vpack.c.bf16 %v1263_v40, %v1263_v40  ;;  %v1200_v52 = vadd.f32 %v2704_v4, %v1129_v45  ;;  %1064 = vst.msk [vmem:[#allocation2 + $0xf0] sm:$0xff] %vm19_vm3, %v999_v42  ;;  %1096 = vst.msk [vmem:[#allocation2 + $0x1f0] sm:$0xff] %vm19_vm3, %v1031_v43 }
 0x165   :  { %v1855_v51 = vpack.c.bf16 %v1295_v41, %v1295_v41  ;;  %v1232_v53 = vadd.f32 %v2704_v4, %v1161_v46  ;;  %v837_v54 = vpop.f32.mrf.mxu0  ;;  %v965_v55 = vpop.f32.mrf.mxu1 }
 0x166   :  { %1584 = vst.msk [vmem:[%s2796_s3 + $0x6c] sm:$0xf] %vm1556_vm4, %v1823_v50  ;;  %v1264_v56 = vmax.f32 %v1200_v52, 0.0  ;;  %v1000_v58 = vadd.f32 %v837_v54, %v115_v44  ;;  %v1032_v59 = vadd.f32 %v965_v55, %v147_v49 }
 0x167   :  { %1616 = vst.msk [vmem:[%s2796_s3 + $0xec] sm:$0xf] %vm1556_vm4, %v1855_v51  ;;  %v1296_v57 = vmax.f32 %v1232_v53, 0.0  ;;  %v1130_v60 = vld [vmem:[#allocation2 + $0xe8] sm:$0xff]  ;;  %v839_v62 = vpop.f32.mrf.mxu0  ;;  %v967_v63 = vpop.f32.mrf.mxu1 }
 0x168   :  { %v1162_v61 = vld [vmem:[#allocation2 + $0x1e8] sm:$0xff]  ;;  %v1824_v0 = vpack.c.bf16 %v1264_v56, %v1264_v56  ;;  %v1201_v2 = vadd.f32 %v2704_v4, %v1130_v60  ;;  %1065 = vst.msk [vmem:[#allocation2 + $0xf8] sm:$0xff] %vm19_vm3, %v1000_v58  ;;  %1097 = vst.msk [vmem:[#allocation2 + $0x1f8] sm:$0xff] %vm19_vm3, %v1032_v59 }
 0x169   :  { %v1856_v1 = vpack.c.bf16 %v1296_v57, %v1296_v57  ;;  %v1233_v3 = vadd.f32 %v2704_v4, %v1162_v61 }
 0x16a   :  { %1585 = vst.msk [vmem:[%s2796_s3 + $0x70] sm:$0xf] %vm1556_vm4, %v1824_v0  ;;  %v1265_v5 = vmax.f32 %v1201_v2, 0.0 }
 0x16b   :  { %1617 = vst.msk [vmem:[%s2796_s3 + $0xf0] sm:$0xf] %vm1556_vm4, %v1856_v1  ;;  %v1297_v6 = vmax.f32 %v1233_v3, 0.0  ;;  %v1131_v7 = vld [vmem:[#allocation2 + $0xf0] sm:$0xff] }
 0x16c   :  { %v1163_v34 = vld [vmem:[#allocation2 + $0x1f0] sm:$0xff]  ;;  %v1825_v8 = vpack.c.bf16 %v1265_v5, %v1265_v5  ;;  %v1202_v10 = vadd.f32 %v2704_v4, %v1131_v7 }
 0x16d   :  { %v1857_v9 = vpack.c.bf16 %v1297_v6, %v1297_v6  ;;  %v1234_v11 = vadd.f32 %v2704_v4, %v1163_v34 }
 0x16e   :  { %1586 = vst.msk [vmem:[%s2796_s3 + $0x74] sm:$0xf] %vm1556_vm4, %v1825_v8  ;;  %v1266_v12 = vmax.f32 %v1202_v10, 0.0 }
 0x16f   :  { %1618 = vst.msk [vmem:[%s2796_s3 + $0xf4] sm:$0xf] %vm1556_vm4, %v1857_v9  ;;  %v1298_v13 = vmax.f32 %v1234_v11, 0.0  ;;  %v1132_v14 = vld [vmem:[#allocation2 + $0xf8] sm:$0xff] }
 0x170   :  { %v1164_v15 = vld [vmem:[#allocation2 + $0x1f8] sm:$0xff]  ;;  %v1826_v16 = vpack.c.bf16 %v1266_v12, %v1266_v12  ;;  %v1203_v18 = vadd.f32 %v2704_v4, %v1132_v14 }
 0x171   :  { %v1858_v17 = vpack.c.bf16 %v1298_v13, %v1298_v13  ;;  %v1235_v19 = vadd.f32 %v2704_v4, %v1164_v15 }
 0x172   :  { %1587 = vst.msk [vmem:[%s2796_s3 + $0x78] sm:$0xf] %vm1556_vm4, %v1826_v16  ;;  %v1267_v20 = vmax.f32 %v1203_v18, 0.0 }
 0x173   :  { %1619 = vst.msk [vmem:[%s2796_s3 + $0xf8] sm:$0xf] %vm1556_vm4, %v1858_v17  ;;  %v1299_v21 = vmax.f32 %v1235_v19, 0.0 }
 0x174   :  { %v1827_v22 = vpack.c.bf16 %v1267_v20, %v1267_v20 }
 0x175   :  { %v1859_v23 = vpack.c.bf16 %v1299_v21, %v1299_v21 }
 0x176   :  { %1588 = vst.msk [vmem:[%s2796_s3 + $0x7c] sm:$0xf] %vm1556_vm4, %v1827_v22 }
 0x177   :  { %1620 = vst.msk [vmem:[%s2796_s3 + $0xfc] sm:$0xf] %vm1556_vm4, %v1859_v23 }

// kernel: resnet18_transfer_forward.24
= control target key start
LH: loop header
LB: loop body
LE: loop exit
PB: predicated region body
PF: predicated region fallthrough
CT: control target
= control target key end

     0   :  { %vm19_vm0 = vcmask 523264   ;;  %vm1058_vm1 = vcmask 519168   ;;  %s1886_s1 = inlined_call_operand.vmem [shape: bf16[576,64], index: 1, kind: input, shape index: {}]   ;;  %s1887_s0 = inlined_call_operand.vmem [shape: bf16[128,576], index: 0, kind: input, shape index: {}]   ;;  %s1888_s2 = inlined_call_operand.vmem [shape: f32[1,64], index: 2, kind: input, shape index: {}]   ;;  %s1889_s3 = inlined_call_operand.vmem [shape: bf16[128,64], index: 3, kind: output, shape index: {}]  }
   0x1   :  { %v1369_v0 = vld [vmem:[%s1886_s1 + $0x78] sm:$0xff]   ;;  %v1373_v4 = vld [vmem:[%s1886_s1 + $0x70] sm:$0xff]   ;;  %v1377_v8 = vld [vmem:[%s1886_s1 + $0x68] sm:$0xff]  }
   0x2   :  { %v1370_v1 = vld [vmem:[%s1886_s1 + $0xf8] sm:$0xff]   ;;  %1196 = vmatprep.subr.bf16.mxu0 %v1369_v0  ;;  %v1374_v5 = vld [vmem:[%s1886_s1 + $0xf0] sm:$0xff]   ;;  %v1378_v9 = vld [vmem:[%s1886_s1 + $0xe8] sm:$0xff]  }
   0x3   :  { %v1371_v2 = vld [vmem:[%s1886_s1 + $0x38] sm:$0xff]   ;;  %1260 = vmatprep.subr.bf16.mxu1 %v1370_v1  ;;  %v1375_v6 = vld [vmem:[%s1886_s1 + $0x30] sm:$0xff]   ;;  %v1379_v10 = vld [vmem:[%s1886_s1 + $0x28] sm:$0xff]  }
   0x4   :  { %v1372_v3 = vld [vmem:[%s1886_s1 + $0xb8] sm:$0xff]   ;;  %1197 = vmatpush3.bf16.msra.mxu0 %v1371_v2  ;;  %v1376_v7 = vld [vmem:[%s1886_s1 + $0xb0] sm:$0xff]   ;;  %v1380_v11 = vld [vmem:[%s1886_s1 + $0xa8] sm:$0xff]  }
   0x5   :  { %1261 = vmatpush3.bf16.msra.mxu1 %v1372_v3  ;;  %1198 = vmatprep.subr.bf16.mxu0 %v1373_v4  ;;  %v1381_v12 = vld [vmem:[%s1886_s1 + $0x60] sm:$0xff]   ;;  %v1385_v16 = vld [vmem:[%s1886_s1 + $0x58] sm:$0xff]   ;;  %v1389_v20 = vld [vmem:[%s1886_s1 + $0x50] sm:$0xff]  }
   0x6   :  { %1262 = vmatprep.subr.bf16.mxu1 %v1374_v5  ;;  %v1382_v13 = vld [vmem:[%s1886_s1 + $0xe0] sm:$0xff]   ;;  %v1386_v17 = vld [vmem:[%s1886_s1 + $0xd8] sm:$0xff]   ;;  %v1390_v21 = vld [vmem:[%s1886_s1 + $0xd0] sm:$0xff]  }
   0x7   :  { %v1383_v14 = vld [vmem:[%s1886_s1 + $0x20] sm:$0xff]   ;;  %v1387_v18 = vld [vmem:[%s1886_s1 + $0x18] sm:$0xff]   ;;  %v1391_v22 = vld [vmem:[%s1886_s1 + $0x10] sm:$0xff]  }
   0x8   :  { %1199 = vmatpush3.bf16.msra.mxu0 %v1375_v6  ;;  %v1384_v15 = vld [vmem:[%s1886_s1 + $0xa0] sm:$0xff]   ;;  %v1388_v19 = vld [vmem:[%s1886_s1 + $0x98] sm:$0xff]   ;;  %v1392_v23 = vld [vmem:[%s1886_s1 + $0x90] sm:$0xff]  }
   0x9   :  { %1263 = vmatpush3.bf16.msra.mxu1 %v1376_v7  ;;  %1200 = vmatprep.subr.bf16.mxu0 %v1377_v8  ;;  %v1393_v24 = vld [vmem:[%s1886_s1 + $0x48] sm:$0xff]   ;;  %v1397_v28 = vld [vmem:[%s1886_s1 + $0x40] sm:$0xff]   ;;  %v1407_v36 = vld [vmem:[%s1886_s1 + $0x118] sm:$0xff]  }
   0xa   :  { %1264 = vmatprep.subr.bf16.mxu1 %v1378_v9  ;;  %v1394_v25 = vld [vmem:[%s1886_s1 + $0xc8] sm:$0xff]   ;;  %v1398_v29 = vld [vmem:[%s1886_s1 + $0xc0] sm:$0xff]   ;;  %v1420_v42 = vld [vmem:[%s1886_s1 + $0x110] sm:$0xff]  }
   0xb   :  { %v1395_v26 = vld [vmem:[%s1886_s1 + $0x8] sm:$0xff]   ;;  %v1399_v30 = vld [vmem:[%s1886_s1] sm:$0xff]   ;;  %v1416_v43 = vld [vmem:[%s1887_s0 + $0x5c] ss:$20 sps:$4 sm:$0xff]  }
   0xc   :  { %1201 = vmatpush3.bf16.msra.mxu0 %v1379_v10  ;;  %v1396_v27 = vld [vmem:[%s1886_s1 + $0x88] sm:$0xff]   ;;  %v1400_v31 = vld [vmem:[%s1886_s1 + $0x80] sm:$0xff]   ;;  %v1421_v47 = vld [vmem:[%s1887_s0 + $0x7c] ss:$20 sps:$4 sm:$0xff]  }
   0xd   :  { %1265 = vmatpush3.bf16.msra.mxu1 %v1380_v11  ;;  %1202 = vmatprep.subr.bf16.mxu0 %v1381_v12  ;;  %v1401_v32 = vld [vmem:[%s1887_s0] ss:$20 sps:$4 sm:$0xff]   ;;  %v1403_v33 = vld [vmem:[%s1887_s0 + $0x4] ss:$20 sps:$4 sm:$0xff]   ;;  %v1404_v34 = vld [vmem:[%s1887_s0 + $0x8] ss:$20 sps:$4 sm:$0xff]  }
   0xe   :  { %1266 = vmatprep.subr.bf16.mxu1 %v1382_v13  ;;  %v1406_v35 = vld [vmem:[%s1887_s0 + $0xc] ss:$20 sps:$4 sm:$0xff]   ;;  %645 = vmatprep.mubr.bf16.mxu0 %v1403_v33  ;;  %v1410_v38 = vld [vmem:[%s1887_s0 + $0x34] ss:$20 sps:$4 sm:$0xff]   ;;  %v1413_v40 = vld [vmem:[%s1887_s0 + $0x30] ss:$20 sps:$4 sm:$0xff]  }
   0xf   :  { %742 = vmatprep.mubr.bf16.mxu1 %v1406_v35  ;;  %v1408_v37 = vld [vmem:[%s1887_s0 + $0x2c] ss:$20 sps:$4 sm:$0xff]   ;;  %v1412_v39 = vld [vmem:[%s1887_s0 + $0x28] ss:$20 sps:$4 sm:$0xff]   ;;  %v1418_v44 = vld [vmem:[%s1887_s0 + $0x50] ss:$20 sps:$4 sm:$0xff]  }
  0x10   :  { %1203 = vmatpush3.bf16.msra.mxu0 %v1383_v14  ;;  %v1414_v41 = vld [vmem:[%s1887_s0 + $0x54] ss:$20 sps:$4 sm:$0xff]   ;;  %v1419_v45 = vld [vmem:[%s1887_s0 + $0x58] ss:$20 sps:$4 sm:$0xff]   ;;  %v1446_v49 = vld [vmem:[%s1886_s1 + $0x100] sm:$0xff]   ;;  %v1461_v12 = vmov 0.0  }
  0x11   :  { %1267 = vmatpush3.bf16.msra.mxu1 %v1384_v15  ;;  %1204 = vmatprep.subr.bf16.mxu0 %v1385_v16  ;;  %v1433_v46 = vld [vmem:[%s1886_s1 + $0x108] sm:$0xff]   ;;  %v1423_v48 = vld [vmem:[%s1887_s0 + $0x84] ss:$20 sps:$4 sm:$0xff]   ;;  %v1426_v51 = vld [vmem:[%s1887_s0 + $0x80] ss:$20 sps:$4 sm:$0xff]   ;;  %22 = vst.msk [vmem:[#allocation2 + $0x10] sm:$0xff] %vm19_vm0, %v1461_v12 }
  0x12   :  { %1268 = vmatprep.subr.bf16.mxu1 %v1386_v17  ;;  %v1425_v50 = vld [vmem:[%s1887_s0 + $0x78] ss:$20 sps:$4 sm:$0xff]   ;;  %v1431_v54 = vld [vmem:[%s1887_s0 + $0xa0] ss:$20 sps:$4 sm:$0xff]   ;;  %v1432_v55 = vld [vmem:[%s1887_s0 + $0xa8] ss:$20 sps:$4 sm:$0xff]  }
  0x13   :  { %v1427_v52 = vld [vmem:[%s1887_s0 + $0xa4] ss:$20 sps:$4 sm:$0xff]   ;;  %v1429_v53 = vld [vmem:[%s1887_s0 + $0xac] ss:$20 sps:$4 sm:$0xff]   ;;  %v1436_v57 = vld [vmem:[%s1887_s0 + $0xd4] ss:$20 sps:$4 sm:$0xff]  }
  0x14   :  { %1205 = vmatpush3.bf16.msra.mxu0 %v1387_v18  ;;  %v1434_v56 = vld [vmem:[%s1887_s0 + $0xcc] ss:$20 sps:$4 sm:$0xff]   ;;  %v1438_v58 = vld [vmem:[%s1887_s0 + $0xc8] ss:$20 sps:$4 sm:$0xff]   ;;  %v1439_v59 = vld [vmem:[%s1887_s0 + $0xd0] ss:$20 sps:$4 sm:$0xff]  }
  0x15   :  { %1269 = vmatpush3.bf16.msra.mxu1 %v1388_v19  ;;  %1206 = vmatprep.subr.bf16.mxu0 %v1389_v20  ;;  %v1440_v60 = vld [vmem:[%s1887_s0 + $0xf4] ss:$20 sps:$4 sm:$0xff]   ;;  %v1442_v61 = vld [vmem:[%s1887_s0 + $0xfc] ss:$20 sps:$4 sm:$0xff]   ;;  %v1445_v63 = vld [vmem:[%s1887_s0 + $0xf8] ss:$20 sps:$4 sm:$0xff]  }
  0x16   :  { %1270 = vmatprep.subr.bf16.mxu1 %v1390_v21  ;;  %v1444_v62 = vld [vmem:[%s1887_s0 + $0xf0] ss:$20 sps:$4 sm:$0xff]   ;;  %v1451_v2 = vld [vmem:[%s1887_s0 + $0x118] ss:$20 sps:$4 sm:$0xff]   ;;  %v1452_v3 = vld [vmem:[%s1887_s0 + $0x120] ss:$20 sps:$4 sm:$0xff]  }
  0x17   :  { %v1447_v0 = vld [vmem:[%s1887_s0 + $0x11c] ss:$20 sps:$4 sm:$0xff]   ;;  %v1449_v1 = vld [vmem:[%s1887_s0 + $0x124] ss:$20 sps:$4 sm:$0xff]   ;;  %v1457_v8 = vld [vmem:[%s1887_s0 + $0x60] ss:$20 sps:$4 sm:$0xff]  }
  0x18   :  { %1207 = vmatpush3.bf16.msra.mxu0 %v1391_v22  ;;  %v1453_v4 = vld [vmem:[%s1887_s0 + $0x10] ss:$20 sps:$4 sm:$0xff]   ;;  %v1455_v6 = vld [vmem:[%s1887_s0 + $0x38] ss:$20 sps:$4 sm:$0xff]   ;;  %v1458_v9 = vld [vmem:[%s1887_s0 + $0x100] ss:$20 sps:$4 sm:$0xff]  }
  0x19   :  { %1271 = vmatpush3.bf16.msra.mxu1 %v1392_v23  ;;  %1208 = vmatprep.subr.bf16.mxu0 %v1393_v24  ;;  %v1454_v5 = vld [vmem:[%s1887_s0 + $0xb0] ss:$20 sps:$4 sm:$0xff]   ;;  %v1456_v7 = vld [vmem:[%s1887_s0 + $0xd8] ss:$20 sps:$4 sm:$0xff]   ;;  %v1459_v10 = vld [vmem:[%s1887_s0 + $0x88] ss:$20 sps:$4 sm:$0xff]  }
  0x1a   :  { %1272 = vmatprep.subr.bf16.mxu1 %v1394_v25  ;;  %v1460_v11 = vld [vmem:[%s1887_s0 + $0x128] ss:$20 sps:$4 sm:$0xff]   ;;  %20 = vst.msk [vmem:[#allocation2] sm:$0xff] %vm19_vm0, %v1461_v12  ;;  %21 = vst.msk [vmem:[#allocation2 + $0x8] sm:$0xff] %vm19_vm0, %v1461_v12 }
  0x1b   :  { %23 = vst.msk [vmem:[#allocation2 + $0x18] sm:$0xff] %vm19_vm0, %v1461_v12  ;;  %24 = vst.msk [vmem:[#allocation2 + $0x20] sm:$0xff] %vm19_vm0, %v1461_v12 }
  0x1c   :  { %1209 = vmatpush3.bf16.msra.mxu0 %v1395_v26  ;;  %25 = vst.msk [vmem:[#allocation2 + $0x28] sm:$0xff] %vm19_vm0, %v1461_v12  ;;  %26 = vst.msk [vmem:[#allocation2 + $0x30] sm:$0xff] %vm19_vm0, %v1461_v12 }
  0x1d   :  { %1273 = vmatpush3.bf16.msra.mxu1 %v1396_v27  ;;  %1210 = vmatprep.subr.bf16.mxu0 %v1397_v28  ;;  %27 = vst.msk [vmem:[#allocation2 + $0x38] sm:$0xff] %vm19_vm0, %v1461_v12  ;;  %28 = vst.msk [vmem:[#allocation2 + $0x40] sm:$0xff] %vm19_vm0, %v1461_v12 }
  0x1e   :  { %1274 = vmatprep.subr.bf16.mxu1 %v1398_v29  ;;  %29 = vst.msk [vmem:[#allocation2 + $0x48] sm:$0xff] %vm19_vm0, %v1461_v12  ;;  %30 = vst.msk [vmem:[#allocation2 + $0x50] sm:$0xff] %vm19_vm0, %v1461_v12 }
  0x1f   :  { %31 = vst.msk [vmem:[#allocation2 + $0x58] sm:$0xff] %vm19_vm0, %v1461_v12  ;;  %32 = vst.msk [vmem:[#allocation2 + $0x60] sm:$0xff] %vm19_vm0, %v1461_v12 }
  0x20   :  { %1211 = vmatpush3.bf16.msra.mxu0 %v1399_v30  ;;  %33 = vst.msk [vmem:[#allocation2 + $0x68] sm:$0xff] %vm19_vm0, %v1461_v12  ;;  %34 = vst.msk [vmem:[#allocation2 + $0x70] sm:$0xff] %vm19_vm0, %v1461_v12 }
  0x21   :  { %1275 = vmatpush3.bf16.msra.mxu1 %v1400_v31  ;;  %1336 = vmatprep.subr.bf16.mxu0 %v1407_v36  ;;  %35 = vst.msk [vmem:[#allocation2 + $0x78] sm:$0xff] %vm19_vm0, %v1461_v12 }
  0x22   :  { %1360 = vmatprep.subr.bf16.mxu1 %v1407_v36 }
  0x23   :  { %646 = vmatmul.mubr.bf16.vlgmr.msra.gmra.mxu0 %v1401_v32 }
  0x24   :  { %743 = vmatmul.mubr.bf16.vlgmr.msra.gmra.mxu1 %v1404_v34  ;;  %1337 = vmatpush3.bf16.msra.mxu0 %v1407_v36 }
  0x25   :  { %1364 = vmatpush3.bf16.msra.mxu1 %v1407_v36  ;;  %653 = vmatprep.mubr.bf16.mxu0 %v1408_v37 }
  0x26   :  { %750 = vmatprep.mubr.bf16.mxu1 %v1410_v38  ;;  %1338 = vmatprep.subr.bf16.mxu0 %v1420_v42 }
  0x27   :  { %1361 = vmatprep.subr.bf16.mxu1 %v1420_v42 }
  0x28   :  { %1339 = vmatpush3.bf16.msra.mxu0 %v1420_v42 }
  0x29   :  { %1365 = vmatpush3.bf16.msra.mxu1 %v1420_v42  ;;  %1340 = vmatprep.subr.bf16.mxu0 %v1433_v46 }
  0x2a   :  { %1362 = vmatprep.subr.bf16.mxu1 %v1433_v46 }
  0x2b   :  { %654 = vmatmul.mubr.bf16.gmra.mxu0 %v1412_v39 }
  0x2c   :  { %751 = vmatmul.mubr.bf16.gmra.mxu1 %v1413_v40  ;;  %661 = vmatprep.mubr.bf16.mxu0 %v1414_v41 }
  0x2d   :  { %758 = vmatprep.mubr.bf16.mxu1 %v1416_v43  ;;  %1341 = vmatpush3.bf16.msra.mxu0 %v1433_v46 }
  0x2e   :  { %1366 = vmatpush3.bf16.msra.mxu1 %v1433_v46  ;;  %1342 = vmatprep.subr.bf16.mxu0 %v1446_v49 }
  0x2f   :  { %1363 = vmatprep.subr.bf16.mxu1 %v1446_v49 }
  0x31   :  { %1343 = vmatpush3.bf16.msra.mxu0 %v1446_v49 }
  0x32   :  { %1367 = vmatpush3.bf16.msra.mxu1 %v1446_v49 }
  0x33   :  { %662 = vmatmul.mubr.bf16.gmra.mxu0 %v1418_v44 }
  0x34   :  { %759 = vmatmul.mubr.bf16.gmra.mxu1 %v1419_v45  ;;  %669 = vmatprep.mubr.bf16.mxu0 %v1421_v47 }
  0x35   :  { %766 = vmatprep.mubr.bf16.mxu1 %v1423_v48 }
  0x3b   :  { %670 = vmatmul.mubr.bf16.gmra.mxu0 %v1425_v50 }
  0x3c   :  { %767 = vmatmul.mubr.bf16.gmra.mxu1 %v1426_v51  ;;  %677 = vmatprep.mubr.bf16.mxu0 %v1427_v52 }
  0x3d   :  { %774 = vmatprep.mubr.bf16.mxu1 %v1429_v53 }
  0x43   :  { %678 = vmatmul.mubr.bf16.gmra.mxu0 %v1431_v54 }
  0x44   :  { %775 = vmatmul.mubr.bf16.gmra.mxu1 %v1432_v55  ;;  %685 = vmatprep.mubr.bf16.mxu0 %v1434_v56 }
  0x45   :  { %782 = vmatprep.mubr.bf16.mxu1 %v1436_v57 }
  0x4b   :  { %686 = vmatmul.mubr.bf16.gmra.mxu0 %v1438_v58 }
  0x4c   :  { %783 = vmatmul.mubr.bf16.gmra.mxu1 %v1439_v59  ;;  %693 = vmatprep.mubr.bf16.mxu0 %v1440_v60 }
  0x4d   :  { %790 = vmatprep.mubr.bf16.mxu1 %v1442_v61 }
  0x53   :  { %694 = vmatmul.mubr.bf16.gmra.mxu0 %v1444_v62 }
  0x54   :  { %791 = vmatmul.mubr.bf16.gmra.mxu1 %v1445_v63  ;;  %701 = vmatprep.mubr.bf16.mxu0 %v1447_v0 }
  0x55   :  { %798 = vmatprep.mubr.bf16.mxu1 %v1449_v1 }
  0x5b   :  { %702 = vmatmul.mubr.bf16.gmra.mxu0 %v1451_v2 }
  0x5c   :  { %799 = vmatmul.mubr.bf16.gmra.mxu1 %v1452_v3  ;;  %1344 = vmatprep.mubr.msk.bf16.mxu0 %vm19_vm0, %v1453_v4 }
  0x5d   :  { %1352 = vmatprep.mubr.msk.bf16.mxu1 %vm19_vm0, %v1454_v5 }
  0x63   :  { %1345 = vmatmul.mubr.msk.bf16.vlgmr.msra.gmra.mxu0 %vm19_vm0, %v1455_v6 }
  0x64   :  { %1353 = vmatmul.mubr.msk.bf16.vlgmr.msra.gmra.mxu1 %vm19_vm0, %v1456_v7  ;;  %1348 = vmatprep.mubr.msk.bf16.mxu0 %vm19_vm0, %v1457_v8 }
  0x65   :  { %1356 = vmatprep.mubr.msk.bf16.mxu1 %vm19_vm0, %v1458_v9 }
  0x6b   :  { %1349 = vmatmul.mubr.msk.bf16.gmra.mxu0 %vm19_vm0, %v1459_v10 }
  0x6c   :  { %1357 = vmatmul.mubr.msk.bf16.gmra.mxu1 %vm19_vm0, %v1460_v11 }
  0xe3   :  { %v1212_v13 = vpop.f32.mrf.mxu0 }
  0xe4   :  { %v1276_v14 = vpop.f32.mrf.mxu1 }
  0xe5   :  { %v1213_v15 = vpop.f32.mrf.mxu0 }
  0xe6   :  { %v1277_v16 = vpop.f32.mrf.mxu1  ;;  %v1214_v7 = vadd.f32 %v1213_v15, %v1212_v13 }
  0xe7   :  { %v1215_v17 = vpop.f32.mrf.mxu0  ;;  %v1278_v8 = vadd.f32 %v1277_v16, %v1276_v14 }
  0xe8   :  { %v1279_v18 = vpop.f32.mrf.mxu1 }
  0xe9   :  { %v1216_v19 = vpop.f32.mrf.mxu0  ;;  %v745_v16 = vadd.f32 %v1278_v8, %v1214_v7 }
  0xea   :  { %v1280_v20 = vpop.f32.mrf.mxu1  ;;  %v1217_v10 = vadd.f32 %v1216_v19, %v1215_v17 }
  0xeb   :  { %v1218_v21 = vpop.f32.mrf.mxu0  ;;  %v1281_v11 = vadd.f32 %v1280_v20, %v1279_v18 }
  0xec   :  { %v1282_v22 = vpop.f32.mrf.mxu1 }
  0xed   :  { %v1219_v23 = vpop.f32.mrf.mxu0  ;;  %v748_v17 = vadd.f32 %v1281_v11, %v1217_v10 }
  0xee   :  { %v1283_v24 = vpop.f32.mrf.mxu1  ;;  %v1220_v12 = vadd.f32 %v1219_v23, %v1218_v21  ;;  %v38_v21 = vld [vmem:[#allocation2 + $0x10] sm:$0xff] }
  0xef   :  { %v1221_v25 = vpop.f32.mrf.mxu0 }
  0xf0   :  { %v1285_v26 = vpop.f32.mrf.mxu1 }
  0xf1   :  { %v1222_v27 = vpop.f32.mrf.mxu0 }
  0xf2   :  { %v1286_v28 = vpop.f32.mrf.mxu1 }
  0xf3   :  { %v1224_v29 = vpop.f32.mrf.mxu0 }
  0xf4   :  { %v1288_v30 = vpop.f32.mrf.mxu1 }
  0xf5   :  { %v1225_v31 = vpop.f32.mrf.mxu0 }
  0xf6   :  { %v1289_v32 = vpop.f32.mrf.mxu1 }
  0xf7   :  { %v1734_v33 = vpop.f32.mrf.mxu0 }
  0xf8   :  { %v1736_v34 = vpop.f32.mrf.mxu1 }
  0xf9   :  { %1890 = vst [vmem:[#allocation3_spill] sm:$0xff] %v1736_v34  ;;  %v1738_v35 = vpop.f32.mrf.mxu0 }
  0xfa   :  { %1891 = vst [vmem:[#allocation4_spill] sm:$0xff] %v1738_v35  ;;  %v1740_v36 = vpop.f32.mrf.mxu1 }
  0xfb   :  { %1892 = vst [vmem:[#allocation5_spill] sm:$0xff] %v1740_v36  ;;  %v1230_v37 = vpop.f32.mrf.mxu0  ;;  %v1284_v36 = vadd.f32 %v1283_v24, %v1282_v22 }
  0xfc   :  { %v1294_v38 = vpop.f32.mrf.mxu1 }
  0xfd   :  { %v1231_v39 = vpop.f32.mrf.mxu0  ;;  %v753_v15 = vadd.f32 %v1284_v36, %v1220_v12 }
  0xfe   :  { %v1295_v40 = vpop.f32.mrf.mxu1  ;;  %v1232_v13 = vadd.f32 %v1231_v39, %v1230_v37  ;;  %v36_v37 = vld [vmem:[#allocation2] sm:$0xff] }
  0xff   :  { %v1742_v41 = vpop.f32.mrf.mxu0  ;;  %v1296_v18 = vadd.f32 %v1295_v40, %v1294_v38 }
 0x100   :  { %1893 = vst [vmem:[#allocation6_spill] sm:$0xff] %v1742_v41  ;;  %v1744_v42 = vpop.f32.mrf.mxu1  ;;  %v1226_v41 = vadd.f32 %v1225_v31, %v1224_v29 }
 0x101   :  { %1894 = vst [vmem:[#allocation7_spill] sm:$0xff] %v1744_v42  ;;  %v1746_v43 = vpop.f32.mrf.mxu0  ;;  %v1903_v24 = vld [vmem:[#allocation4_spill] sm:$0xff] }
 0x102   :  { %1895 = vst [vmem:[#allocation8_spill] sm:$0xff] %v1746_v43  ;;  %v1748_v44 = vpop.f32.mrf.mxu1 }
 0x103   :  { %1896 = vst [vmem:[#allocation9_spill] sm:$0xff] %v1748_v44  ;;  %v1236_v45 = vpop.f32.mrf.mxu0 }
 0x104   :  { %v1300_v46 = vpop.f32.mrf.mxu1 }
 0x105   :  { %v1237_v47 = vpop.f32.mrf.mxu0 }
 0x106   :  { %v1301_v48 = vpop.f32.mrf.mxu1 }
 0x107   :  { %v1239_v49 = vpop.f32.mrf.mxu0 }
 0x108   :  { %v1303_v50 = vpop.f32.mrf.mxu1 }
 0x109   :  { %v1240_v51 = vpop.f32.mrf.mxu0 }
 0x10a   :  { %v1304_v52 = vpop.f32.mrf.mxu1  ;;  %v1241_v31 = vadd.f32 %v1240_v51, %v1239_v49 }
 0x10b   :  { %v1242_v53 = vpop.f32.mrf.mxu0 }
 0x10c   :  { %v1306_v54 = vpop.f32.mrf.mxu1 }
 0x10d   :  { %v1243_v55 = vpop.f32.mrf.mxu0 }
 0x10e   :  { %v1307_v56 = vpop.f32.mrf.mxu1  ;;  %v1244_v44 = vadd.f32 %v1243_v55, %v1242_v53  ;;  %v39_v53 = vld [vmem:[#allocation2 + $0x18] sm:$0xff] }
 0x10f   :  { %v1245_v57 = vpop.f32.mrf.mxu0  ;;  %v1308_v42 = vadd.f32 %v1307_v56, %v1306_v54  ;;  %v769_v56 = vadd.f32 %v1296_v18, %v1232_v13  ;;  %v42_v18 = vld [vmem:[#allocation2 + $0x30] sm:$0xff] }
 0x110   :  { %v1309_v58 = vpop.f32.mrf.mxu1 }
 0x111   :  { %v1246_v59 = vpop.f32.mrf.mxu0  ;;  %v785_v23 = vadd.f32 %v1308_v42, %v1244_v44  ;;  %v44_v44 = vld [vmem:[#allocation2 + $0x40] sm:$0xff] }
 0x112   :  { %v1310_v60 = vpop.f32.mrf.mxu1  ;;  %v1247_v19 = vadd.f32 %v1246_v59, %v1245_v57  ;;  %v1906_v59 = vld [vmem:[#allocation6_spill] sm:$0xff] }
 0x113   :  { %v1750_v61 = vpop.f32.mrf.mxu0  ;;  %v1311_v20 = vadd.f32 %v1310_v60, %v1309_v58  ;;  %v47_v58 = vld [vmem:[#allocation2 + $0x58] sm:$0xff]  ;;  %v1907_v60 = vld [vmem:[#allocation8_spill] sm:$0xff] }
 0x114   :  { %1897 = vst [vmem:[#allocation10_spill] sm:$0xff] %v1750_v61  ;;  %v1752_v62 = vpop.f32.mrf.mxu1  ;;  %v1302_v61 = vadd.f32 %v1301_v48, %v1300_v46 }
 0x115   :  { %1898 = vst [vmem:[#allocation11_spill] sm:$0xff] %v1752_v62  ;;  %v1249_v63 = vpop.f32.mrf.mxu0  ;;  %v788_v55 = vadd.f32 %v1311_v20, %v1247_v19  ;;  %v1910_v20 = vld [vmem:[#allocation3_spill] sm:$0xff] }
 0x116   :  { %v1313_v0 = vpop.f32.mrf.mxu1 }
 0x117   :  { %v1754_v1 = vpop.f32.mrf.mxu0 }
 0x118   :  { %1899 = vst [vmem:[#allocation12_spill] sm:$0xff] %v1754_v1  ;;  %v1756_v2 = vpop.f32.mrf.mxu1  ;;  %v1223_v1 = vadd.f32 %v1222_v27, %v1221_v25  ;;  %v1766_v25 = vadd.f32 %v1903_v24, %v1734_v33  ;;  %v46_v27 = vld [vmem:[#allocation2 + $0x50] sm:$0xff] }
 0x119   :  { %1900 = vst [vmem:[#allocation13_spill] sm:$0xff] %v1756_v2  ;;  %v1758_v3 = vpop.f32.mrf.mxu0  ;;  %v1287_v2 = vadd.f32 %v1286_v28, %v1285_v26 }
 0x11a   :  { %1901 = vst [vmem:[#allocation14_spill] sm:$0xff] %v1758_v3  ;;  %v1760_v4 = vpop.f32.mrf.mxu1  ;;  %v1290_v3 = vadd.f32 %v1289_v32, %v1288_v30  ;;  %v1305_v32 = vadd.f32 %v1304_v52, %v1303_v50 }
 0x11b   :  { %1902 = vst [vmem:[#allocation15_spill] sm:$0xff] %v1760_v4  ;;  %v1254_v5 = vpop.f32.mrf.mxu0  ;;  %v1238_v4 = vadd.f32 %v1237_v47, %v1236_v45  ;;  %v756_v29 = vadd.f32 %v1287_v2, %v1223_v1 }
 0x11c   :  { %v1318_v6 = vpop.f32.mrf.mxu1  ;;  %v1768_v30 = vadd.f32 %v1290_v3, %v1226_v41  ;;  %v1904_v41 = vld [vmem:[#allocation10_spill] sm:$0xff]  ;;  %v1905_v49 = vld [vmem:[#allocation11_spill] sm:$0xff]  ;;  %v37_v3 = vld [vmem:[#allocation2 + $0x8] sm:$0xff] }
 0x11d   :  { %v1255_v9 = vpop.f32.mrf.mxu0  ;;  %v777_v39 = vadd.f32 %v1302_v61, %v1238_v4  ;;  %v1250_v57 = vadd.f32 %v1249_v63, %v1904_v41  ;;  %v1314_v50 = vadd.f32 %v1313_v0, %v1905_v49  ;;  %v1235_v61 = vadd.f32 %v1907_v60, %v1906_v59  ;;  %v1909_v63 = vld [vmem:[#allocation9_spill] sm:$0xff]  ;;  %v41_v59 = vld [vmem:[#allocation2 + $0x28] sm:$0xff] }
 0x11e   :  { %v1319_v34 = vpop.f32.mrf.mxu1  ;;  %v1256_v40 = vadd.f32 %v1255_v9, %v1254_v5  ;;  %v780_v5 = vadd.f32 %v1305_v32, %v1241_v31  ;;  %v45_v9 = vld [vmem:[#allocation2 + $0x48] sm:$0xff]  ;;  %v1791_v31 = vld [vmem:[%s1888_s2] ss:$0 sm:$0xff] }
 0x11f   :  { %v1762_v43 = vpop.f32.mrf.mxu0  ;;  %v1320_v45 = vadd.f32 %v1319_v34, %v1318_v6  ;;  %v1908_v6 = vld [vmem:[#allocation7_spill] sm:$0xff] }
 0x120   :  { %v1321_v62 = vpop.f32.mrf.mxu1  ;;  %v1299_v7 = vadd.f32 %v1909_v63, %v1908_v6  ;;  %v49_v6 = vld [vmem:[#allocation2 + $0x68] sm:$0xff] }
 0x121   :  { %v1258_v35 = vpop.f32.mrf.mxu0  ;;  %v801_v11 = vadd.f32 %v1320_v45, %v1256_v40  ;;  %v48_v45 = vld [vmem:[#allocation2 + $0x60] sm:$0xff] }
 0x122   :  { %v1322_v14 = vpop.f32.mrf.mxu1  ;;  %v1259_v12 = vadd.f32 %v1258_v35, %v1762_v43  ;;  %v1914_v43 = vld [vmem:[#allocation13_spill] sm:$0xff] }
 0x123   :  { %v1346_v22 = vpop.f32.mrf.mxu0  ;;  %v1323_v13 = vadd.f32 %v1322_v14, %v1321_v62  ;;  %v1915_v62 = vld [vmem:[#allocation15_spill] sm:$0xff] }
 0x124   :  { %v850_v26 = vadd.f32 %v1346_v22, %v753_v15  ;;  %v1354_v28 = vpop.f32.mrf.mxu1  ;;  %v1317_v14 = vadd.f32 %v1915_v62, %v1914_v43 }
 0x125   :  { %v882_v36 = vadd.f32 %v1354_v28, %v785_v23  ;;  %v841_v38 = vpop.f32.mrf.mxu0  ;;  %v1912_v28 = vld [vmem:[#allocation12_spill] sm:$0xff] }
 0x126   :  { %v906_v46 = vadd.f32 %v850_v26, %v38_v21  ;;  %v842_v42 = vadd.f32 %v841_v38, %v745_v16  ;;  %v873_v47 = vpop.f32.mrf.mxu1  ;;  %v1911_v21 = vld [vmem:[#allocation5_spill] sm:$0xff] }
 0x127   :  { %v914_v33 = vadd.f32 %v882_v36, %v46_v27  ;;  %v874_v48 = vadd.f32 %v873_v47, %v777_v39  ;;  %v1347_v54 = vpop.f32.mrf.mxu0  ;;  %v1293_v22 = vadd.f32 %v1911_v21, %v1910_v20  ;;  %v793_v27 = vadd.f32 %v1314_v50, %v1250_v57 }
 0x128   :  { %922 = vst.msk [vmem:[#allocation2 + $0x10] sm:$0xff] %vm19_vm0, %v906_v46  ;;  %v904_v51 = vadd.f32 %v842_v42, %v36_v37  ;;  %v853_v52 = vadd.f32 %v1347_v54, %v756_v29  ;;  %v1355_v34 = vpop.f32.mrf.mxu1  ;;  %v1913_v29 = vld [vmem:[#allocation14_spill] sm:$0xff]  ;;  %v40_v37 = vld [vmem:[#allocation2 + $0x20] sm:$0xff]  ;;  %v772_v42 = vadd.f32 %v1299_v7, %v1235_v61  ;;  %v804_v54 = vadd.f32 %v1323_v13, %v1259_v12 }
 0x129   :  { %930 = vst.msk [vmem:[#allocation2 + $0x50] sm:$0xff] %vm19_vm0, %v914_v33  ;;  %v912_v1 = vadd.f32 %v874_v48, %v44_v44  ;;  %v885_v2 = vadd.f32 %v1355_v34, %v788_v55  ;;  %v844_v4 = vpop.f32.mrf.mxu0  ;;  %v1253_v35 = vadd.f32 %v1913_v29, %v1912_v28  ;;  %v43_v48 = vld [vmem:[#allocation2 + $0x38] sm:$0xff]  ;;  %v764_v50 = vadd.f32 %v1293_v22, %v1766_v25 }
 0x12a   :  { %920 = vst.msk [vmem:[#allocation2] sm:$0xff] %vm19_vm0, %v904_v51  ;;  %v907_v0 = vadd.f32 %v853_v52, %v39_v53  ;;  %v845_v8 = vadd.f32 %v844_v4, %v748_v17  ;;  %v876_v10 = vpop.f32.mrf.mxu1  ;;  %v50_v17 = vld [vmem:[#allocation2 + $0x70] sm:$0xff] }
 0x12b   :  { %928 = vst.msk [vmem:[#allocation2 + $0x40] sm:$0xff] %vm19_vm0, %v912_v1  ;;  %v915_v15 = vadd.f32 %v885_v2, %v47_v58  ;;  %v877_v16 = vadd.f32 %v876_v10, %v780_v5  ;;  %v1350_v19 = vpop.f32.mrf.mxu0  ;;  %v796_v61 = vadd.f32 %v1317_v14, %v1253_v35 }
 0x12c   :  { %923 = vst.msk [vmem:[#allocation2 + $0x18] sm:$0xff] %vm19_vm0, %v907_v0  ;;  %v905_v23 = vadd.f32 %v845_v8, %v37_v3  ;;  %v866_v24 = vadd.f32 %v1350_v19, %v769_v56  ;;  %v1358_v26 = vpop.f32.mrf.mxu1 }
 0x12d   :  { %931 = vst.msk [vmem:[#allocation2 + $0x58] sm:$0xff] %vm19_vm0, %v915_v15  ;;  %v913_v32 = vadd.f32 %v877_v16, %v45_v9  ;;  %v898_v36 = vadd.f32 %v1358_v26, %v801_v11  ;;  %v857_v38 = vpop.f32.mrf.mxu0 }
 0x12e   :  { %921 = vst.msk [vmem:[#allocation2 + $0x8] sm:$0xff] %vm19_vm0, %v905_v23  ;;  %v910_v39 = vadd.f32 %v866_v24, %v42_v18  ;;  %v858_v40 = vadd.f32 %v857_v38, %v1768_v30  ;;  %v889_v46 = vpop.f32.mrf.mxu1  ;;  %v51_v30 = vld [vmem:[#allocation2 + $0x78] sm:$0xff] }
 0x12f   :  { %v941_v44 = vld [vmem:[#allocation2 + $0x10] sm:$0xff]  ;;  %929 = vst.msk [vmem:[#allocation2 + $0x48] sm:$0xff] %vm19_vm0, %v913_v32  ;;  %v918_v47 = vadd.f32 %v898_v36, %v50_v17  ;;  %v890_v33 = vadd.f32 %v889_v46, %v793_v27  ;;  %v1351_v53 = vpop.f32.mrf.mxu0 }
 0x130   :  { %v964_v55 = vadd.f32 %v1791_v31, %v941_v44  ;;  %v949_v56 = vld [vmem:[#allocation2 + $0x50] sm:$0xff]  ;;  %926 = vst.msk [vmem:[#allocation2 + $0x30] sm:$0xff] %vm19_vm0, %v910_v39  ;;  %v908_v41 = vadd.f32 %v858_v40, %v40_v37  ;;  %v869_v57 = vadd.f32 %v1351_v53, %v772_v42  ;;  %v1359_v49 = vpop.f32.mrf.mxu1 }
 0x131   :  { %v972_v51 = vadd.f32 %v1791_v31, %v949_v56  ;;  %v939_v52 = vld [vmem:[#allocation2] sm:$0xff]  ;;  %934 = vst.msk [vmem:[#allocation2 + $0x70] sm:$0xff] %vm19_vm0, %v918_v47  ;;  %v916_v58 = vadd.f32 %v890_v33, %v48_v45  ;;  %v901_v34 = vadd.f32 %v1359_v49, %v804_v54  ;;  %v860_v60 = vpop.f32.mrf.mxu0 }
 0x132   :  { %v980_v1 = vmax.f32 %v964_v55, 0.0  ;;  %v962_v2 = vadd.f32 %v1791_v31, %v939_v52  ;;  %v947_v3 = vld [vmem:[#allocation2 + $0x40] sm:$0xff]  ;;  %924 = vst.msk [vmem:[#allocation2 + $0x20] sm:$0xff] %vm19_vm0, %v908_v41  ;;  %v911_v4 = vadd.f32 %v869_v57, %v43_v48  ;;  %v861_v5 = vadd.f32 %v860_v60, %v764_v50  ;;  %v892_v25 = vpop.f32.mrf.mxu1 }
 0x133   :  { %v988_v63 = vmax.f32 %v972_v51, 0.0  ;;  %v970_v7 = vadd.f32 %v1791_v31, %v947_v3  ;;  %v942_v0 = vld [vmem:[#allocation2 + $0x18] sm:$0xff]  ;;  %932 = vst.msk [vmem:[#allocation2 + $0x60] sm:$0xff] %vm19_vm0, %v916_v58  ;;  %v919_v8 = vadd.f32 %v901_v34, %v51_v30  ;;  %v893_v9 = vadd.f32 %v892_v25, %v796_v61 }
 0x134   :  { %v1182_v10 = vpack.c.bf16 %v980_v1, %v980_v1  ;;  %v978_v11 = vmax.f32 %v962_v2, 0.0  ;;  %v965_v12 = vadd.f32 %v1791_v31, %v942_v0  ;;  %v950_v13 = vld [vmem:[#allocation2 + $0x58] sm:$0xff]  ;;  %927 = vst.msk [vmem:[#allocation2 + $0x38] sm:$0xff] %vm19_vm0, %v911_v4  ;;  %v909_v15 = vadd.f32 %v861_v5, %v41_v59 }
 0x135   :  { %v1190_v16 = vpack.c.bf16 %v988_v63, %v988_v63  ;;  %v986_v18 = vmax.f32 %v970_v7, 0.0  ;;  %v973_v19 = vadd.f32 %v1791_v31, %v950_v13  ;;  %v940_v20 = vld [vmem:[#allocation2 + $0x8] sm:$0xff]  ;;  %935 = vst.msk [vmem:[#allocation2 + $0x78] sm:$0xff] %vm19_vm0, %v919_v8  ;;  %v917_v21 = vadd.f32 %v893_v9, %v49_v6 }
 0x136   :  { %1061 = vst.msk [vmem:[%s1889_s3 + $0x8] sm:$0xf] %vm1058_vm1, %v1182_v10  ;;  %v1180_v22 = vpack.c.bf16 %v978_v11, %v978_v11  ;;  %v981_v23 = vmax.f32 %v965_v12, 0.0  ;;  %v963_v24 = vadd.f32 %v1791_v31, %v940_v20  ;;  %v948_v17 = vld [vmem:[#allocation2 + $0x48] sm:$0xff] }
 0x137   :  { %925 = vst.msk [vmem:[#allocation2 + $0x28] sm:$0xff] %vm19_vm0, %v909_v15  ;;  %v1188_v26 = vpack.c.bf16 %v986_v18, %v986_v18  ;;  %v989_v27 = vmax.f32 %v973_v19, 0.0  ;;  %v971_v28 = vadd.f32 %v1791_v31, %v948_v17  ;;  %v945_v29 = vld [vmem:[#allocation2 + $0x30] sm:$0xff]  ;;  %933 = vst.msk [vmem:[#allocation2 + $0x68] sm:$0xff] %vm19_vm0, %v917_v21 }
 0x138   :  { %1069 = vst.msk [vmem:[%s1889_s3 + $0x28] sm:$0xf] %vm1058_vm1, %v1190_v16  ;;  %1059 = vst.msk [vmem:[%s1889_s3] sm:$0xf] %vm1058_vm1, %v1180_v22  ;;  %v1183_v35 = vpack.c.bf16 %v981_v23, %v981_v23  ;;  %v979_v43 = vmax.f32 %v963_v24, 0.0  ;;  %v968_v62 = vadd.f32 %v1791_v31, %v945_v29  ;;  %v953_v14 = vld [vmem:[#allocation2 + $0x70] sm:$0xff] }
 0x139   :  { %1067 = vst.msk [vmem:[%s1889_s3 + $0x20] sm:$0xf] %vm1058_vm1, %v1188_v26  ;;  %v1191_v32 = vpack.c.bf16 %v989_v27, %v989_v27  ;;  %v987_v36 = vmax.f32 %v971_v28, 0.0  ;;  %v976_v37 = vadd.f32 %v1791_v31, %v953_v14  ;;  %v943_v38 = vld [vmem:[#allocation2 + $0x20] sm:$0xff] }
 0x13a   :  { %1062 = vst.msk [vmem:[%s1889_s3 + $0xc] sm:$0xf] %vm1058_vm1, %v1183_v35  ;;  %v1181_v39 = vpack.c.bf16 %v979_v43, %v979_v43  ;;  %v984_v40 = vmax.f32 %v968_v62, 0.0  ;;  %v966_v45 = vadd.f32 %v1791_v31, %v943_v38  ;;  %v951_v46 = vld [vmem:[#allocation2 + $0x60] sm:$0xff] }
 0x13b   :  { %1070 = vst.msk [vmem:[%s1889_s3 + $0x2c] sm:$0xf] %vm1058_vm1, %v1191_v32  ;;  %v1189_v42 = vpack.c.bf16 %v987_v36, %v987_v36  ;;  %v992_v44 = vmax.f32 %v976_v37, 0.0  ;;  %v974_v47 = vadd.f32 %v1791_v31, %v951_v46  ;;  %v946_v33 = vld [vmem:[#allocation2 + $0x38] sm:$0xff] }
 0x13c   :  { %1060 = vst.msk [vmem:[%s1889_s3 + $0x4] sm:$0xf] %vm1058_vm1, %v1181_v39  ;;  %v1186_v48 = vpack.c.bf16 %v984_v40, %v984_v40  ;;  %v982_v53 = vmax.f32 %v966_v45, 0.0  ;;  %v969_v54 = vadd.f32 %v1791_v31, %v946_v33  ;;  %v954_v55 = vld [vmem:[#allocation2 + $0x78] sm:$0xff] }
 0x13d   :  { %1068 = vst.msk [vmem:[%s1889_s3 + $0x24] sm:$0xf] %vm1058_vm1, %v1189_v42  ;;  %v1194_v56 = vpack.c.bf16 %v992_v44, %v992_v44  ;;  %v990_v41 = vmax.f32 %v974_v47, 0.0  ;;  %v977_v57 = vadd.f32 %v1791_v31, %v954_v55 }
 0x13e   :  { %v944_v30 = vld [vmem:[#allocation2 + $0x28] sm:$0xff]  ;;  %1065 = vst.msk [vmem:[%s1889_s3 + $0x18] sm:$0xf] %vm1058_vm1, %v1186_v48  ;;  %v1184_v49 = vpack.c.bf16 %v982_v53, %v982_v53  ;;  %v985_v50 = vmax.f32 %v969_v54, 0.0 }
 0x13f   :  { %v967_v51 = vadd.f32 %v1791_v31, %v944_v30  ;;  %v952_v52 = vld [vmem:[#allocation2 + $0x68] sm:$0xff]  ;;  %1073 = vst.msk [vmem:[%s1889_s3 + $0x38] sm:$0xf] %vm1058_vm1, %v1194_v56  ;;  %v1192_v58 = vpack.c.bf16 %v990_v41, %v990_v41  ;;  %v993_v34 = vmax.f32 %v977_v57, 0.0 }
 0x140   :  { %v975_v59 = vadd.f32 %v1791_v31, %v952_v52  ;;  %1063 = vst.msk [vmem:[%s1889_s3 + $0x10] sm:$0xf] %vm1058_vm1, %v1184_v49  ;;  %v1187_v60 = vpack.c.bf16 %v985_v50, %v985_v50 }
 0x141   :  { %v983_v61 = vmax.f32 %v967_v51, 0.0  ;;  %1071 = vst.msk [vmem:[%s1889_s3 + $0x30] sm:$0xf] %vm1058_vm1, %v1192_v58  ;;  %v1195_v1 = vpack.c.bf16 %v993_v34, %v993_v34 }
 0x142   :  { %v991_v2 = vmax.f32 %v975_v59, 0.0  ;;  %1066 = vst.msk [vmem:[%s1889_s3 + $0x1c] sm:$0xf] %vm1058_vm1, %v1187_v60 }
 0x143   :  { %v1185_v31 = vpack.c.bf16 %v983_v61, %v983_v61  ;;  %1074 = vst.msk [vmem:[%s1889_s3 + $0x3c] sm:$0xf] %vm1058_vm1, %v1195_v1 }
 0x144   :  { %v1193_v3 = vpack.c.bf16 %v991_v2, %v991_v2 }
 0x145   :  { %1064 = vst.msk [vmem:[%s1889_s3 + $0x14] sm:$0xf] %vm1058_vm1, %v1185_v31 }
 0x146   :  { %1072 = vst.msk [vmem:[%s1889_s3 + $0x34] sm:$0xf] %vm1058_vm1, %v1193_v3 }

// kernel: resnet18_transfer_forward.25
= control target key start
LH: loop header
LB: loop body
LE: loop exit
PB: predicated region body
PF: predicated region fallthrough
CT: control target
= control target key end

     0   :  { %vm22_vm0 = vcmask 523264   ;;  %vm1109_vm1 = vcmask 519168   ;;  %s2168_s1 = inlined_call_operand.vmem [shape: bf16[576,64], index: 1, kind: input, shape index: {}]   ;;  %s2169_s0 = inlined_call_operand.vmem [shape: bf16[128,576], index: 0, kind: input, shape index: {}]   ;;  %s2170_s3 = inlined_call_operand.vmem [shape: bf16[128,64], index: 3, kind: input, shape index: {}]   ;;  %s2171_s2 = inlined_call_operand.vmem [shape: f32[1,64], index: 2, kind: input, shape index: {}]   ;;  %s2172_s4 = inlined_call_operand.vmem [shape: bf16[128,64], index: 4, kind: output, shape index: {}]  }
   0x1   :  { %v1459_v0 = vld [vmem:[%s2168_s1 + $0x78] sm:$0xff]   ;;  %v1463_v4 = vld [vmem:[%s2168_s1 + $0x70] sm:$0xff]   ;;  %v1467_v8 = vld [vmem:[%s2168_s1 + $0x68] sm:$0xff]  }
   0x2   :  { %v1460_v1 = vld [vmem:[%s2168_s1 + $0xf8] sm:$0xff]   ;;  %1286 = vmatprep.subr.bf16.mxu0 %v1459_v0  ;;  %v1464_v5 = vld [vmem:[%s2168_s1 + $0xf0] sm:$0xff]   ;;  %v1468_v9 = vld [vmem:[%s2168_s1 + $0xe8] sm:$0xff]  }
   0x3   :  { %v1461_v2 = vld [vmem:[%s2168_s1 + $0x38] sm:$0xff]   ;;  %1350 = vmatprep.subr.bf16.mxu1 %v1460_v1  ;;  %v1465_v6 = vld [vmem:[%s2168_s1 + $0x30] sm:$0xff]   ;;  %v1469_v10 = vld [vmem:[%s2168_s1 + $0x28] sm:$0xff]  }
   0x4   :  { %v1462_v3 = vld [vmem:[%s2168_s1 + $0xb8] sm:$0xff]   ;;  %1287 = vmatpush3.bf16.msra.mxu0 %v1461_v2  ;;  %v1466_v7 = vld [vmem:[%s2168_s1 + $0xb0] sm:$0xff]   ;;  %v1470_v11 = vld [vmem:[%s2168_s1 + $0xa8] sm:$0xff]  }
   0x5   :  { %1351 = vmatpush3.bf16.msra.mxu1 %v1462_v3  ;;  %1288 = vmatprep.subr.bf16.mxu0 %v1463_v4  ;;  %v1471_v12 = vld [vmem:[%s2168_s1 + $0x60] sm:$0xff]   ;;  %v1475_v16 = vld [vmem:[%s2168_s1 + $0x58] sm:$0xff]   ;;  %v1479_v20 = vld [vmem:[%s2168_s1 + $0x50] sm:$0xff]  }
   0x6   :  { %1352 = vmatprep.subr.bf16.mxu1 %v1464_v5  ;;  %v1472_v13 = vld [vmem:[%s2168_s1 + $0xe0] sm:$0xff]   ;;  %v1476_v17 = vld [vmem:[%s2168_s1 + $0xd8] sm:$0xff]   ;;  %v1480_v21 = vld [vmem:[%s2168_s1 + $0xd0] sm:$0xff]  }
   0x7   :  { %v1473_v14 = vld [vmem:[%s2168_s1 + $0x20] sm:$0xff]   ;;  %v1477_v18 = vld [vmem:[%s2168_s1 + $0x18] sm:$0xff]   ;;  %v1481_v22 = vld [vmem:[%s2168_s1 + $0x10] sm:$0xff]  }
   0x8   :  { %1289 = vmatpush3.bf16.msra.mxu0 %v1465_v6  ;;  %v1474_v15 = vld [vmem:[%s2168_s1 + $0xa0] sm:$0xff]   ;;  %v1478_v19 = vld [vmem:[%s2168_s1 + $0x98] sm:$0xff]   ;;  %v1482_v23 = vld [vmem:[%s2168_s1 + $0x90] sm:$0xff]  }
   0x9   :  { %1353 = vmatpush3.bf16.msra.mxu1 %v1466_v7  ;;  %1290 = vmatprep.subr.bf16.mxu0 %v1467_v8  ;;  %v1483_v24 = vld [vmem:[%s2168_s1 + $0x48] sm:$0xff]   ;;  %v1487_v28 = vld [vmem:[%s2168_s1 + $0x40] sm:$0xff]   ;;  %v1497_v36 = vld [vmem:[%s2168_s1 + $0x118] sm:$0xff]  }
   0xa   :  { %1354 = vmatprep.subr.bf16.mxu1 %v1468_v9  ;;  %v1484_v25 = vld [vmem:[%s2168_s1 + $0xc8] sm:$0xff]   ;;  %v1488_v29 = vld [vmem:[%s2168_s1 + $0xc0] sm:$0xff]   ;;  %v1510_v42 = vld [vmem:[%s2168_s1 + $0x110] sm:$0xff]  }
   0xb   :  { %v1485_v26 = vld [vmem:[%s2168_s1 + $0x8] sm:$0xff]   ;;  %v1489_v30 = vld [vmem:[%s2168_s1] sm:$0xff]   ;;  %v1506_v43 = vld [vmem:[%s2169_s0 + $0x5c] ss:$20 sps:$4 sm:$0xff]  }
   0xc   :  { %1291 = vmatpush3.bf16.msra.mxu0 %v1469_v10  ;;  %v1486_v27 = vld [vmem:[%s2168_s1 + $0x88] sm:$0xff]   ;;  %v1490_v31 = vld [vmem:[%s2168_s1 + $0x80] sm:$0xff]   ;;  %v1511_v47 = vld [vmem:[%s2169_s0 + $0x7c] ss:$20 sps:$4 sm:$0xff]  }
   0xd   :  { %1355 = vmatpush3.bf16.msra.mxu1 %v1470_v11  ;;  %1292 = vmatprep.subr.bf16.mxu0 %v1471_v12  ;;  %v1491_v32 = vld [vmem:[%s2169_s0] ss:$20 sps:$4 sm:$0xff]   ;;  %v1493_v33 = vld [vmem:[%s2169_s0 + $0x4] ss:$20 sps:$4 sm:$0xff]   ;;  %v1494_v34 = vld [vmem:[%s2169_s0 + $0x8] ss:$20 sps:$4 sm:$0xff]  }
   0xe   :  { %1356 = vmatprep.subr.bf16.mxu1 %v1472_v13  ;;  %v1496_v35 = vld [vmem:[%s2169_s0 + $0xc] ss:$20 sps:$4 sm:$0xff]   ;;  %648 = vmatprep.mubr.bf16.mxu0 %v1493_v33  ;;  %v1500_v38 = vld [vmem:[%s2169_s0 + $0x34] ss:$20 sps:$4 sm:$0xff]   ;;  %v1503_v40 = vld [vmem:[%s2169_s0 + $0x30] ss:$20 sps:$4 sm:$0xff]  }
   0xf   :  { %745 = vmatprep.mubr.bf16.mxu1 %v1496_v35  ;;  %v1498_v37 = vld [vmem:[%s2169_s0 + $0x2c] ss:$20 sps:$4 sm:$0xff]   ;;  %v1502_v39 = vld [vmem:[%s2169_s0 + $0x28] ss:$20 sps:$4 sm:$0xff]   ;;  %v1508_v44 = vld [vmem:[%s2169_s0 + $0x50] ss:$20 sps:$4 sm:$0xff]  }
  0x10   :  { %1293 = vmatpush3.bf16.msra.mxu0 %v1473_v14  ;;  %v1504_v41 = vld [vmem:[%s2169_s0 + $0x54] ss:$20 sps:$4 sm:$0xff]   ;;  %v1509_v45 = vld [vmem:[%s2169_s0 + $0x58] ss:$20 sps:$4 sm:$0xff]   ;;  %v1536_v49 = vld [vmem:[%s2168_s1 + $0x100] sm:$0xff]   ;;  %v1551_v12 = vmov 0.0  }
  0x11   :  { %1357 = vmatpush3.bf16.msra.mxu1 %v1474_v15  ;;  %1294 = vmatprep.subr.bf16.mxu0 %v1475_v16  ;;  %v1523_v46 = vld [vmem:[%s2168_s1 + $0x108] sm:$0xff]   ;;  %v1513_v48 = vld [vmem:[%s2169_s0 + $0x84] ss:$20 sps:$4 sm:$0xff]   ;;  %v1516_v51 = vld [vmem:[%s2169_s0 + $0x80] ss:$20 sps:$4 sm:$0xff]   ;;  %25 = vst.msk [vmem:[#allocation2 + $0x10] sm:$0xff] %vm22_vm0, %v1551_v12 }
  0x12   :  { %1358 = vmatprep.subr.bf16.mxu1 %v1476_v17  ;;  %v1515_v50 = vld [vmem:[%s2169_s0 + $0x78] ss:$20 sps:$4 sm:$0xff]   ;;  %v1521_v54 = vld [vmem:[%s2169_s0 + $0xa0] ss:$20 sps:$4 sm:$0xff]   ;;  %v1522_v55 = vld [vmem:[%s2169_s0 + $0xa8] ss:$20 sps:$4 sm:$0xff]  }
  0x13   :  { %v1517_v52 = vld [vmem:[%s2169_s0 + $0xa4] ss:$20 sps:$4 sm:$0xff]   ;;  %v1519_v53 = vld [vmem:[%s2169_s0 + $0xac] ss:$20 sps:$4 sm:$0xff]   ;;  %v1526_v57 = vld [vmem:[%s2169_s0 + $0xd4] ss:$20 sps:$4 sm:$0xff]  }
  0x14   :  { %1295 = vmatpush3.bf16.msra.mxu0 %v1477_v18  ;;  %v1524_v56 = vld [vmem:[%s2169_s0 + $0xcc] ss:$20 sps:$4 sm:$0xff]   ;;  %v1528_v58 = vld [vmem:[%s2169_s0 + $0xc8] ss:$20 sps:$4 sm:$0xff]   ;;  %v1529_v59 = vld [vmem:[%s2169_s0 + $0xd0] ss:$20 sps:$4 sm:$0xff]  }
  0x15   :  { %1359 = vmatpush3.bf16.msra.mxu1 %v1478_v19  ;;  %1296 = vmatprep.subr.bf16.mxu0 %v1479_v20  ;;  %v1530_v60 = vld [vmem:[%s2169_s0 + $0xf4] ss:$20 sps:$4 sm:$0xff]   ;;  %v1532_v61 = vld [vmem:[%s2169_s0 + $0xfc] ss:$20 sps:$4 sm:$0xff]   ;;  %v1535_v63 = vld [vmem:[%s2169_s0 + $0xf8] ss:$20 sps:$4 sm:$0xff]  }
  0x16   :  { %1360 = vmatprep.subr.bf16.mxu1 %v1480_v21  ;;  %v1534_v62 = vld [vmem:[%s2169_s0 + $0xf0] ss:$20 sps:$4 sm:$0xff]   ;;  %v1541_v2 = vld [vmem:[%s2169_s0 + $0x118] ss:$20 sps:$4 sm:$0xff]   ;;  %v1542_v3 = vld [vmem:[%s2169_s0 + $0x120] ss:$20 sps:$4 sm:$0xff]  }
  0x17   :  { %v1537_v0 = vld [vmem:[%s2169_s0 + $0x11c] ss:$20 sps:$4 sm:$0xff]   ;;  %v1539_v1 = vld [vmem:[%s2169_s0 + $0x124] ss:$20 sps:$4 sm:$0xff]   ;;  %v1547_v8 = vld [vmem:[%s2169_s0 + $0x60] ss:$20 sps:$4 sm:$0xff]  }
  0x18   :  { %1297 = vmatpush3.bf16.msra.mxu0 %v1481_v22  ;;  %v1543_v4 = vld [vmem:[%s2169_s0 + $0x10] ss:$20 sps:$4 sm:$0xff]   ;;  %v1545_v6 = vld [vmem:[%s2169_s0 + $0x38] ss:$20 sps:$4 sm:$0xff]   ;;  %v1548_v9 = vld [vmem:[%s2169_s0 + $0x100] ss:$20 sps:$4 sm:$0xff]  }
  0x19   :  { %1361 = vmatpush3.bf16.msra.mxu1 %v1482_v23  ;;  %1298 = vmatprep.subr.bf16.mxu0 %v1483_v24  ;;  %v1544_v5 = vld [vmem:[%s2169_s0 + $0xb0] ss:$20 sps:$4 sm:$0xff]   ;;  %v1546_v7 = vld [vmem:[%s2169_s0 + $0xd8] ss:$20 sps:$4 sm:$0xff]   ;;  %v1549_v10 = vld [vmem:[%s2169_s0 + $0x88] ss:$20 sps:$4 sm:$0xff]  }
  0x1a   :  { %1362 = vmatprep.subr.bf16.mxu1 %v1484_v25  ;;  %v1550_v11 = vld [vmem:[%s2169_s0 + $0x128] ss:$20 sps:$4 sm:$0xff]   ;;  %23 = vst.msk [vmem:[#allocation2] sm:$0xff] %vm22_vm0, %v1551_v12  ;;  %24 = vst.msk [vmem:[#allocation2 + $0x8] sm:$0xff] %vm22_vm0, %v1551_v12 }
  0x1b   :  { %26 = vst.msk [vmem:[#allocation2 + $0x18] sm:$0xff] %vm22_vm0, %v1551_v12  ;;  %27 = vst.msk [vmem:[#allocation2 + $0x20] sm:$0xff] %vm22_vm0, %v1551_v12 }
  0x1c   :  { %1299 = vmatpush3.bf16.msra.mxu0 %v1485_v26  ;;  %28 = vst.msk [vmem:[#allocation2 + $0x28] sm:$0xff] %vm22_vm0, %v1551_v12  ;;  %29 = vst.msk [vmem:[#allocation2 + $0x30] sm:$0xff] %vm22_vm0, %v1551_v12 }
  0x1d   :  { %1363 = vmatpush3.bf16.msra.mxu1 %v1486_v27  ;;  %1300 = vmatprep.subr.bf16.mxu0 %v1487_v28  ;;  %30 = vst.msk [vmem:[#allocation2 + $0x38] sm:$0xff] %vm22_vm0, %v1551_v12  ;;  %31 = vst.msk [vmem:[#allocation2 + $0x40] sm:$0xff] %vm22_vm0, %v1551_v12 }
  0x1e   :  { %1364 = vmatprep.subr.bf16.mxu1 %v1488_v29  ;;  %32 = vst.msk [vmem:[#allocation2 + $0x48] sm:$0xff] %vm22_vm0, %v1551_v12  ;;  %33 = vst.msk [vmem:[#allocation2 + $0x50] sm:$0xff] %vm22_vm0, %v1551_v12 }
  0x1f   :  { %34 = vst.msk [vmem:[#allocation2 + $0x58] sm:$0xff] %vm22_vm0, %v1551_v12  ;;  %35 = vst.msk [vmem:[#allocation2 + $0x60] sm:$0xff] %vm22_vm0, %v1551_v12 }
  0x20   :  { %1301 = vmatpush3.bf16.msra.mxu0 %v1489_v30  ;;  %36 = vst.msk [vmem:[#allocation2 + $0x68] sm:$0xff] %vm22_vm0, %v1551_v12  ;;  %37 = vst.msk [vmem:[#allocation2 + $0x70] sm:$0xff] %vm22_vm0, %v1551_v12 }
  0x21   :  { %1365 = vmatpush3.bf16.msra.mxu1 %v1490_v31  ;;  %1426 = vmatprep.subr.bf16.mxu0 %v1497_v36  ;;  %38 = vst.msk [vmem:[#allocation2 + $0x78] sm:$0xff] %vm22_vm0, %v1551_v12 }
  0x22   :  { %1450 = vmatprep.subr.bf16.mxu1 %v1497_v36 }
  0x23   :  { %649 = vmatmul.mubr.bf16.vlgmr.msra.gmra.mxu0 %v1491_v32 }
  0x24   :  { %746 = vmatmul.mubr.bf16.vlgmr.msra.gmra.mxu1 %v1494_v34  ;;  %1427 = vmatpush3.bf16.msra.mxu0 %v1497_v36 }
  0x25   :  { %1454 = vmatpush3.bf16.msra.mxu1 %v1497_v36  ;;  %656 = vmatprep.mubr.bf16.mxu0 %v1498_v37 }
  0x26   :  { %753 = vmatprep.mubr.bf16.mxu1 %v1500_v38  ;;  %1428 = vmatprep.subr.bf16.mxu0 %v1510_v42 }
  0x27   :  { %1451 = vmatprep.subr.bf16.mxu1 %v1510_v42 }
  0x28   :  { %1429 = vmatpush3.bf16.msra.mxu0 %v1510_v42 }
  0x29   :  { %1455 = vmatpush3.bf16.msra.mxu1 %v1510_v42  ;;  %1430 = vmatprep.subr.bf16.mxu0 %v1523_v46 }
  0x2a   :  { %1452 = vmatprep.subr.bf16.mxu1 %v1523_v46 }
  0x2b   :  { %657 = vmatmul.mubr.bf16.gmra.mxu0 %v1502_v39 }
  0x2c   :  { %754 = vmatmul.mubr.bf16.gmra.mxu1 %v1503_v40  ;;  %664 = vmatprep.mubr.bf16.mxu0 %v1504_v41 }
  0x2d   :  { %761 = vmatprep.mubr.bf16.mxu1 %v1506_v43  ;;  %1431 = vmatpush3.bf16.msra.mxu0 %v1523_v46 }
  0x2e   :  { %1456 = vmatpush3.bf16.msra.mxu1 %v1523_v46  ;;  %1432 = vmatprep.subr.bf16.mxu0 %v1536_v49 }
  0x2f   :  { %1453 = vmatprep.subr.bf16.mxu1 %v1536_v49 }
  0x31   :  { %1433 = vmatpush3.bf16.msra.mxu0 %v1536_v49 }
  0x32   :  { %1457 = vmatpush3.bf16.msra.mxu1 %v1536_v49 }
  0x33   :  { %665 = vmatmul.mubr.bf16.gmra.mxu0 %v1508_v44 }
  0x34   :  { %762 = vmatmul.mubr.bf16.gmra.mxu1 %v1509_v45  ;;  %672 = vmatprep.mubr.bf16.mxu0 %v1511_v47 }
  0x35   :  { %769 = vmatprep.mubr.bf16.mxu1 %v1513_v48 }
  0x3b   :  { %673 = vmatmul.mubr.bf16.gmra.mxu0 %v1515_v50 }
  0x3c   :  { %770 = vmatmul.mubr.bf16.gmra.mxu1 %v1516_v51  ;;  %680 = vmatprep.mubr.bf16.mxu0 %v1517_v52 }
  0x3d   :  { %777 = vmatprep.mubr.bf16.mxu1 %v1519_v53 }
  0x43   :  { %681 = vmatmul.mubr.bf16.gmra.mxu0 %v1521_v54 }
  0x44   :  { %778 = vmatmul.mubr.bf16.gmra.mxu1 %v1522_v55  ;;  %688 = vmatprep.mubr.bf16.mxu0 %v1524_v56 }
  0x45   :  { %785 = vmatprep.mubr.bf16.mxu1 %v1526_v57 }
  0x4b   :  { %689 = vmatmul.mubr.bf16.gmra.mxu0 %v1528_v58 }
  0x4c   :  { %786 = vmatmul.mubr.bf16.gmra.mxu1 %v1529_v59  ;;  %696 = vmatprep.mubr.bf16.mxu0 %v1530_v60 }
  0x4d   :  { %793 = vmatprep.mubr.bf16.mxu1 %v1532_v61 }
  0x53   :  { %697 = vmatmul.mubr.bf16.gmra.mxu0 %v1534_v62 }
  0x54   :  { %794 = vmatmul.mubr.bf16.gmra.mxu1 %v1535_v63  ;;  %704 = vmatprep.mubr.bf16.mxu0 %v1537_v0 }
  0x55   :  { %801 = vmatprep.mubr.bf16.mxu1 %v1539_v1 }
  0x5b   :  { %705 = vmatmul.mubr.bf16.gmra.mxu0 %v1541_v2  ;;  %v1918_v2 = vld [vmem:[%s2170_s3 + $0x8] sm:$0xff]  }
  0x5c   :  { %802 = vmatmul.mubr.bf16.gmra.mxu1 %v1542_v3  ;;  %1434 = vmatprep.mubr.msk.bf16.mxu0 %vm22_vm0, %v1543_v4  ;;  %v1925_v4 = vld [vmem:[%s2170_s3 + $0x28] sm:$0xff]  }
  0x5d   :  { %1442 = vmatprep.mubr.msk.bf16.mxu1 %vm22_vm0, %v1544_v5  ;;  %v1930_v5 = vld [vmem:[%s2170_s3] sm:$0xff]  }
  0x5e   :  { %2184 = vst [vmem:[#allocation10_spill] sm:$0xff] %v1930_v5 }
  0x63   :  { %1435 = vmatmul.mubr.msk.bf16.vlgmr.msra.gmra.mxu0 %vm22_vm0, %v1545_v6  ;;  %v1935_v6 = vld [vmem:[%s2170_s3 + $0x20] sm:$0xff]  }
  0x64   :  { %1443 = vmatmul.mubr.msk.bf16.vlgmr.msra.gmra.mxu1 %vm22_vm0, %v1546_v7  ;;  %1438 = vmatprep.mubr.msk.bf16.mxu0 %vm22_vm0, %v1547_v8  ;;  %2185 = vst [vmem:[#allocation11_spill] sm:$0xff] %v1935_v6 }
  0x65   :  { %1446 = vmatprep.mubr.msk.bf16.mxu1 %vm22_vm0, %v1548_v9  ;;  %v1944_v9 = vld [vmem:[%s2170_s3 + $0x18] sm:$0xff]  }
  0x6b   :  { %1439 = vmatmul.mubr.msk.bf16.gmra.mxu0 %vm22_vm0, %v1549_v10  ;;  %v1949_v10 = vld [vmem:[%s2170_s3 + $0x38] sm:$0xff]  }
  0x6c   :  { %1447 = vmatmul.mubr.msk.bf16.gmra.mxu1 %vm22_vm0, %v1550_v11 }
  0xe3   :  { %v1829_v13 = vpop.f32.mrf.mxu0 }
  0xe4   :  { %v1831_v14 = vpop.f32.mrf.mxu1 }
  0xe5   :  { %v1833_v15 = vpop.f32.mrf.mxu0 }
  0xe6   :  { %v1835_v16 = vpop.f32.mrf.mxu1 }
  0xe7   :  { %v1837_v17 = vpop.f32.mrf.mxu0 }
  0xe8   :  { %v1839_v18 = vpop.f32.mrf.mxu1 }
  0xe9   :  { %v1841_v19 = vpop.f32.mrf.mxu0 }
  0xea   :  { %v1843_v20 = vpop.f32.mrf.mxu1 }
  0xeb   :  { %v1845_v21 = vpop.f32.mrf.mxu0  ;;  %v1371_v12 = vadd.f32 %v1843_v20, %v1839_v18 }
  0xec   :  { %v1847_v22 = vpop.f32.mrf.mxu1 }
  0xed   :  { %v1849_v23 = vpop.f32.mrf.mxu0 }
  0xee   :  { %v1851_v24 = vpop.f32.mrf.mxu1  ;;  %v1310_v6 = vadd.f32 %v1849_v23, %v1845_v21 }
  0xef   :  { %v1853_v25 = vpop.f32.mrf.mxu0 }
  0xf0   :  { %v1855_v26 = vpop.f32.mrf.mxu1 }
  0xf1   :  { %v1857_v27 = vpop.f32.mrf.mxu0 }
  0xf2   :  { %v1859_v28 = vpop.f32.mrf.mxu1 }
  0xf3   :  { %v1861_v29 = vpop.f32.mrf.mxu0  ;;  %v1377_v18 = vadd.f32 %v1859_v28, %v1855_v26 }
  0xf4   :  { %v1863_v30 = vpop.f32.mrf.mxu1 }
  0xf5   :  { %v1865_v31 = vpop.f32.mrf.mxu0 }
  0xf6   :  { %v1867_v32 = vpop.f32.mrf.mxu1 }
  0xf7   :  { %v1869_v33 = vpop.f32.mrf.mxu0  ;;  %v1380_v20 = vadd.f32 %v1867_v32, %v1863_v30 }
  0xf8   :  { %v1871_v34 = vpop.f32.mrf.mxu1 }
  0xf9   :  { %2177 = vst [vmem:[#allocation3_spill] sm:$0xff] %v1871_v34  ;;  %v1873_v35 = vpop.f32.mrf.mxu0  ;;  %v1368_v34 = vadd.f32 %v1835_v16, %v1831_v14 }
  0xfa   :  { %v1875_v36 = vpop.f32.mrf.mxu1 }
  0xfb   :  { %2178 = vst [vmem:[#allocation4_spill] sm:$0xff] %v1875_v36  ;;  %v1877_v37 = vpop.f32.mrf.mxu0 }
  0xfc   :  { %v1879_v38 = vpop.f32.mrf.mxu1 }
  0xfd   :  { %v1881_v39 = vpop.f32.mrf.mxu0 }
  0xfe   :  { %v1883_v40 = vpop.f32.mrf.mxu1  ;;  %v1322_v26 = vadd.f32 %v1881_v39, %v1877_v37 }
  0xff   :  { %v1885_v41 = vpop.f32.mrf.mxu0  ;;  %v1386_v30 = vadd.f32 %v1883_v40, %v1879_v38 }
 0x100   :  { %v1887_v42 = vpop.f32.mrf.mxu1 }
 0x101   :  { %2179 = vst [vmem:[#allocation5_spill] sm:$0xff] %v1887_v42  ;;  %v1889_v43 = vpop.f32.mrf.mxu0 }
 0x102   :  { %2180 = vst [vmem:[#allocation6_spill] sm:$0xff] %v1889_v43  ;;  %v1891_v44 = vpop.f32.mrf.mxu1  ;;  %v1962_v43 = vld [vmem:[%s2170_s3 + $0x10] sm:$0xff]  }
 0x103   :  { %2181 = vst [vmem:[#allocation7_spill] sm:$0xff] %v1891_v44  ;;  %v1893_v45 = vpop.f32.mrf.mxu0  ;;  %v1257_v44 = vunpack.c.l.bf16 %v1962_v43 }
 0x104   :  { %v1895_v46 = vpop.f32.mrf.mxu1 }
 0x105   :  { %v1327_v47 = vpop.f32.mrf.mxu0 }
 0x106   :  { %v1391_v48 = vpop.f32.mrf.mxu1 }
 0x107   :  { %v1897_v49 = vpop.f32.mrf.mxu0  ;;  %v1392_v23 = vadd.f32 %v1391_v48, %v1895_v46  ;;  %v2007_v48 = vadd.f32 %v1873_v35, %v1869_v33 }
 0x108   :  { %v1899_v50 = vpop.f32.mrf.mxu1 }
 0x109   :  { %v1901_v51 = vpop.f32.mrf.mxu0 }
 0x10a   :  { %v1903_v52 = vpop.f32.mrf.mxu1 }
 0x10b   :  { %v1332_v53 = vpop.f32.mrf.mxu0  ;;  %v1395_v38 = vadd.f32 %v1903_v52, %v1899_v50  ;;  %v50_v52 = vld [vmem:[#allocation2 + $0x58] sm:$0xff] }
 0x10c   :  { %v1396_v54 = vpop.f32.mrf.mxu1 }
 0x10d   :  { %v1333_v55 = vpop.f32.mrf.mxu0 }
 0x10e   :  { %v1397_v56 = vpop.f32.mrf.mxu1  ;;  %v1334_v5 = vadd.f32 %v1333_v55, %v1332_v53  ;;  %v1262_v53 = vunpack.c.h.bf16 %v1944_v9 }
 0x10f   :  { %v1335_v57 = vpop.f32.mrf.mxu0  ;;  %v1398_v14 = vadd.f32 %v1397_v56, %v1396_v54  ;;  %v49_v56 = vld [vmem:[#allocation2 + $0x50] sm:$0xff] }
 0x110   :  { %v1399_v58 = vpop.f32.mrf.mxu1 }
 0x111   :  { %v1336_v59 = vpop.f32.mrf.mxu0  ;;  %v788_v46 = vadd.f32 %v1398_v14, %v1334_v5  ;;  %v47_v5 = vld [vmem:[#allocation2 + $0x40] sm:$0xff] }
 0x112   :  { %v1400_v60 = vpop.f32.mrf.mxu1  ;;  %v1337_v32 = vadd.f32 %v1336_v59, %v1335_v57  ;;  %v39_v57 = vld [vmem:[#allocation2] sm:$0xff] }
 0x113   :  { %v1905_v61 = vpop.f32.mrf.mxu0  ;;  %v1401_v54 = vadd.f32 %v1400_v60, %v1399_v58 }
 0x114   :  { %v1907_v62 = vpop.f32.mrf.mxu1 }
 0x115   :  { %v1909_v63 = vpop.f32.mrf.mxu0 }
 0x116   :  { %v1911_v0 = vpop.f32.mrf.mxu1 }
 0x117   :  { %v1913_v1 = vpop.f32.mrf.mxu0  ;;  %v1404_v50 = vadd.f32 %v1911_v0, %v1907_v62 }
 0x118   :  { %2182 = vst [vmem:[#allocation8_spill] sm:$0xff] %v1913_v1  ;;  %v1920_v3 = vpop.f32.mrf.mxu1  ;;  %v1967_v1 = vld [vmem:[%s2170_s3 + $0x30] sm:$0xff]  }
 0x119   :  { %2183 = vst [vmem:[#allocation9_spill] sm:$0xff] %v1920_v3  ;;  %v1937_v7 = vpop.f32.mrf.mxu0  ;;  %v1307_v3 = vadd.f32 %v1841_v19, %v1837_v17  ;;  %v1273_v42 = vunpack.c.l.bf16 %v1967_v1  ;;  %v1313_v17 = vadd.f32 %v1857_v27, %v1853_v25  ;;  %v1316_v19 = vadd.f32 %v1865_v31, %v1861_v29 }
 0x11a   :  { %2186 = vst [vmem:[#allocation12_spill] sm:$0xff] %v1937_v7  ;;  %v1939_v8 = vpop.f32.mrf.mxu1  ;;  %v1304_v7 = vadd.f32 %v1833_v15, %v1829_v13  ;;  %v1374_v13 = vadd.f32 %v1851_v24, %v1847_v22  ;;  %v1328_v22 = vadd.f32 %v1327_v47, %v1893_v45  ;;  %v41_v45 = vld [vmem:[#allocation2 + $0x10] sm:$0xff] }
 0x11b   :  { %2187 = vst [vmem:[#allocation13_spill] sm:$0xff] %v1939_v8  ;;  %v1344_v11 = vpop.f32.mrf.mxu0  ;;  %v751_v31 = vadd.f32 %v1371_v12, %v1307_v3  ;;  %v759_v37 = vadd.f32 %v1377_v18, %v1313_v17  ;;  %v2009_v39 = vadd.f32 %v1380_v20, %v1316_v19  ;;  %v791_v17 = vadd.f32 %v1401_v54, %v1337_v32 }
 0x11c   :  { %v1408_v8 = vpop.f32.mrf.mxu1  ;;  %v756_v28 = vadd.f32 %v1374_v13, %v1310_v6  ;;  %v748_v29 = vadd.f32 %v1368_v34, %v1304_v7  ;;  %v1331_v34 = vadd.f32 %v1901_v51, %v1897_v49  ;;  %v780_v59 = vadd.f32 %v1392_v23, %v1328_v22  ;;  %v42_v13 = vld [vmem:[#allocation2 + $0x18] sm:$0xff]  ;;  %v40_v22 = vld [vmem:[#allocation2 + $0x8] sm:$0xff] }
 0x11d   :  { %v1345_v36 = vpop.f32.mrf.mxu0  ;;  %v772_v18 = vadd.f32 %v1386_v30, %v1322_v26  ;;  %v1340_v49 = vadd.f32 %v1909_v63, %v1905_v61  ;;  %v2189_v61 = vld [vmem:[#allocation5_spill] sm:$0xff]  ;;  %v2190_v63 = vld [vmem:[#allocation7_spill] sm:$0xff] }
 0x11e   :  { %v1409_v15 = vpop.f32.mrf.mxu1  ;;  %v1346_v60 = vadd.f32 %v1345_v36, %v1344_v11  ;;  %v2188_v11 = vld [vmem:[#allocation6_spill] sm:$0xff]  ;;  %v1389_v26 = vadd.f32 %v2190_v63, %v2189_v61 }
 0x11f   :  { %v1983_v16 = vpop.f32.mrf.mxu0  ;;  %v1410_v3 = vadd.f32 %v1409_v15, %v1408_v8  ;;  %v1325_v15 = vadd.f32 %v2188_v11, %v1885_v41 }
 0x120   :  { %v1995_v21 = vpop.f32.mrf.mxu1 }
 0x121   :  { %v1348_v24 = vpop.f32.mrf.mxu0  ;;  %v804_v30 = vadd.f32 %v1410_v3, %v1346_v60  ;;  %v2039_v60 = vld [vmem:[%s2171_s2] ss:$0 sm:$0xff] }
 0x122   :  { %v1412_v27 = vpop.f32.mrf.mxu1  ;;  %v1349_v32 = vadd.f32 %v1348_v24, %v1983_v16  ;;  %v2194_v16 = vld [vmem:[#allocation12_spill] sm:$0xff] }
 0x123   :  { %v1436_v47 = vpop.f32.mrf.mxu0  ;;  %v1413_v41 = vadd.f32 %v1412_v27, %v1995_v21  ;;  %v2195_v21 = vld [vmem:[#allocation9_spill] sm:$0xff] }
 0x124   :  { %v853_v55 = vadd.f32 %v1436_v47, %v756_v28  ;;  %v1444_v25 = vpop.f32.mrf.mxu1  ;;  %v48_v28 = vld [vmem:[#allocation2 + $0x48] sm:$0xff]  ;;  %v45_v47 = vld [vmem:[#allocation2 + $0x30] sm:$0xff] }
 0x125   :  { %v885_v40 = vadd.f32 %v1444_v25, %v788_v46  ;;  %v844_v58 = vpop.f32.mrf.mxu0  ;;  %v783_v25 = vadd.f32 %v1395_v38, %v1331_v34  ;;  %v53_v38 = vld [vmem:[#allocation2 + $0x70] sm:$0xff] }
 0x126   :  { %v909_v33 = vadd.f32 %v853_v55, %v41_v45  ;;  %v845_v35 = vadd.f32 %v844_v58, %v748_v29  ;;  %v876_v6 = vpop.f32.mrf.mxu1  ;;  %v2191_v55 = vld [vmem:[#allocation3_spill] sm:$0xff]  ;;  %v2193_v58 = vld [vmem:[#allocation8_spill] sm:$0xff]  ;;  %v2196_v27 = vld [vmem:[#allocation13_spill] sm:$0xff] }
 0x127   :  { %v917_v7 = vadd.f32 %v885_v40, %v49_v56  ;;  %v877_v12 = vadd.f32 %v876_v6, %v780_v59  ;;  %v1437_v14 = vpop.f32.mrf.mxu0  ;;  %v2192_v56 = vld [vmem:[#allocation4_spill] sm:$0xff]  ;;  %v1343_v24 = vadd.f32 %v2194_v16, %v2193_v58  ;;  %v1407_v59 = vadd.f32 %v2196_v27, %v2195_v21 }
 0x128   :  { %925 = vst.msk [vmem:[#allocation2 + $0x10] sm:$0xff] %vm22_vm0, %v909_v33  ;;  %v907_v36 = vadd.f32 %v845_v35, %v39_v57  ;;  %v856_v51 = vadd.f32 %v1437_v14, %v759_v37  ;;  %v1445_v8 = vpop.f32.mrf.mxu1  ;;  %v1383_v37 = vadd.f32 %v2192_v56, %v2191_v55  ;;  %v796_v57 = vadd.f32 %v1404_v50, %v1340_v49  ;;  %v43_v35 = vld [vmem:[#allocation2 + $0x20] sm:$0xff] }
 0x129   :  { %933 = vst.msk [vmem:[#allocation2 + $0x50] sm:$0xff] %vm22_vm0, %v917_v7  ;;  %v915_v19 = vadd.f32 %v877_v12, %v47_v5  ;;  %v888_v20 = vadd.f32 %v1445_v8, %v791_v17  ;;  %v847_v23 = vpop.f32.mrf.mxu0  ;;  %v51_v12 = vld [vmem:[#allocation2 + $0x60] sm:$0xff]  ;;  %v775_v14 = vadd.f32 %v1389_v26, %v1325_v15  ;;  %v1258_v17 = vunpack.c.h.bf16 %v1962_v43  ;;  %v54_v15 = vld [vmem:[#allocation2 + $0x78] sm:$0xff] }
 0x12a   :  { %923 = vst.msk [vmem:[#allocation2] sm:$0xff] %vm22_vm0, %v907_v36  ;;  %v910_v62 = vadd.f32 %v856_v51, %v42_v13  ;;  %v848_v0 = vadd.f32 %v847_v23, %v751_v31  ;;  %v879_v29 = vpop.f32.mrf.mxu1  ;;  %v46_v36 = vld [vmem:[#allocation2 + $0x38] sm:$0xff]  ;;  %v1274_v8 = vunpack.c.h.bf16 %v1967_v1  ;;  %v767_v23 = vadd.f32 %v1383_v37, %v2007_v48 }
 0x12b   :  { %931 = vst.msk [vmem:[#allocation2 + $0x40] sm:$0xff] %vm22_vm0, %v915_v19  ;;  %v918_v54 = vadd.f32 %v888_v20, %v50_v52  ;;  %v880_v45 = vadd.f32 %v879_v29, %v783_v25  ;;  %v1440_v46 = vpop.f32.mrf.mxu0  ;;  %v807_v52 = vadd.f32 %v1413_v41, %v1349_v32  ;;  %v2197_v29 = vunpack.c.l.bf16 %v1918_v2 }
 0x12c   :  { %926 = vst.msk [vmem:[#allocation2 + $0x18] sm:$0xff] %vm22_vm0, %v910_v62  ;;  %v908_v34 = vadd.f32 %v848_v0, %v40_v22  ;;  %v869_v31 = vadd.f32 %v1440_v46, %v772_v18  ;;  %v1448_v40 = vpop.f32.mrf.mxu1  ;;  %v44_v62 = vld [vmem:[#allocation2 + $0x28] sm:$0xff]  ;;  %v2198_v46 = vunpack.c.l.bf16 %v1925_v4 }
 0x12d   :  { %934 = vst.msk [vmem:[#allocation2 + $0x58] sm:$0xff] %vm22_vm0, %v918_v54  ;;  %v916_v3 = vadd.f32 %v880_v45, %v48_v28  ;;  %v901_v33 = vadd.f32 %v1448_v40, %v804_v30  ;;  %v860_v5 = vpop.f32.mrf.mxu0  ;;  %v799_v28 = vadd.f32 %v1407_v59, %v1343_v24  ;;  %v52_v45 = vld [vmem:[#allocation2 + $0x68] sm:$0xff]  ;;  %v2199_v40 = vld [vmem:[#allocation10_spill] sm:$0xff]  ;;  %v2201_v59 = vld [vmem:[#allocation11_spill] sm:$0xff] }
 0x12e   :  { %924 = vst.msk [vmem:[#allocation2 + $0x8] sm:$0xff] %vm22_vm0, %v908_v34  ;;  %v913_v6 = vadd.f32 %v869_v31, %v45_v47  ;;  %v861_v7 = vadd.f32 %v860_v5, %v2009_v39  ;;  %v892_v13 = vpop.f32.mrf.mxu1 }
 0x12f   :  { %v944_v18 = vld [vmem:[#allocation2 + $0x10] sm:$0xff]  ;;  %932 = vst.msk [vmem:[#allocation2 + $0x48] sm:$0xff] %vm22_vm0, %v916_v3  ;;  %v921_v49 = vadd.f32 %v901_v33, %v53_v38  ;;  %v893_v50 = vadd.f32 %v892_v13, %v796_v57  ;;  %v1441_v51 = vpop.f32.mrf.mxu0  ;;  %v2200_v57 = vunpack.c.l.bf16 %v2199_v40  ;;  %v2202_v3 = vunpack.c.l.bf16 %v2201_v59 }
 0x130   :  { %v967_v11 = vadd.f32 %v2039_v60, %v944_v18  ;;  %v952_v19 = vld [vmem:[#allocation2 + $0x50] sm:$0xff]  ;;  %929 = vst.msk [vmem:[#allocation2 + $0x30] sm:$0xff] %vm22_vm0, %v913_v6  ;;  %v911_v39 = vadd.f32 %v861_v7, %v43_v35  ;;  %v872_v20 = vadd.f32 %v1441_v51, %v775_v14  ;;  %v1449_v22 = vpop.f32.mrf.mxu1  ;;  %v2203_v13 = vunpack.c.h.bf16 %v1918_v2 }
 0x131   :  { %v975_v25 = vadd.f32 %v2039_v60, %v952_v19  ;;  %v942_v61 = vld [vmem:[#allocation2] sm:$0xff]  ;;  %937 = vst.msk [vmem:[#allocation2 + $0x70] sm:$0xff] %vm22_vm0, %v921_v49  ;;  %v919_v63 = vadd.f32 %v893_v50, %v51_v12  ;;  %v904_v26 = vadd.f32 %v1449_v22, %v807_v52  ;;  %v863_v0 = vpop.f32.mrf.mxu0  ;;  %v2204_v51 = vunpack.c.h.bf16 %v1925_v4 }
 0x132   :  { %v1015_v30 = vadd.f32 %v2197_v29, %v967_v11  ;;  %v965_v32 = vadd.f32 %v2039_v60, %v942_v61  ;;  %v950_v41 = vld [vmem:[#allocation2 + $0x40] sm:$0xff]  ;;  %927 = vst.msk [vmem:[#allocation2 + $0x20] sm:$0xff] %vm22_vm0, %v911_v39  ;;  %v914_v54 = vadd.f32 %v872_v20, %v46_v36  ;;  %v864_v48 = vadd.f32 %v863_v0, %v767_v23  ;;  %v895_v47 = vpop.f32.mrf.mxu1 }
 0x133   :  { %v1023_v55 = vadd.f32 %v2198_v46, %v975_v25  ;;  %v973_v56 = vadd.f32 %v2039_v60, %v950_v41  ;;  %v945_v37 = vld [vmem:[#allocation2 + $0x18] sm:$0xff]  ;;  %935 = vst.msk [vmem:[#allocation2 + $0x60] sm:$0xff] %vm22_vm0, %v919_v63  ;;  %v922_v34 = vadd.f32 %v904_v26, %v54_v15  ;;  %v896_v31 = vadd.f32 %v895_v47, %v799_v28 }
 0x134   :  { %v1031_v38 = vmax.f32 %v1015_v30, 0.0  ;;  %v1013_v58 = vadd.f32 %v2200_v57, %v965_v32  ;;  %v968_v16 = vadd.f32 %v2039_v60, %v945_v37  ;;  %v953_v24 = vld [vmem:[#allocation2 + $0x58] sm:$0xff]  ;;  %930 = vst.msk [vmem:[#allocation2 + $0x38] sm:$0xff] %vm22_vm0, %v914_v54  ;;  %v912_v21 = vadd.f32 %v864_v48, %v44_v62 }
 0x135   :  { %v1039_v27 = vmax.f32 %v1023_v55, 0.0  ;;  %v1021_v33 = vadd.f32 %v2202_v3, %v973_v56  ;;  %v976_v35 = vadd.f32 %v2039_v60, %v953_v24  ;;  %v943_v5 = vld [vmem:[#allocation2 + $0x8] sm:$0xff]  ;;  %938 = vst.msk [vmem:[#allocation2 + $0x78] sm:$0xff] %vm22_vm0, %v922_v34  ;;  %v920_v6 = vadd.f32 %v896_v31, %v52_v45 }
 0x136   :  { %v1233_v7 = vpack.c.bf16 %v1031_v38, %v1031_v38  ;;  %v1029_v12 = vmax.f32 %v1013_v58, 0.0  ;;  %v1016_v14 = vadd.f32 %v2203_v13, %v968_v16  ;;  %v966_v18 = vadd.f32 %v2039_v60, %v943_v5  ;;  %v951_v49 = vld [vmem:[#allocation2 + $0x48] sm:$0xff]  ;;  %928 = vst.msk [vmem:[#allocation2 + $0x28] sm:$0xff] %vm22_vm0, %v912_v21 }
 0x137   :  { %v1241_v50 = vpack.c.bf16 %v1039_v27, %v1039_v27  ;;  %v1037_v36 = vmax.f32 %v1021_v33, 0.0  ;;  %v1024_v52 = vadd.f32 %v2204_v51, %v976_v35  ;;  %v974_v11 = vadd.f32 %v2039_v60, %v951_v49  ;;  %v948_v19 = vld [vmem:[#allocation2 + $0x30] sm:$0xff]  ;;  %936 = vst.msk [vmem:[#allocation2 + $0x68] sm:$0xff] %vm22_vm0, %v920_v6 }
 0x138   :  { %1112 = vst.msk [vmem:[%s2172_s4 + $0x8] sm:$0xf] %vm1109_vm1, %v1233_v7  ;;  %v1231_v2 = vpack.c.bf16 %v1029_v12, %v1029_v12  ;;  %v1032_v39 = vmax.f32 %v1016_v14, 0.0  ;;  %v2205_v20 = vunpack.c.h.bf16 %v2199_v40  ;;  %v971_v22 = vadd.f32 %v2039_v60, %v948_v19  ;;  %v956_v23 = vld [vmem:[#allocation2 + $0x70] sm:$0xff] }
 0x139   :  { %1120 = vst.msk [vmem:[%s2172_s4 + $0x28] sm:$0xf] %vm1109_vm1, %v1241_v50  ;;  %v1239_v4 = vpack.c.bf16 %v1037_v36, %v1037_v36  ;;  %v1040_v25 = vmax.f32 %v1024_v52, 0.0  ;;  %v2206_v61 = vunpack.c.h.bf16 %v2201_v59  ;;  %v979_v26 = vadd.f32 %v2039_v60, %v956_v23  ;;  %v946_v62 = vld [vmem:[#allocation2 + $0x20] sm:$0xff] }
 0x13a   :  { %v1014_v15 = vadd.f32 %v2205_v20, %v966_v18  ;;  %1110 = vst.msk [vmem:[%s2172_s4] sm:$0xf] %vm1109_vm1, %v1231_v2  ;;  %v1234_v0 = vpack.c.bf16 %v1032_v39, %v1032_v39  ;;  %v2207_v29 = vunpack.c.l.bf16 %v1944_v9  ;;  %v969_v32 = vadd.f32 %v2039_v60, %v946_v62  ;;  %v954_v41 = vld [vmem:[#allocation2 + $0x60] sm:$0xff] }
 0x13b   :  { %v1022_v63 = vadd.f32 %v2206_v61, %v974_v11  ;;  %1118 = vst.msk [vmem:[%s2172_s4 + $0x20] sm:$0xf] %vm1109_vm1, %v1239_v4  ;;  %v1242_v54 = vpack.c.bf16 %v1040_v25, %v1040_v25  ;;  %v2208_v45 = vunpack.c.l.bf16 %v1949_v10  ;;  %v977_v46 = vadd.f32 %v2039_v60, %v954_v41  ;;  %v949_v55 = vld [vmem:[#allocation2 + $0x38] sm:$0xff] }
 0x13c   :  { %v1030_v28 = vmax.f32 %v1014_v15, 0.0  ;;  %v1019_v30 = vadd.f32 %v2207_v29, %v971_v22  ;;  %1113 = vst.msk [vmem:[%s2172_s4 + $0xc] sm:$0xf] %vm1109_vm1, %v1234_v0  ;;  %v1017_v34 = vadd.f32 %v1257_v44, %v969_v32  ;;  %v972_v31 = vadd.f32 %v2039_v60, %v949_v55  ;;  %v957_v38 = vld [vmem:[#allocation2 + $0x78] sm:$0xff] }
 0x13d   :  { %v1038_v48 = vmax.f32 %v1022_v63, 0.0  ;;  %v1027_v47 = vadd.f32 %v2208_v45, %v979_v26  ;;  %1121 = vst.msk [vmem:[%s2172_s4 + $0x2c] sm:$0xf] %vm1109_vm1, %v1242_v54  ;;  %v1025_v58 = vadd.f32 %v1273_v42, %v977_v46  ;;  %v980_v16 = vadd.f32 %v2039_v60, %v957_v38  ;;  %v947_v24 = vld [vmem:[#allocation2 + $0x28] sm:$0xff] }
 0x13e   :  { %v1232_v56 = vpack.c.bf16 %v1030_v28, %v1030_v28  ;;  %v1035_v37 = vmax.f32 %v1019_v30, 0.0  ;;  %v1033_v21 = vmax.f32 %v1017_v34, 0.0  ;;  %v1020_v27 = vadd.f32 %v1262_v53, %v972_v31  ;;  %v955_v3 = vld [vmem:[#allocation2 + $0x68] sm:$0xff] }
 0x13f   :  { %v1240_v40 = vpack.c.bf16 %v1038_v48, %v1038_v48  ;;  %v1043_v57 = vmax.f32 %v1027_v47, 0.0  ;;  %v970_v59 = vadd.f32 %v2039_v60, %v947_v24  ;;  %v1041_v33 = vmax.f32 %v1025_v58, 0.0 }
 0x140   :  { %1111 = vst.msk [vmem:[%s2172_s4 + $0x4] sm:$0xf] %vm1109_vm1, %v1232_v56  ;;  %v1237_v44 = vpack.c.bf16 %v1035_v37, %v1035_v37  ;;  %v2209_v35 = vunpack.c.h.bf16 %v1949_v10  ;;  %v978_v6 = vadd.f32 %v2039_v60, %v955_v3  ;;  %v1235_v9 = vpack.c.bf16 %v1033_v21, %v1033_v21 }
 0x141   :  { %1119 = vst.msk [vmem:[%s2172_s4 + $0x24] sm:$0xf] %vm1109_vm1, %v1240_v40  ;;  %v1245_v42 = vpack.c.bf16 %v1043_v57, %v1043_v57  ;;  %v1036_v53 = vmax.f32 %v1020_v27, 0.0  ;;  %v1018_v7 = vadd.f32 %v1258_v17, %v970_v59  ;;  %v1243_v12 = vpack.c.bf16 %v1041_v33, %v1041_v33 }
 0x142   :  { %v1028_v5 = vadd.f32 %v2209_v35, %v980_v16  ;;  %1116 = vst.msk [vmem:[%s2172_s4 + $0x18] sm:$0xf] %vm1109_vm1, %v1237_v44  ;;  %v1026_v60 = vadd.f32 %v1274_v8, %v978_v6  ;;  %1114 = vst.msk [vmem:[%s2172_s4 + $0x10] sm:$0xf] %vm1109_vm1, %v1235_v9 }
 0x143   :  { %1124 = vst.msk [vmem:[%s2172_s4 + $0x38] sm:$0xf] %vm1109_vm1, %v1245_v42  ;;  %v1238_v13 = vpack.c.bf16 %v1036_v53, %v1036_v53  ;;  %v1034_v14 = vmax.f32 %v1018_v7, 0.0  ;;  %1122 = vst.msk [vmem:[%s2172_s4 + $0x30] sm:$0xf] %vm1109_vm1, %v1243_v12 }
 0x144   :  { %v1044_v10 = vmax.f32 %v1028_v5, 0.0  ;;  %v1042_v17 = vmax.f32 %v1026_v60, 0.0 }
 0x145   :  { %1117 = vst.msk [vmem:[%s2172_s4 + $0x1c] sm:$0xf] %vm1109_vm1, %v1238_v13  ;;  %v1236_v1 = vpack.c.bf16 %v1034_v14, %v1034_v14 }
 0x146   :  { %v1246_v43 = vpack.c.bf16 %v1044_v10, %v1044_v10  ;;  %v1244_v8 = vpack.c.bf16 %v1042_v17, %v1042_v17 }
 0x147   :  { %1115 = vst.msk [vmem:[%s2172_s4 + $0x14] sm:$0xf] %vm1109_vm1, %v1236_v1 }
 0x148   :  { %1125 = vst.msk [vmem:[%s2172_s4 + $0x3c] sm:$0xf] %vm1109_vm1, %v1246_v43  ;;  %1123 = vst.msk [vmem:[%s2172_s4 + $0x34] sm:$0xf] %vm1109_vm1, %v1244_v8 }

// kernel: resnet18_transfer_forward.28
= control target key start
LH: loop header
LB: loop body
LE: loop exit
PB: predicated region body
PF: predicated region fallthrough
CT: control target
= control target key end

     0   :  { %vm377_vm0 = vcmask 523264   ;;  %s944_s1 = inlined_call_operand.vmem [shape: bf16[576,128], index: 1, kind: input, shape index: {}]   ;;  %s945_s0 = inlined_call_operand.vmem [shape: bf16[32,576], index: 0, kind: input, shape index: {}]   ;;  %s946_s2 = inlined_call_operand.vmem [shape: f32[1,128], index: 2, kind: input, shape index: {}]   ;;  %s947_s3 = inlined_call_operand.vmem [shape: bf16[32,128], index: 3, kind: output, shape index: {}]  }
   0x1   :  { %v727_v0 = vld [vmem:[%s944_s1 + $0x78] sm:$0xff]   ;;  %v731_v4 = vld [vmem:[%s944_s1 + $0x70] sm:$0xff]   ;;  %v735_v8 = vld [vmem:[%s944_s1 + $0x68] sm:$0xff]  }
   0x2   :  { %v728_v1 = vld [vmem:[%s944_s1 + $0xf8] sm:$0xff]   ;;  %653 = vmatprep.subr.bf16.mxu0 %v727_v0  ;;  %v732_v5 = vld [vmem:[%s944_s1 + $0xf0] sm:$0xff]   ;;  %v736_v9 = vld [vmem:[%s944_s1 + $0xe8] sm:$0xff]  }
   0x3   :  { %v729_v2 = vld [vmem:[%s944_s1 + $0x38] sm:$0xff]   ;;  %681 = vmatprep.subr.bf16.mxu1 %v728_v1  ;;  %v733_v6 = vld [vmem:[%s944_s1 + $0x30] sm:$0xff]   ;;  %v737_v10 = vld [vmem:[%s944_s1 + $0x28] sm:$0xff]  }
   0x4   :  { %v730_v3 = vld [vmem:[%s944_s1 + $0xb8] sm:$0xff]   ;;  %654 = vmatpush3.bf16.msra.mxu0 %v729_v2  ;;  %v734_v7 = vld [vmem:[%s944_s1 + $0xb0] sm:$0xff]   ;;  %v738_v11 = vld [vmem:[%s944_s1 + $0xa8] sm:$0xff]  }
   0x5   :  { %682 = vmatpush3.bf16.msra.mxu1 %v730_v3  ;;  %655 = vmatprep.subr.bf16.mxu0 %v731_v4  ;;  %v739_v12 = vld [vmem:[%s944_s1 + $0x60] sm:$0xff]   ;;  %v743_v16 = vld [vmem:[%s944_s1 + $0x58] sm:$0xff]   ;;  %v747_v20 = vld [vmem:[%s944_s1 + $0x50] sm:$0xff]  }
   0x6   :  { %683 = vmatprep.subr.bf16.mxu1 %v732_v5  ;;  %v740_v13 = vld [vmem:[%s944_s1 + $0xe0] sm:$0xff]   ;;  %v744_v17 = vld [vmem:[%s944_s1 + $0xd8] sm:$0xff]   ;;  %v748_v21 = vld [vmem:[%s944_s1 + $0xd0] sm:$0xff]  }
   0x7   :  { %v741_v14 = vld [vmem:[%s944_s1 + $0x20] sm:$0xff]   ;;  %v745_v18 = vld [vmem:[%s944_s1 + $0x18] sm:$0xff]   ;;  %v749_v22 = vld [vmem:[%s944_s1 + $0x10] sm:$0xff]  }
   0x8   :  { %656 = vmatpush3.bf16.msra.mxu0 %v733_v6  ;;  %v742_v15 = vld [vmem:[%s944_s1 + $0xa0] sm:$0xff]   ;;  %v746_v19 = vld [vmem:[%s944_s1 + $0x98] sm:$0xff]   ;;  %v750_v23 = vld [vmem:[%s944_s1 + $0x90] sm:$0xff]  }
   0x9   :  { %684 = vmatpush3.bf16.msra.mxu1 %v734_v7  ;;  %657 = vmatprep.subr.bf16.mxu0 %v735_v8  ;;  %v751_v24 = vld [vmem:[%s944_s1 + $0x48] sm:$0xff]   ;;  %v755_v28 = vld [vmem:[%s944_s1 + $0x40] sm:$0xff]   ;;  %v765_v36 = vld [vmem:[%s944_s1 + $0x118] sm:$0xff]  }
   0xa   :  { %685 = vmatprep.subr.bf16.mxu1 %v736_v9  ;;  %v752_v25 = vld [vmem:[%s944_s1 + $0xc8] sm:$0xff]   ;;  %v756_v29 = vld [vmem:[%s944_s1 + $0xc0] sm:$0xff]   ;;  %v766_v37 = vld [vmem:[%s944_s1 + $0x110] sm:$0xff]  }
   0xb   :  { %v753_v26 = vld [vmem:[%s944_s1 + $0x8] sm:$0xff]   ;;  %v757_v30 = vld [vmem:[%s944_s1] sm:$0xff]  }
   0xc   :  { %658 = vmatpush3.bf16.msra.mxu0 %v737_v10  ;;  %v754_v27 = vld [vmem:[%s944_s1 + $0x88] sm:$0xff]   ;;  %v758_v31 = vld [vmem:[%s944_s1 + $0x80] sm:$0xff]  }
   0xd   :  { %686 = vmatpush3.bf16.msra.mxu1 %v738_v11  ;;  %659 = vmatprep.subr.bf16.mxu0 %v739_v12  ;;  %v759_v32 = vld [vmem:[%s945_s0] ss:$20 sps:$4 sm:$0xff]   ;;  %v761_v33 = vld [vmem:[%s945_s0 + $0x4] ss:$20 sps:$4 sm:$0xff]   ;;  %v762_v34 = vld [vmem:[%s945_s0 + $0x8] ss:$20 sps:$4 sm:$0xff]  }
   0xe   :  { %687 = vmatprep.subr.bf16.mxu1 %v740_v13  ;;  %v764_v35 = vld [vmem:[%s945_s0 + $0xc] ss:$20 sps:$4 sm:$0xff]   ;;  %416 = vmatprep.mubr.bf16.mxu0 %v761_v33  ;;  %v769_v39 = vld [vmem:[%s945_s0 + $0x34] ss:$20 sps:$4 sm:$0xff]   ;;  %v772_v42 = vld [vmem:[%s945_s0 + $0x30] ss:$20 sps:$4 sm:$0xff]  }
   0xf   :  { %465 = vmatprep.mubr.bf16.mxu1 %v764_v35  ;;  %v767_v38 = vld [vmem:[%s945_s0 + $0x2c] ss:$20 sps:$4 sm:$0xff]   ;;  %v771_v40 = vld [vmem:[%s945_s0 + $0x28] ss:$20 sps:$4 sm:$0xff]   ;;  %v775_v43 = vld [vmem:[%s945_s0 + $0x10] ss:$20 sps:$4 sm:$0xff]  }
  0x10   :  { %660 = vmatpush3.bf16.msra.mxu0 %v741_v14  ;;  %v773_v41 = vld [vmem:[%s944_s1 + $0x108] sm:$0xff]   ;;  %v774_v44 = vld [vmem:[%s944_s1 + $0x100] sm:$0xff]  }
  0x11   :  { %688 = vmatpush3.bf16.msra.mxu1 %v742_v15  ;;  %661 = vmatprep.subr.bf16.mxu0 %v743_v16  ;;  %v776_v45 = vld [vmem:[%s945_s0 + $0x38] ss:$20 sps:$4 sm:$0xff]   ;;  %v633_v10 = vld [vmem:[%s946_s2] ss:$0 sm:$0xff] }
  0x12   :  { %689 = vmatprep.subr.bf16.mxu1 %v744_v17 }
  0x14   :  { %662 = vmatpush3.bf16.msra.mxu0 %v745_v18 }
  0x15   :  { %690 = vmatpush3.bf16.msra.mxu1 %v746_v19  ;;  %663 = vmatprep.subr.bf16.mxu0 %v747_v20 }
  0x16   :  { %691 = vmatprep.subr.bf16.mxu1 %v748_v21 }
  0x18   :  { %664 = vmatpush3.bf16.msra.mxu0 %v749_v22 }
  0x19   :  { %692 = vmatpush3.bf16.msra.mxu1 %v750_v23  ;;  %665 = vmatprep.subr.bf16.mxu0 %v751_v24 }
  0x1a   :  { %693 = vmatprep.subr.bf16.mxu1 %v752_v25 }
  0x1c   :  { %666 = vmatpush3.bf16.msra.mxu0 %v753_v26 }
  0x1d   :  { %694 = vmatpush3.bf16.msra.mxu1 %v754_v27  ;;  %667 = vmatprep.subr.bf16.mxu0 %v755_v28 }
  0x1e   :  { %695 = vmatprep.subr.bf16.mxu1 %v756_v29 }
  0x20   :  { %668 = vmatpush3.bf16.msra.mxu0 %v757_v30 }
  0x21   :  { %696 = vmatpush3.bf16.msra.mxu1 %v758_v31  ;;  %715 = vmatprep.subr.bf16.mxu0 %v765_v36 }
  0x23   :  { %417 = vmatmul.mubr.bf16.vlgmr.msra.gmra.mxu0 %v759_v32 }
  0x24   :  { %466 = vmatmul.mubr.bf16.vlgmr.msra.gmra.mxu1 %v762_v34  ;;  %716 = vmatpush3.bf16.msra.mxu0 %v765_v36 }
  0x25   :  { %717 = vmatprep.subr.bf16.mxu0 %v766_v37  ;;  %424 = vmatprep.mubr.bf16.mxu0 %v767_v38 }
  0x26   :  { %473 = vmatprep.mubr.bf16.mxu1 %v769_v39 }
  0x28   :  { %718 = vmatpush3.bf16.msra.mxu0 %v766_v37 }
  0x29   :  { %719 = vmatprep.subr.bf16.mxu0 %v773_v41 }
  0x2b   :  { %425 = vmatmul.mubr.bf16.gmra.mxu0 %v771_v40 }
  0x2c   :  { %474 = vmatmul.mubr.bf16.gmra.mxu1 %v772_v42  ;;  %723 = vmatprep.mubr.msk.bf16.mxu0 %vm377_vm0, %v775_v43 }
  0x2d   :  { %720 = vmatpush3.bf16.msra.mxu0 %v773_v41 }
  0x2e   :  { %721 = vmatprep.subr.bf16.mxu0 %v774_v44 }
  0x31   :  { %722 = vmatpush3.bf16.msra.mxu0 %v774_v44 }
  0x34   :  { %724 = vmatmul.mubr.msk.bf16.vlgmr.msra.gmra.mxu0 %vm377_vm0, %v776_v45 }
  0xe3   :  { %v669_v46 = vpop.f32.mrf.mxu0 }
  0xe4   :  { %v697_v47 = vpop.f32.mrf.mxu1 }
  0xe5   :  { %v670_v48 = vpop.f32.mrf.mxu0 }
  0xe6   :  { %v698_v49 = vpop.f32.mrf.mxu1  ;;  %v671_v62 = vadd.f32 %v670_v48, %v669_v46 }
  0xe7   :  { %v672_v50 = vpop.f32.mrf.mxu0  ;;  %v699_v63 = vadd.f32 %v698_v49, %v697_v47 }
  0xe8   :  { %v700_v51 = vpop.f32.mrf.mxu1 }
  0xe9   :  { %v673_v52 = vpop.f32.mrf.mxu0  ;;  %v468_v9 = vadd.f32 %v699_v63, %v671_v62 }
  0xea   :  { %v701_v53 = vpop.f32.mrf.mxu1  ;;  %v674_v6 = vadd.f32 %v673_v52, %v672_v50 }
  0xeb   :  { %v675_v54 = vpop.f32.mrf.mxu0  ;;  %v702_v7 = vadd.f32 %v701_v53, %v700_v51 }
  0xec   :  { %v703_v55 = vpop.f32.mrf.mxu1 }
  0xed   :  { %v676_v56 = vpop.f32.mrf.mxu0  ;;  %v471_v17 = vadd.f32 %v702_v7, %v674_v6 }
  0xee   :  { %v704_v57 = vpop.f32.mrf.mxu1  ;;  %v677_v58 = vadd.f32 %v676_v56, %v675_v54 }
  0xef   :  { %v705_v59 = vadd.f32 %v704_v57, %v703_v55  ;;  %v678_v60 = vpop.f32.mrf.mxu0 }
  0xf0   :  { %v706_v61 = vpop.f32.mrf.mxu1 }
  0xf1   :  { %v679_v0 = vpop.f32.mrf.mxu0  ;;  %v476_v4 = vadd.f32 %v705_v59, %v677_v58 }
  0xf2   :  { %v707_v1 = vpop.f32.mrf.mxu1  ;;  %v680_v2 = vadd.f32 %v679_v0, %v678_v60 }
  0xf3   :  { %v708_v3 = vadd.f32 %v707_v1, %v706_v61 }
  0xf4   :  { %v725_v5 = vpop.f32.mrf.mxu0 }
  0xf5   :  { %v525_v8 = vadd.f32 %v725_v5, %v476_v4  ;;  %v479_v13 = vadd.f32 %v708_v3, %v680_v2 }
  0xf6   :  { %v516_v11 = vpop.f32.mrf.mxu0 }
  0xf7   :  { %v517_v12 = vadd.f32 %v516_v11, %v468_v9  ;;  %v555_v15 = vadd.f32 %v633_v10, %v525_v8 }
  0xf8   :  { %v726_v14 = vpop.f32.mrf.mxu0 }
  0xf9   :  { %v528_v16 = vadd.f32 %v726_v14, %v479_v13  ;;  %v553_v19 = vadd.f32 %v633_v10, %v517_v12  ;;  %v559_v22 = vmax.f32 %v555_v15, 0.0 }
  0xfa   :  { %v519_v18 = vpop.f32.mrf.mxu0 }
  0xfb   :  { %v556_v20 = vadd.f32 %v633_v10, %v528_v16  ;;  %v520_v21 = vadd.f32 %v519_v18, %v471_v17  ;;  %v557_v25 = vmax.f32 %v553_v19, 0.0 }
  0xfd   :  { %v560_v23 = vmax.f32 %v556_v20, 0.0  ;;  %v554_v24 = vadd.f32 %v633_v10, %v520_v21 }
  0xff   :  { %v650_v26 = vpack.c.bf16 %v560_v23, %v559_v22  ;;  %v558_v27 = vmax.f32 %v554_v24, 0.0 }
 0x101   :  { %652 = vst [vmem:[%s947_s3 + $0x8] sm:$0xff] %v650_v26   ;;  %v645_v28 = vpack.c.bf16 %v558_v27, %v557_v25 }
 0x103   :  { %646 = vst [vmem:[%s947_s3] sm:$0xff] %v645_v28  }

// kernel: resnet18_transfer_forward.31
= control target key start
LH: loop header
LB: loop body
LE: loop exit
PB: predicated region body
PF: predicated region fallthrough
CT: control target
= control target key end

     0   :  { %s1072_s12 = smov 0   ;;  %s1074_s13 = smov 0   ;;  %s1182_s0 = inlined_call_operand.vmem [shape: bf16[32,1152], index: 0, kind: input, shape index: {}]   ;;  %s1183_s1 = inlined_call_operand.vmem [shape: bf16[1152,128], index: 1, kind: input, shape index: {}]   ;;  %s1184_s2 = inlined_call_operand.vmem [shape: f32[1,128], index: 2, kind: input, shape index: {}]   ;;  %s1185_s3 = inlined_call_operand.vmem [shape: bf16[32,128], index: 3, kind: output, shape index: {}]  }
   0x1   :  { %s1076_s14 = smov 0   ;;  %s1078_s15 = smov 0  }
   0x2   :  { %s1080_s16 = smov 0  }
   0x3 LB: > { %s25_s17 = sadd.s32 1, %s1045_s15  ;;  %p48_p1 = scmp.ne.s32.totalorder %s1037_s13, %s1033_s12  ;;  %s1049_s16 = sphi %s1080_s16, %s13_s16   ;;  %s1045_s15 = sphi %s1078_s15, %s1189_s15   ;;  %s1041_s14 = sphi %s1076_s14, %s1188_s14   ;;  %s1037_s13 = sphi %s1074_s13, %s1187_s13   ;;  %s1033_s12 = sphi %s1072_s12, %s1186_s12  }
   0x4   : > { %p26_p0 = scmp.ge.s32.totalorder %s25_s17, 3  ;;  %p49_p2 = scmp.eq.s32.totalorder %s1049_s16, 0 }
   0x5   : > { %s41_s19 = sadd.s32 1, %s1037_s13  ;;  %p809_p5 = scmp.ge.s32.totalorder %s1049_s16, 3 }
   0x6   : > { %s1191_s17 = smov (%p26_p0, %s25_s17), 0  ;;  %p50_p3 = por %p49_p2, %p48_p1 }
   0x7   : > { %s37_s18 = ssub.s32 %s1045_s15, %s1191_s17  ;;  %162 = sbr.rel (%p809_p5) target bundleno = 21 (0x15), region = 20 }
   0x8   : > { %p39_p4 = scmp.eq.s32.totalorder %s37_s18, 0 }
   0xa   : > { %s1107_s20 = scalar_select %p39_p4, %s1037_s13, %s41_s19  }
   0xc   : > { %165 = sbr.rel (!%p50_p3) target bundleno = 21 (0x15), region = 24  ;;  %s167_s21 = sand.u32 (%p50_p3), 1, %s1037_s13  }
   0xd   : > { %s862_s22 = smul.u32 (%p50_p3), 12, %s1045_s15 }
   0xe   : > { %s936_s23 = smul.u32 (%p50_p3), 48, %s167_s21 }
   0xf   : > { %s175_s26 = scalar_lea.vmem (%p50_p3), %s1182_s0, %s862_s22 }
  0x10   : > { %v190_v0 = vld [vmem:[%s175_s26] sm:$0xff] (%p50_p3)  ;;  %v194_v2 = vld [vmem:[%s175_s26 + $0x48] sm:$0xff] (%p50_p3)  ;;  %s169_s27 = scalar_lea.vmem (%p50_p3), [#allocation3], %s936_s23  ;;  %v815_v6 = vld [vmem:[%s175_s26 + $0x50] sm:$0xf] (%p50_p3) }
  0x11   : > { %v192_v1 = vld [vmem:[%s175_s26 + $0x24] sm:$0xff]  ;;  %191 = vst [vmem:[%s169_s27] sm:$0xff] %v190_v0  ;;  %195 = vst [vmem:[%s169_s27 + $0x18] sm:$0xff] %v194_v2  ;;  %v196_v3 = vld [vmem:[%s175_s26 + $0x6c] sm:$0xff] }
  0x12   : > { %193 = vst [vmem:[%s169_s27 + $0xc] sm:$0xff] %v192_v1  ;;  %v811_v4 = vld [vmem:[%s175_s26 + $0x8] sm:$0xf]  ;;  %v813_v5 = vld [vmem:[%s175_s26 + $0x2c] sm:$0xf]  ;;  %197 = vst [vmem:[%s169_s27 + $0x24] sm:$0xff] %v196_v3 }
  0x13   : > { %812 = vst [vmem:[%s169_s27 + $0x8] sm:$0xf] %v811_v4  ;;  %814 = vst [vmem:[%s169_s27 + $0x14] sm:$0xf] %v813_v5  ;;  %v817_v7 = vld [vmem:[%s175_s26 + $0x74] sm:$0xf] }
  0x14   : > { %816 = vst [vmem:[%s169_s27 + $0x20] sm:$0xf] %v815_v6  ;;  %818 = vst [vmem:[%s169_s27 + $0x2c] sm:$0xf] %v817_v7 }
  0x15 PF: > { %p819_p6 = scmp.ge.s32.totalorder %s1049_s16, 1  ;;  %p230_p7 = scmp.lt.s32.totalorder %s1049_s16, 4 }
  0x17   : > { %p231_p8 = pnand %p819_p6, %p230_p7 }
  0x18   : > { %s237_s28 = sand.u32 (!%p231_p8), 1, %s1033_s12   ;;  %s276_s29 = smul.u32 (!%p231_p8), 48, %s1041_s14 }
  0x19   : > { %234 = sbr.rel (%p231_p8) target bundleno = 299 (0x12b), region = 54  ;;  %p821_p10 = scmp.ne.s32.totalorder (!%p231_p8), %s1041_s14, 0 }
  0x1a   : > { %s937_s30 = smul.u32 (!%p231_p8), 48, %s237_s28  ;;  %p277_p9 = scmp.lt.s32.totalorder (!%p231_p8), %s276_s29, 143 }
  0x1c   : > { %s1124_s8 = scalar_lea.vmem (!%p231_p8), [#allocation3], %s937_s30 }
  0x1e   : > { %s1193_s29 = smov (!%p277_p9, %s276_s29), 143  ;;  %301 = sbr.rel (%p821_p10) target bundleno = 38 (0x26), region = 62 }
  0x1f   : > { %s820_s4 = sshll.u32 %s1193_s29, 2 }
  0x20   : > { %s1122_s7 = scalar_lea.vmem %s1183_s1, %s820_s4 }
  0x23   : > { %v1051_v8 = vmov 0.0  }
  0x24   : > { %302 = vst [vmem:[#allocation2 + $0x10] sm:$0xff] %v1051_v8  ;;  %303 = vst [vmem:[#allocation2] sm:$0xff] %v1051_v8 }
  0x25   : > { %304 = vst [vmem:[#allocation2 + $0x18] sm:$0xff] %v1051_v8  ;;  %305 = vst [vmem:[#allocation2 + $0x8] sm:$0xff] %v1051_v8 }
  0x26 PF: > { %v979_v9 = vld [vmem:[%s1122_s7 + $0x78] sm:$0xff]   ;;  %v982_v12 = vld [vmem:[%s1122_s7 + $0x70] sm:$0xff]   ;;  %v985_v15 = vld [vmem:[%s1122_s7 + $0x68] sm:$0xff]   ;;  %p852_p11 = scmp.ne.s32.totalorder %s1041_s14, 2 }
  0x27   : > { %v980_v10 = vld [vmem:[%s1122_s7 + $0x38] sm:$0xff]   ;;  %878 = vmatprep.subr.bf16.mxu0 %v979_v9  ;;  %v983_v13 = vld [vmem:[%s1122_s7 + $0x30] sm:$0xff]   ;;  %v986_v16 = vld [vmem:[%s1122_s7 + $0x28] sm:$0xff]  }
  0x28   : > { %v981_v11 = vld [vmem:[%s1122_s7 + $0xb8] sm:$0xff]   ;;  %879 = vmatpush3.bf16.msra.mxu0 %v980_v10  ;;  %v984_v14 = vld [vmem:[%s1122_s7 + $0xb0] sm:$0xff]   ;;  %v987_v17 = vld [vmem:[%s1122_s7 + $0xa8] sm:$0xff]  }
  0x29   : > { %916 = vmatprep.subr.bf16.mxu1 %v981_v11  ;;  %880 = vmatprep.subr.bf16.mxu0 %v982_v12  ;;  %v988_v18 = vld [vmem:[%s1122_s7 + $0x60] sm:$0xff]   ;;  %v991_v21 = vld [vmem:[%s1122_s7 + $0x58] sm:$0xff]   ;;  %v994_v24 = vld [vmem:[%s1122_s7 + $0x50] sm:$0xff]  }
  0x2a   : > { %917 = vmatpush3.bf16.msra.mxu1 %v981_v11  ;;  %v989_v19 = vld [vmem:[%s1122_s7 + $0x20] sm:$0xff]   ;;  %v993_v22 = vld [vmem:[%s1122_s7 + $0x98] sm:$0xff]   ;;  %v996_v25 = vld [vmem:[%s1122_s7 + $0x90] sm:$0xff]  }
  0x2b   : > { %918 = vmatprep.subr.bf16.mxu1 %v984_v14  ;;  %v990_v20 = vld [vmem:[%s1122_s7 + $0xa0] sm:$0xff]   ;;  %v992_v23 = vld [vmem:[%s1122_s7 + $0x18] sm:$0xff]   ;;  %v995_v26 = vld [vmem:[%s1122_s7 + $0x10] sm:$0xff]  }
  0x2c   : > { %881 = vmatpush3.bf16.msra.mxu0 %v983_v13  ;;  %v997_v27 = vld [vmem:[%s1122_s7 + $0x48] sm:$0xff]   ;;  %v1000_v30 = vld [vmem:[%s1122_s7 + $0x40] sm:$0xff]   ;;  %v306_v44 = vld [vmem:[#allocation2 + $0x10] sm:$0xff] }
  0x2d   : > { %882 = vmatprep.subr.bf16.mxu0 %v985_v15  ;;  %v998_v28 = vld [vmem:[%s1122_s7 + $0x8] sm:$0xff]   ;;  %v1002_v31 = vld [vmem:[%s1122_s7 + $0x80] sm:$0xff]   ;;  %v308_v58 = vld [vmem:[#allocation2 + $0x18] sm:$0xff] }
  0x2e   : > { %919 = vmatpush3.bf16.msra.mxu1 %v984_v14  ;;  %v999_v29 = vld [vmem:[%s1122_s7 + $0x88] sm:$0xff]   ;;  %v1005_v32 = vld [vmem:[%s1124_s8 + $0x4] ss:$12 sps:$4 sm:$0xff]  }
  0x2f   : > { %920 = vmatprep.subr.bf16.mxu1 %v987_v17  ;;  %v1006_v33 = vld [vmem:[%s1124_s8 + $0x8] ss:$12 sps:$4 sm:$0xff]   ;;  %574 = vmatprep.mubr.bf16.mxu0 %v1005_v32  ;;  %v1003_v35 = vld [vmem:[%s1124_s8] ss:$12 sps:$4 sm:$0xff]   ;;  %v1010_v38 = vld [vmem:[%s1124_s8 + $0x18] ss:$12 sps:$4 sm:$0xff]  }
  0x30   : > { %883 = vmatpush3.bf16.msra.mxu0 %v986_v16  ;;  %v1001_v34 = vld [vmem:[%s1122_s7] sm:$0xff]   ;;  %932 = vmatprep.mubr.bf16.mxu1 %v1006_v33  ;;  %v1008_v36 = vld [vmem:[%s1124_s8 + $0x1c] ss:$12 sps:$4 sm:$0xff]  }
  0x31   : > { %884 = vmatprep.subr.bf16.mxu0 %v988_v18  ;;  %v1007_v37 = vld [vmem:[%s1124_s8 + $0x20] ss:$12 sps:$4 sm:$0xff]  }
  0x32   : > { %921 = vmatpush3.bf16.msra.mxu1 %v987_v17  ;;  %v307_v52 = vld [vmem:[#allocation2] sm:$0xff]  ;;  %v309_v0 = vld [vmem:[#allocation2 + $0x8] sm:$0xff] }
  0x33   : > { %922 = vmatprep.subr.bf16.mxu1 %v990_v20 }
  0x34   : > { %885 = vmatpush3.bf16.msra.mxu0 %v989_v19 }
  0x35   : > { %886 = vmatprep.subr.bf16.mxu0 %v991_v21 }
  0x36   : > { %923 = vmatpush3.bf16.msra.mxu1 %v990_v20 }
  0x37   : > { %924 = vmatprep.subr.bf16.mxu1 %v993_v22 }
  0x38   : > { %887 = vmatpush3.bf16.msra.mxu0 %v992_v23 }
  0x39   : > { %888 = vmatprep.subr.bf16.mxu0 %v994_v24 }
  0x3a   : > { %925 = vmatpush3.bf16.msra.mxu1 %v993_v22 }
  0x3b   : > { %926 = vmatprep.subr.bf16.mxu1 %v996_v25 }
  0x3c   : > { %889 = vmatpush3.bf16.msra.mxu0 %v995_v26 }
  0x3d   : > { %890 = vmatprep.subr.bf16.mxu0 %v997_v27 }
  0x3e   : > { %927 = vmatpush3.bf16.msra.mxu1 %v996_v25 }
  0x3f   : > { %928 = vmatprep.subr.bf16.mxu1 %v999_v29 }
  0x40   : > { %891 = vmatpush3.bf16.msra.mxu0 %v998_v28 }
  0x41   : > { %892 = vmatprep.subr.bf16.mxu0 %v1000_v30 }
  0x42   : > { %929 = vmatpush3.bf16.msra.mxu1 %v999_v29 }
  0x43   : > { %930 = vmatprep.subr.bf16.mxu1 %v1002_v31 }
  0x44   : > { %893 = vmatpush3.bf16.msra.mxu0 %v1001_v34 }
  0x46   : > { %931 = vmatpush3.bf16.msra.mxu1 %v1002_v31 }
  0x47   : > { %575 = vmatmul.mubr.bf16.vlgmr.msra.gmra.mxu0 %v1003_v35 }
  0x48   : > { %582 = vmatprep.mubr.bf16.mxu0 %v1008_v36 }
  0x49   : > { %933 = vmatmul.mubr.bf16.vlgmr.msra.gmra.mxu1 %v1007_v37 }
  0x4f   : > { %583 = vmatmul.mubr.bf16.gmra.mxu0 %v1010_v38 }
 0x107   : > { %v894_v39 = vpop.f32.mrf.mxu0 }
 0x109   : > { %v895_v40 = vpop.f32.mrf.mxu0  ;;  %v934_v41 = vpop.f32.mrf.mxu1 }
 0x10a   : > { %v896_v42 = vadd.f32 %v895_v40, %v894_v39 }
 0x10b   : > { %v897_v43 = vpop.f32.mrf.mxu0  ;;  %v625_v45 = vpop.f32.mrf.mxu1 }
 0x10c   : > { %v626_v46 = vadd.f32 %v896_v42, %v625_v45 }
 0x10d   : > { %v898_v47 = vpop.f32.mrf.mxu0  ;;  %v935_v48 = vpop.f32.mrf.mxu1 }
 0x10e   : > { %v640_v49 = vadd.f32 %v626_v46, %v306_v44  ;;  %v899_v50 = vadd.f32 %v898_v47, %v897_v43 }
 0x10f   : > { %v900_v51 = vpop.f32.mrf.mxu0  ;;  %v628_v53 = vpop.f32.mrf.mxu1 }
 0x110   : > { %644 = vst [vmem:[#allocation2 + $0x10] sm:$0xff] %v640_v49  ;;  %v629_v54 = vadd.f32 %v899_v50, %v628_v53 }
 0x111   : > { %v901_v55 = vpop.f32.mrf.mxu0 }
 0x112   : > { %v641_v56 = vadd.f32 %v629_v54, %v307_v52  ;;  %v902_v57 = vadd.f32 %v901_v55, %v900_v51 }
 0x113   : > { %v903_v59 = vpop.f32.mrf.mxu0 }
 0x114   : > { %645 = vst [vmem:[#allocation2] sm:$0xff] %v641_v56  ;;  %v634_v60 = vadd.f32 %v934_v41, %v902_v57 }
 0x115   : > { %v904_v61 = vpop.f32.mrf.mxu0 }
 0x116   : > { %v642_v62 = vadd.f32 %v634_v60, %v308_v58  ;;  %v905_v63 = vadd.f32 %v904_v61, %v903_v59 }
 0x118   : > { %646 = vst [vmem:[#allocation2 + $0x18] sm:$0xff] %v642_v62  ;;  %v637_v1 = vadd.f32 %v935_v48, %v905_v63  ;;  %651 = sbr.rel (%p852_p11) target bundleno = 299 (0x12b), region = 66 }
 0x11a   : > { %v643_v2 = vadd.f32 %v637_v1, %v309_v0 }
 0x11c   : > { %647 = vst [vmem:[#allocation2 + $0x8] sm:$0xff] %v643_v2 }
 0x11d   : > { %v652_v3 = vld [vmem:[#allocation2 + $0x10] sm:$0xff]  ;;  %v653_v4 = vld [vmem:[#allocation2] sm:$0xff] }
 0x11e   : > { %v853_v5 = vld [vmem:[%s1184_s2] ss:$0 sm:$0xff] }
 0x11f   : > { %v663_v6 = vadd.f32 %v853_v5, %v652_v3  ;;  %v664_v7 = vadd.f32 %v853_v5, %v653_v4  ;;  %v654_v8 = vld [vmem:[#allocation2 + $0x18] sm:$0xff] }
 0x120   : > { %v665_v10 = vadd.f32 %v853_v5, %v654_v8 }
 0x121   : > { %v667_v12 = vmax.f32 %v663_v6, 0.0  ;;  %v668_v13 = vmax.f32 %v664_v7, 0.0 }
 0x122   : > { %v669_v14 = vmax.f32 %v665_v10, 0.0 }
 0x123   : > { %v655_v9 = vld [vmem:[#allocation2 + $0x8] sm:$0xff]  ;;  %v870_v16 = vpack.c.bf16 %v668_v13, %v667_v12 }
 0x124   : > { %v666_v11 = vadd.f32 %v853_v5, %v655_v9 }
 0x125   : > { %871 = vst [vmem:[%s1185_s3] sm:$0xff] %v870_v16  }
 0x126   : > { %v670_v15 = vmax.f32 %v666_v11, 0.0 }
 0x128   : > { %v875_v17 = vpack.c.bf16 %v670_v15, %v669_v14 }
 0x12a   : > { %877 = vst [vmem:[%s1185_s3 + $0x8] sm:$0xff] %v875_v17  }
 0x12b PF: > { %s13_s16 = sadd.s32 1, %s1049_s16   ;;  %s1186_s12 = smov %s1037_s13 }
 0x12c   : > { %p10_p12 = scmp.ge.s32.totalorder %s13_s16, 5   ;;  %s1187_s13 = smov %s1107_s20 }
 0x12d   : > { %s1188_s14 = smov %s1045_s15  ;;  %s1189_s15 = smov %s1191_s17 }
 0x12e   :  { %12 = sbr.rel (!%p10_p12) target bundleno = 3 (0x3), region = 113 }

// kernel: resnet18_transfer_forward.30
= control target key start
LH: loop header
LB: loop body
LE: loop exit
PB: predicated region body
PF: predicated region fallthrough
CT: control target
= control target key end

     0   :  { %s1177_s15 = smov 0   ;;  %s1179_s16 = smov 0   ;;  %s1293_s0 = inlined_call_operand.vmem [shape: bf16[32,1152], index: 0, kind: input, shape index: {}]   ;;  %s1294_s1 = inlined_call_operand.vmem [shape: bf16[1152,128], index: 1, kind: input, shape index: {}]   ;;  %s1295_s2 = inlined_call_operand.vmem [shape: f32[1,128], index: 2, kind: input, shape index: {}]   ;;  %s1296_s3 = inlined_call_operand.vmem [shape: bf16[32,128], index: 3, kind: input, shape index: {}]   ;;  %s1297_s4 = inlined_call_operand.vmem [shape: bf16[32,128], index: 4, kind: output, shape index: {}]  }
   0x1   :  { %s1181_s17 = smov 0   ;;  %s1183_s18 = smov 0  }
   0x2   :  { %s1185_s19 = smov 0  }
   0x3 LB: > { %s26_s20 = sadd.s32 1, %s1145_s18  ;;  %p49_p1 = scmp.ne.s32.totalorder %s1137_s16, %s1133_s15  ;;  %s1149_s19 = sphi %s1185_s19, %s14_s19   ;;  %s1145_s18 = sphi %s1183_s18, %s1301_s18   ;;  %s1141_s17 = sphi %s1181_s17, %s1300_s17   ;;  %s1137_s16 = sphi %s1179_s16, %s1299_s16   ;;  %s1133_s15 = sphi %s1177_s15, %s1298_s15  }
   0x4   : > { %p27_p0 = scmp.ge.s32.totalorder %s26_s20, 3  ;;  %p50_p2 = scmp.eq.s32.totalorder %s1149_s19, 0 }
   0x5   : > { %s42_s22 = sadd.s32 1, %s1137_s16  ;;  %p900_p5 = scmp.ge.s32.totalorder %s1149_s19, 3 }
   0x6   : > { %s1303_s20 = smov (%p27_p0, %s26_s20), 0  ;;  %p51_p3 = por %p50_p2, %p49_p1 }
   0x7   : > { %s38_s21 = ssub.s32 %s1145_s18, %s1303_s20  ;;  %203 = sbr.rel (%p900_p5) target bundleno = 21 (0x15), region = 24 }
   0x8   : > { %p40_p4 = scmp.eq.s32.totalorder %s38_s21, 0 }
   0xa   : > { %s1212_s23 = scalar_select %p40_p4, %s1137_s16, %s42_s22  }
   0xc   : > { %206 = sbr.rel (!%p51_p3) target bundleno = 21 (0x15), region = 28  ;;  %s208_s24 = sand.u32 (%p51_p3), 1, %s1137_s16  }
   0xd   : > { %s953_s25 = smul.u32 (%p51_p3), 12, %s1145_s18 }
   0xe   : > { %s1036_s26 = smul.u32 (%p51_p3), 48, %s208_s24 }
   0xf   : > { %s216_s29 = scalar_lea.vmem (%p51_p3), %s1293_s0, %s953_s25 }
  0x10   : > { %v231_v0 = vld [vmem:[%s216_s29] sm:$0xff] (%p51_p3)  ;;  %v235_v2 = vld [vmem:[%s216_s29 + $0x48] sm:$0xff] (%p51_p3)  ;;  %s210_s30 = scalar_lea.vmem (%p51_p3), [#allocation3], %s1036_s26  ;;  %v906_v6 = vld [vmem:[%s216_s29 + $0x50] sm:$0xf] (%p51_p3) }
  0x11   : > { %v233_v1 = vld [vmem:[%s216_s29 + $0x24] sm:$0xff]  ;;  %232 = vst [vmem:[%s210_s30] sm:$0xff] %v231_v0  ;;  %236 = vst [vmem:[%s210_s30 + $0x18] sm:$0xff] %v235_v2  ;;  %v237_v3 = vld [vmem:[%s216_s29 + $0x6c] sm:$0xff] }
  0x12   : > { %234 = vst [vmem:[%s210_s30 + $0xc] sm:$0xff] %v233_v1  ;;  %v902_v4 = vld [vmem:[%s216_s29 + $0x8] sm:$0xf]  ;;  %v904_v5 = vld [vmem:[%s216_s29 + $0x2c] sm:$0xf]  ;;  %238 = vst [vmem:[%s210_s30 + $0x24] sm:$0xff] %v237_v3 }
  0x13   : > { %903 = vst [vmem:[%s210_s30 + $0x8] sm:$0xf] %v902_v4  ;;  %905 = vst [vmem:[%s210_s30 + $0x14] sm:$0xf] %v904_v5  ;;  %v908_v7 = vld [vmem:[%s216_s29 + $0x74] sm:$0xf] }
  0x14   : > { %907 = vst [vmem:[%s210_s30 + $0x20] sm:$0xf] %v906_v6  ;;  %909 = vst [vmem:[%s210_s30 + $0x2c] sm:$0xf] %v908_v7 }
  0x15 PF: > { %p910_p6 = scmp.ge.s32.totalorder %s1149_s19, 1  ;;  %p271_p7 = scmp.lt.s32.totalorder %s1149_s19, 4 }
  0x17   : > { %p272_p8 = pnand %p910_p6, %p271_p7 }
  0x18   : > { %s278_s5 = sand.u32 (!%p272_p8), 1, %s1133_s15   ;;  %s327_s6 = smul.u32 (!%p272_p8), 48, %s1141_s17 }
  0x19   : > { %275 = sbr.rel (%p272_p8) target bundleno = 301 (0x12d), region = 58  ;;  %p912_p10 = scmp.ne.s32.totalorder (!%p272_p8), %s1141_s17, 0 }
  0x1a   : > { %s1037_s7 = smul.u32 (!%p272_p8), 48, %s278_s5  ;;  %p328_p9 = scmp.lt.s32.totalorder (!%p272_p8), %s327_s6, 143 }
  0x1c   : > { %s1229_s12 = scalar_lea.vmem (!%p272_p8), [#allocation3], %s1037_s7 }
  0x1e   : > { %s1305_s6 = smov (!%p328_p9, %s327_s6), 143  ;;  %361 = sbr.rel (%p912_p10) target bundleno = 38 (0x26), region = 66 }
  0x1f   : > { %s911_s8 = sshll.u32 %s1305_s6, 2 }
  0x20   : > { %s1227_s11 = scalar_lea.vmem %s1294_s1, %s911_s8 }
  0x23   : > { %v1151_v8 = vmov 0.0  }
  0x24   : > { %362 = vst [vmem:[#allocation2 + $0x10] sm:$0xff] %v1151_v8  ;;  %363 = vst [vmem:[#allocation2] sm:$0xff] %v1151_v8 }
  0x25   : > { %364 = vst [vmem:[#allocation2 + $0x18] sm:$0xff] %v1151_v8  ;;  %365 = vst [vmem:[#allocation2 + $0x8] sm:$0xff] %v1151_v8 }
  0x26 PF: > { %v1079_v9 = vld [vmem:[%s1227_s11 + $0x78] sm:$0xff]   ;;  %v1082_v12 = vld [vmem:[%s1227_s11 + $0x70] sm:$0xff]   ;;  %v1085_v15 = vld [vmem:[%s1227_s11 + $0x68] sm:$0xff]   ;;  %p943_p11 = scmp.ne.s32.totalorder %s1141_s17, 2 }
  0x27   : > { %v1080_v10 = vld [vmem:[%s1227_s11 + $0x38] sm:$0xff]   ;;  %978 = vmatprep.subr.bf16.mxu0 %v1079_v9  ;;  %v1083_v13 = vld [vmem:[%s1227_s11 + $0x30] sm:$0xff]   ;;  %v1086_v16 = vld [vmem:[%s1227_s11 + $0x28] sm:$0xff]  }
  0x28   : > { %v1081_v11 = vld [vmem:[%s1227_s11 + $0xb8] sm:$0xff]   ;;  %979 = vmatpush3.bf16.msra.mxu0 %v1080_v10  ;;  %v1084_v14 = vld [vmem:[%s1227_s11 + $0xb0] sm:$0xff]   ;;  %v1087_v17 = vld [vmem:[%s1227_s11 + $0xa8] sm:$0xff]  }
  0x29   : > { %1016 = vmatprep.subr.bf16.mxu1 %v1081_v11  ;;  %980 = vmatprep.subr.bf16.mxu0 %v1082_v12  ;;  %v1088_v18 = vld [vmem:[%s1227_s11 + $0x60] sm:$0xff]   ;;  %v1091_v21 = vld [vmem:[%s1227_s11 + $0x58] sm:$0xff]   ;;  %v1094_v24 = vld [vmem:[%s1227_s11 + $0x50] sm:$0xff]  }
  0x2a   : > { %1017 = vmatpush3.bf16.msra.mxu1 %v1081_v11  ;;  %v1089_v19 = vld [vmem:[%s1227_s11 + $0x20] sm:$0xff]   ;;  %v1093_v22 = vld [vmem:[%s1227_s11 + $0x98] sm:$0xff]   ;;  %v1096_v25 = vld [vmem:[%s1227_s11 + $0x90] sm:$0xff]  }
  0x2b   : > { %1018 = vmatprep.subr.bf16.mxu1 %v1084_v14  ;;  %v1090_v20 = vld [vmem:[%s1227_s11 + $0xa0] sm:$0xff]   ;;  %v1092_v23 = vld [vmem:[%s1227_s11 + $0x18] sm:$0xff]   ;;  %v1095_v26 = vld [vmem:[%s1227_s11 + $0x10] sm:$0xff]  }
  0x2c   : > { %981 = vmatpush3.bf16.msra.mxu0 %v1083_v13  ;;  %v1097_v27 = vld [vmem:[%s1227_s11 + $0x48] sm:$0xff]   ;;  %v1100_v30 = vld [vmem:[%s1227_s11 + $0x40] sm:$0xff]   ;;  %v366_v44 = vld [vmem:[#allocation2 + $0x10] sm:$0xff] }
  0x2d   : > { %982 = vmatprep.subr.bf16.mxu0 %v1085_v15  ;;  %v1098_v28 = vld [vmem:[%s1227_s11 + $0x8] sm:$0xff]   ;;  %v1102_v31 = vld [vmem:[%s1227_s11 + $0x80] sm:$0xff]   ;;  %v368_v58 = vld [vmem:[#allocation2 + $0x18] sm:$0xff] }
  0x2e   : > { %1019 = vmatpush3.bf16.msra.mxu1 %v1084_v14  ;;  %v1099_v29 = vld [vmem:[%s1227_s11 + $0x88] sm:$0xff]   ;;  %v1105_v32 = vld [vmem:[%s1229_s12 + $0x4] ss:$12 sps:$4 sm:$0xff]  }
  0x2f   : > { %1020 = vmatprep.subr.bf16.mxu1 %v1087_v17  ;;  %v1106_v33 = vld [vmem:[%s1229_s12 + $0x8] ss:$12 sps:$4 sm:$0xff]   ;;  %634 = vmatprep.mubr.bf16.mxu0 %v1105_v32  ;;  %v1103_v35 = vld [vmem:[%s1229_s12] ss:$12 sps:$4 sm:$0xff]   ;;  %v1110_v38 = vld [vmem:[%s1229_s12 + $0x18] ss:$12 sps:$4 sm:$0xff]  }
  0x30   : > { %983 = vmatpush3.bf16.msra.mxu0 %v1086_v16  ;;  %v1101_v34 = vld [vmem:[%s1227_s11] sm:$0xff]   ;;  %1032 = vmatprep.mubr.bf16.mxu1 %v1106_v33  ;;  %v1108_v36 = vld [vmem:[%s1229_s12 + $0x1c] ss:$12 sps:$4 sm:$0xff]  }
  0x31   : > { %984 = vmatprep.subr.bf16.mxu0 %v1088_v18  ;;  %v1107_v37 = vld [vmem:[%s1229_s12 + $0x20] ss:$12 sps:$4 sm:$0xff]  }
  0x32   : > { %1021 = vmatpush3.bf16.msra.mxu1 %v1087_v17  ;;  %v367_v52 = vld [vmem:[#allocation2] sm:$0xff]  ;;  %v369_v0 = vld [vmem:[#allocation2 + $0x8] sm:$0xff] }
  0x33   : > { %1022 = vmatprep.subr.bf16.mxu1 %v1090_v20 }
  0x34   : > { %985 = vmatpush3.bf16.msra.mxu0 %v1089_v19 }
  0x35   : > { %986 = vmatprep.subr.bf16.mxu0 %v1091_v21 }
  0x36   : > { %1023 = vmatpush3.bf16.msra.mxu1 %v1090_v20 }
  0x37   : > { %1024 = vmatprep.subr.bf16.mxu1 %v1093_v22 }
  0x38   : > { %987 = vmatpush3.bf16.msra.mxu0 %v1092_v23 }
  0x39   : > { %988 = vmatprep.subr.bf16.mxu0 %v1094_v24 }
  0x3a   : > { %1025 = vmatpush3.bf16.msra.mxu1 %v1093_v22 }
  0x3b   : > { %1026 = vmatprep.subr.bf16.mxu1 %v1096_v25 }
  0x3c   : > { %989 = vmatpush3.bf16.msra.mxu0 %v1095_v26 }
  0x3d   : > { %990 = vmatprep.subr.bf16.mxu0 %v1097_v27 }
  0x3e   : > { %1027 = vmatpush3.bf16.msra.mxu1 %v1096_v25 }
  0x3f   : > { %1028 = vmatprep.subr.bf16.mxu1 %v1099_v29 }
  0x40   : > { %991 = vmatpush3.bf16.msra.mxu0 %v1098_v28 }
  0x41   : > { %992 = vmatprep.subr.bf16.mxu0 %v1100_v30 }
  0x42   : > { %1029 = vmatpush3.bf16.msra.mxu1 %v1099_v29 }
  0x43   : > { %1030 = vmatprep.subr.bf16.mxu1 %v1102_v31 }
  0x44   : > { %993 = vmatpush3.bf16.msra.mxu0 %v1101_v34 }
  0x46   : > { %1031 = vmatpush3.bf16.msra.mxu1 %v1102_v31 }
  0x47   : > { %635 = vmatmul.mubr.bf16.vlgmr.msra.gmra.mxu0 %v1103_v35 }
  0x48   : > { %642 = vmatprep.mubr.bf16.mxu0 %v1108_v36 }
  0x49   : > { %1033 = vmatmul.mubr.bf16.vlgmr.msra.gmra.mxu1 %v1107_v37 }
  0x4f   : > { %643 = vmatmul.mubr.bf16.gmra.mxu0 %v1110_v38 }
 0x107   : > { %v994_v39 = vpop.f32.mrf.mxu0 }
 0x109   : > { %v995_v40 = vpop.f32.mrf.mxu0  ;;  %v1034_v41 = vpop.f32.mrf.mxu1 }
 0x10a   : > { %v996_v42 = vadd.f32 %v995_v40, %v994_v39 }
 0x10b   : > { %v997_v43 = vpop.f32.mrf.mxu0  ;;  %v685_v45 = vpop.f32.mrf.mxu1 }
 0x10c   : > { %v686_v46 = vadd.f32 %v996_v42, %v685_v45 }
 0x10d   : > { %v998_v47 = vpop.f32.mrf.mxu0  ;;  %v1035_v48 = vpop.f32.mrf.mxu1 }
 0x10e   : > { %v700_v49 = vadd.f32 %v686_v46, %v366_v44  ;;  %v999_v50 = vadd.f32 %v998_v47, %v997_v43 }
 0x10f   : > { %v1000_v51 = vpop.f32.mrf.mxu0  ;;  %v688_v53 = vpop.f32.mrf.mxu1 }
 0x110   : > { %704 = vst [vmem:[#allocation2 + $0x10] sm:$0xff] %v700_v49  ;;  %v689_v54 = vadd.f32 %v999_v50, %v688_v53 }
 0x111   : > { %v1001_v55 = vpop.f32.mrf.mxu0 }
 0x112   : > { %v701_v56 = vadd.f32 %v689_v54, %v367_v52  ;;  %v1002_v57 = vadd.f32 %v1001_v55, %v1000_v51 }
 0x113   : > { %v1003_v59 = vpop.f32.mrf.mxu0 }
 0x114   : > { %705 = vst [vmem:[#allocation2] sm:$0xff] %v701_v56  ;;  %v694_v60 = vadd.f32 %v1034_v41, %v1002_v57 }
 0x115   : > { %v1004_v61 = vpop.f32.mrf.mxu0 }
 0x116   : > { %v702_v62 = vadd.f32 %v694_v60, %v368_v58  ;;  %v1005_v63 = vadd.f32 %v1004_v61, %v1003_v59 }
 0x118   : > { %706 = vst [vmem:[#allocation2 + $0x18] sm:$0xff] %v702_v62  ;;  %v697_v1 = vadd.f32 %v1035_v48, %v1005_v63  ;;  %711 = sbr.rel (%p943_p11) target bundleno = 301 (0x12d), region = 70 }
 0x11a   : > { %v703_v2 = vadd.f32 %v697_v1, %v369_v0 }
 0x11c   : > { %707 = vst [vmem:[#allocation2 + $0x8] sm:$0xff] %v703_v2 }
 0x11d   : > { %v712_v3 = vld [vmem:[#allocation2 + $0x10] sm:$0xff]  ;;  %v713_v4 = vld [vmem:[#allocation2] sm:$0xff]  ;;  %v976_v15 = vld [vmem:[%s1296_s3 + $0x8] sm:$0xff]  }
 0x11e   : > { %v944_v5 = vld [vmem:[%s1295_s2] ss:$0 sm:$0xff]  ;;  %v964_v16 = vunpack.c.l.bf16 %v976_v15  ;;  %v965_v17 = vunpack.c.h.bf16 %v976_v15 }
 0x11f   : > { %v723_v6 = vadd.f32 %v944_v5, %v712_v3  ;;  %v724_v7 = vadd.f32 %v944_v5, %v713_v4  ;;  %v959_v8 = vld [vmem:[%s1296_s3] sm:$0xff]   ;;  %v714_v9 = vld [vmem:[#allocation2 + $0x18] sm:$0xff] }
 0x120   : > { %v960_v11 = vunpack.c.l.bf16 %v959_v8  ;;  %v961_v12 = vunpack.c.h.bf16 %v959_v8  ;;  %v725_v13 = vadd.f32 %v944_v5, %v714_v9 }
 0x122   : > { %v735_v18 = vadd.f32 %v960_v11, %v723_v6  ;;  %v736_v19 = vadd.f32 %v961_v12, %v724_v7  ;;  %v737_v20 = vadd.f32 %v964_v16, %v725_v13 }
 0x123   : > { %v715_v10 = vld [vmem:[#allocation2 + $0x8] sm:$0xff] }
 0x124   : > { %v726_v14 = vadd.f32 %v944_v5, %v715_v10  ;;  %v739_v22 = vmax.f32 %v735_v18, 0.0  ;;  %v740_v23 = vmax.f32 %v736_v19, 0.0  ;;  %v741_v24 = vmax.f32 %v737_v20, 0.0 }
 0x126   : > { %v738_v21 = vadd.f32 %v965_v17, %v726_v14  ;;  %v969_v26 = vpack.c.bf16 %v740_v23, %v739_v22 }
 0x128   : > { %v742_v25 = vmax.f32 %v738_v21, 0.0  ;;  %970 = vst [vmem:[%s1297_s4] sm:$0xff] %v969_v26  }
 0x12a   : > { %v974_v27 = vpack.c.bf16 %v742_v25, %v741_v24 }
 0x12c   : > { %977 = vst [vmem:[%s1297_s4 + $0x8] sm:$0xff] %v974_v27  }
 0x12d PF: > { %s14_s19 = sadd.s32 1, %s1149_s19   ;;  %s1298_s15 = smov %s1137_s16 }
 0x12e   : > { %p11_p12 = scmp.ge.s32.totalorder %s14_s19, 5   ;;  %s1299_s16 = smov %s1212_s23 }
 0x12f   : > { %s1300_s17 = smov %s1145_s18  ;;  %s1301_s18 = smov %s1303_s20 }
 0x130   :  { %13 = sbr.rel (!%p11_p12) target bundleno = 3 (0x3), region = 120 }

// kernel: resnet18_transfer_forward.29
= control target key start
LH: loop header
LB: loop body
LE: loop exit
PB: predicated region body
PF: predicated region fallthrough
CT: control target
= control target key end

     0   :  { %vm73_vm0 = vcmask 523264   ;;  %s278_s1 = inlined_call_operand.vmem [shape: bf16[64,128], index: 1, kind: input, shape index: {}]   ;;  %s279_s0 = inlined_call_operand.vmem [shape: bf16[32,64], index: 0, kind: input, shape index: {}]   ;;  %s280_s2 = inlined_call_operand.vmem [shape: f32[1,128], index: 2, kind: input, shape index: {}]   ;;  %s281_s3 = inlined_call_operand.vmem [shape: bf16[32,128], index: 3, kind: output, shape index: {}]  }
   0x1   :  { %v225_v0 = vld [vmem:[%s278_s1 + $0x18] sm:$0xff]   ;;  %v226_v1 = vld [vmem:[%s278_s1 + $0x10] sm:$0xff]   ;;  %v227_v2 = vld [vmem:[%s278_s1 + $0x8] sm:$0xff]  }
   0x2   :  { %213 = vmatprep.subr.bf16.mxu0 %v225_v0  ;;  %v229_v3 = vld [vmem:[%s279_s0] sm:$0xff]   ;;  %v230_v5 = vld [vmem:[%s279_s0 + $0x8] sm:$0xff]  }
   0x3   :  { %214 = vmatpush3.bf16.msra.mxu0 %v225_v0  ;;  %221 = vmatprep.mubr.msk.bf16.mxu0 %vm73_vm0, %v229_v3  ;;  %v228_v4 = vld [vmem:[%s278_s1] sm:$0xff]  }
   0x4   :  { %215 = vmatprep.subr.bf16.mxu0 %v226_v1  ;;  %v187_v7 = vld [vmem:[%s280_s2] ss:$0 sm:$0xff] }
   0x7   :  { %216 = vmatpush3.bf16.msra.mxu0 %v226_v1 }
   0x8   :  { %217 = vmatprep.subr.bf16.mxu0 %v227_v2 }
   0xb   :  { %218 = vmatpush3.bf16.msra.mxu0 %v227_v2 }
   0xc   :  { %219 = vmatprep.subr.bf16.mxu0 %v228_v4 }
   0xf   :  { %220 = vmatpush3.bf16.msra.mxu0 %v228_v4 }
  0x12   :  { %222 = vmatmul.mubr.msk.bf16.vlgmr.msra.gmra.mxu0 %vm73_vm0, %v230_v5 }
  0xd2   :  { %v223_v6 = vpop.f32.mrf.mxu0 }
  0xd3   :  { %v153_v10 = vadd.f32 %v223_v6, %v187_v7 }
  0xd4   :  { %v114_v8 = vpop.f32.mrf.mxu0 }
  0xd5   :  { %v151_v13 = vadd.f32 %v187_v7, %v114_v8 }
  0xd6   :  { %v224_v9 = vpop.f32.mrf.mxu0 }
  0xd7   :  { %v154_v11 = vadd.f32 %v224_v9, %v187_v7 }
  0xd8   :  { %v117_v12 = vpop.f32.mrf.mxu0 }
  0xd9   :  { %v204_v14 = vpack.c.bf16 %v154_v11, %v153_v10  ;;  %v152_v15 = vadd.f32 %v187_v7, %v117_v12 }
  0xdb   :  { %206 = vst [vmem:[%s281_s3 + $0x8] sm:$0xff] %v204_v14   ;;  %v199_v16 = vpack.c.bf16 %v152_v15, %v151_v13 }
  0xdd   :  { %200 = vst [vmem:[%s281_s3] sm:$0xff] %v199_v16  }

// kernel: resnet18_transfer_forward.33
= control target key start
LH: loop header
LB: loop body
LE: loop exit
PB: predicated region body
PF: predicated region fallthrough
CT: control target
= control target key end

     0   :  { %s1148_s12 = smov 0   ;;  %s1150_s13 = smov 0   ;;  %s1279_s0 = inlined_call_operand.vmem [shape: bf16[16,1152], index: 0, kind: input, shape index: {}]   ;;  %s1280_s1 = inlined_call_operand.vmem [shape: bf16[1152,256], index: 1, kind: input, shape index: {}]   ;;  %s1281_s2 = inlined_call_operand.vmem [shape: f32[1,256], index: 2, kind: input, shape index: {}]   ;;  %s1282_s3 = inlined_call_operand.vmem [shape: bf16[16,256], index: 3, kind: output, shape index: {}]  }
   0x1   :  { %s1152_s14 = smov 0   ;;  %s1154_s15 = smov 0  }
   0x2   :  { %s1156_s16 = smov 0  }
   0x3 LB: > { %s25_s17 = sadd.s32 1, %s1120_s15  ;;  %p48_p1 = scmp.ne.s32.totalorder %s1112_s13, %s1108_s12  ;;  %s1124_s16 = sphi %s1156_s16, %s13_s16   ;;  %s1120_s15 = sphi %s1154_s15, %s1286_s15   ;;  %s1116_s14 = sphi %s1152_s14, %s1285_s14   ;;  %s1112_s13 = sphi %s1150_s13, %s1284_s13   ;;  %s1108_s12 = sphi %s1148_s12, %s1283_s12  }
   0x4   : > { %p26_p0 = scmp.ge.s32.totalorder %s25_s17, 3  ;;  %p49_p2 = scmp.eq.s32.totalorder %s1124_s16, 0 }
   0x5   : > { %s41_s19 = sadd.s32 1, %s1112_s13  ;;  %p894_p5 = scmp.ge.s32.totalorder %s1124_s16, 3 }
   0x6   : > { %s1288_s17 = smov (%p26_p0, %s25_s17), 0  ;;  %p50_p3 = por %p49_p2, %p48_p1 }
   0x7   : > { %s37_s18 = ssub.s32 %s1120_s15, %s1288_s17  ;;  %164 = sbr.rel (%p894_p5) target bundleno = 19 (0x13), region = 20 }
   0x8   : > { %p39_p4 = scmp.eq.s32.totalorder %s37_s18, 0 }
   0xa   : > { %s1183_s20 = scalar_select %p39_p4, %s1112_s13, %s41_s19  }
   0xc   : > { %167 = sbr.rel (!%p50_p3) target bundleno = 19 (0x13), region = 24  ;;  %s169_s21 = sand.u32 (%p50_p3), 1, %s1112_s13  }
   0xd   : > { %s962_s22 = smul.u32 (%p50_p3), 12, %s1120_s15 }
   0xe   : > { %s966_s23 = smul.u32 (%p50_p3), 24, %s169_s21 }
   0xf   : > { %s177_s26 = scalar_lea.vmem (%p50_p3), %s1279_s0, %s962_s22 }
  0x10   : > { %v192_v0 = vld [vmem:[%s177_s26] sm:$0xff] (%p50_p3)  ;;  %v896_v2 = vld [vmem:[%s177_s26 + $0x8] sm:$0xf] (%p50_p3)  ;;  %s171_s27 = scalar_lea.vmem (%p50_p3), [#allocation3], %s966_s23  ;;  %v898_v3 = vld [vmem:[%s177_s26 + $0x2c] sm:$0xf] (%p50_p3) }
  0x11   : > { %v194_v1 = vld [vmem:[%s177_s26 + $0x24] sm:$0xff]  ;;  %193 = vst [vmem:[%s171_s27] sm:$0xff] %v192_v0  ;;  %897 = vst [vmem:[%s171_s27 + $0x8] sm:$0xf] %v896_v2 }
  0x12   : > { %195 = vst [vmem:[%s171_s27 + $0xc] sm:$0xff] %v194_v1  ;;  %899 = vst [vmem:[%s171_s27 + $0x14] sm:$0xf] %v898_v3 }
  0x13 PF: > { %p900_p6 = scmp.ge.s32.totalorder %s1124_s16, 1  ;;  %p227_p7 = scmp.lt.s32.totalorder %s1124_s16, 4 }
  0x15   : > { %p228_p8 = pnand %p900_p6, %p227_p7 }
  0x16   : > { %s234_s28 = sand.u32 (!%p228_p8), 1, %s1108_s12   ;;  %s278_s29 = smul.u32 (!%p228_p8), 48, %s1116_s14 }
  0x17   : > { %231 = sbr.rel (%p228_p8) target bundleno = 320 (0x140), region = 54  ;;  %p903_p10 = scmp.ne.s32.totalorder (!%p228_p8), %s1116_s14, 0 }
  0x18   : > { %s967_s30 = smul.u32 (!%p228_p8), 24, %s234_s28  ;;  %p280_p9 = scmp.lt.s32.totalorder (!%p228_p8), %s278_s29, 143 }
  0x1a   : > { %s1200_s8 = scalar_lea.vmem (!%p228_p8), [#allocation3], %s967_s30 }
  0x1c   : > { %s1290_s29 = smov (!%p280_p9, %s278_s29), 143  ;;  %311 = sbr.rel (%p903_p10) target bundleno = 36 (0x24), region = 62 }
  0x1d   : > { %s963_s4 = sshll.u32 %s1290_s29, 3 }
  0x1e   : > { %s1198_s7 = scalar_lea.vmem %s1280_s1, %s963_s4 }
  0x21   : > { %v1126_v4 = vmov 0.0  }
  0x22   : > { %312 = vst [vmem:[#allocation2 + $0x10] sm:$0xff] %v1126_v4  ;;  %313 = vst [vmem:[#allocation2] sm:$0xff] %v1126_v4 }
  0x23   : > { %314 = vst [vmem:[#allocation2 + $0x18] sm:$0xff] %v1126_v4  ;;  %315 = vst [vmem:[#allocation2 + $0x8] sm:$0xff] %v1126_v4 }
  0x24 PF: > { %v1010_v5 = vld [vmem:[%s1198_s7 + $0x74] ss:$8 sps:$4 sm:$0xff]   ;;  %v1012_v6 = vld [vmem:[%s1198_s7 + $0x70] ss:$8 sps:$4 sm:$0xff]   ;;  %v1127_v7 = vmov 0   ;;  %p955_p11 = scmp.ne.s32.totalorder %s1116_s14, 2 }
  0x25   : > { %703 = vmatprep.mubr.bf16.mxu1 %v1127_v7  ;;  %628 = vmatprep.subr.bf16.mxu0 %v1010_v5  ;;  %v1013_v8 = vld [vmem:[%s1198_s7 + $0x64] ss:$8 sps:$4 sm:$0xff]   ;;  %v1015_v9 = vld [vmem:[%s1198_s7 + $0x60] ss:$8 sps:$4 sm:$0xff]   ;;  %v1016_v10 = vld [vmem:[%s1198_s7 + $0x54] ss:$8 sps:$4 sm:$0xff]  }
  0x26   : > { %629 = vmatpush1.bf16.msra.mxu0 %v1012_v6  ;;  %v1018_v11 = vld [vmem:[%s1198_s7 + $0x50] ss:$8 sps:$4 sm:$0xff]   ;;  %v1019_v12 = vld [vmem:[%s1198_s7 + $0x44] ss:$8 sps:$4 sm:$0xff]   ;;  %v1031_v13 = vld [vmem:[%s1198_s7 + $0x174] ss:$8 sps:$4 sm:$0xff]  }
  0x27   : > { %630 = vmatprep.subr.bf16.mxu0 %v1013_v8  ;;  %v1033_v14 = vld [vmem:[%s1198_s7 + $0x170] ss:$8 sps:$4 sm:$0xff]   ;;  %v1021_v15 = vld [vmem:[%s1198_s7 + $0x40] ss:$8 sps:$4 sm:$0xff]   ;;  %v1022_v16 = vld [vmem:[%s1198_s7 + $0x34] ss:$8 sps:$4 sm:$0xff]   ;;  %671 = vmatprep.subr.bf16.mxu1 %v1031_v13 }
  0x28   : > { %v1037_v17 = vld [vmem:[%s1198_s7 + $0x164] ss:$8 sps:$4 sm:$0xff]   ;;  %672 = vmatpush1.bf16.msra.mxu1 %v1033_v14  ;;  %v1039_v18 = vld [vmem:[%s1198_s7 + $0x160] ss:$8 sps:$4 sm:$0xff]   ;;  %v1024_v19 = vld [vmem:[%s1198_s7 + $0x30] ss:$8 sps:$4 sm:$0xff]  }
  0x29   : > { %673 = vmatprep.subr.bf16.mxu1 %v1037_v17  ;;  %v1043_v20 = vld [vmem:[%s1198_s7 + $0x154] ss:$8 sps:$4 sm:$0xff]   ;;  %v1025_v21 = vld [vmem:[%s1198_s7 + $0x24] ss:$8 sps:$4 sm:$0xff]   ;;  %v1045_v22 = vld [vmem:[%s1198_s7 + $0x150] ss:$8 sps:$4 sm:$0xff]  }
  0x2a   : > { %631 = vmatpush1.bf16.msra.mxu0 %v1015_v9  ;;  %v1049_v23 = vld [vmem:[%s1198_s7 + $0x144] ss:$8 sps:$4 sm:$0xff]   ;;  %v1027_v24 = vld [vmem:[%s1198_s7 + $0x20] ss:$8 sps:$4 sm:$0xff]   ;;  %v1028_v25 = vld [vmem:[%s1198_s7 + $0x14] ss:$8 sps:$4 sm:$0xff]  }
  0x2b   : > { %632 = vmatprep.subr.bf16.mxu0 %v1016_v10  ;;  %v1051_v26 = vld [vmem:[%s1198_s7 + $0x140] ss:$8 sps:$4 sm:$0xff]   ;;  %v1055_v27 = vld [vmem:[%s1198_s7 + $0x134] ss:$8 sps:$4 sm:$0xff]   ;;  %v1030_v28 = vld [vmem:[%s1198_s7 + $0x10] ss:$8 sps:$4 sm:$0xff]  }
  0x2c   : > { %674 = vmatpush1.bf16.msra.mxu1 %v1039_v18  ;;  %v1034_v29 = vld [vmem:[%s1198_s7 + $0x4] ss:$8 sps:$4 sm:$0xff]   ;;  %v1057_v30 = vld [vmem:[%s1198_s7 + $0x130] ss:$8 sps:$4 sm:$0xff]   ;;  %v1036_v32 = vld [vmem:[%s1198_s7] ss:$8 sps:$4 sm:$0xff]  }
  0x2d   : > { %675 = vmatprep.subr.bf16.mxu1 %v1043_v20  ;;  %v1061_v31 = vld [vmem:[%s1198_s7 + $0x124] ss:$8 sps:$4 sm:$0xff]   ;;  %v1040_v33 = vld [vmem:[%s1198_s7 + $0xf4] ss:$8 sps:$4 sm:$0xff]   ;;  %v1063_v34 = vld [vmem:[%s1198_s7 + $0x120] ss:$8 sps:$4 sm:$0xff]  }
  0x2e   : > { %633 = vmatpush1.bf16.msra.mxu0 %v1018_v11  ;;  %v1067_v35 = vld [vmem:[%s1198_s7 + $0x114] ss:$8 sps:$4 sm:$0xff]   ;;  %v1042_v36 = vld [vmem:[%s1198_s7 + $0xf0] ss:$8 sps:$4 sm:$0xff]   ;;  %v1046_v37 = vld [vmem:[%s1198_s7 + $0xe4] ss:$8 sps:$4 sm:$0xff]  }
  0x2f   : > { %634 = vmatprep.subr.bf16.mxu0 %v1019_v12  ;;  %v1069_v38 = vld [vmem:[%s1198_s7 + $0x110] ss:$8 sps:$4 sm:$0xff]   ;;  %v1073_v39 = vld [vmem:[%s1198_s7 + $0x104] ss:$8 sps:$4 sm:$0xff]   ;;  %v1048_v41 = vld [vmem:[%s1198_s7 + $0xe0] ss:$8 sps:$4 sm:$0xff]  }
  0x30   : > { %676 = vmatpush1.bf16.msra.mxu1 %v1045_v22  ;;  %v1085_v40 = vld [vmem:[%s1200_s8 + $0x4] ss:$12 sps:$4 sm:$0xff]   ;;  %v1079_v46 = vld [vmem:[%s1200_s8 + $0x8] ss:$12 sps:$4 sm:$0xff]   ;;  %v1083_v56 = vld [vmem:[%s1200_s8] ss:$12 sps:$4 sm:$0xff]  }
  0x31   : > { %677 = vmatprep.subr.bf16.mxu1 %v1049_v23  ;;  %v1052_v42 = vld [vmem:[%s1198_s7 + $0xd4] ss:$8 sps:$4 sm:$0xff]   ;;  %660 = vmatprep.mubr.bf16.mxu0 %v1085_v40  ;;  %v1075_v43 = vld [vmem:[%s1198_s7 + $0x100] ss:$8 sps:$4 sm:$0xff]   ;;  %v1054_v44 = vld [vmem:[%s1198_s7 + $0xd0] ss:$8 sps:$4 sm:$0xff]  }
  0x32   : > { %635 = vmatpush1.bf16.msra.mxu0 %v1021_v15  ;;  %v1058_v45 = vld [vmem:[%s1198_s7 + $0xc4] ss:$8 sps:$4 sm:$0xff]   ;;  %v1060_v47 = vld [vmem:[%s1198_s7 + $0xc0] ss:$8 sps:$4 sm:$0xff]   ;;  %v1064_v48 = vld [vmem:[%s1198_s7 + $0xb4] ss:$8 sps:$4 sm:$0xff]  }
  0x33   : > { %636 = vmatprep.subr.bf16.mxu0 %v1022_v16  ;;  %v1066_v49 = vld [vmem:[%s1198_s7 + $0xb0] ss:$8 sps:$4 sm:$0xff]   ;;  %v1070_v50 = vld [vmem:[%s1198_s7 + $0xa4] ss:$8 sps:$4 sm:$0xff]   ;;  %v1072_v51 = vld [vmem:[%s1198_s7 + $0xa0] ss:$8 sps:$4 sm:$0xff]  }
  0x34   : > { %678 = vmatpush1.bf16.msra.mxu1 %v1051_v26  ;;  %v1076_v52 = vld [vmem:[%s1198_s7 + $0x94] ss:$8 sps:$4 sm:$0xff]   ;;  %v1078_v53 = vld [vmem:[%s1198_s7 + $0x90] ss:$8 sps:$4 sm:$0xff]   ;;  %v1080_v54 = vld [vmem:[%s1198_s7 + $0x84] ss:$8 sps:$4 sm:$0xff]  }
  0x35   : > { %679 = vmatprep.subr.bf16.mxu1 %v1055_v27  ;;  %v1082_v55 = vld [vmem:[%s1198_s7 + $0x80] ss:$8 sps:$4 sm:$0xff]   ;;  %v316_v59 = vld [vmem:[#allocation2 + $0x10] sm:$0xff]  ;;  %v318_v3 = vld [vmem:[#allocation2 + $0x18] sm:$0xff] }
  0x36   : > { %637 = vmatpush1.bf16.msra.mxu0 %v1024_v19  ;;  %v317_v63 = vld [vmem:[#allocation2] sm:$0xff]  ;;  %v319_v8 = vld [vmem:[#allocation2 + $0x8] sm:$0xff] }
  0x37   : > { %638 = vmatprep.subr.bf16.mxu0 %v1025_v21 }
  0x38   : > { %680 = vmatpush1.bf16.msra.mxu1 %v1057_v30 }
  0x39   : > { %681 = vmatprep.subr.bf16.mxu1 %v1061_v31 }
  0x3a   : > { %639 = vmatpush1.bf16.msra.mxu0 %v1027_v24 }
  0x3b   : > { %640 = vmatprep.subr.bf16.mxu0 %v1028_v25 }
  0x3c   : > { %682 = vmatpush1.bf16.msra.mxu1 %v1063_v34 }
  0x3d   : > { %683 = vmatprep.subr.bf16.mxu1 %v1067_v35 }
  0x3e   : > { %641 = vmatpush1.bf16.msra.mxu0 %v1030_v28 }
  0x3f   : > { %642 = vmatprep.subr.bf16.mxu0 %v1034_v29 }
  0x40   : > { %684 = vmatpush1.bf16.msra.mxu1 %v1069_v38 }
  0x41   : > { %685 = vmatprep.subr.bf16.mxu1 %v1073_v39 }
  0x42   : > { %643 = vmatpush1.bf16.msra.mxu0 %v1036_v32 }
  0x43   : > { %644 = vmatprep.subr.bf16.mxu0 %v1040_v33 }
  0x44   : > { %686 = vmatpush1.bf16.msra.mxu1 %v1075_v43 }
  0x46   : > { %645 = vmatpush2.bf16.msra.mxu0 %v1042_v36 }
  0x47   : > { %646 = vmatprep.subr.bf16.mxu0 %v1046_v37  ;;  %704 = vmatmul.mubr.bf16.vlgmr.msra.gmra.mxu1 %v1079_v46 }
  0x4a   : > { %647 = vmatpush2.bf16.msra.mxu0 %v1048_v41 }
  0x4b   : > { %648 = vmatprep.subr.bf16.mxu0 %v1052_v42 }
  0x4e   : > { %649 = vmatpush2.bf16.msra.mxu0 %v1054_v44 }
  0x4f   : > { %650 = vmatprep.subr.bf16.mxu0 %v1058_v45 }
  0x52   : > { %651 = vmatpush2.bf16.msra.mxu0 %v1060_v47 }
  0x53   : > { %652 = vmatprep.subr.bf16.mxu0 %v1064_v48 }
  0x56   : > { %653 = vmatpush2.bf16.msra.mxu0 %v1066_v49 }
  0x57   : > { %654 = vmatprep.subr.bf16.mxu0 %v1070_v50 }
  0x5a   : > { %655 = vmatpush2.bf16.msra.mxu0 %v1072_v51 }
  0x5b   : > { %656 = vmatprep.subr.bf16.mxu0 %v1076_v52 }
  0x5e   : > { %657 = vmatpush2.bf16.msra.mxu0 %v1078_v53 }
  0x5f   : > { %658 = vmatprep.subr.bf16.mxu0 %v1080_v54 }
  0x62   : > { %659 = vmatpush2.bf16.msra.mxu0 %v1082_v55 }
  0x65   : > { %661 = vmatmul.mubr.bf16.vlgmr.msra.gmra.mxu0 %v1083_v56 }
 0x107   : > { %v705_v57 = vpop.f32.mrf.mxu1 }
 0x109   : > { %v707_v58 = vpop.f32.mrf.mxu1 }
 0x10b   : > { %v709_v62 = vpop.f32.mrf.mxu1 }
 0x10d   : > { %v711_v7 = vpop.f32.mrf.mxu1 }
 0x125   : > { %v662_v60 = vpop.f32.mrf.mxu0 }
 0x126   : > { %v706_v61 = vadd.f32 %v705_v57, %v662_v60 }
 0x127   : > { %v664_v0 = vpop.f32.mrf.mxu0 }
 0x128   : > { %v714_v1 = vadd.f32 %v706_v61, %v316_v59  ;;  %v708_v2 = vadd.f32 %v707_v58, %v664_v0 }
 0x129   : > { %v666_v4 = vpop.f32.mrf.mxu0 }
 0x12a   : > { %718 = vst [vmem:[#allocation2 + $0x10] sm:$0xff] %v714_v1  ;;  %v715_v5 = vadd.f32 %v708_v2, %v317_v63  ;;  %v710_v6 = vadd.f32 %v709_v62, %v666_v4 }
 0x12b   : > { %v668_v9 = vpop.f32.mrf.mxu0 }
 0x12c   : > { %719 = vst [vmem:[#allocation2] sm:$0xff] %v715_v5  ;;  %v716_v10 = vadd.f32 %v710_v6, %v318_v3  ;;  %v712_v11 = vadd.f32 %v711_v7, %v668_v9  ;;  %725 = sbr.rel (%p955_p11) target bundleno = 320 (0x140), region = 66 }
 0x12e   : > { %720 = vst [vmem:[#allocation2 + $0x18] sm:$0xff] %v716_v10  ;;  %v717_v12 = vadd.f32 %v712_v11, %v319_v8 }
 0x130   : > { %721 = vst [vmem:[#allocation2 + $0x8] sm:$0xff] %v717_v12 }
 0x131   : > { %v732_v13 = vlaneseq  ;;  %v730_v15 = vld [vmem:[%s1281_s2] sm:$0x3]  ;;  %v726_v16 = vld [vmem:[#allocation2 + $0x10] sm:$0xff] }
 0x133   : > { %v733_v14 = vshrl.u32 %v732_v13, 7  ;;  %v727_v19 = vld [vmem:[#allocation2] sm:$0xff] }
 0x135   : > { %v734_v17 = vsub.s32 0, %v733_v14  ;;  %v738_v18 = vsub.s32 1, %v733_v14  ;;  %v728_v20 = vld [vmem:[#allocation2 + $0x18] sm:$0xff] }
 0x137   : > { %v729_v21 = vld [vmem:[#allocation2 + $0x8] sm:$0xff]  ;;  %v735_v22 = vrot.slane %v730_v15, %v734_v17  ;;  %v739_v23 = vrot.slane %v730_v15, %v738_v18 }
 0x139   : > { %v742_v24 = vadd.f32 %v735_v22, %v726_v16  ;;  %v743_v25 = vadd.f32 %v739_v23, %v727_v19  ;;  %v744_v26 = vadd.f32 %v735_v22, %v728_v20  ;;  %v745_v27 = vadd.f32 %v739_v23, %v729_v21 }
 0x13b   : > { %v746_v28 = vmax.f32 %v742_v24, 0.0  ;;  %v747_v29 = vmax.f32 %v743_v25, 0.0  ;;  %v748_v30 = vmax.f32 %v744_v26, 0.0  ;;  %v749_v31 = vmax.f32 %v745_v27, 0.0 }
 0x13d   : > { %v964_v32 = vpack.c.bf16 %v747_v29, %v746_v28  ;;  %v965_v33 = vpack.c.bf16 %v749_v31, %v748_v30 }
 0x13f   : > { %762 = vst [vmem:[%s1282_s3] sm:$0xff] %v964_v32  ;;  %763 = vst [vmem:[%s1282_s3 + $0x8] sm:$0xff] %v965_v33 }
 0x140 PF: > { %s13_s16 = sadd.s32 1, %s1124_s16   ;;  %s1283_s12 = smov %s1112_s13 }
 0x141   : > { %p10_p12 = scmp.ge.s32.totalorder %s13_s16, 5   ;;  %s1284_s13 = smov %s1183_s20 }
 0x142   : > { %s1285_s14 = smov %s1120_s15  ;;  %s1286_s15 = smov %s1288_s17 }
 0x143   :  { %12 = sbr.rel (!%p10_p12) target bundleno = 3 (0x3), region = 113 }

// kernel: resnet18_transfer_forward.34
= control target key start
LH: loop header
LB: loop body
LE: loop exit
PB: predicated region body
PF: predicated region fallthrough
CT: control target
= control target key end

     0   :  { %v270_v1 = vmov 0   ;;  %v191_v18 = vlaneseq  ;;  %s351_s1 = inlined_call_operand.vmem [shape: bf16[128,256], index: 1, kind: input, shape index: {}]   ;;  %s352_s0 = inlined_call_operand.vmem [shape: bf16[16,128], index: 0, kind: input, shape index: {}]   ;;  %s353_s2 = inlined_call_operand.vmem [shape: f32[1,256], index: 2, kind: input, shape index: {}]   ;;  %s354_s3 = inlined_call_operand.vmem [shape: bf16[16,256], index: 3, kind: output, shape index: {}]  }
   0x1   :  { %v245_v0 = vld [vmem:[%s351_s1 + $0x74] ss:$8 sps:$4 sm:$0xff]   ;;  %163 = vmatprep.mubr.bf16.mxu0 %v270_v1  ;;  %v247_v2 = vld [vmem:[%s351_s1 + $0x70] ss:$8 sps:$4 sm:$0xff]   ;;  %v248_v3 = vld [vmem:[%s351_s1 + $0x64] ss:$8 sps:$4 sm:$0xff]  }
   0x2   :  { %131 = vmatprep.subr.bf16.mxu0 %v245_v0  ;;  %v250_v4 = vld [vmem:[%s351_s1 + $0x60] ss:$8 sps:$4 sm:$0xff]   ;;  %v251_v5 = vld [vmem:[%s351_s1 + $0x54] ss:$8 sps:$4 sm:$0xff]   ;;  %v253_v6 = vld [vmem:[%s351_s1 + $0x50] ss:$8 sps:$4 sm:$0xff]  }
   0x3   :  { %132 = vmatpush1.bf16.msra.mxu0 %v247_v2  ;;  %v254_v7 = vld [vmem:[%s351_s1 + $0x44] ss:$8 sps:$4 sm:$0xff]   ;;  %v256_v8 = vld [vmem:[%s351_s1 + $0x40] ss:$8 sps:$4 sm:$0xff]   ;;  %v257_v9 = vld [vmem:[%s351_s1 + $0x34] ss:$8 sps:$4 sm:$0xff]  }
   0x4   :  { %133 = vmatprep.subr.bf16.mxu0 %v248_v3  ;;  %v259_v10 = vld [vmem:[%s351_s1 + $0x30] ss:$8 sps:$4 sm:$0xff]   ;;  %v260_v11 = vld [vmem:[%s351_s1 + $0x24] ss:$8 sps:$4 sm:$0xff]   ;;  %v262_v12 = vld [vmem:[%s351_s1 + $0x20] ss:$8 sps:$4 sm:$0xff]  }
   0x5   :  { %v263_v13 = vld [vmem:[%s351_s1 + $0x14] ss:$8 sps:$4 sm:$0xff]   ;;  %v265_v14 = vld [vmem:[%s351_s1 + $0x10] ss:$8 sps:$4 sm:$0xff]   ;;  %v266_v15 = vld [vmem:[%s351_s1 + $0x4] ss:$8 sps:$4 sm:$0xff]  }
   0x6   :  { %v268_v16 = vld [vmem:[%s351_s1] ss:$8 sps:$4 sm:$0xff]   ;;  %v192_v19 = vshrl.u32 %v191_v18, 7 }
   0x7   :  { %134 = vmatpush1.bf16.msra.mxu0 %v250_v4  ;;  %v269_v17 = vld [vmem:[%s352_s0] sm:$0xff]  }
   0x8   :  { %135 = vmatprep.subr.bf16.mxu0 %v251_v5  ;;  %v193_v20 = vsub.s32 0, %v192_v19  ;;  %v197_v21 = vsub.s32 1, %v192_v19  ;;  %v189_v22 = vld [vmem:[%s353_s2] sm:$0x3] }
   0xa   :  { %v194_v23 = vrot.slane %v189_v22, %v193_v20  ;;  %v198_v24 = vrot.slane %v189_v22, %v197_v21 }
   0xb   :  { %136 = vmatpush1.bf16.msra.mxu0 %v253_v6 }
   0xc   :  { %137 = vmatprep.subr.bf16.mxu0 %v254_v7 }
   0xf   :  { %138 = vmatpush1.bf16.msra.mxu0 %v256_v8 }
  0x10   :  { %139 = vmatprep.subr.bf16.mxu0 %v257_v9 }
  0x13   :  { %140 = vmatpush1.bf16.msra.mxu0 %v259_v10 }
  0x14   :  { %141 = vmatprep.subr.bf16.mxu0 %v260_v11 }
  0x17   :  { %142 = vmatpush1.bf16.msra.mxu0 %v262_v12 }
  0x18   :  { %143 = vmatprep.subr.bf16.mxu0 %v263_v13 }
  0x1b   :  { %144 = vmatpush1.bf16.msra.mxu0 %v265_v14 }
  0x1c   :  { %145 = vmatprep.subr.bf16.mxu0 %v266_v15 }
  0x1f   :  { %146 = vmatpush1.bf16.msra.mxu0 %v268_v16 }
  0x22   :  { %164 = vmatmul.mubr.bf16.vlgmr.msra.gmra.mxu0 %v269_v17 }
  0xe2   :  { %v165_v25 = vpop.f32.mrf.mxu0 }
  0xe3   :  { %v201_v27 = vadd.f32 %v194_v23, %v165_v25 }
  0xe4   :  { %v167_v26 = vpop.f32.mrf.mxu0 }
  0xe5   :  { %v202_v28 = vadd.f32 %v198_v24, %v167_v26 }
  0xe6   :  { %v169_v29 = vpop.f32.mrf.mxu0 }
  0xe7   :  { %v242_v30 = vpack.c.bf16 %v202_v28, %v201_v27  ;;  %v203_v32 = vadd.f32 %v194_v23, %v169_v29 }
  0xe8   :  { %v171_v31 = vpop.f32.mrf.mxu0 }
  0xe9   :  { %217 = vst [vmem:[%s354_s3] sm:$0xff] %v242_v30  ;;  %v204_v33 = vadd.f32 %v198_v24, %v171_v31 }
  0xeb   :  { %v243_v34 = vpack.c.bf16 %v204_v33, %v203_v32 }
  0xed   :  { %218 = vst [vmem:[%s354_s3 + $0x8] sm:$0xff] %v243_v34 }

// kernel: resnet18_transfer_forward.35
= control target key start
LH: loop header
LB: loop body
LE: loop exit
PB: predicated region body
PF: predicated region fallthrough
CT: control target
= control target key end

     0   :  { %s1711_s15 = smov 0   ;;  %s1713_s16 = smov 0   ;;  %s1899_s0 = inlined_call_operand.vmem [shape: bf16[16,2304], index: 0, kind: input, shape index: {}]   ;;  %s1900_s1 = inlined_call_operand.vmem [shape: bf16[2304,256], index: 1, kind: input, shape index: {}]   ;;  %s1901_s2 = inlined_call_operand.vmem [shape: f32[1,256], index: 2, kind: input, shape index: {}]   ;;  %s1902_s3 = inlined_call_operand.vmem [shape: bf16[16,256], index: 3, kind: input, shape index: {}]   ;;  %s1903_s4 = inlined_call_operand.vmem [shape: bf16[16,256], index: 4, kind: output, shape index: {}]  }
   0x1   :  { %s1715_s17 = smov 0   ;;  %s1717_s18 = smov 0  }
   0x2   :  { %s1719_s19 = smov 0  }
   0x3 LB: > { %s26_s20 = sadd.s32 1, %s1679_s18  ;;  %p49_p1 = scmp.ne.s32.totalorder %s1671_s16, %s1667_s15  ;;  %s1683_s19 = sphi %s1719_s19, %s14_s19   ;;  %s1679_s18 = sphi %s1717_s18, %s1907_s18   ;;  %s1675_s17 = sphi %s1715_s17, %s1906_s17   ;;  %s1671_s16 = sphi %s1713_s16, %s1905_s16   ;;  %s1667_s15 = sphi %s1711_s15, %s1904_s15  }
   0x4   : > { %p27_p0 = scmp.ge.s32.totalorder %s26_s20, 3  ;;  %p50_p2 = scmp.eq.s32.totalorder %s1683_s19, 0 }
   0x5   : > { %s42_s22 = sadd.s32 1, %s1671_s16  ;;  %p1330_p5 = scmp.ge.s32.totalorder %s1683_s19, 3 }
   0x6   : > { %s1909_s20 = smov (%p27_p0, %s26_s20), 0  ;;  %p51_p3 = por %p50_p2, %p49_p1 }
   0x7   : > { %s38_s21 = ssub.s32 %s1679_s18, %s1909_s20  ;;  %208 = sbr.rel (%p1330_p5) target bundleno = 20 (0x14), region = 24 }
   0x8   : > { %p40_p4 = scmp.eq.s32.totalorder %s38_s21, 0 }
   0xa   : > { %s1746_s23 = scalar_select %p40_p4, %s1671_s16, %s42_s22  }
   0xc   : > { %211 = sbr.rel (!%p51_p3) target bundleno = 20 (0x14), region = 28  ;;  %s213_s24 = sand.u32 (%p51_p3), 1, %s1671_s16  }
   0xd   : > { %s1445_s25 = smul.u32 (%p51_p3), 24, %s1679_s18 }
   0xe   : > { %s1449_s26 = smul.u32 (%p51_p3), 48, %s213_s24 }
   0xf   : > { %s221_s29 = scalar_lea.vmem (%p51_p3), %s1899_s0, %s1445_s25 }
  0x10   : > { %v234_v0 = vld [vmem:[%s221_s29] sm:$0xff] (%p51_p3)  ;;  %v236_v1 = vld [vmem:[%s221_s29 + $0x8] sm:$0xff] (%p51_p3)  ;;  %v238_v2 = vld [vmem:[%s221_s29 + $0x10] sm:$0xff] (%p51_p3)  ;;  %s215_s30 = scalar_lea.vmem (%p51_p3), [#allocation3], %s1449_s26 }
  0x11   : > { %235 = vst [vmem:[%s215_s30] sm:$0xff] %v234_v0  ;;  %237 = vst [vmem:[%s215_s30 + $0x8] sm:$0xff] %v236_v1  ;;  %v240_v3 = vld [vmem:[%s221_s29 + $0x48] sm:$0xff]  ;;  %v242_v4 = vld [vmem:[%s221_s29 + $0x50] sm:$0xff] }
  0x12   : > { %239 = vst [vmem:[%s215_s30 + $0x10] sm:$0xff] %v238_v2  ;;  %v244_v5 = vld [vmem:[%s221_s29 + $0x58] sm:$0xff]  ;;  %241 = vst [vmem:[%s215_s30 + $0x18] sm:$0xff] %v240_v3 }
  0x13   : > { %243 = vst [vmem:[%s215_s30 + $0x20] sm:$0xff] %v242_v4  ;;  %245 = vst [vmem:[%s215_s30 + $0x28] sm:$0xff] %v244_v5 }
  0x14 PF: > { %p1332_p6 = scmp.ge.s32.totalorder %s1683_s19, 1  ;;  %p265_p7 = scmp.lt.s32.totalorder %s1683_s19, 4 }
  0x16   : > { %p266_p8 = pnand %p1332_p6, %p265_p7 }
  0x17   : > { %s272_s5 = sand.u32 (!%p266_p8), 1, %s1667_s15   ;;  %s328_s6 = smul.u32 (!%p266_p8), 96, %s1675_s17 }
  0x18   : > { %269 = sbr.rel (%p266_p8) target bundleno = 387 (0x183), region = 55  ;;  %p1335_p10 = scmp.ne.s32.totalorder (!%p266_p8), %s1675_s17, 0 }
  0x19   : > { %s1450_s7 = smul.u32 (!%p266_p8), 48, %s272_s5  ;;  %p330_p9 = scmp.lt.s32.totalorder (!%p266_p8), %s328_s6, 287 }
  0x1b   : > { %s1763_s12 = scalar_lea.vmem (!%p266_p8), [#allocation3], %s1450_s7 }
  0x1d   : > { %s1911_s6 = smov (!%p330_p9, %s328_s6), 287  ;;  %372 = sbr.rel (%p1335_p10) target bundleno = 37 (0x25), region = 63 }
  0x1e   : > { %s1446_s8 = sshll.u32 %s1911_s6, 3 }
  0x1f   : > { %s1761_s11 = scalar_lea.vmem %s1900_s1, %s1446_s8 }
  0x22   : > { %v1685_v6 = vmov 0.0  }
  0x23   : > { %373 = vst [vmem:[#allocation2 + $0x10] sm:$0xff] %v1685_v6  ;;  %374 = vst [vmem:[#allocation2] sm:$0xff] %v1685_v6 }
  0x24   : > { %375 = vst [vmem:[#allocation2 + $0x18] sm:$0xff] %v1685_v6  ;;  %376 = vst [vmem:[#allocation2 + $0x8] sm:$0xff] %v1685_v6 }
  0x25 PF: > { %v1492_v7 = vld [vmem:[%s1761_s11 + $0x74] ss:$8 sps:$4 sm:$0xff]   ;;  %v1496_v9 = vld [vmem:[%s1761_s11 + $0x70] ss:$8 sps:$4 sm:$0xff]   ;;  %v1498_v11 = vld [vmem:[%s1761_s11 + $0x64] ss:$8 sps:$4 sm:$0xff]  }
  0x26   : > { %v1494_v8 = vld [vmem:[%s1761_s11 + $0x174] ss:$8 sps:$4 sm:$0xff]   ;;  %993 = vmatprep.subr.bf16.mxu0 %v1492_v7  ;;  %v1497_v10 = vld [vmem:[%s1761_s11 + $0x170] ss:$8 sps:$4 sm:$0xff]   ;;  %v1500_v12 = vld [vmem:[%s1761_s11 + $0x164] ss:$8 sps:$4 sm:$0xff]  }
  0x27   : > { %1036 = vmatprep.subr.bf16.mxu1 %v1494_v8  ;;  %994 = vmatpush1.bf16.msra.mxu0 %v1496_v9  ;;  %v1502_v13 = vld [vmem:[%s1761_s11 + $0x60] ss:$8 sps:$4 sm:$0xff]   ;;  %v1504_v15 = vld [vmem:[%s1761_s11 + $0x54] ss:$8 sps:$4 sm:$0xff]   ;;  %v1508_v17 = vld [vmem:[%s1761_s11 + $0x50] ss:$8 sps:$4 sm:$0xff]  }
  0x28   : > { %1037 = vmatpush1.bf16.msra.mxu1 %v1497_v10  ;;  %995 = vmatprep.subr.bf16.mxu0 %v1498_v11  ;;  %v1503_v14 = vld [vmem:[%s1761_s11 + $0x160] ss:$8 sps:$4 sm:$0xff]   ;;  %v1506_v16 = vld [vmem:[%s1761_s11 + $0x154] ss:$8 sps:$4 sm:$0xff]   ;;  %v1509_v18 = vld [vmem:[%s1761_s11 + $0x150] ss:$8 sps:$4 sm:$0xff]  }
  0x29   : > { %1038 = vmatprep.subr.bf16.mxu1 %v1500_v12  ;;  %v1510_v19 = vld [vmem:[%s1761_s11 + $0x44] ss:$8 sps:$4 sm:$0xff]   ;;  %v1514_v21 = vld [vmem:[%s1761_s11 + $0x40] ss:$8 sps:$4 sm:$0xff]   ;;  %v1516_v23 = vld [vmem:[%s1761_s11 + $0x34] ss:$8 sps:$4 sm:$0xff]  }
  0x2a   : > { %v1512_v20 = vld [vmem:[%s1761_s11 + $0x144] ss:$8 sps:$4 sm:$0xff]   ;;  %v1515_v22 = vld [vmem:[%s1761_s11 + $0x140] ss:$8 sps:$4 sm:$0xff]   ;;  %v1518_v24 = vld [vmem:[%s1761_s11 + $0x134] ss:$8 sps:$4 sm:$0xff]  }
  0x2b   : > { %996 = vmatpush1.bf16.msra.mxu0 %v1502_v13  ;;  %v1520_v25 = vld [vmem:[%s1761_s11 + $0x30] ss:$8 sps:$4 sm:$0xff]   ;;  %v1522_v27 = vld [vmem:[%s1761_s11 + $0x24] ss:$8 sps:$4 sm:$0xff]   ;;  %v1526_v29 = vld [vmem:[%s1761_s11 + $0x20] ss:$8 sps:$4 sm:$0xff]  }
  0x2c   : > { %1039 = vmatpush1.bf16.msra.mxu1 %v1503_v14  ;;  %997 = vmatprep.subr.bf16.mxu0 %v1504_v15  ;;  %v1521_v26 = vld [vmem:[%s1761_s11 + $0x130] ss:$8 sps:$4 sm:$0xff]   ;;  %v1524_v28 = vld [vmem:[%s1761_s11 + $0x124] ss:$8 sps:$4 sm:$0xff]   ;;  %v1527_v30 = vld [vmem:[%s1761_s11 + $0x120] ss:$8 sps:$4 sm:$0xff]  }
  0x2d   : > { %1040 = vmatprep.subr.bf16.mxu1 %v1506_v16  ;;  %v1528_v31 = vld [vmem:[%s1761_s11 + $0x14] ss:$8 sps:$4 sm:$0xff]   ;;  %v1532_v33 = vld [vmem:[%s1761_s11 + $0x10] ss:$8 sps:$4 sm:$0xff]   ;;  %v1534_v35 = vld [vmem:[%s1761_s11 + $0x4] ss:$8 sps:$4 sm:$0xff]  }
  0x2e   : > { %v1530_v32 = vld [vmem:[%s1761_s11 + $0x114] ss:$8 sps:$4 sm:$0xff]   ;;  %v1533_v34 = vld [vmem:[%s1761_s11 + $0x110] ss:$8 sps:$4 sm:$0xff]   ;;  %v1536_v36 = vld [vmem:[%s1761_s11 + $0x104] ss:$8 sps:$4 sm:$0xff]  }
  0x2f   : > { %998 = vmatpush1.bf16.msra.mxu0 %v1508_v17  ;;  %v1538_v37 = vld [vmem:[%s1761_s11] ss:$8 sps:$4 sm:$0xff]   ;;  %v1540_v39 = vld [vmem:[%s1761_s11 + $0xf4] ss:$8 sps:$4 sm:$0xff]   ;;  %v1544_v41 = vld [vmem:[%s1761_s11 + $0xf0] ss:$8 sps:$4 sm:$0xff]  }
  0x30   : > { %1041 = vmatpush1.bf16.msra.mxu1 %v1509_v18  ;;  %999 = vmatprep.subr.bf16.mxu0 %v1510_v19  ;;  %v1539_v38 = vld [vmem:[%s1761_s11 + $0x100] ss:$8 sps:$4 sm:$0xff]   ;;  %v1542_v40 = vld [vmem:[%s1761_s11 + $0x1f4] ss:$8 sps:$4 sm:$0xff]   ;;  %v1545_v42 = vld [vmem:[%s1761_s11 + $0x1f0] ss:$8 sps:$4 sm:$0xff]  }
  0x31   : > { %1042 = vmatprep.subr.bf16.mxu1 %v1512_v20  ;;  %v1546_v43 = vld [vmem:[%s1761_s11 + $0xe4] ss:$8 sps:$4 sm:$0xff]   ;;  %v1550_v45 = vld [vmem:[%s1761_s11 + $0xe0] ss:$8 sps:$4 sm:$0xff]   ;;  %v1552_v47 = vld [vmem:[%s1761_s11 + $0xd4] ss:$8 sps:$4 sm:$0xff]  }
  0x32   : > { %v1548_v44 = vld [vmem:[%s1761_s11 + $0x1e4] ss:$8 sps:$4 sm:$0xff]   ;;  %v1551_v46 = vld [vmem:[%s1761_s11 + $0x1e0] ss:$8 sps:$4 sm:$0xff]   ;;  %v1554_v48 = vld [vmem:[%s1761_s11 + $0x1d4] ss:$8 sps:$4 sm:$0xff]  }
  0x33   : > { %1000 = vmatpush1.bf16.msra.mxu0 %v1514_v21  ;;  %v1556_v49 = vld [vmem:[%s1761_s11 + $0xd0] ss:$8 sps:$4 sm:$0xff]   ;;  %v1558_v51 = vld [vmem:[%s1761_s11 + $0xc4] ss:$8 sps:$4 sm:$0xff]   ;;  %v1562_v53 = vld [vmem:[%s1761_s11 + $0xc0] ss:$8 sps:$4 sm:$0xff]  }
  0x34   : > { %1043 = vmatpush1.bf16.msra.mxu1 %v1515_v22  ;;  %1001 = vmatprep.subr.bf16.mxu0 %v1516_v23  ;;  %v1557_v50 = vld [vmem:[%s1761_s11 + $0x1d0] ss:$8 sps:$4 sm:$0xff]   ;;  %v1560_v52 = vld [vmem:[%s1761_s11 + $0x1c4] ss:$8 sps:$4 sm:$0xff]   ;;  %v1563_v54 = vld [vmem:[%s1761_s11 + $0x1c0] ss:$8 sps:$4 sm:$0xff]  }
  0x35   : > { %1044 = vmatprep.subr.bf16.mxu1 %v1518_v24  ;;  %v1564_v55 = vld [vmem:[%s1761_s11 + $0xb4] ss:$8 sps:$4 sm:$0xff]   ;;  %v1568_v59 = vld [vmem:[%s1761_s11 + $0xb0] ss:$8 sps:$4 sm:$0xff]   ;;  %v1570_v61 = vld [vmem:[%s1761_s11 + $0xa4] ss:$8 sps:$4 sm:$0xff]  }
  0x36   : > { %v1590_v56 = vld [vmem:[%s1763_s12 + $0x4] ss:$24 sps:$4 sm:$0xff]   ;;  %v1569_v60 = vld [vmem:[%s1761_s11 + $0x1b0] ss:$8 sps:$4 sm:$0xff]   ;;  %v1574_v63 = vld [vmem:[%s1761_s11 + $0xa0] ss:$8 sps:$4 sm:$0xff]  }
  0x37   : > { %1002 = vmatpush1.bf16.msra.mxu0 %v1520_v25  ;;  %v1566_v57 = vld [vmem:[%s1761_s11 + $0x1b4] ss:$8 sps:$4 sm:$0xff]   ;;  %1025 = vmatprep.mubr.bf16.mxu0 %v1590_v56  ;;  %v1572_v62 = vld [vmem:[%s1761_s11 + $0x1a4] ss:$8 sps:$4 sm:$0xff]   ;;  %v1575_v0 = vld [vmem:[%s1761_s11 + $0x1a0] ss:$8 sps:$4 sm:$0xff]  }
  0x38   : > { %1045 = vmatpush1.bf16.msra.mxu1 %v1521_v26  ;;  %1003 = vmatprep.subr.bf16.mxu0 %v1522_v27  ;;  %v1593_v58 = vld [vmem:[%s1763_s12 + $0xc] ss:$24 sps:$4 sm:$0xff]   ;;  %v1580_v3 = vld [vmem:[%s1761_s11 + $0x90] ss:$8 sps:$4 sm:$0xff]   ;;  %v1586_v7 = vld [vmem:[%s1761_s11 + $0x80] ss:$8 sps:$4 sm:$0xff]  }
  0x39   : > { %1046 = vmatprep.subr.bf16.mxu1 %v1524_v28  ;;  %1068 = vmatprep.mubr.bf16.mxu1 %v1593_v58  ;;  %v1576_v1 = vld [vmem:[%s1761_s11 + $0x94] ss:$8 sps:$4 sm:$0xff]   ;;  %v1581_v4 = vld [vmem:[%s1761_s11 + $0x190] ss:$8 sps:$4 sm:$0xff]   ;;  %v1582_v5 = vld [vmem:[%s1761_s11 + $0x84] ss:$8 sps:$4 sm:$0xff]  }
  0x3a   : > { %v1578_v2 = vld [vmem:[%s1761_s11 + $0x194] ss:$8 sps:$4 sm:$0xff]   ;;  %v1584_v6 = vld [vmem:[%s1761_s11 + $0x184] ss:$8 sps:$4 sm:$0xff]   ;;  %v1587_v8 = vld [vmem:[%s1761_s11 + $0x180] ss:$8 sps:$4 sm:$0xff]  }
  0x3b   : > { %1004 = vmatpush1.bf16.msra.mxu0 %v1526_v29  ;;  %v1596_v9 = vld [vmem:[%s1761_s11 + $0x274] ss:$8 sps:$4 sm:$0xff]   ;;  %v1588_v10 = vld [vmem:[%s1763_s12] ss:$24 sps:$4 sm:$0xff]   ;;  %v1599_v13 = vld [vmem:[%s1761_s11 + $0x264] ss:$8 sps:$4 sm:$0xff]  }
  0x3c   : > { %1047 = vmatpush1.bf16.msra.mxu1 %v1527_v30  ;;  %1005 = vmatprep.subr.bf16.mxu0 %v1528_v31  ;;  %v1591_v11 = vld [vmem:[%s1763_s12 + $0x8] ss:$24 sps:$4 sm:$0xff]   ;;  %v1644_v14 = vld [vmem:[%s1763_s12 + $0x14] ss:$24 sps:$4 sm:$0xff]   ;;  %p1438_p11 = scmp.ne.s32.totalorder %s1675_s17, 2 }
  0x3d   : > { %1048 = vmatprep.subr.bf16.mxu1 %v1530_v32  ;;  %v1594_v12 = vld [vmem:[%s1761_s11 + $0x270] ss:$8 sps:$4 sm:$0xff]   ;;  %v1597_v15 = vld [vmem:[%s1761_s11 + $0x260] ss:$8 sps:$4 sm:$0xff]   ;;  %v1602_v16 = vld [vmem:[%s1761_s11 + $0x254] ss:$8 sps:$4 sm:$0xff]  }
  0x3e   : > { %v1600_v17 = vld [vmem:[%s1761_s11 + $0x250] ss:$8 sps:$4 sm:$0xff]   ;;  %v1605_v18 = vld [vmem:[%s1761_s11 + $0x244] ss:$8 sps:$4 sm:$0xff]   ;;  %v1603_v19 = vld [vmem:[%s1761_s11 + $0x240] ss:$8 sps:$4 sm:$0xff]  }
  0x3f   : > { %1006 = vmatpush1.bf16.msra.mxu0 %v1532_v33  ;;  %v1608_v20 = vld [vmem:[%s1761_s11 + $0x234] ss:$8 sps:$4 sm:$0xff]   ;;  %v1606_v21 = vld [vmem:[%s1761_s11 + $0x230] ss:$8 sps:$4 sm:$0xff]   ;;  %v1611_v22 = vld [vmem:[%s1761_s11 + $0x224] ss:$8 sps:$4 sm:$0xff]  }
  0x40   : > { %1049 = vmatpush1.bf16.msra.mxu1 %v1533_v34  ;;  %1007 = vmatprep.subr.bf16.mxu0 %v1534_v35  ;;  %v1609_v23 = vld [vmem:[%s1761_s11 + $0x220] ss:$8 sps:$4 sm:$0xff]   ;;  %v1614_v24 = vld [vmem:[%s1761_s11 + $0x214] ss:$8 sps:$4 sm:$0xff]   ;;  %v1612_v25 = vld [vmem:[%s1761_s11 + $0x210] ss:$8 sps:$4 sm:$0xff]  }
  0x41   : > { %1050 = vmatprep.subr.bf16.mxu1 %v1536_v36  ;;  %v1617_v26 = vld [vmem:[%s1761_s11 + $0x204] ss:$8 sps:$4 sm:$0xff]   ;;  %v1615_v27 = vld [vmem:[%s1761_s11 + $0x200] ss:$8 sps:$4 sm:$0xff]   ;;  %v1620_v28 = vld [vmem:[%s1761_s11 + $0x2f4] ss:$8 sps:$4 sm:$0xff]  }
  0x42   : > { %v1618_v29 = vld [vmem:[%s1761_s11 + $0x2f0] ss:$8 sps:$4 sm:$0xff]   ;;  %v1623_v30 = vld [vmem:[%s1761_s11 + $0x2e4] ss:$8 sps:$4 sm:$0xff]   ;;  %v1621_v31 = vld [vmem:[%s1761_s11 + $0x2e0] ss:$8 sps:$4 sm:$0xff]  }
  0x43   : > { %1008 = vmatpush1.bf16.msra.mxu0 %v1538_v37  ;;  %v1626_v32 = vld [vmem:[%s1761_s11 + $0x2d4] ss:$8 sps:$4 sm:$0xff]   ;;  %v1624_v33 = vld [vmem:[%s1761_s11 + $0x2d0] ss:$8 sps:$4 sm:$0xff]   ;;  %v1629_v34 = vld [vmem:[%s1761_s11 + $0x2c4] ss:$8 sps:$4 sm:$0xff]  }
  0x44   : > { %1051 = vmatpush1.bf16.msra.mxu1 %v1539_v38  ;;  %1009 = vmatprep.subr.bf16.mxu0 %v1540_v39  ;;  %v1627_v35 = vld [vmem:[%s1761_s11 + $0x2c0] ss:$8 sps:$4 sm:$0xff]   ;;  %v1632_v36 = vld [vmem:[%s1761_s11 + $0x2b4] ss:$8 sps:$4 sm:$0xff]   ;;  %v1630_v37 = vld [vmem:[%s1761_s11 + $0x2b0] ss:$8 sps:$4 sm:$0xff]  }
  0x45   : > { %1052 = vmatprep.subr.bf16.mxu1 %v1542_v40  ;;  %v1635_v38 = vld [vmem:[%s1761_s11 + $0x2a4] ss:$8 sps:$4 sm:$0xff]   ;;  %v1633_v39 = vld [vmem:[%s1761_s11 + $0x2a0] ss:$8 sps:$4 sm:$0xff]   ;;  %v1638_v40 = vld [vmem:[%s1761_s11 + $0x294] ss:$8 sps:$4 sm:$0xff]  }
  0x46   : > { %v378_v58 = vld [vmem:[#allocation2] sm:$0xff] }
  0x47   : > { %1010 = vmatpush2.bf16.msra.mxu0 %v1544_v41  ;;  %v1636_v41 = vld [vmem:[%s1761_s11 + $0x290] ss:$8 sps:$4 sm:$0xff]  }
  0x48   : > { %1053 = vmatpush2.bf16.msra.mxu1 %v1545_v42  ;;  %1011 = vmatprep.subr.bf16.mxu0 %v1546_v43  ;;  %v1641_v42 = vld [vmem:[%s1761_s11 + $0x284] ss:$8 sps:$4 sm:$0xff]   ;;  %v1639_v43 = vld [vmem:[%s1761_s11 + $0x280] ss:$8 sps:$4 sm:$0xff]  }
  0x49   : > { %1054 = vmatprep.subr.bf16.mxu1 %v1548_v44  ;;  %v1642_v44 = vld [vmem:[%s1763_s12 + $0x10] ss:$24 sps:$4 sm:$0xff]  }
  0x4b   : > { %1012 = vmatpush2.bf16.msra.mxu0 %v1550_v45 }
  0x4c   : > { %1055 = vmatpush2.bf16.msra.mxu1 %v1551_v46  ;;  %1013 = vmatprep.subr.bf16.mxu0 %v1552_v47 }
  0x4d   : > { %1056 = vmatprep.subr.bf16.mxu1 %v1554_v48 }
  0x4f   : > { %1014 = vmatpush2.bf16.msra.mxu0 %v1556_v49 }
  0x50   : > { %1057 = vmatpush2.bf16.msra.mxu1 %v1557_v50  ;;  %1015 = vmatprep.subr.bf16.mxu0 %v1558_v51 }
  0x51   : > { %1058 = vmatprep.subr.bf16.mxu1 %v1560_v52 }
  0x53   : > { %1016 = vmatpush2.bf16.msra.mxu0 %v1562_v53  ;;  %v377_v53 = vld [vmem:[#allocation2 + $0x10] sm:$0xff] }
  0x54   : > { %1059 = vmatpush2.bf16.msra.mxu1 %v1563_v54  ;;  %1017 = vmatprep.subr.bf16.mxu0 %v1564_v55 }
  0x55   : > { %1060 = vmatprep.subr.bf16.mxu1 %v1566_v57 }
  0x57   : > { %1018 = vmatpush2.bf16.msra.mxu0 %v1568_v59 }
  0x58   : > { %1061 = vmatpush2.bf16.msra.mxu1 %v1569_v60  ;;  %1019 = vmatprep.subr.bf16.mxu0 %v1570_v61 }
  0x59   : > { %1062 = vmatprep.subr.bf16.mxu1 %v1572_v62 }
  0x5b   : > { %1020 = vmatpush2.bf16.msra.mxu0 %v1574_v63  ;;  %v379_v63 = vld [vmem:[#allocation2 + $0x18] sm:$0xff] }
  0x5c   : > { %1063 = vmatpush2.bf16.msra.mxu1 %v1575_v0  ;;  %1021 = vmatprep.subr.bf16.mxu0 %v1576_v1 }
  0x5d   : > { %1064 = vmatprep.subr.bf16.mxu1 %v1578_v2 }
  0x5f   : > { %1022 = vmatpush2.bf16.msra.mxu0 %v1580_v3 }
  0x60   : > { %1065 = vmatpush2.bf16.msra.mxu1 %v1581_v4  ;;  %1023 = vmatprep.subr.bf16.mxu0 %v1582_v5  ;;  %v380_v4 = vld [vmem:[#allocation2 + $0x8] sm:$0xff] }
  0x61   : > { %1066 = vmatprep.subr.bf16.mxu1 %v1584_v6 }
  0x63   : > { %1024 = vmatpush2.bf16.msra.mxu0 %v1586_v7 }
  0x64   : > { %1067 = vmatpush2.bf16.msra.mxu1 %v1587_v8  ;;  %1079 = vmatprep.subr.bf16.mxu0 %v1596_v9 }
  0x66   : > { %1026 = vmatmul.mubr.bf16.vlgmr.msra.gmra.mxu0 %v1588_v10 }
  0x67   : > { %1069 = vmatmul.mubr.bf16.vlgmr.msra.gmra.mxu1 %v1591_v11  ;;  %1080 = vmatpush1.bf16.msra.mxu0 %v1594_v12 }
  0x68   : > { %1081 = vmatprep.subr.bf16.mxu0 %v1599_v13  ;;  %1111 = vmatprep.mubr.bf16.mxu0 %v1644_v14 }
  0x6b   : > { %1082 = vmatpush1.bf16.msra.mxu0 %v1597_v15 }
  0x6c   : > { %1083 = vmatprep.subr.bf16.mxu0 %v1602_v16 }
  0x6f   : > { %1084 = vmatpush1.bf16.msra.mxu0 %v1600_v17 }
  0x70   : > { %1085 = vmatprep.subr.bf16.mxu0 %v1605_v18 }
  0x73   : > { %1086 = vmatpush1.bf16.msra.mxu0 %v1603_v19 }
  0x74   : > { %1087 = vmatprep.subr.bf16.mxu0 %v1608_v20 }
  0x77   : > { %1088 = vmatpush1.bf16.msra.mxu0 %v1606_v21 }
  0x78   : > { %1089 = vmatprep.subr.bf16.mxu0 %v1611_v22 }
  0x7b   : > { %1090 = vmatpush1.bf16.msra.mxu0 %v1609_v23 }
  0x7c   : > { %1091 = vmatprep.subr.bf16.mxu0 %v1614_v24 }
  0x7f   : > { %1092 = vmatpush1.bf16.msra.mxu0 %v1612_v25 }
  0x80   : > { %1093 = vmatprep.subr.bf16.mxu0 %v1617_v26 }
  0x83   : > { %1094 = vmatpush1.bf16.msra.mxu0 %v1615_v27 }
  0x84   : > { %1095 = vmatprep.subr.bf16.mxu0 %v1620_v28 }
  0x87   : > { %1096 = vmatpush2.bf16.msra.mxu0 %v1618_v29 }
  0x88   : > { %1097 = vmatprep.subr.bf16.mxu0 %v1623_v30 }
  0x8b   : > { %1098 = vmatpush2.bf16.msra.mxu0 %v1621_v31 }
  0x8c   : > { %1099 = vmatprep.subr.bf16.mxu0 %v1626_v32 }
  0x8f   : > { %1100 = vmatpush2.bf16.msra.mxu0 %v1624_v33 }
  0x90   : > { %1101 = vmatprep.subr.bf16.mxu0 %v1629_v34 }
  0x93   : > { %1102 = vmatpush2.bf16.msra.mxu0 %v1627_v35 }
  0x94   : > { %1103 = vmatprep.subr.bf16.mxu0 %v1632_v36 }
  0x97   : > { %1104 = vmatpush2.bf16.msra.mxu0 %v1630_v37 }
  0x98   : > { %1105 = vmatprep.subr.bf16.mxu0 %v1635_v38 }
  0x9b   : > { %1106 = vmatpush2.bf16.msra.mxu0 %v1633_v39 }
  0x9c   : > { %1107 = vmatprep.subr.bf16.mxu0 %v1638_v40 }
  0x9f   : > { %1108 = vmatpush2.bf16.msra.mxu0 %v1636_v41 }
  0xa0   : > { %1109 = vmatprep.subr.bf16.mxu0 %v1641_v42 }
  0xa3   : > { %1110 = vmatpush2.bf16.msra.mxu0 %v1639_v43 }
  0xa6   : > { %1112 = vmatmul.mubr.bf16.vlgmr.msra.gmra.mxu0 %v1642_v44 }
 0x126   : > { %v1027_v45 = vpop.f32.mrf.mxu0 }
 0x127   : > { %v1070_v46 = vpop.f32.mrf.mxu1 }
 0x128   : > { %v1029_v47 = vpop.f32.mrf.mxu0  ;;  %v1071_v52 = vadd.f32 %v1070_v46, %v1027_v45 }
 0x129   : > { %v1072_v48 = vpop.f32.mrf.mxu1 }
 0x12a   : > { %v1031_v49 = vpop.f32.mrf.mxu0  ;;  %v1073_v55 = vadd.f32 %v1072_v48, %v1029_v47 }
 0x12b   : > { %v1074_v50 = vpop.f32.mrf.mxu1 }
 0x12c   : > { %v1033_v51 = vpop.f32.mrf.mxu0  ;;  %v1075_v60 = vadd.f32 %v1074_v50, %v1031_v49 }
 0x12d   : > { %v1076_v57 = vpop.f32.mrf.mxu1 }
 0x12e   : > { %v1077_v1 = vadd.f32 %v1076_v57, %v1033_v51 }
 0x166   : > { %v1113_v54 = vpop.f32.mrf.mxu0 }
 0x167   : > { %v1114_v56 = vadd.f32 %v1113_v54, %v1071_v52 }
 0x168   : > { %v1115_v59 = vpop.f32.mrf.mxu0 }
 0x169   : > { %v1122_v61 = vadd.f32 %v1114_v56, %v377_v53  ;;  %v1116_v62 = vadd.f32 %v1115_v59, %v1073_v55 }
 0x16a   : > { %v1117_v0 = vpop.f32.mrf.mxu0 }
 0x16b   : > { %1126 = vst [vmem:[#allocation2 + $0x10] sm:$0xff] %v1122_v61  ;;  %v1123_v2 = vadd.f32 %v1116_v62, %v378_v58  ;;  %v1118_v3 = vadd.f32 %v1117_v0, %v1075_v60 }
 0x16c   : > { %v1119_v5 = vpop.f32.mrf.mxu0 }
 0x16d   : > { %1127 = vst [vmem:[#allocation2] sm:$0xff] %v1123_v2  ;;  %v1124_v6 = vadd.f32 %v1118_v3, %v379_v63  ;;  %v1120_v7 = vadd.f32 %v1119_v5, %v1077_v1  ;;  %1133 = sbr.rel (%p1438_p11) target bundleno = 387 (0x183), region = 67 }
 0x16f   : > { %1128 = vst [vmem:[#allocation2 + $0x18] sm:$0xff] %v1124_v6  ;;  %v1125_v8 = vadd.f32 %v1120_v7, %v380_v4 }
 0x171   : > { %1129 = vst [vmem:[#allocation2 + $0x8] sm:$0xff] %v1125_v8 }
 0x172   : > { %v1140_v9 = vlaneseq  ;;  %v1154_v11 = vld [vmem:[%s1902_s3] sm:$0xff]  ;;  %v1155_v13 = vld [vmem:[%s1902_s3 + $0x8] sm:$0xff]  ;;  %v1134_v14 = vld [vmem:[#allocation2 + $0x10] sm:$0xff] }
 0x173   : > { %v1138_v12 = vld [vmem:[%s1901_s2] sm:$0x3]  ;;  %v1156_v18 = vunpack.c.l.bf16 %v1154_v11  ;;  %v1157_v19 = vunpack.c.h.bf16 %v1154_v11  ;;  %v1158_v24 = vunpack.c.l.bf16 %v1155_v13  ;;  %v1159_v25 = vunpack.c.h.bf16 %v1155_v13 }
 0x174   : > { %v1141_v10 = vshrl.u32 %v1140_v9, 7  ;;  %v1135_v17 = vld [vmem:[#allocation2] sm:$0xff] }
 0x176   : > { %v1142_v15 = vsub.s32 0, %v1141_v10  ;;  %v1146_v16 = vsub.s32 1, %v1141_v10  ;;  %v1136_v20 = vld [vmem:[#allocation2 + $0x18] sm:$0xff] }
 0x178   : > { %v1137_v21 = vld [vmem:[#allocation2 + $0x8] sm:$0xff]  ;;  %v1143_v22 = vrot.slane %v1138_v12, %v1142_v15  ;;  %v1147_v23 = vrot.slane %v1138_v12, %v1146_v16 }
 0x17a   : > { %v1150_v26 = vadd.f32 %v1143_v22, %v1134_v14  ;;  %v1151_v27 = vadd.f32 %v1147_v23, %v1135_v17  ;;  %v1152_v28 = vadd.f32 %v1143_v22, %v1136_v20  ;;  %v1153_v29 = vadd.f32 %v1147_v23, %v1137_v21 }
 0x17c   : > { %v1160_v30 = vadd.f32 %v1156_v18, %v1150_v26  ;;  %v1161_v31 = vadd.f32 %v1157_v19, %v1151_v27  ;;  %v1162_v32 = vadd.f32 %v1158_v24, %v1152_v28  ;;  %v1163_v33 = vadd.f32 %v1159_v25, %v1153_v29 }
 0x17e   : > { %v1164_v34 = vmax.f32 %v1160_v30, 0.0  ;;  %v1165_v35 = vmax.f32 %v1161_v31, 0.0  ;;  %v1166_v36 = vmax.f32 %v1162_v32, 0.0  ;;  %v1167_v37 = vmax.f32 %v1163_v33, 0.0 }
 0x180   : > { %v1447_v38 = vpack.c.bf16 %v1165_v35, %v1164_v34  ;;  %v1448_v39 = vpack.c.bf16 %v1167_v37, %v1166_v36 }
 0x182   : > { %1180 = vst [vmem:[%s1903_s4] sm:$0xff] %v1447_v38  ;;  %1181 = vst [vmem:[%s1903_s4 + $0x8] sm:$0xff] %v1448_v39 }
 0x183 PF: > { %s14_s19 = sadd.s32 1, %s1683_s19   ;;  %s1904_s15 = smov %s1671_s16 }
 0x184   : > { %p11_p12 = scmp.ge.s32.totalorder %s14_s19, 5   ;;  %s1905_s16 = smov %s1746_s23 }
 0x185   : > { %s1906_s17 = smov %s1679_s18  ;;  %s1907_s18 = smov %s1909_s20 }
 0x186   :  { %13 = sbr.rel (!%p11_p12) target bundleno = 3 (0x3), region = 111 }

// kernel: resnet18_transfer_forward.36
= control target key start
LH: loop header
LB: loop body
LE: loop exit
PB: predicated region body
PF: predicated region fallthrough
CT: control target
= control target key end

     0   :  { %s1606_s12 = smov 0   ;;  %s1608_s13 = smov 0   ;;  %s1788_s0 = inlined_call_operand.vmem [shape: bf16[16,2304], index: 0, kind: input, shape index: {}]   ;;  %s1789_s1 = inlined_call_operand.vmem [shape: bf16[2304,256], index: 1, kind: input, shape index: {}]   ;;  %s1790_s2 = inlined_call_operand.vmem [shape: f32[1,256], index: 2, kind: input, shape index: {}]   ;;  %s1791_s3 = inlined_call_operand.vmem [shape: bf16[16,256], index: 3, kind: output, shape index: {}]  }
   0x1   :  { %s1610_s14 = smov 0   ;;  %s1612_s15 = smov 0  }
   0x2   :  { %s1614_s16 = smov 0  }
   0x3 LB: > { %s25_s17 = sadd.s32 1, %s1579_s15  ;;  %p48_p1 = scmp.ne.s32.totalorder %s1571_s13, %s1567_s12  ;;  %s1583_s16 = sphi %s1614_s16, %s13_s16   ;;  %s1579_s15 = sphi %s1612_s15, %s1795_s15   ;;  %s1575_s14 = sphi %s1610_s14, %s1794_s14   ;;  %s1571_s13 = sphi %s1608_s13, %s1793_s13   ;;  %s1567_s12 = sphi %s1606_s12, %s1792_s12  }
   0x4   : > { %p26_p0 = scmp.ge.s32.totalorder %s25_s17, 3  ;;  %p49_p2 = scmp.eq.s32.totalorder %s1583_s16, 0 }
   0x5   : > { %s41_s19 = sadd.s32 1, %s1571_s13  ;;  %p1230_p5 = scmp.ge.s32.totalorder %s1583_s16, 3 }
   0x6   : > { %s1797_s17 = smov (%p26_p0, %s25_s17), 0  ;;  %p50_p3 = por %p49_p2, %p48_p1 }
   0x7   : > { %s37_s18 = ssub.s32 %s1579_s15, %s1797_s17  ;;  %164 = sbr.rel (%p1230_p5) target bundleno = 20 (0x14), region = 20 }
   0x8   : > { %p39_p4 = scmp.eq.s32.totalorder %s37_s18, 0 }
   0xa   : > { %s1641_s20 = scalar_select %p39_p4, %s1571_s13, %s41_s19  }
   0xc   : > { %167 = sbr.rel (!%p50_p3) target bundleno = 20 (0x14), region = 24  ;;  %s169_s21 = sand.u32 (%p50_p3), 1, %s1571_s13  }
   0xd   : > { %s1345_s22 = smul.u32 (%p50_p3), 24, %s1579_s15 }
   0xe   : > { %s1349_s23 = smul.u32 (%p50_p3), 48, %s169_s21 }
   0xf   : > { %s177_s26 = scalar_lea.vmem (%p50_p3), %s1788_s0, %s1345_s22 }
  0x10   : > { %v190_v0 = vld [vmem:[%s177_s26] sm:$0xff] (%p50_p3)  ;;  %v192_v1 = vld [vmem:[%s177_s26 + $0x8] sm:$0xff] (%p50_p3)  ;;  %v194_v2 = vld [vmem:[%s177_s26 + $0x10] sm:$0xff] (%p50_p3)  ;;  %s171_s27 = scalar_lea.vmem (%p50_p3), [#allocation3], %s1349_s23 }
  0x11   : > { %191 = vst [vmem:[%s171_s27] sm:$0xff] %v190_v0  ;;  %193 = vst [vmem:[%s171_s27 + $0x8] sm:$0xff] %v192_v1  ;;  %v196_v3 = vld [vmem:[%s177_s26 + $0x48] sm:$0xff]  ;;  %v198_v4 = vld [vmem:[%s177_s26 + $0x50] sm:$0xff] }
  0x12   : > { %195 = vst [vmem:[%s171_s27 + $0x10] sm:$0xff] %v194_v2  ;;  %v200_v5 = vld [vmem:[%s177_s26 + $0x58] sm:$0xff]  ;;  %197 = vst [vmem:[%s171_s27 + $0x18] sm:$0xff] %v196_v3 }
  0x13   : > { %199 = vst [vmem:[%s171_s27 + $0x20] sm:$0xff] %v198_v4  ;;  %201 = vst [vmem:[%s171_s27 + $0x28] sm:$0xff] %v200_v5 }
  0x14 PF: > { %p1232_p6 = scmp.ge.s32.totalorder %s1583_s16, 1  ;;  %p221_p7 = scmp.lt.s32.totalorder %s1583_s16, 4 }
  0x16   : > { %p222_p8 = pnand %p1232_p6, %p221_p7 }
  0x17   : > { %s228_s28 = sand.u32 (!%p222_p8), 1, %s1567_s12   ;;  %s272_s29 = smul.u32 (!%p222_p8), 96, %s1575_s14 }
  0x18   : > { %225 = sbr.rel (%p222_p8) target bundleno = 385 (0x181), region = 51  ;;  %p1235_p10 = scmp.ne.s32.totalorder (!%p222_p8), %s1575_s14, 0 }
  0x19   : > { %s1350_s30 = smul.u32 (!%p222_p8), 48, %s228_s28  ;;  %p274_p9 = scmp.lt.s32.totalorder (!%p222_p8), %s272_s29, 287 }
  0x1b   : > { %s1658_s8 = scalar_lea.vmem (!%p222_p8), [#allocation3], %s1350_s30 }
  0x1d   : > { %s1799_s29 = smov (!%p274_p9, %s272_s29), 287  ;;  %304 = sbr.rel (%p1235_p10) target bundleno = 37 (0x25), region = 59 }
  0x1e   : > { %s1346_s4 = sshll.u32 %s1799_s29, 3 }
  0x1f   : > { %s1656_s7 = scalar_lea.vmem %s1789_s1, %s1346_s4 }
  0x22   : > { %v1585_v6 = vmov 0.0  }
  0x23   : > { %305 = vst [vmem:[#allocation2 + $0x10] sm:$0xff] %v1585_v6  ;;  %306 = vst [vmem:[#allocation2] sm:$0xff] %v1585_v6 }
  0x24   : > { %307 = vst [vmem:[#allocation2 + $0x18] sm:$0xff] %v1585_v6  ;;  %308 = vst [vmem:[#allocation2 + $0x8] sm:$0xff] %v1585_v6 }
  0x25 PF: > { %v1392_v7 = vld [vmem:[%s1656_s7 + $0x74] ss:$8 sps:$4 sm:$0xff]   ;;  %v1396_v9 = vld [vmem:[%s1656_s7 + $0x70] ss:$8 sps:$4 sm:$0xff]   ;;  %v1398_v11 = vld [vmem:[%s1656_s7 + $0x64] ss:$8 sps:$4 sm:$0xff]  }
  0x26   : > { %v1394_v8 = vld [vmem:[%s1656_s7 + $0x174] ss:$8 sps:$4 sm:$0xff]   ;;  %925 = vmatprep.subr.bf16.mxu0 %v1392_v7  ;;  %v1397_v10 = vld [vmem:[%s1656_s7 + $0x170] ss:$8 sps:$4 sm:$0xff]   ;;  %v1400_v12 = vld [vmem:[%s1656_s7 + $0x164] ss:$8 sps:$4 sm:$0xff]  }
  0x27   : > { %968 = vmatprep.subr.bf16.mxu1 %v1394_v8  ;;  %926 = vmatpush1.bf16.msra.mxu0 %v1396_v9  ;;  %v1402_v13 = vld [vmem:[%s1656_s7 + $0x60] ss:$8 sps:$4 sm:$0xff]   ;;  %v1404_v15 = vld [vmem:[%s1656_s7 + $0x54] ss:$8 sps:$4 sm:$0xff]   ;;  %v1408_v17 = vld [vmem:[%s1656_s7 + $0x50] ss:$8 sps:$4 sm:$0xff]  }
  0x28   : > { %969 = vmatpush1.bf16.msra.mxu1 %v1397_v10  ;;  %927 = vmatprep.subr.bf16.mxu0 %v1398_v11  ;;  %v1403_v14 = vld [vmem:[%s1656_s7 + $0x160] ss:$8 sps:$4 sm:$0xff]   ;;  %v1406_v16 = vld [vmem:[%s1656_s7 + $0x154] ss:$8 sps:$4 sm:$0xff]   ;;  %v1409_v18 = vld [vmem:[%s1656_s7 + $0x150] ss:$8 sps:$4 sm:$0xff]  }
  0x29   : > { %970 = vmatprep.subr.bf16.mxu1 %v1400_v12  ;;  %v1410_v19 = vld [vmem:[%s1656_s7 + $0x44] ss:$8 sps:$4 sm:$0xff]   ;;  %v1414_v21 = vld [vmem:[%s1656_s7 + $0x40] ss:$8 sps:$4 sm:$0xff]   ;;  %v1416_v23 = vld [vmem:[%s1656_s7 + $0x34] ss:$8 sps:$4 sm:$0xff]  }
  0x2a   : > { %v1412_v20 = vld [vmem:[%s1656_s7 + $0x144] ss:$8 sps:$4 sm:$0xff]   ;;  %v1415_v22 = vld [vmem:[%s1656_s7 + $0x140] ss:$8 sps:$4 sm:$0xff]   ;;  %v1418_v24 = vld [vmem:[%s1656_s7 + $0x134] ss:$8 sps:$4 sm:$0xff]  }
  0x2b   : > { %928 = vmatpush1.bf16.msra.mxu0 %v1402_v13  ;;  %v1420_v25 = vld [vmem:[%s1656_s7 + $0x30] ss:$8 sps:$4 sm:$0xff]   ;;  %v1422_v27 = vld [vmem:[%s1656_s7 + $0x24] ss:$8 sps:$4 sm:$0xff]   ;;  %v1426_v29 = vld [vmem:[%s1656_s7 + $0x20] ss:$8 sps:$4 sm:$0xff]  }
  0x2c   : > { %971 = vmatpush1.bf16.msra.mxu1 %v1403_v14  ;;  %929 = vmatprep.subr.bf16.mxu0 %v1404_v15  ;;  %v1421_v26 = vld [vmem:[%s1656_s7 + $0x130] ss:$8 sps:$4 sm:$0xff]   ;;  %v1424_v28 = vld [vmem:[%s1656_s7 + $0x124] ss:$8 sps:$4 sm:$0xff]   ;;  %v1427_v30 = vld [vmem:[%s1656_s7 + $0x120] ss:$8 sps:$4 sm:$0xff]  }
  0x2d   : > { %972 = vmatprep.subr.bf16.mxu1 %v1406_v16  ;;  %v1428_v31 = vld [vmem:[%s1656_s7 + $0x14] ss:$8 sps:$4 sm:$0xff]   ;;  %v1432_v33 = vld [vmem:[%s1656_s7 + $0x10] ss:$8 sps:$4 sm:$0xff]   ;;  %v1434_v35 = vld [vmem:[%s1656_s7 + $0x4] ss:$8 sps:$4 sm:$0xff]  }
  0x2e   : > { %v1430_v32 = vld [vmem:[%s1656_s7 + $0x114] ss:$8 sps:$4 sm:$0xff]   ;;  %v1433_v34 = vld [vmem:[%s1656_s7 + $0x110] ss:$8 sps:$4 sm:$0xff]   ;;  %v1436_v36 = vld [vmem:[%s1656_s7 + $0x104] ss:$8 sps:$4 sm:$0xff]  }
  0x2f   : > { %930 = vmatpush1.bf16.msra.mxu0 %v1408_v17  ;;  %v1438_v37 = vld [vmem:[%s1656_s7] ss:$8 sps:$4 sm:$0xff]   ;;  %v1440_v39 = vld [vmem:[%s1656_s7 + $0xf4] ss:$8 sps:$4 sm:$0xff]   ;;  %v1444_v41 = vld [vmem:[%s1656_s7 + $0xf0] ss:$8 sps:$4 sm:$0xff]  }
  0x30   : > { %973 = vmatpush1.bf16.msra.mxu1 %v1409_v18  ;;  %931 = vmatprep.subr.bf16.mxu0 %v1410_v19  ;;  %v1439_v38 = vld [vmem:[%s1656_s7 + $0x100] ss:$8 sps:$4 sm:$0xff]   ;;  %v1442_v40 = vld [vmem:[%s1656_s7 + $0x1f4] ss:$8 sps:$4 sm:$0xff]   ;;  %v1445_v42 = vld [vmem:[%s1656_s7 + $0x1f0] ss:$8 sps:$4 sm:$0xff]  }
  0x31   : > { %974 = vmatprep.subr.bf16.mxu1 %v1412_v20  ;;  %v1446_v43 = vld [vmem:[%s1656_s7 + $0xe4] ss:$8 sps:$4 sm:$0xff]   ;;  %v1450_v45 = vld [vmem:[%s1656_s7 + $0xe0] ss:$8 sps:$4 sm:$0xff]   ;;  %v1452_v47 = vld [vmem:[%s1656_s7 + $0xd4] ss:$8 sps:$4 sm:$0xff]  }
  0x32   : > { %v1448_v44 = vld [vmem:[%s1656_s7 + $0x1e4] ss:$8 sps:$4 sm:$0xff]   ;;  %v1451_v46 = vld [vmem:[%s1656_s7 + $0x1e0] ss:$8 sps:$4 sm:$0xff]   ;;  %v1454_v48 = vld [vmem:[%s1656_s7 + $0x1d4] ss:$8 sps:$4 sm:$0xff]  }
  0x33   : > { %932 = vmatpush1.bf16.msra.mxu0 %v1414_v21  ;;  %v1456_v49 = vld [vmem:[%s1656_s7 + $0xd0] ss:$8 sps:$4 sm:$0xff]   ;;  %v1458_v51 = vld [vmem:[%s1656_s7 + $0xc4] ss:$8 sps:$4 sm:$0xff]   ;;  %v1462_v53 = vld [vmem:[%s1656_s7 + $0xc0] ss:$8 sps:$4 sm:$0xff]  }
  0x34   : > { %975 = vmatpush1.bf16.msra.mxu1 %v1415_v22  ;;  %933 = vmatprep.subr.bf16.mxu0 %v1416_v23  ;;  %v1457_v50 = vld [vmem:[%s1656_s7 + $0x1d0] ss:$8 sps:$4 sm:$0xff]   ;;  %v1460_v52 = vld [vmem:[%s1656_s7 + $0x1c4] ss:$8 sps:$4 sm:$0xff]   ;;  %v1463_v54 = vld [vmem:[%s1656_s7 + $0x1c0] ss:$8 sps:$4 sm:$0xff]  }
  0x35   : > { %976 = vmatprep.subr.bf16.mxu1 %v1418_v24  ;;  %v1464_v55 = vld [vmem:[%s1656_s7 + $0xb4] ss:$8 sps:$4 sm:$0xff]   ;;  %v1468_v59 = vld [vmem:[%s1656_s7 + $0xb0] ss:$8 sps:$4 sm:$0xff]   ;;  %v1470_v61 = vld [vmem:[%s1656_s7 + $0xa4] ss:$8 sps:$4 sm:$0xff]  }
  0x36   : > { %v1490_v56 = vld [vmem:[%s1658_s8 + $0x4] ss:$24 sps:$4 sm:$0xff]   ;;  %v1469_v60 = vld [vmem:[%s1656_s7 + $0x1b0] ss:$8 sps:$4 sm:$0xff]   ;;  %v1474_v63 = vld [vmem:[%s1656_s7 + $0xa0] ss:$8 sps:$4 sm:$0xff]  }
  0x37   : > { %934 = vmatpush1.bf16.msra.mxu0 %v1420_v25  ;;  %v1466_v57 = vld [vmem:[%s1656_s7 + $0x1b4] ss:$8 sps:$4 sm:$0xff]   ;;  %957 = vmatprep.mubr.bf16.mxu0 %v1490_v56  ;;  %v1472_v62 = vld [vmem:[%s1656_s7 + $0x1a4] ss:$8 sps:$4 sm:$0xff]   ;;  %v1475_v0 = vld [vmem:[%s1656_s7 + $0x1a0] ss:$8 sps:$4 sm:$0xff]  }
  0x38   : > { %977 = vmatpush1.bf16.msra.mxu1 %v1421_v26  ;;  %935 = vmatprep.subr.bf16.mxu0 %v1422_v27  ;;  %v1493_v58 = vld [vmem:[%s1658_s8 + $0xc] ss:$24 sps:$4 sm:$0xff]   ;;  %v1480_v3 = vld [vmem:[%s1656_s7 + $0x90] ss:$8 sps:$4 sm:$0xff]   ;;  %v1486_v7 = vld [vmem:[%s1656_s7 + $0x80] ss:$8 sps:$4 sm:$0xff]  }
  0x39   : > { %978 = vmatprep.subr.bf16.mxu1 %v1424_v28  ;;  %1000 = vmatprep.mubr.bf16.mxu1 %v1493_v58  ;;  %v1476_v1 = vld [vmem:[%s1656_s7 + $0x94] ss:$8 sps:$4 sm:$0xff]   ;;  %v1481_v4 = vld [vmem:[%s1656_s7 + $0x190] ss:$8 sps:$4 sm:$0xff]   ;;  %v1482_v5 = vld [vmem:[%s1656_s7 + $0x84] ss:$8 sps:$4 sm:$0xff]  }
  0x3a   : > { %v1478_v2 = vld [vmem:[%s1656_s7 + $0x194] ss:$8 sps:$4 sm:$0xff]   ;;  %v1484_v6 = vld [vmem:[%s1656_s7 + $0x184] ss:$8 sps:$4 sm:$0xff]   ;;  %v1487_v8 = vld [vmem:[%s1656_s7 + $0x180] ss:$8 sps:$4 sm:$0xff]  }
  0x3b   : > { %936 = vmatpush1.bf16.msra.mxu0 %v1426_v29  ;;  %v1496_v9 = vld [vmem:[%s1656_s7 + $0x274] ss:$8 sps:$4 sm:$0xff]   ;;  %v1488_v10 = vld [vmem:[%s1658_s8] ss:$24 sps:$4 sm:$0xff]   ;;  %v1499_v13 = vld [vmem:[%s1656_s7 + $0x264] ss:$8 sps:$4 sm:$0xff]  }
  0x3c   : > { %979 = vmatpush1.bf16.msra.mxu1 %v1427_v30  ;;  %937 = vmatprep.subr.bf16.mxu0 %v1428_v31  ;;  %v1491_v11 = vld [vmem:[%s1658_s8 + $0x8] ss:$24 sps:$4 sm:$0xff]   ;;  %v1544_v14 = vld [vmem:[%s1658_s8 + $0x14] ss:$24 sps:$4 sm:$0xff]   ;;  %p1338_p11 = scmp.ne.s32.totalorder %s1575_s14, 2 }
  0x3d   : > { %980 = vmatprep.subr.bf16.mxu1 %v1430_v32  ;;  %v1494_v12 = vld [vmem:[%s1656_s7 + $0x270] ss:$8 sps:$4 sm:$0xff]   ;;  %v1497_v15 = vld [vmem:[%s1656_s7 + $0x260] ss:$8 sps:$4 sm:$0xff]   ;;  %v1502_v16 = vld [vmem:[%s1656_s7 + $0x254] ss:$8 sps:$4 sm:$0xff]  }
  0x3e   : > { %v1500_v17 = vld [vmem:[%s1656_s7 + $0x250] ss:$8 sps:$4 sm:$0xff]   ;;  %v1505_v18 = vld [vmem:[%s1656_s7 + $0x244] ss:$8 sps:$4 sm:$0xff]   ;;  %v1503_v19 = vld [vmem:[%s1656_s7 + $0x240] ss:$8 sps:$4 sm:$0xff]  }
  0x3f   : > { %938 = vmatpush1.bf16.msra.mxu0 %v1432_v33  ;;  %v1508_v20 = vld [vmem:[%s1656_s7 + $0x234] ss:$8 sps:$4 sm:$0xff]   ;;  %v1506_v21 = vld [vmem:[%s1656_s7 + $0x230] ss:$8 sps:$4 sm:$0xff]   ;;  %v1511_v22 = vld [vmem:[%s1656_s7 + $0x224] ss:$8 sps:$4 sm:$0xff]  }
  0x40   : > { %981 = vmatpush1.bf16.msra.mxu1 %v1433_v34  ;;  %939 = vmatprep.subr.bf16.mxu0 %v1434_v35  ;;  %v1509_v23 = vld [vmem:[%s1656_s7 + $0x220] ss:$8 sps:$4 sm:$0xff]   ;;  %v1514_v24 = vld [vmem:[%s1656_s7 + $0x214] ss:$8 sps:$4 sm:$0xff]   ;;  %v1512_v25 = vld [vmem:[%s1656_s7 + $0x210] ss:$8 sps:$4 sm:$0xff]  }
  0x41   : > { %982 = vmatprep.subr.bf16.mxu1 %v1436_v36  ;;  %v1517_v26 = vld [vmem:[%s1656_s7 + $0x204] ss:$8 sps:$4 sm:$0xff]   ;;  %v1515_v27 = vld [vmem:[%s1656_s7 + $0x200] ss:$8 sps:$4 sm:$0xff]   ;;  %v1520_v28 = vld [vmem:[%s1656_s7 + $0x2f4] ss:$8 sps:$4 sm:$0xff]  }
  0x42   : > { %v1518_v29 = vld [vmem:[%s1656_s7 + $0x2f0] ss:$8 sps:$4 sm:$0xff]   ;;  %v1523_v30 = vld [vmem:[%s1656_s7 + $0x2e4] ss:$8 sps:$4 sm:$0xff]   ;;  %v1521_v31 = vld [vmem:[%s1656_s7 + $0x2e0] ss:$8 sps:$4 sm:$0xff]  }
  0x43   : > { %940 = vmatpush1.bf16.msra.mxu0 %v1438_v37  ;;  %v1526_v32 = vld [vmem:[%s1656_s7 + $0x2d4] ss:$8 sps:$4 sm:$0xff]   ;;  %v1524_v33 = vld [vmem:[%s1656_s7 + $0x2d0] ss:$8 sps:$4 sm:$0xff]   ;;  %v1529_v34 = vld [vmem:[%s1656_s7 + $0x2c4] ss:$8 sps:$4 sm:$0xff]  }
  0x44   : > { %983 = vmatpush1.bf16.msra.mxu1 %v1439_v38  ;;  %941 = vmatprep.subr.bf16.mxu0 %v1440_v39  ;;  %v1527_v35 = vld [vmem:[%s1656_s7 + $0x2c0] ss:$8 sps:$4 sm:$0xff]   ;;  %v1532_v36 = vld [vmem:[%s1656_s7 + $0x2b4] ss:$8 sps:$4 sm:$0xff]   ;;  %v1530_v37 = vld [vmem:[%s1656_s7 + $0x2b0] ss:$8 sps:$4 sm:$0xff]  }
  0x45   : > { %984 = vmatprep.subr.bf16.mxu1 %v1442_v40  ;;  %v1535_v38 = vld [vmem:[%s1656_s7 + $0x2a4] ss:$8 sps:$4 sm:$0xff]   ;;  %v1533_v39 = vld [vmem:[%s1656_s7 + $0x2a0] ss:$8 sps:$4 sm:$0xff]   ;;  %v1538_v40 = vld [vmem:[%s1656_s7 + $0x294] ss:$8 sps:$4 sm:$0xff]  }
  0x46   : > { %v310_v58 = vld [vmem:[#allocation2] sm:$0xff] }
  0x47   : > { %942 = vmatpush2.bf16.msra.mxu0 %v1444_v41  ;;  %v1536_v41 = vld [vmem:[%s1656_s7 + $0x290] ss:$8 sps:$4 sm:$0xff]  }
  0x48   : > { %985 = vmatpush2.bf16.msra.mxu1 %v1445_v42  ;;  %943 = vmatprep.subr.bf16.mxu0 %v1446_v43  ;;  %v1541_v42 = vld [vmem:[%s1656_s7 + $0x284] ss:$8 sps:$4 sm:$0xff]   ;;  %v1539_v43 = vld [vmem:[%s1656_s7 + $0x280] ss:$8 sps:$4 sm:$0xff]  }
  0x49   : > { %986 = vmatprep.subr.bf16.mxu1 %v1448_v44  ;;  %v1542_v44 = vld [vmem:[%s1658_s8 + $0x10] ss:$24 sps:$4 sm:$0xff]  }
  0x4b   : > { %944 = vmatpush2.bf16.msra.mxu0 %v1450_v45 }
  0x4c   : > { %987 = vmatpush2.bf16.msra.mxu1 %v1451_v46  ;;  %945 = vmatprep.subr.bf16.mxu0 %v1452_v47 }
  0x4d   : > { %988 = vmatprep.subr.bf16.mxu1 %v1454_v48 }
  0x4f   : > { %946 = vmatpush2.bf16.msra.mxu0 %v1456_v49 }
  0x50   : > { %989 = vmatpush2.bf16.msra.mxu1 %v1457_v50  ;;  %947 = vmatprep.subr.bf16.mxu0 %v1458_v51 }
  0x51   : > { %990 = vmatprep.subr.bf16.mxu1 %v1460_v52 }
  0x53   : > { %948 = vmatpush2.bf16.msra.mxu0 %v1462_v53  ;;  %v309_v53 = vld [vmem:[#allocation2 + $0x10] sm:$0xff] }
  0x54   : > { %991 = vmatpush2.bf16.msra.mxu1 %v1463_v54  ;;  %949 = vmatprep.subr.bf16.mxu0 %v1464_v55 }
  0x55   : > { %992 = vmatprep.subr.bf16.mxu1 %v1466_v57 }
  0x57   : > { %950 = vmatpush2.bf16.msra.mxu0 %v1468_v59 }
  0x58   : > { %993 = vmatpush2.bf16.msra.mxu1 %v1469_v60  ;;  %951 = vmatprep.subr.bf16.mxu0 %v1470_v61 }
  0x59   : > { %994 = vmatprep.subr.bf16.mxu1 %v1472_v62 }
  0x5b   : > { %952 = vmatpush2.bf16.msra.mxu0 %v1474_v63  ;;  %v311_v63 = vld [vmem:[#allocation2 + $0x18] sm:$0xff] }
  0x5c   : > { %995 = vmatpush2.bf16.msra.mxu1 %v1475_v0  ;;  %953 = vmatprep.subr.bf16.mxu0 %v1476_v1 }
  0x5d   : > { %996 = vmatprep.subr.bf16.mxu1 %v1478_v2 }
  0x5f   : > { %954 = vmatpush2.bf16.msra.mxu0 %v1480_v3 }
  0x60   : > { %997 = vmatpush2.bf16.msra.mxu1 %v1481_v4  ;;  %955 = vmatprep.subr.bf16.mxu0 %v1482_v5  ;;  %v312_v4 = vld [vmem:[#allocation2 + $0x8] sm:$0xff] }
  0x61   : > { %998 = vmatprep.subr.bf16.mxu1 %v1484_v6 }
  0x63   : > { %956 = vmatpush2.bf16.msra.mxu0 %v1486_v7 }
  0x64   : > { %999 = vmatpush2.bf16.msra.mxu1 %v1487_v8  ;;  %1011 = vmatprep.subr.bf16.mxu0 %v1496_v9 }
  0x66   : > { %958 = vmatmul.mubr.bf16.vlgmr.msra.gmra.mxu0 %v1488_v10 }
  0x67   : > { %1001 = vmatmul.mubr.bf16.vlgmr.msra.gmra.mxu1 %v1491_v11  ;;  %1012 = vmatpush1.bf16.msra.mxu0 %v1494_v12 }
  0x68   : > { %1013 = vmatprep.subr.bf16.mxu0 %v1499_v13  ;;  %1043 = vmatprep.mubr.bf16.mxu0 %v1544_v14 }
  0x6b   : > { %1014 = vmatpush1.bf16.msra.mxu0 %v1497_v15 }
  0x6c   : > { %1015 = vmatprep.subr.bf16.mxu0 %v1502_v16 }
  0x6f   : > { %1016 = vmatpush1.bf16.msra.mxu0 %v1500_v17 }
  0x70   : > { %1017 = vmatprep.subr.bf16.mxu0 %v1505_v18 }
  0x73   : > { %1018 = vmatpush1.bf16.msra.mxu0 %v1503_v19 }
  0x74   : > { %1019 = vmatprep.subr.bf16.mxu0 %v1508_v20 }
  0x77   : > { %1020 = vmatpush1.bf16.msra.mxu0 %v1506_v21 }
  0x78   : > { %1021 = vmatprep.subr.bf16.mxu0 %v1511_v22 }
  0x7b   : > { %1022 = vmatpush1.bf16.msra.mxu0 %v1509_v23 }
  0x7c   : > { %1023 = vmatprep.subr.bf16.mxu0 %v1514_v24 }
  0x7f   : > { %1024 = vmatpush1.bf16.msra.mxu0 %v1512_v25 }
  0x80   : > { %1025 = vmatprep.subr.bf16.mxu0 %v1517_v26 }
  0x83   : > { %1026 = vmatpush1.bf16.msra.mxu0 %v1515_v27 }
  0x84   : > { %1027 = vmatprep.subr.bf16.mxu0 %v1520_v28 }
  0x87   : > { %1028 = vmatpush2.bf16.msra.mxu0 %v1518_v29 }
  0x88   : > { %1029 = vmatprep.subr.bf16.mxu0 %v1523_v30 }
  0x8b   : > { %1030 = vmatpush2.bf16.msra.mxu0 %v1521_v31 }
  0x8c   : > { %1031 = vmatprep.subr.bf16.mxu0 %v1526_v32 }
  0x8f   : > { %1032 = vmatpush2.bf16.msra.mxu0 %v1524_v33 }
  0x90   : > { %1033 = vmatprep.subr.bf16.mxu0 %v1529_v34 }
  0x93   : > { %1034 = vmatpush2.bf16.msra.mxu0 %v1527_v35 }
  0x94   : > { %1035 = vmatprep.subr.bf16.mxu0 %v1532_v36 }
  0x97   : > { %1036 = vmatpush2.bf16.msra.mxu0 %v1530_v37 }
  0x98   : > { %1037 = vmatprep.subr.bf16.mxu0 %v1535_v38 }
  0x9b   : > { %1038 = vmatpush2.bf16.msra.mxu0 %v1533_v39 }
  0x9c   : > { %1039 = vmatprep.subr.bf16.mxu0 %v1538_v40 }
  0x9f   : > { %1040 = vmatpush2.bf16.msra.mxu0 %v1536_v41 }
  0xa0   : > { %1041 = vmatprep.subr.bf16.mxu0 %v1541_v42 }
  0xa3   : > { %1042 = vmatpush2.bf16.msra.mxu0 %v1539_v43 }
  0xa6   : > { %1044 = vmatmul.mubr.bf16.vlgmr.msra.gmra.mxu0 %v1542_v44 }
 0x126   : > { %v959_v45 = vpop.f32.mrf.mxu0 }
 0x127   : > { %v1002_v46 = vpop.f32.mrf.mxu1 }
 0x128   : > { %v961_v47 = vpop.f32.mrf.mxu0  ;;  %v1003_v52 = vadd.f32 %v1002_v46, %v959_v45 }
 0x129   : > { %v1004_v48 = vpop.f32.mrf.mxu1 }
 0x12a   : > { %v963_v49 = vpop.f32.mrf.mxu0  ;;  %v1005_v55 = vadd.f32 %v1004_v48, %v961_v47 }
 0x12b   : > { %v1006_v50 = vpop.f32.mrf.mxu1 }
 0x12c   : > { %v965_v51 = vpop.f32.mrf.mxu0  ;;  %v1007_v60 = vadd.f32 %v1006_v50, %v963_v49 }
 0x12d   : > { %v1008_v57 = vpop.f32.mrf.mxu1 }
 0x12e   : > { %v1009_v1 = vadd.f32 %v1008_v57, %v965_v51 }
 0x166   : > { %v1045_v54 = vpop.f32.mrf.mxu0 }
 0x167   : > { %v1046_v56 = vadd.f32 %v1045_v54, %v1003_v52 }
 0x168   : > { %v1047_v59 = vpop.f32.mrf.mxu0 }
 0x169   : > { %v1054_v61 = vadd.f32 %v1046_v56, %v309_v53  ;;  %v1048_v62 = vadd.f32 %v1047_v59, %v1005_v55 }
 0x16a   : > { %v1049_v0 = vpop.f32.mrf.mxu0 }
 0x16b   : > { %1058 = vst [vmem:[#allocation2 + $0x10] sm:$0xff] %v1054_v61  ;;  %v1055_v2 = vadd.f32 %v1048_v62, %v310_v58  ;;  %v1050_v3 = vadd.f32 %v1049_v0, %v1007_v60 }
 0x16c   : > { %v1051_v5 = vpop.f32.mrf.mxu0 }
 0x16d   : > { %1059 = vst [vmem:[#allocation2] sm:$0xff] %v1055_v2  ;;  %v1056_v6 = vadd.f32 %v1050_v3, %v311_v63  ;;  %v1052_v7 = vadd.f32 %v1051_v5, %v1009_v1  ;;  %1065 = sbr.rel (%p1338_p11) target bundleno = 385 (0x181), region = 63 }
 0x16f   : > { %1060 = vst [vmem:[#allocation2 + $0x18] sm:$0xff] %v1056_v6  ;;  %v1057_v8 = vadd.f32 %v1052_v7, %v312_v4 }
 0x171   : > { %1061 = vst [vmem:[#allocation2 + $0x8] sm:$0xff] %v1057_v8 }
 0x172   : > { %v1072_v9 = vlaneseq  ;;  %v1070_v11 = vld [vmem:[%s1790_s2] sm:$0x3]  ;;  %v1066_v12 = vld [vmem:[#allocation2 + $0x10] sm:$0xff] }
 0x174   : > { %v1073_v10 = vshrl.u32 %v1072_v9, 7  ;;  %v1067_v15 = vld [vmem:[#allocation2] sm:$0xff] }
 0x176   : > { %v1074_v13 = vsub.s32 0, %v1073_v10  ;;  %v1078_v14 = vsub.s32 1, %v1073_v10  ;;  %v1068_v16 = vld [vmem:[#allocation2 + $0x18] sm:$0xff] }
 0x178   : > { %v1069_v17 = vld [vmem:[#allocation2 + $0x8] sm:$0xff]  ;;  %v1075_v18 = vrot.slane %v1070_v11, %v1074_v13  ;;  %v1079_v19 = vrot.slane %v1070_v11, %v1078_v14 }
 0x17a   : > { %v1082_v20 = vadd.f32 %v1075_v18, %v1066_v12  ;;  %v1083_v21 = vadd.f32 %v1079_v19, %v1067_v15  ;;  %v1084_v22 = vadd.f32 %v1075_v18, %v1068_v16  ;;  %v1085_v23 = vadd.f32 %v1079_v19, %v1069_v17 }
 0x17c   : > { %v1086_v24 = vmax.f32 %v1082_v20, 0.0  ;;  %v1087_v25 = vmax.f32 %v1083_v21, 0.0  ;;  %v1088_v26 = vmax.f32 %v1084_v22, 0.0  ;;  %v1089_v27 = vmax.f32 %v1085_v23, 0.0 }
 0x17e   : > { %v1347_v28 = vpack.c.bf16 %v1087_v25, %v1086_v24  ;;  %v1348_v29 = vpack.c.bf16 %v1089_v27, %v1088_v26 }
 0x180   : > { %1102 = vst [vmem:[%s1791_s3] sm:$0xff] %v1347_v28  ;;  %1103 = vst [vmem:[%s1791_s3 + $0x8] sm:$0xff] %v1348_v29 }
 0x181 PF: > { %s13_s16 = sadd.s32 1, %s1583_s16   ;;  %s1792_s12 = smov %s1571_s13 }
 0x182   : > { %p10_p12 = scmp.ge.s32.totalorder %s13_s16, 5   ;;  %s1793_s13 = smov %s1641_s20 }
 0x183   : > { %s1794_s14 = smov %s1579_s15  ;;  %s1795_s15 = smov %s1797_s17 }
 0x184   :  { %12 = sbr.rel (!%p10_p12) target bundleno = 3 (0x3), region = 104 }

// kernel: resnet18_transfer_forward.38
= control target key start
LH: loop header
LB: loop body
LE: loop exit
PB: predicated region body
PF: predicated region fallthrough
CT: control target
= control target key end

     0   :  { %s2609_s0 = inlined_call_operand.vmem [shape: bf16[16,2304], index: 0, kind: input, shape index: {}]   ;;  %s2610_s1 = inlined_call_operand.vmem [shape: bf16[2304,512], index: 1, kind: input, shape index: {}]   ;;  %s2611_s2 = inlined_call_operand.vmem [shape: f32[1,512], index: 2, kind: input, shape index: {}]   ;;  %s2612_s3 = inlined_call_operand.vmem [shape: bf16[16,512], index: 3, kind: output, shape index: {}]  }
   0x1   :  { %2614 = sst [smem:[#allocation7_spill]] %s2609_s0 }
   0x2   :  { %2615 = sst [smem:[#allocation8_spill]] %s2610_s1 }
   0x3   :  { %s2129_s12 = smov 0   ;;  %s2131_s13 = smov 0  }
   0x4   :  { %s2133_s14 = smov 0   ;;  %s2135_s15 = smov 0  }
   0x5   :  { %s2137_s16 = smov 0   ;;  %s2139_s17 = smov 0  }
   0x6   :  { %s2141_s18 = smov 0   ;;  %s2143_s19 = smov 0  }
   0x7   :  { %s2145_s20 = smov 0   ;;  %s2147_s21 = smov 0  }
   0x8   :  { %s2149_s22 = smov 0  }
   0x9 LB: > { %s1647_s23 = sadd.s32 4294967295, %s2106_s22   ;;  %s25_s24 = sadd.s32 1, %s2098_s20  ;;  %s2106_s22 = sphi %s2149_s22, %s13_s22   ;;  %s2102_s21 = sphi %s2147_s21, %s2632_s21   ;;  %s2098_s20 = sphi %s2145_s20, %s2631_s20   ;;  %s2094_s19 = sphi %s2143_s19, %s2630_s19   ;;  %s2090_s18 = sphi %s2141_s18, %s2629_s18   ;;  %s2086_s17 = sphi %s2139_s17, %s2628_s17   ;;  %s2082_s16 = sphi %s2137_s16, %s2627_s16   ;;  %s2078_s15 = sphi %s2135_s15, %s2626_s15   ;;  %s2074_s14 = sphi %s2133_s14, %s2625_s14   ;;  %s2070_s13 = sphi %s2131_s13, %s2624_s13   ;;  %s2066_s12 = sphi %s2129_s12, %s2623_s12  }
   0xa   : > { %p26_p0 = scmp.ge.s32.totalorder %s25_s24, 3  ;;  %s28_s25 = sadd.s32 1, %s2102_s21 }
   0xb   : > { %s41_s26 = sadd.s32 1, %s2086_s17  ;;  %p48_p1 = scmp.ne.s32.totalorder %s2086_s17, %s2082_s16 }
   0xc   : > { %s2634_s24 = smov (%p26_p0, %s25_s24), 0  ;;  %s2636_s25 = smov (!%p26_p0, %s28_s25), %s2102_s21 }
   0xd   : > { %s37_s27 = ssub.s32 %s2098_s20, %s2634_s24  ;;  %p49_p2 = scmp.eq.s32.totalorder %s2106_s22, 0 }
   0xe   : > { %p30_p3 = scmp.ge.s32.totalorder %s2636_s25, 2  ;;  %p39_p4 = scmp.eq.s32.totalorder %s37_s27, 0 }
   0xf   : > { %p2196_p5 = por %p49_p2, %p48_p1  ;;  %s69_s29 = sadd.s32 1, %s2078_s15 }
  0x10   : > { %s2638_s25 = smov (%p30_p3, %s2636_s25), 0  ;;  %p76_p6 = scmp.ne.s32.totalorder %s2078_s15, %s2074_s14 }
  0x11   : > { %2617 = sst [smem:[#allocation6_spill]] %s2638_s25  ;;  %s65_s4 = ssub.s32 %s2102_s21, %s2638_s25 }
  0x12   : > { %s2204_s30 = scalar_select %p39_p4, %s2086_s17, %s41_s26  }
  0x13   : > { %s66_s5 = sor.u32 %s65_s4, %s37_s27  ;;  %p121_p7 = scmp.eq.s32.totalorder %s65_s4, 0 }
  0x14   : > { %p67_p8 = scmp.eq.s32.totalorder %s66_s5, 0  ;;  %p2210_p9 = por %p76_p6, %p49_p2 }
  0x15   : > { %s123_s7 = sadd.s32 1, %s2070_s13  ;;  %p133_p10 = scmp.ne.s32.totalorder %s2070_s13, %s2066_s12 }
  0x16   : > { %s2218_s8 = scalar_select %p67_p8, %s2078_s15, %s69_s29  }
  0x17   : > { %s2221_s9 = scalar_select %p121_p7, %s2070_s13, %s123_s7  }
  0x18   : > { %p134_p11 = scmp.eq.s32.totalorder %s1647_s23, 5  ;;  %p1650_p13 = scmp.ge.s32.totalorder %s2106_s22, 6 }
  0x1a   : > { %p2223_p12 = por %p134_p11, %p133_p10  ;;  %156 = sbr.rel (%p1650_p13) target bundleno = 101 (0x65), region = 16 }
  0x1f   : > { %159 = sbr.rel (!%p2196_p5) target bundleno = 43 (0x2b), region = 20  ;;  %s161_s11 = sand.u32 (%p2196_p5), 1, %s2086_s17  }
  0x20   : > { %s1769_s26 = smul.u32 (%p2196_p5), 24, %s2098_s20  ;;  %s2620_s0 = sld [smem:[#allocation7_spill]] (%p2196_p5) }
  0x21   : > { %s1774_s27 = smul.u32 (%p2196_p5), 48, %s161_s11 }
  0x23   : > { %s163_s23 = scalar_lea.vmem (%p2196_p5), [#allocation3], %s1774_s27 }
  0x26   : > { %s169_s5 = scalar_lea.vmem %s2620_s0, %s1769_s26 }
  0x27   : > { %v182_v0 = vld [vmem:[%s169_s5] sm:$0xff]  ;;  %v184_v1 = vld [vmem:[%s169_s5 + $0x8] sm:$0xff]  ;;  %v186_v2 = vld [vmem:[%s169_s5 + $0x10] sm:$0xff] }
  0x28   : > { %183 = vst [vmem:[%s163_s23] sm:$0xff] %v182_v0  ;;  %185 = vst [vmem:[%s163_s23 + $0x8] sm:$0xff] %v184_v1  ;;  %v188_v3 = vld [vmem:[%s169_s5 + $0x48] sm:$0xff]  ;;  %v190_v4 = vld [vmem:[%s169_s5 + $0x50] sm:$0xff] }
  0x29   : > { %187 = vst [vmem:[%s163_s23 + $0x10] sm:$0xff] %v186_v2  ;;  %v192_v5 = vld [vmem:[%s169_s5 + $0x58] sm:$0xff]  ;;  %189 = vst [vmem:[%s163_s23 + $0x18] sm:$0xff] %v188_v3 }
  0x2a   : > { %191 = vst [vmem:[%s163_s23 + $0x20] sm:$0xff] %v190_v4  ;;  %193 = vst [vmem:[%s163_s23 + $0x28] sm:$0xff] %v192_v5 }
  0x2b PF: > { %199 = sbr.rel (!%p2210_p9) target bundleno = 101 (0x65), region = 43  ;;  %s201_s28 = sand.u32 (%p2210_p9), 1, %s2078_s15  }
  0x2c   : > { %s1775_s7 = smul.u32 (%p2210_p9), 768, %s201_s28  ;;  %s1652_s11 = sshll.u32 (%p2210_p9), %s2102_s21, 1 }
  0x2d   : > { %s1770_s26 = smul.u32 (%p2210_p9), 384, %s2098_s20  ;;  %s2621_s1 = sld [smem:[#allocation8_spill]] (%p2210_p9) }
  0x2e   : > { %s2248_s6 = scalar_lea.vmem (%p2210_p9), [#allocation4], %s1775_s7 }
  0x2f   : > { %s207_s27 = sadd.s32 (%p2210_p9), %s1770_s26, %s1652_s11 }
  0x30   : > { %s1654_s29 = sshll.u32 %s207_s27, 2 }
  0x33   : > { %s2243_s5 = scalar_lea.vmem %s2621_s1, %s1654_s29 }
  0x34   : > { %v428_v6 = vld [vmem:[%s2243_s5] sm:$0xff]  ;;  %v430_v7 = vld [vmem:[%s2243_s5 + $0x10] sm:$0xff] }
  0x35   : > { %v432_v8 = vld [vmem:[%s2243_s5 + $0x20] sm:$0xff]  ;;  %429 = vst [vmem:[%s2248_s6] sm:$0xff] %v428_v6  ;;  %431 = vst [vmem:[%s2248_s6 + $0x8] sm:$0xff] %v430_v7  ;;  %v434_v9 = vld [vmem:[%s2243_s5 + $0x30] sm:$0xff] }
  0x36   : > { %433 = vst [vmem:[%s2248_s6 + $0x10] sm:$0xff] %v432_v8  ;;  %v436_v10 = vld [vmem:[%s2243_s5 + $0x40] sm:$0xff]  ;;  %v438_v11 = vld [vmem:[%s2243_s5 + $0x50] sm:$0xff]  ;;  %435 = vst [vmem:[%s2248_s6 + $0x18] sm:$0xff] %v434_v9 }
  0x37   : > { %437 = vst [vmem:[%s2248_s6 + $0x20] sm:$0xff] %v436_v10  ;;  %439 = vst [vmem:[%s2248_s6 + $0x28] sm:$0xff] %v438_v11  ;;  %v440_v12 = vld [vmem:[%s2243_s5 + $0x60] sm:$0xff]  ;;  %v442_v13 = vld [vmem:[%s2243_s5 + $0x70] sm:$0xff] }
  0x38   : > { %v444_v14 = vld [vmem:[%s2243_s5 + $0x80] sm:$0xff]  ;;  %441 = vst [vmem:[%s2248_s6 + $0x30] sm:$0xff] %v440_v12  ;;  %443 = vst [vmem:[%s2248_s6 + $0x38] sm:$0xff] %v442_v13  ;;  %v446_v15 = vld [vmem:[%s2243_s5 + $0x90] sm:$0xff] }
  0x39   : > { %445 = vst [vmem:[%s2248_s6 + $0x40] sm:$0xff] %v444_v14  ;;  %v448_v16 = vld [vmem:[%s2243_s5 + $0xa0] sm:$0xff]  ;;  %v450_v17 = vld [vmem:[%s2243_s5 + $0xb0] sm:$0xff]  ;;  %447 = vst [vmem:[%s2248_s6 + $0x48] sm:$0xff] %v446_v15 }
  0x3a   : > { %449 = vst [vmem:[%s2248_s6 + $0x50] sm:$0xff] %v448_v16  ;;  %451 = vst [vmem:[%s2248_s6 + $0x58] sm:$0xff] %v450_v17  ;;  %v452_v18 = vld [vmem:[%s2243_s5 + $0xc0] sm:$0xff]  ;;  %v454_v19 = vld [vmem:[%s2243_s5 + $0xd0] sm:$0xff] }
  0x3b   : > { %v456_v20 = vld [vmem:[%s2243_s5 + $0xe0] sm:$0xff]  ;;  %453 = vst [vmem:[%s2248_s6 + $0x60] sm:$0xff] %v452_v18  ;;  %455 = vst [vmem:[%s2248_s6 + $0x68] sm:$0xff] %v454_v19  ;;  %v458_v21 = vld [vmem:[%s2243_s5 + $0xf0] sm:$0xff] }
  0x3c   : > { %457 = vst [vmem:[%s2248_s6 + $0x70] sm:$0xff] %v456_v20  ;;  %v460_v22 = vld [vmem:[%s2243_s5 + $0x100] sm:$0xff]  ;;  %v462_v23 = vld [vmem:[%s2243_s5 + $0x110] sm:$0xff]  ;;  %459 = vst [vmem:[%s2248_s6 + $0x78] sm:$0xff] %v458_v21 }
  0x3d   : > { %461 = vst [vmem:[%s2248_s6 + $0x80] sm:$0xff] %v460_v22  ;;  %463 = vst [vmem:[%s2248_s6 + $0x88] sm:$0xff] %v462_v23  ;;  %v464_v24 = vld [vmem:[%s2243_s5 + $0x120] sm:$0xff]  ;;  %v466_v25 = vld [vmem:[%s2243_s5 + $0x130] sm:$0xff] }
  0x3e   : > { %v468_v26 = vld [vmem:[%s2243_s5 + $0x140] sm:$0xff]  ;;  %465 = vst [vmem:[%s2248_s6 + $0x90] sm:$0xff] %v464_v24  ;;  %467 = vst [vmem:[%s2248_s6 + $0x98] sm:$0xff] %v466_v25  ;;  %v470_v27 = vld [vmem:[%s2243_s5 + $0x150] sm:$0xff] }
  0x3f   : > { %469 = vst [vmem:[%s2248_s6 + $0xa0] sm:$0xff] %v468_v26  ;;  %v472_v28 = vld [vmem:[%s2243_s5 + $0x160] sm:$0xff]  ;;  %v474_v29 = vld [vmem:[%s2243_s5 + $0x170] sm:$0xff]  ;;  %471 = vst [vmem:[%s2248_s6 + $0xa8] sm:$0xff] %v470_v27 }
  0x40   : > { %473 = vst [vmem:[%s2248_s6 + $0xb0] sm:$0xff] %v472_v28  ;;  %475 = vst [vmem:[%s2248_s6 + $0xb8] sm:$0xff] %v474_v29  ;;  %v476_v30 = vld [vmem:[%s2243_s5 + $0x180] sm:$0xff]  ;;  %v478_v31 = vld [vmem:[%s2243_s5 + $0x190] sm:$0xff] }
  0x41   : > { %v480_v32 = vld [vmem:[%s2243_s5 + $0x1a0] sm:$0xff]  ;;  %477 = vst [vmem:[%s2248_s6 + $0xc0] sm:$0xff] %v476_v30  ;;  %479 = vst [vmem:[%s2248_s6 + $0xc8] sm:$0xff] %v478_v31  ;;  %v482_v33 = vld [vmem:[%s2243_s5 + $0x1b0] sm:$0xff] }
  0x42   : > { %481 = vst [vmem:[%s2248_s6 + $0xd0] sm:$0xff] %v480_v32  ;;  %v484_v34 = vld [vmem:[%s2243_s5 + $0x1c0] sm:$0xff]  ;;  %v486_v35 = vld [vmem:[%s2243_s5 + $0x1d0] sm:$0xff]  ;;  %483 = vst [vmem:[%s2248_s6 + $0xd8] sm:$0xff] %v482_v33 }
  0x43   : > { %485 = vst [vmem:[%s2248_s6 + $0xe0] sm:$0xff] %v484_v34  ;;  %487 = vst [vmem:[%s2248_s6 + $0xe8] sm:$0xff] %v486_v35  ;;  %v488_v36 = vld [vmem:[%s2243_s5 + $0x1e0] sm:$0xff]  ;;  %v490_v37 = vld [vmem:[%s2243_s5 + $0x1f0] sm:$0xff] }
  0x44   : > { %v492_v38 = vld [vmem:[%s2243_s5 + $0x200] sm:$0xff]  ;;  %489 = vst [vmem:[%s2248_s6 + $0xf0] sm:$0xff] %v488_v36  ;;  %491 = vst [vmem:[%s2248_s6 + $0xf8] sm:$0xff] %v490_v37  ;;  %v494_v39 = vld [vmem:[%s2243_s5 + $0x210] sm:$0xff] }
  0x45   : > { %493 = vst [vmem:[%s2248_s6 + $0x100] sm:$0xff] %v492_v38  ;;  %v496_v40 = vld [vmem:[%s2243_s5 + $0x220] sm:$0xff]  ;;  %v498_v41 = vld [vmem:[%s2243_s5 + $0x230] sm:$0xff]  ;;  %495 = vst [vmem:[%s2248_s6 + $0x108] sm:$0xff] %v494_v39 }
  0x46   : > { %497 = vst [vmem:[%s2248_s6 + $0x110] sm:$0xff] %v496_v40  ;;  %499 = vst [vmem:[%s2248_s6 + $0x118] sm:$0xff] %v498_v41  ;;  %v500_v42 = vld [vmem:[%s2243_s5 + $0x240] sm:$0xff]  ;;  %v502_v43 = vld [vmem:[%s2243_s5 + $0x250] sm:$0xff] }
  0x47   : > { %v504_v44 = vld [vmem:[%s2243_s5 + $0x260] sm:$0xff]  ;;  %501 = vst [vmem:[%s2248_s6 + $0x120] sm:$0xff] %v500_v42  ;;  %503 = vst [vmem:[%s2248_s6 + $0x128] sm:$0xff] %v502_v43  ;;  %v506_v45 = vld [vmem:[%s2243_s5 + $0x270] sm:$0xff] }
  0x48   : > { %505 = vst [vmem:[%s2248_s6 + $0x130] sm:$0xff] %v504_v44  ;;  %v508_v46 = vld [vmem:[%s2243_s5 + $0x280] sm:$0xff]  ;;  %v510_v47 = vld [vmem:[%s2243_s5 + $0x290] sm:$0xff]  ;;  %507 = vst [vmem:[%s2248_s6 + $0x138] sm:$0xff] %v506_v45 }
  0x49   : > { %509 = vst [vmem:[%s2248_s6 + $0x140] sm:$0xff] %v508_v46  ;;  %511 = vst [vmem:[%s2248_s6 + $0x148] sm:$0xff] %v510_v47  ;;  %v512_v48 = vld [vmem:[%s2243_s5 + $0x2a0] sm:$0xff]  ;;  %v514_v49 = vld [vmem:[%s2243_s5 + $0x2b0] sm:$0xff] }
  0x4a   : > { %v516_v50 = vld [vmem:[%s2243_s5 + $0x2c0] sm:$0xff]  ;;  %513 = vst [vmem:[%s2248_s6 + $0x150] sm:$0xff] %v512_v48  ;;  %515 = vst [vmem:[%s2248_s6 + $0x158] sm:$0xff] %v514_v49  ;;  %v518_v51 = vld [vmem:[%s2243_s5 + $0x2d0] sm:$0xff] }
  0x4b   : > { %517 = vst [vmem:[%s2248_s6 + $0x160] sm:$0xff] %v516_v50  ;;  %v520_v52 = vld [vmem:[%s2243_s5 + $0x2e0] sm:$0xff]  ;;  %v522_v53 = vld [vmem:[%s2243_s5 + $0x2f0] sm:$0xff]  ;;  %519 = vst [vmem:[%s2248_s6 + $0x168] sm:$0xff] %v518_v51 }
  0x4c   : > { %521 = vst [vmem:[%s2248_s6 + $0x170] sm:$0xff] %v520_v52  ;;  %523 = vst [vmem:[%s2248_s6 + $0x178] sm:$0xff] %v522_v53  ;;  %v524_v54 = vld [vmem:[%s2243_s5 + $0x300] sm:$0xff]  ;;  %v526_v55 = vld [vmem:[%s2243_s5 + $0x310] sm:$0xff] }
  0x4d   : > { %v528_v56 = vld [vmem:[%s2243_s5 + $0x320] sm:$0xff]  ;;  %525 = vst [vmem:[%s2248_s6 + $0x180] sm:$0xff] %v524_v54  ;;  %527 = vst [vmem:[%s2248_s6 + $0x188] sm:$0xff] %v526_v55  ;;  %v530_v57 = vld [vmem:[%s2243_s5 + $0x330] sm:$0xff] }
  0x4e   : > { %529 = vst [vmem:[%s2248_s6 + $0x190] sm:$0xff] %v528_v56  ;;  %v532_v58 = vld [vmem:[%s2243_s5 + $0x340] sm:$0xff]  ;;  %v534_v59 = vld [vmem:[%s2243_s5 + $0x350] sm:$0xff]  ;;  %531 = vst [vmem:[%s2248_s6 + $0x198] sm:$0xff] %v530_v57 }
  0x4f   : > { %533 = vst [vmem:[%s2248_s6 + $0x1a0] sm:$0xff] %v532_v58  ;;  %535 = vst [vmem:[%s2248_s6 + $0x1a8] sm:$0xff] %v534_v59  ;;  %v536_v60 = vld [vmem:[%s2243_s5 + $0x360] sm:$0xff]  ;;  %v538_v61 = vld [vmem:[%s2243_s5 + $0x370] sm:$0xff] }
  0x50   : > { %v540_v62 = vld [vmem:[%s2243_s5 + $0x380] sm:$0xff]  ;;  %537 = vst [vmem:[%s2248_s6 + $0x1b0] sm:$0xff] %v536_v60  ;;  %539 = vst [vmem:[%s2248_s6 + $0x1b8] sm:$0xff] %v538_v61  ;;  %v542_v63 = vld [vmem:[%s2243_s5 + $0x390] sm:$0xff] }
  0x51   : > { %541 = vst [vmem:[%s2248_s6 + $0x1c0] sm:$0xff] %v540_v62  ;;  %v544_v0 = vld [vmem:[%s2243_s5 + $0x3a0] sm:$0xff]  ;;  %v546_v1 = vld [vmem:[%s2243_s5 + $0x3b0] sm:$0xff]  ;;  %543 = vst [vmem:[%s2248_s6 + $0x1c8] sm:$0xff] %v542_v63 }
  0x52   : > { %545 = vst [vmem:[%s2248_s6 + $0x1d0] sm:$0xff] %v544_v0  ;;  %547 = vst [vmem:[%s2248_s6 + $0x1d8] sm:$0xff] %v546_v1  ;;  %v548_v2 = vld [vmem:[%s2243_s5 + $0x3c0] sm:$0xff]  ;;  %v550_v3 = vld [vmem:[%s2243_s5 + $0x3d0] sm:$0xff] }
  0x53   : > { %v552_v4 = vld [vmem:[%s2243_s5 + $0x3e0] sm:$0xff]  ;;  %549 = vst [vmem:[%s2248_s6 + $0x1e0] sm:$0xff] %v548_v2  ;;  %551 = vst [vmem:[%s2248_s6 + $0x1e8] sm:$0xff] %v550_v3  ;;  %v554_v5 = vld [vmem:[%s2243_s5 + $0x3f0] sm:$0xff] }
  0x54   : > { %553 = vst [vmem:[%s2248_s6 + $0x1f0] sm:$0xff] %v552_v4  ;;  %v556_v6 = vld [vmem:[%s2243_s5 + $0x400] sm:$0xff]  ;;  %v558_v7 = vld [vmem:[%s2243_s5 + $0x410] sm:$0xff]  ;;  %555 = vst [vmem:[%s2248_s6 + $0x1f8] sm:$0xff] %v554_v5 }
  0x55   : > { %557 = vst [vmem:[%s2248_s6 + $0x200] sm:$0xff] %v556_v6  ;;  %559 = vst [vmem:[%s2248_s6 + $0x208] sm:$0xff] %v558_v7  ;;  %v560_v8 = vld [vmem:[%s2243_s5 + $0x420] sm:$0xff]  ;;  %v562_v9 = vld [vmem:[%s2243_s5 + $0x430] sm:$0xff] }
  0x56   : > { %v564_v10 = vld [vmem:[%s2243_s5 + $0x440] sm:$0xff]  ;;  %561 = vst [vmem:[%s2248_s6 + $0x210] sm:$0xff] %v560_v8  ;;  %563 = vst [vmem:[%s2248_s6 + $0x218] sm:$0xff] %v562_v9  ;;  %v566_v11 = vld [vmem:[%s2243_s5 + $0x450] sm:$0xff] }
  0x57   : > { %565 = vst [vmem:[%s2248_s6 + $0x220] sm:$0xff] %v564_v10  ;;  %v568_v12 = vld [vmem:[%s2243_s5 + $0x460] sm:$0xff]  ;;  %v570_v13 = vld [vmem:[%s2243_s5 + $0x470] sm:$0xff]  ;;  %567 = vst [vmem:[%s2248_s6 + $0x228] sm:$0xff] %v566_v11 }
  0x58   : > { %569 = vst [vmem:[%s2248_s6 + $0x230] sm:$0xff] %v568_v12  ;;  %571 = vst [vmem:[%s2248_s6 + $0x238] sm:$0xff] %v570_v13  ;;  %v572_v14 = vld [vmem:[%s2243_s5 + $0x480] sm:$0xff]  ;;  %v574_v15 = vld [vmem:[%s2243_s5 + $0x490] sm:$0xff] }
  0x59   : > { %v576_v16 = vld [vmem:[%s2243_s5 + $0x4a0] sm:$0xff]  ;;  %573 = vst [vmem:[%s2248_s6 + $0x240] sm:$0xff] %v572_v14  ;;  %575 = vst [vmem:[%s2248_s6 + $0x248] sm:$0xff] %v574_v15  ;;  %v578_v17 = vld [vmem:[%s2243_s5 + $0x4b0] sm:$0xff] }
  0x5a   : > { %577 = vst [vmem:[%s2248_s6 + $0x250] sm:$0xff] %v576_v16  ;;  %v580_v18 = vld [vmem:[%s2243_s5 + $0x4c0] sm:$0xff]  ;;  %v582_v19 = vld [vmem:[%s2243_s5 + $0x4d0] sm:$0xff]  ;;  %579 = vst [vmem:[%s2248_s6 + $0x258] sm:$0xff] %v578_v17 }
  0x5b   : > { %581 = vst [vmem:[%s2248_s6 + $0x260] sm:$0xff] %v580_v18  ;;  %583 = vst [vmem:[%s2248_s6 + $0x268] sm:$0xff] %v582_v19  ;;  %v584_v20 = vld [vmem:[%s2243_s5 + $0x4e0] sm:$0xff]  ;;  %v586_v21 = vld [vmem:[%s2243_s5 + $0x4f0] sm:$0xff] }
  0x5c   : > { %v588_v22 = vld [vmem:[%s2243_s5 + $0x500] sm:$0xff]  ;;  %585 = vst [vmem:[%s2248_s6 + $0x270] sm:$0xff] %v584_v20  ;;  %587 = vst [vmem:[%s2248_s6 + $0x278] sm:$0xff] %v586_v21  ;;  %v590_v23 = vld [vmem:[%s2243_s5 + $0x510] sm:$0xff] }
  0x5d   : > { %589 = vst [vmem:[%s2248_s6 + $0x280] sm:$0xff] %v588_v22  ;;  %v592_v24 = vld [vmem:[%s2243_s5 + $0x520] sm:$0xff]  ;;  %v594_v25 = vld [vmem:[%s2243_s5 + $0x530] sm:$0xff]  ;;  %591 = vst [vmem:[%s2248_s6 + $0x288] sm:$0xff] %v590_v23 }
  0x5e   : > { %593 = vst [vmem:[%s2248_s6 + $0x290] sm:$0xff] %v592_v24  ;;  %595 = vst [vmem:[%s2248_s6 + $0x298] sm:$0xff] %v594_v25  ;;  %v596_v26 = vld [vmem:[%s2243_s5 + $0x540] sm:$0xff]  ;;  %v598_v27 = vld [vmem:[%s2243_s5 + $0x550] sm:$0xff] }
  0x5f   : > { %v600_v28 = vld [vmem:[%s2243_s5 + $0x560] sm:$0xff]  ;;  %597 = vst [vmem:[%s2248_s6 + $0x2a0] sm:$0xff] %v596_v26  ;;  %599 = vst [vmem:[%s2248_s6 + $0x2a8] sm:$0xff] %v598_v27  ;;  %v602_v29 = vld [vmem:[%s2243_s5 + $0x570] sm:$0xff] }
  0x60   : > { %601 = vst [vmem:[%s2248_s6 + $0x2b0] sm:$0xff] %v600_v28  ;;  %v604_v30 = vld [vmem:[%s2243_s5 + $0x580] sm:$0xff]  ;;  %v606_v31 = vld [vmem:[%s2243_s5 + $0x590] sm:$0xff]  ;;  %603 = vst [vmem:[%s2248_s6 + $0x2b8] sm:$0xff] %v602_v29 }
  0x61   : > { %605 = vst [vmem:[%s2248_s6 + $0x2c0] sm:$0xff] %v604_v30  ;;  %607 = vst [vmem:[%s2248_s6 + $0x2c8] sm:$0xff] %v606_v31  ;;  %v608_v32 = vld [vmem:[%s2243_s5 + $0x5a0] sm:$0xff]  ;;  %v610_v33 = vld [vmem:[%s2243_s5 + $0x5b0] sm:$0xff] }
  0x62   : > { %v612_v34 = vld [vmem:[%s2243_s5 + $0x5c0] sm:$0xff]  ;;  %609 = vst [vmem:[%s2248_s6 + $0x2d0] sm:$0xff] %v608_v32  ;;  %611 = vst [vmem:[%s2248_s6 + $0x2d8] sm:$0xff] %v610_v33  ;;  %v614_v35 = vld [vmem:[%s2243_s5 + $0x5d0] sm:$0xff] }
  0x63   : > { %613 = vst [vmem:[%s2248_s6 + $0x2e0] sm:$0xff] %v612_v34  ;;  %v616_v36 = vld [vmem:[%s2243_s5 + $0x5e0] sm:$0xff]  ;;  %v618_v37 = vld [vmem:[%s2243_s5 + $0x5f0] sm:$0xff]  ;;  %615 = vst [vmem:[%s2248_s6 + $0x2e8] sm:$0xff] %v614_v35 }
  0x64   : > { %617 = vst [vmem:[%s2248_s6 + $0x2f0] sm:$0xff] %v616_v36  ;;  %619 = vst [vmem:[%s2248_s6 + $0x2f8] sm:$0xff] %v618_v37 }
  0x65 PF: > { %p1655_p0 = scmp.ge.s32.totalorder %s2106_s22, 1  ;;  %p632_p1 = scmp.lt.s32.totalorder %s2106_s22, 7 }
  0x67   : > { %p633_p2 = pnand %p1655_p0, %p632_p1 }
  0x68   : > { %s639_s0 = sand.u32 (!%p633_p2), 1, %s2082_s16   ;;  %s646_s23 = sand.u32 (!%p633_p2), 1, %s2074_s14  }
  0x69   : > { %636 = sbr.rel (%p633_p2) target bundleno = 476 (0x1dc), region = 85  ;;  %s673_s7 = sand.u32 (!%p633_p2), 1, %s2066_s12  }
  0x6a   : > { %s1776_s28 = smul.u32 (!%p633_p2), 48, %s639_s0  ;;  %s1656_s26 = sshll.u32 (!%p633_p2), %s673_s7, 4 }
  0x6b   : > { %s1777_s11 = smul.u32 (!%p633_p2), 768, %s646_s23  ;;  %s1657_s27 = sshll.u32 (!%p633_p2), %s2094_s19, 1 }
  0x6c   : > { %p681_p3 = scmp.lt.s32.totalorder (!%p633_p2), %s1657_s27, 3  ;;  %s2451_s6 = scalar_lea.vmem (!%p633_p2), [#allocation3], %s1776_s28 }
  0x6d   : > { %s2453_s1 = scalar_lea.vmem (!%p633_p2), [#allocation4], %s1777_s11  ;;  %s2455_s25 = scalar_lea.vmem (!%p633_p2), [#allocation5], %s1656_s26 }
  0x6e   : > { %s2640_s27 = smov (!%p681_p3, %s1657_s27), 3  ;;  %p1658_p4 = scmp.ne.s32.totalorder %s2090_s18, 0 }
  0x6f   : > { %s683_s5 = scalar_lea.vmem %s2611_s2, %s2640_s27 }
  0x70   : > { %690 = sbr.rel (%p1658_p4) target bundleno = 120 (0x78), region = 97 }
  0x75   : > { %v2108_v38 = vmov 0.0  }
  0x76   : > { %691 = vst [vmem:[#allocation2 + $0x10] sm:$0xff] %v2108_v38  ;;  %692 = vst [vmem:[#allocation2] sm:$0xff] %v2108_v38 }
  0x77   : > { %693 = vst [vmem:[#allocation2 + $0x18] sm:$0xff] %v2108_v38  ;;  %694 = vst [vmem:[#allocation2 + $0x8] sm:$0xff] %v2108_v38 }
  0x78 PF: > { %v1867_v39 = vld [vmem:[%s2453_s1 + $0x74] ss:$8 sps:$4 sm:$0xff]   ;;  %v1871_v41 = vld [vmem:[%s2453_s1 + $0x70] ss:$8 sps:$4 sm:$0xff]   ;;  %v1873_v43 = vld [vmem:[%s2453_s1 + $0x64] ss:$8 sps:$4 sm:$0xff]  }
  0x79   : > { %v1869_v40 = vld [vmem:[%s2453_s1 + $0x174] ss:$8 sps:$4 sm:$0xff]   ;;  %1311 = vmatprep.subr.bf16.mxu0 %v1867_v39  ;;  %v1872_v42 = vld [vmem:[%s2453_s1 + $0x170] ss:$8 sps:$4 sm:$0xff]   ;;  %v1875_v44 = vld [vmem:[%s2453_s1 + $0x164] ss:$8 sps:$4 sm:$0xff]  }
  0x7a   : > { %1354 = vmatprep.subr.bf16.mxu1 %v1869_v40  ;;  %1312 = vmatpush1.bf16.msra.mxu0 %v1871_v41  ;;  %v1877_v45 = vld [vmem:[%s2453_s1 + $0x60] ss:$8 sps:$4 sm:$0xff]   ;;  %v1879_v47 = vld [vmem:[%s2453_s1 + $0x54] ss:$8 sps:$4 sm:$0xff]   ;;  %v1883_v49 = vld [vmem:[%s2453_s1 + $0x50] ss:$8 sps:$4 sm:$0xff]  }
  0x7b   : > { %1355 = vmatpush1.bf16.msra.mxu1 %v1872_v42  ;;  %1313 = vmatprep.subr.bf16.mxu0 %v1873_v43  ;;  %v1878_v46 = vld [vmem:[%s2453_s1 + $0x160] ss:$8 sps:$4 sm:$0xff]   ;;  %v1881_v48 = vld [vmem:[%s2453_s1 + $0x154] ss:$8 sps:$4 sm:$0xff]   ;;  %v1884_v50 = vld [vmem:[%s2453_s1 + $0x150] ss:$8 sps:$4 sm:$0xff]  }
  0x7c   : > { %1356 = vmatprep.subr.bf16.mxu1 %v1875_v44  ;;  %v1885_v51 = vld [vmem:[%s2453_s1 + $0x44] ss:$8 sps:$4 sm:$0xff]   ;;  %v1889_v53 = vld [vmem:[%s2453_s1 + $0x40] ss:$8 sps:$4 sm:$0xff]   ;;  %v1891_v55 = vld [vmem:[%s2453_s1 + $0x34] ss:$8 sps:$4 sm:$0xff]  }
  0x7d   : > { %v1887_v52 = vld [vmem:[%s2453_s1 + $0x144] ss:$8 sps:$4 sm:$0xff]   ;;  %v1890_v54 = vld [vmem:[%s2453_s1 + $0x140] ss:$8 sps:$4 sm:$0xff]   ;;  %v1893_v56 = vld [vmem:[%s2453_s1 + $0x134] ss:$8 sps:$4 sm:$0xff]  }
  0x7e   : > { %1314 = vmatpush1.bf16.msra.mxu0 %v1877_v45  ;;  %v1895_v57 = vld [vmem:[%s2453_s1 + $0x30] ss:$8 sps:$4 sm:$0xff]   ;;  %v1897_v59 = vld [vmem:[%s2453_s1 + $0x24] ss:$8 sps:$4 sm:$0xff]   ;;  %v1901_v61 = vld [vmem:[%s2453_s1 + $0x20] ss:$8 sps:$4 sm:$0xff]  }
  0x7f   : > { %1357 = vmatpush1.bf16.msra.mxu1 %v1878_v46  ;;  %1315 = vmatprep.subr.bf16.mxu0 %v1879_v47  ;;  %v1896_v58 = vld [vmem:[%s2453_s1 + $0x130] ss:$8 sps:$4 sm:$0xff]   ;;  %v1899_v60 = vld [vmem:[%s2453_s1 + $0x124] ss:$8 sps:$4 sm:$0xff]   ;;  %v1902_v62 = vld [vmem:[%s2453_s1 + $0x120] ss:$8 sps:$4 sm:$0xff]  }
  0x80   : > { %1358 = vmatprep.subr.bf16.mxu1 %v1881_v48  ;;  %v1903_v63 = vld [vmem:[%s2453_s1 + $0x14] ss:$8 sps:$4 sm:$0xff]   ;;  %v1907_v1 = vld [vmem:[%s2453_s1 + $0x10] ss:$8 sps:$4 sm:$0xff]   ;;  %v1909_v3 = vld [vmem:[%s2453_s1 + $0x4] ss:$8 sps:$4 sm:$0xff]  }
  0x81   : > { %v1905_v0 = vld [vmem:[%s2453_s1 + $0x114] ss:$8 sps:$4 sm:$0xff]   ;;  %v1908_v2 = vld [vmem:[%s2453_s1 + $0x110] ss:$8 sps:$4 sm:$0xff]   ;;  %v1911_v4 = vld [vmem:[%s2453_s1 + $0x104] ss:$8 sps:$4 sm:$0xff]  }
  0x82   : > { %1316 = vmatpush1.bf16.msra.mxu0 %v1883_v49  ;;  %v1913_v5 = vld [vmem:[%s2453_s1] ss:$8 sps:$4 sm:$0xff]   ;;  %v1915_v7 = vld [vmem:[%s2453_s1 + $0xf4] ss:$8 sps:$4 sm:$0xff]   ;;  %v1919_v9 = vld [vmem:[%s2453_s1 + $0xf0] ss:$8 sps:$4 sm:$0xff]  }
  0x83   : > { %1359 = vmatpush1.bf16.msra.mxu1 %v1884_v50  ;;  %1317 = vmatprep.subr.bf16.mxu0 %v1885_v51  ;;  %v1914_v6 = vld [vmem:[%s2453_s1 + $0x100] ss:$8 sps:$4 sm:$0xff]   ;;  %v1917_v8 = vld [vmem:[%s2453_s1 + $0x1f4] ss:$8 sps:$4 sm:$0xff]   ;;  %v1920_v10 = vld [vmem:[%s2453_s1 + $0x1f0] ss:$8 sps:$4 sm:$0xff]  }
  0x84   : > { %1360 = vmatprep.subr.bf16.mxu1 %v1887_v52  ;;  %v1921_v11 = vld [vmem:[%s2453_s1 + $0xe4] ss:$8 sps:$4 sm:$0xff]   ;;  %v1925_v13 = vld [vmem:[%s2453_s1 + $0xe0] ss:$8 sps:$4 sm:$0xff]   ;;  %v1927_v15 = vld [vmem:[%s2453_s1 + $0xd4] ss:$8 sps:$4 sm:$0xff]  }
  0x85   : > { %v1923_v12 = vld [vmem:[%s2453_s1 + $0x1e4] ss:$8 sps:$4 sm:$0xff]   ;;  %v1926_v14 = vld [vmem:[%s2453_s1 + $0x1e0] ss:$8 sps:$4 sm:$0xff]   ;;  %v1929_v16 = vld [vmem:[%s2453_s1 + $0x1d4] ss:$8 sps:$4 sm:$0xff]  }
  0x86   : > { %1318 = vmatpush1.bf16.msra.mxu0 %v1889_v53  ;;  %v1931_v17 = vld [vmem:[%s2453_s1 + $0xd0] ss:$8 sps:$4 sm:$0xff]   ;;  %v1933_v19 = vld [vmem:[%s2453_s1 + $0xc4] ss:$8 sps:$4 sm:$0xff]   ;;  %v1937_v21 = vld [vmem:[%s2453_s1 + $0xc0] ss:$8 sps:$4 sm:$0xff]  }
  0x87   : > { %1361 = vmatpush1.bf16.msra.mxu1 %v1890_v54  ;;  %1319 = vmatprep.subr.bf16.mxu0 %v1891_v55  ;;  %v1932_v18 = vld [vmem:[%s2453_s1 + $0x1d0] ss:$8 sps:$4 sm:$0xff]   ;;  %v1935_v20 = vld [vmem:[%s2453_s1 + $0x1c4] ss:$8 sps:$4 sm:$0xff]   ;;  %v1938_v22 = vld [vmem:[%s2453_s1 + $0x1c0] ss:$8 sps:$4 sm:$0xff]  }
  0x88   : > { %1362 = vmatprep.subr.bf16.mxu1 %v1893_v56  ;;  %v1939_v23 = vld [vmem:[%s2453_s1 + $0xb4] ss:$8 sps:$4 sm:$0xff]   ;;  %v1943_v27 = vld [vmem:[%s2453_s1 + $0xb0] ss:$8 sps:$4 sm:$0xff]   ;;  %v1945_v29 = vld [vmem:[%s2453_s1 + $0xa4] ss:$8 sps:$4 sm:$0xff]  }
  0x89   : > { %v1965_v24 = vld [vmem:[%s2451_s6 + $0x4] ss:$24 sps:$4 sm:$0xff]   ;;  %v1944_v28 = vld [vmem:[%s2453_s1 + $0x1b0] ss:$8 sps:$4 sm:$0xff]   ;;  %v1949_v31 = vld [vmem:[%s2453_s1 + $0xa0] ss:$8 sps:$4 sm:$0xff]  }
  0x8a   : > { %1320 = vmatpush1.bf16.msra.mxu0 %v1895_v57  ;;  %v1941_v25 = vld [vmem:[%s2453_s1 + $0x1b4] ss:$8 sps:$4 sm:$0xff]   ;;  %1343 = vmatprep.mubr.bf16.mxu0 %v1965_v24  ;;  %v1947_v30 = vld [vmem:[%s2453_s1 + $0x1a4] ss:$8 sps:$4 sm:$0xff]   ;;  %v1950_v32 = vld [vmem:[%s2453_s1 + $0x1a0] ss:$8 sps:$4 sm:$0xff]  }
  0x8b   : > { %1363 = vmatpush1.bf16.msra.mxu1 %v1896_v58  ;;  %1321 = vmatprep.subr.bf16.mxu0 %v1897_v59  ;;  %v1968_v26 = vld [vmem:[%s2451_s6 + $0xc] ss:$24 sps:$4 sm:$0xff]   ;;  %v1955_v35 = vld [vmem:[%s2453_s1 + $0x90] ss:$8 sps:$4 sm:$0xff]   ;;  %v1961_v39 = vld [vmem:[%s2453_s1 + $0x80] ss:$8 sps:$4 sm:$0xff]  }
  0x8c   : > { %1364 = vmatprep.subr.bf16.mxu1 %v1899_v60  ;;  %1386 = vmatprep.mubr.bf16.mxu1 %v1968_v26  ;;  %v1951_v33 = vld [vmem:[%s2453_s1 + $0x94] ss:$8 sps:$4 sm:$0xff]   ;;  %v1956_v36 = vld [vmem:[%s2453_s1 + $0x190] ss:$8 sps:$4 sm:$0xff]   ;;  %v1957_v37 = vld [vmem:[%s2453_s1 + $0x84] ss:$8 sps:$4 sm:$0xff]  }
  0x8d   : > { %v1953_v34 = vld [vmem:[%s2453_s1 + $0x194] ss:$8 sps:$4 sm:$0xff]   ;;  %v1959_v38 = vld [vmem:[%s2453_s1 + $0x184] ss:$8 sps:$4 sm:$0xff]   ;;  %v1962_v40 = vld [vmem:[%s2453_s1 + $0x180] ss:$8 sps:$4 sm:$0xff]  }
  0x8e   : > { %1322 = vmatpush1.bf16.msra.mxu0 %v1901_v61  ;;  %v1971_v41 = vld [vmem:[%s2453_s1 + $0x274] ss:$8 sps:$4 sm:$0xff]   ;;  %v1963_v42 = vld [vmem:[%s2451_s6] ss:$24 sps:$4 sm:$0xff]   ;;  %v1974_v45 = vld [vmem:[%s2453_s1 + $0x264] ss:$8 sps:$4 sm:$0xff]  }
  0x8f   : > { %1365 = vmatpush1.bf16.msra.mxu1 %v1902_v62  ;;  %1323 = vmatprep.subr.bf16.mxu0 %v1903_v63  ;;  %v1966_v43 = vld [vmem:[%s2451_s6 + $0x8] ss:$24 sps:$4 sm:$0xff]   ;;  %v2019_v46 = vld [vmem:[%s2451_s6 + $0x14] ss:$24 sps:$4 sm:$0xff]   ;;  %p1761_p5 = scmp.ne.s32.totalorder %s2090_s18, 2 }
  0x90   : > { %1366 = vmatprep.subr.bf16.mxu1 %v1905_v0  ;;  %v1969_v44 = vld [vmem:[%s2453_s1 + $0x270] ss:$8 sps:$4 sm:$0xff]   ;;  %v1972_v47 = vld [vmem:[%s2453_s1 + $0x260] ss:$8 sps:$4 sm:$0xff]   ;;  %v1977_v48 = vld [vmem:[%s2453_s1 + $0x254] ss:$8 sps:$4 sm:$0xff]  }
  0x91   : > { %v1975_v49 = vld [vmem:[%s2453_s1 + $0x250] ss:$8 sps:$4 sm:$0xff]   ;;  %v1980_v50 = vld [vmem:[%s2453_s1 + $0x244] ss:$8 sps:$4 sm:$0xff]   ;;  %v1978_v51 = vld [vmem:[%s2453_s1 + $0x240] ss:$8 sps:$4 sm:$0xff]  }
  0x92   : > { %1324 = vmatpush1.bf16.msra.mxu0 %v1907_v1  ;;  %v1983_v52 = vld [vmem:[%s2453_s1 + $0x234] ss:$8 sps:$4 sm:$0xff]   ;;  %v1981_v53 = vld [vmem:[%s2453_s1 + $0x230] ss:$8 sps:$4 sm:$0xff]   ;;  %v1986_v54 = vld [vmem:[%s2453_s1 + $0x224] ss:$8 sps:$4 sm:$0xff]  }
  0x93   : > { %1367 = vmatpush1.bf16.msra.mxu1 %v1908_v2  ;;  %1325 = vmatprep.subr.bf16.mxu0 %v1909_v3  ;;  %v1984_v55 = vld [vmem:[%s2453_s1 + $0x220] ss:$8 sps:$4 sm:$0xff]   ;;  %v1989_v56 = vld [vmem:[%s2453_s1 + $0x214] ss:$8 sps:$4 sm:$0xff]   ;;  %v1987_v57 = vld [vmem:[%s2453_s1 + $0x210] ss:$8 sps:$4 sm:$0xff]  }
  0x94   : > { %1368 = vmatprep.subr.bf16.mxu1 %v1911_v4  ;;  %v1992_v58 = vld [vmem:[%s2453_s1 + $0x204] ss:$8 sps:$4 sm:$0xff]   ;;  %v1990_v59 = vld [vmem:[%s2453_s1 + $0x200] ss:$8 sps:$4 sm:$0xff]   ;;  %v1995_v60 = vld [vmem:[%s2453_s1 + $0x2f4] ss:$8 sps:$4 sm:$0xff]  }
  0x95   : > { %v1993_v61 = vld [vmem:[%s2453_s1 + $0x2f0] ss:$8 sps:$4 sm:$0xff]   ;;  %v1998_v62 = vld [vmem:[%s2453_s1 + $0x2e4] ss:$8 sps:$4 sm:$0xff]   ;;  %v1996_v63 = vld [vmem:[%s2453_s1 + $0x2e0] ss:$8 sps:$4 sm:$0xff]  }
  0x96   : > { %1326 = vmatpush1.bf16.msra.mxu0 %v1913_v5  ;;  %v2001_v0 = vld [vmem:[%s2453_s1 + $0x2d4] ss:$8 sps:$4 sm:$0xff]   ;;  %v1999_v1 = vld [vmem:[%s2453_s1 + $0x2d0] ss:$8 sps:$4 sm:$0xff]   ;;  %v2004_v2 = vld [vmem:[%s2453_s1 + $0x2c4] ss:$8 sps:$4 sm:$0xff]  }
  0x97   : > { %1369 = vmatpush1.bf16.msra.mxu1 %v1914_v6  ;;  %1327 = vmatprep.subr.bf16.mxu0 %v1915_v7  ;;  %v2002_v3 = vld [vmem:[%s2453_s1 + $0x2c0] ss:$8 sps:$4 sm:$0xff]   ;;  %v2007_v4 = vld [vmem:[%s2453_s1 + $0x2b4] ss:$8 sps:$4 sm:$0xff]   ;;  %v2005_v5 = vld [vmem:[%s2453_s1 + $0x2b0] ss:$8 sps:$4 sm:$0xff]  }
  0x98   : > { %1370 = vmatprep.subr.bf16.mxu1 %v1917_v8  ;;  %v2010_v6 = vld [vmem:[%s2453_s1 + $0x2a4] ss:$8 sps:$4 sm:$0xff]   ;;  %v2008_v7 = vld [vmem:[%s2453_s1 + $0x2a0] ss:$8 sps:$4 sm:$0xff]   ;;  %v2013_v8 = vld [vmem:[%s2453_s1 + $0x294] ss:$8 sps:$4 sm:$0xff]  }
  0x99   : > { %v696_v26 = vld [vmem:[#allocation2] sm:$0xff] }
  0x9a   : > { %1328 = vmatpush2.bf16.msra.mxu0 %v1919_v9  ;;  %v2011_v9 = vld [vmem:[%s2453_s1 + $0x290] ss:$8 sps:$4 sm:$0xff]  }
  0x9b   : > { %1371 = vmatpush2.bf16.msra.mxu1 %v1920_v10  ;;  %1329 = vmatprep.subr.bf16.mxu0 %v1921_v11  ;;  %v2016_v10 = vld [vmem:[%s2453_s1 + $0x284] ss:$8 sps:$4 sm:$0xff]   ;;  %v2014_v11 = vld [vmem:[%s2453_s1 + $0x280] ss:$8 sps:$4 sm:$0xff]  }
  0x9c   : > { %1372 = vmatprep.subr.bf16.mxu1 %v1923_v12  ;;  %v2017_v12 = vld [vmem:[%s2451_s6 + $0x10] ss:$24 sps:$4 sm:$0xff]  }
  0x9e   : > { %1330 = vmatpush2.bf16.msra.mxu0 %v1925_v13 }
  0x9f   : > { %1373 = vmatpush2.bf16.msra.mxu1 %v1926_v14  ;;  %1331 = vmatprep.subr.bf16.mxu0 %v1927_v15 }
  0xa0   : > { %1374 = vmatprep.subr.bf16.mxu1 %v1929_v16 }
  0xa2   : > { %1332 = vmatpush2.bf16.msra.mxu0 %v1931_v17 }
  0xa3   : > { %1375 = vmatpush2.bf16.msra.mxu1 %v1932_v18  ;;  %1333 = vmatprep.subr.bf16.mxu0 %v1933_v19 }
  0xa4   : > { %1376 = vmatprep.subr.bf16.mxu1 %v1935_v20 }
  0xa6   : > { %1334 = vmatpush2.bf16.msra.mxu0 %v1937_v21  ;;  %v695_v21 = vld [vmem:[#allocation2 + $0x10] sm:$0xff] }
  0xa7   : > { %1377 = vmatpush2.bf16.msra.mxu1 %v1938_v22  ;;  %1335 = vmatprep.subr.bf16.mxu0 %v1939_v23 }
  0xa8   : > { %1378 = vmatprep.subr.bf16.mxu1 %v1941_v25 }
  0xaa   : > { %1336 = vmatpush2.bf16.msra.mxu0 %v1943_v27 }
  0xab   : > { %1379 = vmatpush2.bf16.msra.mxu1 %v1944_v28  ;;  %1337 = vmatprep.subr.bf16.mxu0 %v1945_v29 }
  0xac   : > { %1380 = vmatprep.subr.bf16.mxu1 %v1947_v30 }
  0xae   : > { %1338 = vmatpush2.bf16.msra.mxu0 %v1949_v31  ;;  %v697_v31 = vld [vmem:[#allocation2 + $0x18] sm:$0xff] }
  0xaf   : > { %1381 = vmatpush2.bf16.msra.mxu1 %v1950_v32  ;;  %1339 = vmatprep.subr.bf16.mxu0 %v1951_v33 }
  0xb0   : > { %1382 = vmatprep.subr.bf16.mxu1 %v1953_v34 }
  0xb2   : > { %1340 = vmatpush2.bf16.msra.mxu0 %v1955_v35 }
  0xb3   : > { %1383 = vmatpush2.bf16.msra.mxu1 %v1956_v36  ;;  %1341 = vmatprep.subr.bf16.mxu0 %v1957_v37  ;;  %v698_v36 = vld [vmem:[#allocation2 + $0x8] sm:$0xff] }
  0xb4   : > { %1384 = vmatprep.subr.bf16.mxu1 %v1959_v38 }
  0xb6   : > { %1342 = vmatpush2.bf16.msra.mxu0 %v1961_v39 }
  0xb7   : > { %1385 = vmatpush2.bf16.msra.mxu1 %v1962_v40  ;;  %1397 = vmatprep.subr.bf16.mxu0 %v1971_v41 }
  0xb9   : > { %1344 = vmatmul.mubr.bf16.vlgmr.msra.gmra.mxu0 %v1963_v42 }
  0xba   : > { %1387 = vmatmul.mubr.bf16.vlgmr.msra.gmra.mxu1 %v1966_v43  ;;  %1398 = vmatpush1.bf16.msra.mxu0 %v1969_v44 }
  0xbb   : > { %1399 = vmatprep.subr.bf16.mxu0 %v1974_v45  ;;  %1429 = vmatprep.mubr.bf16.mxu0 %v2019_v46 }
  0xbe   : > { %1400 = vmatpush1.bf16.msra.mxu0 %v1972_v47 }
  0xbf   : > { %1401 = vmatprep.subr.bf16.mxu0 %v1977_v48 }
  0xc2   : > { %1402 = vmatpush1.bf16.msra.mxu0 %v1975_v49 }
  0xc3   : > { %1403 = vmatprep.subr.bf16.mxu0 %v1980_v50 }
  0xc6   : > { %1404 = vmatpush1.bf16.msra.mxu0 %v1978_v51 }
  0xc7   : > { %1405 = vmatprep.subr.bf16.mxu0 %v1983_v52 }
  0xca   : > { %1406 = vmatpush1.bf16.msra.mxu0 %v1981_v53 }
  0xcb   : > { %1407 = vmatprep.subr.bf16.mxu0 %v1986_v54 }
  0xce   : > { %1408 = vmatpush1.bf16.msra.mxu0 %v1984_v55 }
  0xcf   : > { %1409 = vmatprep.subr.bf16.mxu0 %v1989_v56 }
  0xd2   : > { %1410 = vmatpush1.bf16.msra.mxu0 %v1987_v57 }
  0xd3   : > { %1411 = vmatprep.subr.bf16.mxu0 %v1992_v58 }
  0xd6   : > { %1412 = vmatpush1.bf16.msra.mxu0 %v1990_v59 }
  0xd7   : > { %1413 = vmatprep.subr.bf16.mxu0 %v1995_v60 }
  0xda   : > { %1414 = vmatpush2.bf16.msra.mxu0 %v1993_v61 }
  0xdb   : > { %1415 = vmatprep.subr.bf16.mxu0 %v1998_v62 }
  0xde   : > { %1416 = vmatpush2.bf16.msra.mxu0 %v1996_v63 }
  0xdf   : > { %1417 = vmatprep.subr.bf16.mxu0 %v2001_v0 }
  0xe2   : > { %1418 = vmatpush2.bf16.msra.mxu0 %v1999_v1 }
  0xe3   : > { %1419 = vmatprep.subr.bf16.mxu0 %v2004_v2 }
  0xe6   : > { %1420 = vmatpush2.bf16.msra.mxu0 %v2002_v3 }
  0xe7   : > { %1421 = vmatprep.subr.bf16.mxu0 %v2007_v4 }
  0xea   : > { %1422 = vmatpush2.bf16.msra.mxu0 %v2005_v5 }
  0xeb   : > { %1423 = vmatprep.subr.bf16.mxu0 %v2010_v6 }
  0xee   : > { %1424 = vmatpush2.bf16.msra.mxu0 %v2008_v7 }
  0xef   : > { %1425 = vmatprep.subr.bf16.mxu0 %v2013_v8 }
  0xf2   : > { %1426 = vmatpush2.bf16.msra.mxu0 %v2011_v9 }
  0xf3   : > { %1427 = vmatprep.subr.bf16.mxu0 %v2016_v10 }
  0xf6   : > { %1428 = vmatpush2.bf16.msra.mxu0 %v2014_v11 }
  0xf9   : > { %1430 = vmatmul.mubr.bf16.vlgmr.msra.gmra.mxu0 %v2017_v12 }
 0x179   : > { %v1345_v13 = vpop.f32.mrf.mxu0 }
 0x17a   : > { %v1388_v14 = vpop.f32.mrf.mxu1 }
 0x17b   : > { %v1347_v15 = vpop.f32.mrf.mxu0  ;;  %v1389_v20 = vadd.f32 %v1388_v14, %v1345_v13 }
 0x17c   : > { %v1390_v16 = vpop.f32.mrf.mxu1 }
 0x17d   : > { %v1349_v17 = vpop.f32.mrf.mxu0  ;;  %v1391_v23 = vadd.f32 %v1390_v16, %v1347_v15 }
 0x17e   : > { %v1392_v18 = vpop.f32.mrf.mxu1 }
 0x17f   : > { %v1351_v19 = vpop.f32.mrf.mxu0  ;;  %v1393_v28 = vadd.f32 %v1392_v18, %v1349_v17 }
 0x180   : > { %v1394_v25 = vpop.f32.mrf.mxu1 }
 0x181   : > { %v1395_v33 = vadd.f32 %v1394_v25, %v1351_v19 }
 0x1b9   : > { %v1431_v22 = vpop.f32.mrf.mxu0 }
 0x1ba   : > { %v1432_v24 = vadd.f32 %v1431_v22, %v1389_v20 }
 0x1bb   : > { %v1433_v27 = vpop.f32.mrf.mxu0 }
 0x1bc   : > { %v1440_v29 = vadd.f32 %v1432_v24, %v695_v21  ;;  %v1434_v30 = vadd.f32 %v1433_v27, %v1391_v23 }
 0x1bd   : > { %v1435_v32 = vpop.f32.mrf.mxu0 }
 0x1be   : > { %1444 = vst [vmem:[#allocation2 + $0x10] sm:$0xff] %v1440_v29  ;;  %v1441_v34 = vadd.f32 %v1434_v30, %v696_v26  ;;  %v1436_v35 = vadd.f32 %v1435_v32, %v1393_v28 }
 0x1bf   : > { %v1437_v37 = vpop.f32.mrf.mxu0 }
 0x1c0   : > { %1445 = vst [vmem:[#allocation2] sm:$0xff] %v1441_v34  ;;  %v1442_v38 = vadd.f32 %v1436_v35, %v697_v31  ;;  %v1438_v39 = vadd.f32 %v1437_v37, %v1395_v33  ;;  %1451 = sbr.rel (%p1761_p5) target bundleno = 468 (0x1d4), region = 101 }
 0x1c2   : > { %1446 = vst [vmem:[#allocation2 + $0x18] sm:$0xff] %v1442_v38  ;;  %v1443_v40 = vadd.f32 %v1438_v39, %v698_v36 }
 0x1c4   : > { %1447 = vst [vmem:[#allocation2 + $0x8] sm:$0xff] %v1443_v40 }
 0x1c5   : > { %v1458_v41 = vlaneseq  ;;  %v1456_v43 = vld [vmem:[%s683_s5] sm:$0x3]  ;;  %v1452_v44 = vld [vmem:[#allocation2 + $0x10] sm:$0xff] }
 0x1c7   : > { %v1459_v42 = vshrl.u32 %v1458_v41, 7  ;;  %v1453_v47 = vld [vmem:[#allocation2] sm:$0xff] }
 0x1c9   : > { %v1460_v45 = vsub.s32 0, %v1459_v42  ;;  %v1464_v46 = vsub.s32 1, %v1459_v42  ;;  %v1454_v48 = vld [vmem:[#allocation2 + $0x18] sm:$0xff] }
 0x1cb   : > { %v1455_v49 = vld [vmem:[#allocation2 + $0x8] sm:$0xff]  ;;  %v1461_v50 = vrot.slane %v1456_v43, %v1460_v45  ;;  %v1465_v51 = vrot.slane %v1456_v43, %v1464_v46 }
 0x1cd   : > { %v1468_v52 = vadd.f32 %v1461_v50, %v1452_v44  ;;  %v1469_v53 = vadd.f32 %v1465_v51, %v1453_v47  ;;  %v1470_v54 = vadd.f32 %v1461_v50, %v1454_v48  ;;  %v1471_v55 = vadd.f32 %v1465_v51, %v1455_v49 }
 0x1cf   : > { %v1472_v56 = vmax.f32 %v1468_v52, 0.0  ;;  %v1473_v57 = vmax.f32 %v1469_v53, 0.0  ;;  %v1474_v58 = vmax.f32 %v1470_v54, 0.0  ;;  %v1475_v59 = vmax.f32 %v1471_v55, 0.0 }
 0x1d1   : > { %v1771_v60 = vpack.c.bf16 %v1473_v57, %v1472_v56  ;;  %v1772_v61 = vpack.c.bf16 %v1475_v59, %v1474_v58 }
 0x1d3   : > { %1488 = vst [vmem:[%s2455_s25] sm:$0xff] %v1771_v60  ;;  %1489 = vst [vmem:[%s2455_s25 + $0x8] sm:$0xff] %v1772_v61 }
 0x1d4 PF: > { %1496 = sbr.rel (!%p2223_p12) target bundleno = 476 (0x1dc), region = 105  ;;  %s1773_s14 = sshll.u32 (%p2223_p12), %s2094_s19, 3 }
 0x1d5   : > { %s1502_s0 = scalar_lea.vmem (%p2223_p12), %s2612_s3, %s1773_s14 }
 0x1da   : > { %v1533_v62 = vld [vmem:[%s2455_s25] sm:$0xff]  ;;  %v1535_v63 = vld [vmem:[%s2455_s25 + $0x8] sm:$0xff] }
 0x1db   : > { %1534 = vst [vmem:[%s1502_s0] sm:$0xff] %v1533_v62  ;;  %1536 = vst [vmem:[%s1502_s0 + $0x10] sm:$0xff] %v1535_v63 }
 0x1dc PF: > { %s13_s22 = sadd.s32 1, %s2106_s22   ;;  %s2622_s25 = sld [smem:[#allocation6_spill]] }
 0x1dd   : > { %p10_p6 = scmp.ge.s32.totalorder %s13_s22, 8   ;;  %s2623_s12 = smov %s2070_s13 }
 0x1de   : > { %s2624_s13 = smov %s2221_s9  ;;  %s2625_s14 = smov %s2078_s15 }
 0x1df   : > { %s2626_s15 = smov %s2218_s8  ;;  %s2627_s16 = smov %s2086_s17 }
 0x1e0   : > { %s2628_s17 = smov %s2204_s30  ;;  %s2629_s18 = smov %s2098_s20 }
 0x1e1   : > { %s2630_s19 = smov %s2102_s21  ;;  %s2631_s20 = smov %s2634_s24 }
 0x1e2   : > { %s2632_s21 = smov %s2622_s25  ;;  %12 = sbr.rel (!%p10_p6) target bundleno = 9 (0x9), region = 185 }

// kernel: resnet18_transfer_forward.39
= control target key start
LH: loop header
LB: loop body
LE: loop exit
PB: predicated region body
PF: predicated region fallthrough
CT: control target
= control target key end

     0   :  { %s1081_s12 = smov 0   ;;  %s1083_s13 = smov 0   ;;  %s1269_s0 = inlined_call_operand.vmem [shape: bf16[16,256], index: 0, kind: input, shape index: {}]   ;;  %s1270_s1 = inlined_call_operand.vmem [shape: bf16[256,512], index: 1, kind: input, shape index: {}]   ;;  %s1271_s2 = inlined_call_operand.vmem [shape: f32[1,512], index: 2, kind: input, shape index: {}]   ;;  %s1272_s3 = inlined_call_operand.vmem [shape: bf16[16,512], index: 3, kind: output, shape index: {}]  }
   0x1   :  { %s1085_s14 = smov 0   ;;  %s1087_s15 = smov 0  }
   0x2   :  { %s1089_s16 = smov 0  }
   0x3 LB: > { %s28_s17 = sadd.s32 1, %s1055_s15  ;;  %s873_s18 = sadd.s32 4294967295, %s1059_s16   ;;  %s1059_s16 = sphi %s1089_s16, %s13_s16   ;;  %s1055_s15 = sphi %s1087_s15, %s1277_s15   ;;  %s1051_s14 = sphi %s1085_s14, %s1276_s14   ;;  %s1047_s13 = sphi %s1083_s13, %s1275_s13   ;;  %s1043_s12 = sphi %s1081_s12, %s1274_s12  }
   0x4   : > { %p30_p0 = scmp.ge.s32.totalorder %s28_s17, 2  ;;  %p76_p1 = scmp.ne.s32.totalorder %s1047_s13, %s1043_s12 }
   0x5   : > { %p77_p2 = scmp.eq.s32.totalorder %s1059_s16, 0  ;;  %p134_p4 = scmp.eq.s32.totalorder %s873_s18, 1 }
   0x6   : > { %s1279_s17 = smov (%p30_p0, %s28_s17), 0  ;;  %s69_s20 = sadd.s32 1, %s1047_s13 }
   0x7   : > { %p78_p3 = por %p77_p2, %p76_p1  ;;  %s65_s19 = ssub.s32 %s1055_s15, %s1279_s17 }
   0x8   : > { %p67_p5 = scmp.eq.s32.totalorder %s65_s19, 0  ;;  %p1116_p6 = por %p134_p4, %p76_p1 }
   0x9   : > { %p877_p7 = scmp.ge.s32.totalorder %s1059_s16, 2 }
   0xa   : > { %s1121_s22 = scalar_select %p67_p5, %s1047_s13, %s69_s20  }
   0xb   : > { %171 = sbr.rel (%p877_p7) target bundleno = 36 (0x24), region = 20 }
  0x10   : > { %174 = sbr.rel (!%p78_p3) target bundleno = 36 (0x24), region = 24  ;;  %s176_s23 = sand.u32 (%p78_p3), 1, %s1047_s13  }
  0x11   : > { %s926_s24 = sshll.u32 (%p78_p3), %s1055_s15, 3  ;;  %s878_s25 = sshll.u32 (%p78_p3), %s176_s23, 8 }
  0x12   : > { %s1129_s28 = scalar_lea.vmem (%p78_p3), %s1270_s1, %s926_s24  ;;  %s1134_s29 = scalar_lea.vmem (%p78_p3), [#allocation3], %s878_s25 }
  0x13   : > { %v275_v0 = vld [vmem:[%s1129_s28] sm:$0xff] (%p78_p3)  ;;  %v277_v1 = vld [vmem:[%s1129_s28 + $0x10] sm:$0xff] (%p78_p3) }
  0x14   : > { %v279_v2 = vld [vmem:[%s1129_s28 + $0x20] sm:$0xff] (%p78_p3)  ;;  %276 = vst [vmem:[%s1134_s29] sm:$0xff] (%p78_p3), %v275_v0  ;;  %278 = vst [vmem:[%s1134_s29 + $0x8] sm:$0xff] (%p78_p3), %v277_v1  ;;  %v281_v3 = vld [vmem:[%s1129_s28 + $0x30] sm:$0xff] (%p78_p3) }
  0x15   : > { %280 = vst [vmem:[%s1134_s29 + $0x10] sm:$0xff] %v279_v2  ;;  %v283_v4 = vld [vmem:[%s1129_s28 + $0x40] sm:$0xff]  ;;  %v285_v5 = vld [vmem:[%s1129_s28 + $0x50] sm:$0xff]  ;;  %282 = vst [vmem:[%s1134_s29 + $0x18] sm:$0xff] %v281_v3 }
  0x16   : > { %284 = vst [vmem:[%s1134_s29 + $0x20] sm:$0xff] %v283_v4  ;;  %286 = vst [vmem:[%s1134_s29 + $0x28] sm:$0xff] %v285_v5  ;;  %v287_v6 = vld [vmem:[%s1129_s28 + $0x60] sm:$0xff]  ;;  %v289_v7 = vld [vmem:[%s1129_s28 + $0x70] sm:$0xff] }
  0x17   : > { %v291_v8 = vld [vmem:[%s1129_s28 + $0x80] sm:$0xff]  ;;  %288 = vst [vmem:[%s1134_s29 + $0x30] sm:$0xff] %v287_v6  ;;  %290 = vst [vmem:[%s1134_s29 + $0x38] sm:$0xff] %v289_v7  ;;  %v293_v9 = vld [vmem:[%s1129_s28 + $0x90] sm:$0xff] }
  0x18   : > { %292 = vst [vmem:[%s1134_s29 + $0x40] sm:$0xff] %v291_v8  ;;  %v295_v10 = vld [vmem:[%s1129_s28 + $0xa0] sm:$0xff]  ;;  %v297_v11 = vld [vmem:[%s1129_s28 + $0xb0] sm:$0xff]  ;;  %294 = vst [vmem:[%s1134_s29 + $0x48] sm:$0xff] %v293_v9 }
  0x19   : > { %296 = vst [vmem:[%s1134_s29 + $0x50] sm:$0xff] %v295_v10  ;;  %298 = vst [vmem:[%s1134_s29 + $0x58] sm:$0xff] %v297_v11  ;;  %v299_v12 = vld [vmem:[%s1129_s28 + $0xc0] sm:$0xff]  ;;  %v301_v13 = vld [vmem:[%s1129_s28 + $0xd0] sm:$0xff] }
  0x1a   : > { %v303_v14 = vld [vmem:[%s1129_s28 + $0xe0] sm:$0xff]  ;;  %300 = vst [vmem:[%s1134_s29 + $0x60] sm:$0xff] %v299_v12  ;;  %302 = vst [vmem:[%s1134_s29 + $0x68] sm:$0xff] %v301_v13  ;;  %v305_v15 = vld [vmem:[%s1129_s28 + $0xf0] sm:$0xff] }
  0x1b   : > { %304 = vst [vmem:[%s1134_s29 + $0x70] sm:$0xff] %v303_v14  ;;  %v307_v16 = vld [vmem:[%s1129_s28 + $0x100] sm:$0xff]  ;;  %v309_v17 = vld [vmem:[%s1129_s28 + $0x110] sm:$0xff]  ;;  %306 = vst [vmem:[%s1134_s29 + $0x78] sm:$0xff] %v305_v15 }
  0x1c   : > { %308 = vst [vmem:[%s1134_s29 + $0x80] sm:$0xff] %v307_v16  ;;  %310 = vst [vmem:[%s1134_s29 + $0x88] sm:$0xff] %v309_v17  ;;  %v311_v18 = vld [vmem:[%s1129_s28 + $0x120] sm:$0xff]  ;;  %v313_v19 = vld [vmem:[%s1129_s28 + $0x130] sm:$0xff] }
  0x1d   : > { %v315_v20 = vld [vmem:[%s1129_s28 + $0x140] sm:$0xff]  ;;  %312 = vst [vmem:[%s1134_s29 + $0x90] sm:$0xff] %v311_v18  ;;  %314 = vst [vmem:[%s1134_s29 + $0x98] sm:$0xff] %v313_v19  ;;  %v317_v21 = vld [vmem:[%s1129_s28 + $0x150] sm:$0xff] }
  0x1e   : > { %316 = vst [vmem:[%s1134_s29 + $0xa0] sm:$0xff] %v315_v20  ;;  %v319_v22 = vld [vmem:[%s1129_s28 + $0x160] sm:$0xff]  ;;  %v321_v23 = vld [vmem:[%s1129_s28 + $0x170] sm:$0xff]  ;;  %318 = vst [vmem:[%s1134_s29 + $0xa8] sm:$0xff] %v317_v21 }
  0x1f   : > { %320 = vst [vmem:[%s1134_s29 + $0xb0] sm:$0xff] %v319_v22  ;;  %322 = vst [vmem:[%s1134_s29 + $0xb8] sm:$0xff] %v321_v23  ;;  %v323_v24 = vld [vmem:[%s1129_s28 + $0x180] sm:$0xff]  ;;  %v325_v25 = vld [vmem:[%s1129_s28 + $0x190] sm:$0xff] }
  0x20   : > { %v327_v26 = vld [vmem:[%s1129_s28 + $0x1a0] sm:$0xff]  ;;  %324 = vst [vmem:[%s1134_s29 + $0xc0] sm:$0xff] %v323_v24  ;;  %326 = vst [vmem:[%s1134_s29 + $0xc8] sm:$0xff] %v325_v25  ;;  %v329_v27 = vld [vmem:[%s1129_s28 + $0x1b0] sm:$0xff] }
  0x21   : > { %328 = vst [vmem:[%s1134_s29 + $0xd0] sm:$0xff] %v327_v26  ;;  %v331_v28 = vld [vmem:[%s1129_s28 + $0x1c0] sm:$0xff]  ;;  %v333_v29 = vld [vmem:[%s1129_s28 + $0x1d0] sm:$0xff]  ;;  %330 = vst [vmem:[%s1134_s29 + $0xd8] sm:$0xff] %v329_v27 }
  0x22   : > { %332 = vst [vmem:[%s1134_s29 + $0xe0] sm:$0xff] %v331_v28  ;;  %334 = vst [vmem:[%s1134_s29 + $0xe8] sm:$0xff] %v333_v29  ;;  %v335_v30 = vld [vmem:[%s1129_s28 + $0x1e0] sm:$0xff]  ;;  %v337_v31 = vld [vmem:[%s1129_s28 + $0x1f0] sm:$0xff] }
  0x23   : > { %336 = vst [vmem:[%s1134_s29 + $0xf0] sm:$0xff] %v335_v30  ;;  %338 = vst [vmem:[%s1134_s29 + $0xf8] sm:$0xff] %v337_v31 }
  0x24 PF: > { %p881_p8 = scmp.ge.s32.totalorder %s1059_s16, 1  ;;  %p351_p9 = scmp.lt.s32.totalorder %s1059_s16, 3 }
  0x26   : > { %p352_p10 = pnand %p881_p8, %p351_p9 }
  0x27   : > { %s358_s30 = sand.u32 (!%p352_p10), 1, %s1043_s12   ;;  %s884_s10 = sshll.u32 (!%p352_p10), %s1051_s14, 1 }
  0x28   : > { %355 = sbr.rel (%p352_p10) target bundleno = 322 (0x142), region = 66  ;;  %s882_s4 = sshll.u32 (!%p352_p10), %s358_s30, 8 }
  0x29   : > { %s1205_s7 = scalar_lea.vmem (!%p352_p10), [#allocation3], %s882_s4  ;;  %p409_p11 = scmp.lt.s32.totalorder (!%p352_p10), %s884_s10, 3 }
  0x2a   : > { %s883_s20 = sshll.u32 (!%p352_p10), %s358_s30, 4 }
  0x2b   : > { %s393_s23 = scalar_lea.vmem (!%p352_p10), [#allocation4], %s883_s20 }
  0x2d   : > { %v1020_v32 = vld [vmem:[%s1269_s0 + $0x4] ss:$8 sps:$4 sm:$0xff]   ;;  %v970_v33 = vld [vmem:[%s1205_s7 + $0x74] ss:$8 sps:$4 sm:$0xff]   ;;  %v972_v34 = vld [vmem:[%s1205_s7 + $0x70] ss:$8 sps:$4 sm:$0xff]   ;;  %v691_v2 = vlaneseq }
  0x2e   : > { %663 = vmatprep.mubr.bf16.mxu0 %v1020_v32  ;;  %631 = vmatprep.subr.bf16.mxu0 %v970_v33  ;;  %v973_v35 = vld [vmem:[%s1205_s7 + $0x64] ss:$8 sps:$4 sm:$0xff]   ;;  %v975_v36 = vld [vmem:[%s1205_s7 + $0x60] ss:$8 sps:$4 sm:$0xff]   ;;  %v976_v37 = vld [vmem:[%s1205_s7 + $0x54] ss:$8 sps:$4 sm:$0xff]  }
  0x2f   : > { %632 = vmatpush1.bf16.msra.mxu0 %v972_v34  ;;  %v978_v38 = vld [vmem:[%s1205_s7 + $0x50] ss:$8 sps:$4 sm:$0xff]   ;;  %v979_v39 = vld [vmem:[%s1205_s7 + $0x44] ss:$8 sps:$4 sm:$0xff]   ;;  %v981_v40 = vld [vmem:[%s1205_s7 + $0x40] ss:$8 sps:$4 sm:$0xff]  }
  0x30   : > { %633 = vmatprep.subr.bf16.mxu0 %v973_v35  ;;  %v982_v41 = vld [vmem:[%s1205_s7 + $0x34] ss:$8 sps:$4 sm:$0xff]   ;;  %v984_v42 = vld [vmem:[%s1205_s7 + $0x30] ss:$8 sps:$4 sm:$0xff]   ;;  %v985_v43 = vld [vmem:[%s1205_s7 + $0x24] ss:$8 sps:$4 sm:$0xff]  }
  0x31   : > { %v987_v44 = vld [vmem:[%s1205_s7 + $0x20] ss:$8 sps:$4 sm:$0xff]   ;;  %v988_v45 = vld [vmem:[%s1205_s7 + $0x14] ss:$8 sps:$4 sm:$0xff]   ;;  %v990_v46 = vld [vmem:[%s1205_s7 + $0x10] ss:$8 sps:$4 sm:$0xff]  }
  0x32   : > { %v991_v47 = vld [vmem:[%s1205_s7 + $0x4] ss:$8 sps:$4 sm:$0xff]   ;;  %v993_v48 = vld [vmem:[%s1205_s7] ss:$8 sps:$4 sm:$0xff]   ;;  %v994_v49 = vld [vmem:[%s1205_s7 + $0xf4] ss:$8 sps:$4 sm:$0xff]  }
  0x33   : > { %634 = vmatpush1.bf16.msra.mxu0 %v975_v36  ;;  %v996_v50 = vld [vmem:[%s1205_s7 + $0xf0] ss:$8 sps:$4 sm:$0xff]   ;;  %v997_v51 = vld [vmem:[%s1205_s7 + $0xe4] ss:$8 sps:$4 sm:$0xff]   ;;  %v999_v52 = vld [vmem:[%s1205_s7 + $0xe0] ss:$8 sps:$4 sm:$0xff]  }
  0x34   : > { %635 = vmatprep.subr.bf16.mxu0 %v976_v37  ;;  %v1000_v53 = vld [vmem:[%s1205_s7 + $0xd4] ss:$8 sps:$4 sm:$0xff]   ;;  %v1002_v54 = vld [vmem:[%s1205_s7 + $0xd0] ss:$8 sps:$4 sm:$0xff]   ;;  %v1003_v55 = vld [vmem:[%s1205_s7 + $0xc4] ss:$8 sps:$4 sm:$0xff]  }
  0x35   : > { %v1005_v56 = vld [vmem:[%s1205_s7 + $0xc0] ss:$8 sps:$4 sm:$0xff]   ;;  %v1006_v57 = vld [vmem:[%s1205_s7 + $0xb4] ss:$8 sps:$4 sm:$0xff]   ;;  %v1008_v58 = vld [vmem:[%s1205_s7 + $0xb0] ss:$8 sps:$4 sm:$0xff]  }
  0x36   : > { %v1009_v59 = vld [vmem:[%s1205_s7 + $0xa4] ss:$8 sps:$4 sm:$0xff]   ;;  %v1011_v60 = vld [vmem:[%s1205_s7 + $0xa0] ss:$8 sps:$4 sm:$0xff]   ;;  %v1012_v61 = vld [vmem:[%s1205_s7 + $0x94] ss:$8 sps:$4 sm:$0xff]  }
  0x37   : > { %636 = vmatpush1.bf16.msra.mxu0 %v978_v38  ;;  %v1014_v62 = vld [vmem:[%s1205_s7 + $0x90] ss:$8 sps:$4 sm:$0xff]   ;;  %v1015_v63 = vld [vmem:[%s1205_s7 + $0x84] ss:$8 sps:$4 sm:$0xff]   ;;  %v1017_v0 = vld [vmem:[%s1205_s7 + $0x80] ss:$8 sps:$4 sm:$0xff]  }
  0x38   : > { %637 = vmatprep.subr.bf16.mxu0 %v979_v39  ;;  %v1018_v1 = vld [vmem:[%s1269_s0] ss:$8 sps:$4 sm:$0xff]   ;;  %s1281_s10 = smov (!%p409_p11, %s884_s10), 3  ;;  %v692_v3 = vshrl.u32 %v691_v2, 7  ;;  %s929_s24 = sshll.u32 (%p1116_p6), %s1051_s14, 3 }
  0x39   : > { %s411_s19 = scalar_lea.vmem %s1271_s2, %s1281_s10  ;;  %s731_s26 = scalar_lea.vmem (%p1116_p6), %s1272_s3, %s929_s24 }
  0x3a   : > { %v693_v4 = vsub.s32 0, %v692_v3  ;;  %v697_v5 = vsub.s32 1, %v692_v3  ;;  %v689_v6 = vld [vmem:[%s411_s19] sm:$0x3] }
  0x3b   : > { %638 = vmatpush1.bf16.msra.mxu0 %v981_v40 }
  0x3c   : > { %639 = vmatprep.subr.bf16.mxu0 %v982_v41  ;;  %v694_v7 = vrot.slane %v689_v6, %v693_v4  ;;  %v698_v8 = vrot.slane %v689_v6, %v697_v5 }
  0x3f   : > { %640 = vmatpush1.bf16.msra.mxu0 %v984_v42 }
  0x40   : > { %641 = vmatprep.subr.bf16.mxu0 %v985_v43 }
  0x43   : > { %642 = vmatpush1.bf16.msra.mxu0 %v987_v44 }
  0x44   : > { %643 = vmatprep.subr.bf16.mxu0 %v988_v45 }
  0x47   : > { %644 = vmatpush1.bf16.msra.mxu0 %v990_v46 }
  0x48   : > { %645 = vmatprep.subr.bf16.mxu0 %v991_v47 }
  0x4b   : > { %646 = vmatpush1.bf16.msra.mxu0 %v993_v48 }
  0x4c   : > { %647 = vmatprep.subr.bf16.mxu0 %v994_v49 }
  0x4f   : > { %648 = vmatpush2.bf16.msra.mxu0 %v996_v50 }
  0x50   : > { %649 = vmatprep.subr.bf16.mxu0 %v997_v51 }
  0x53   : > { %650 = vmatpush2.bf16.msra.mxu0 %v999_v52 }
  0x54   : > { %651 = vmatprep.subr.bf16.mxu0 %v1000_v53 }
  0x57   : > { %652 = vmatpush2.bf16.msra.mxu0 %v1002_v54 }
  0x58   : > { %653 = vmatprep.subr.bf16.mxu0 %v1003_v55 }
  0x5b   : > { %654 = vmatpush2.bf16.msra.mxu0 %v1005_v56 }
  0x5c   : > { %655 = vmatprep.subr.bf16.mxu0 %v1006_v57 }
  0x5f   : > { %656 = vmatpush2.bf16.msra.mxu0 %v1008_v58 }
  0x60   : > { %657 = vmatprep.subr.bf16.mxu0 %v1009_v59 }
  0x63   : > { %658 = vmatpush2.bf16.msra.mxu0 %v1011_v60 }
  0x64   : > { %659 = vmatprep.subr.bf16.mxu0 %v1012_v61 }
  0x67   : > { %660 = vmatpush2.bf16.msra.mxu0 %v1014_v62 }
  0x68   : > { %661 = vmatprep.subr.bf16.mxu0 %v1015_v63 }
  0x6b   : > { %662 = vmatpush2.bf16.msra.mxu0 %v1017_v0 }
  0x6e   : > { %664 = vmatmul.mubr.bf16.vlgmr.msra.gmra.mxu0 %v1018_v1 }
 0x12e   : > { %v665_v9 = vpop.f32.mrf.mxu0 }
 0x12f   : > { %v701_v11 = vadd.f32 %v694_v7, %v665_v9 }
 0x130   : > { %v667_v10 = vpop.f32.mrf.mxu0 }
 0x131   : > { %v702_v12 = vadd.f32 %v698_v8, %v667_v10 }
 0x132   : > { %v669_v13 = vpop.f32.mrf.mxu0 }
 0x133   : > { %v927_v14 = vpack.c.bf16 %v702_v12, %v701_v11  ;;  %v703_v16 = vadd.f32 %v694_v7, %v669_v13 }
 0x134   : > { %v671_v15 = vpop.f32.mrf.mxu0 }
 0x135   : > { %717 = vst [vmem:[%s393_s23] sm:$0xff] %v927_v14  ;;  %v704_v17 = vadd.f32 %v698_v8, %v671_v15  ;;  %725 = sbr.rel (!%p1116_p6) target bundleno = 322 (0x142), region = 82 }
 0x137   : > { %v928_v18 = vpack.c.bf16 %v704_v17, %v703_v16 }
 0x139   : > { %718 = vst [vmem:[%s393_s23 + $0x8] sm:$0xff] %v928_v18 }
 0x13c   : > { %v762_v19 = vld [vmem:[%s393_s23] sm:$0xff] }
 0x13d   : > { %763 = vst [vmem:[%s731_s26] sm:$0xff] %v762_v19 }
 0x140   : > { %v764_v20 = vld [vmem:[%s393_s23 + $0x8] sm:$0xff] }
 0x141   : > { %765 = vst [vmem:[%s731_s26 + $0x10] sm:$0xff] %v764_v20 }
 0x142 PF: > { %s13_s16 = sadd.s32 1, %s1059_s16   ;;  %s1274_s12 = smov %s1047_s13 }
 0x143   : > { %p10_p12 = scmp.ge.s32.totalorder %s13_s16, 4   ;;  %s1275_s13 = smov %s1121_s22 }
 0x144   : > { %s1276_s14 = smov %s1055_s15  ;;  %s1277_s15 = smov %s1279_s17 }
 0x145   :  { %12 = sbr.rel (!%p10_p12) target bundleno = 3 (0x3), region = 157 }

// kernel: resnet18_transfer_forward.41
= control target key start
LH: loop header
LB: loop body
LE: loop exit
PB: predicated region body
PF: predicated region fallthrough
CT: control target
= control target key end

     0   :  { %s2609_s0 = inlined_call_operand.vmem [shape: bf16[16,4608], index: 0, kind: input, shape index: {}]   ;;  %s2610_s1 = inlined_call_operand.vmem [shape: bf16[4608,512], index: 1, kind: input, shape index: {}]   ;;  %s2611_s2 = inlined_call_operand.vmem [shape: f32[1,512], index: 2, kind: input, shape index: {}]   ;;  %s2612_s3 = inlined_call_operand.vmem [shape: bf16[16,512], index: 3, kind: output, shape index: {}]  }
   0x1   :  { %2614 = sst [smem:[#allocation7_spill]] %s2609_s0 }
   0x2   :  { %2615 = sst [smem:[#allocation8_spill]] %s2610_s1 }
   0x3   :  { %s2129_s12 = smov 0   ;;  %s2131_s13 = smov 0  }
   0x4   :  { %s2133_s14 = smov 0   ;;  %s2135_s15 = smov 0  }
   0x5   :  { %s2137_s16 = smov 0   ;;  %s2139_s17 = smov 0  }
   0x6   :  { %s2141_s18 = smov 0   ;;  %s2143_s19 = smov 0  }
   0x7   :  { %s2145_s20 = smov 0   ;;  %s2147_s21 = smov 0  }
   0x8   :  { %s2149_s22 = smov 0  }
   0x9 LB: > { %s1647_s23 = sadd.s32 4294967295, %s2106_s22   ;;  %s25_s24 = sadd.s32 1, %s2098_s20  ;;  %s2106_s22 = sphi %s2149_s22, %s13_s22   ;;  %s2102_s21 = sphi %s2147_s21, %s2632_s21   ;;  %s2098_s20 = sphi %s2145_s20, %s2631_s20   ;;  %s2094_s19 = sphi %s2143_s19, %s2630_s19   ;;  %s2090_s18 = sphi %s2141_s18, %s2629_s18   ;;  %s2086_s17 = sphi %s2139_s17, %s2628_s17   ;;  %s2082_s16 = sphi %s2137_s16, %s2627_s16   ;;  %s2078_s15 = sphi %s2135_s15, %s2626_s15   ;;  %s2074_s14 = sphi %s2133_s14, %s2625_s14   ;;  %s2070_s13 = sphi %s2131_s13, %s2624_s13   ;;  %s2066_s12 = sphi %s2129_s12, %s2623_s12  }
   0xa   : > { %p26_p0 = scmp.ge.s32.totalorder %s25_s24, 6  ;;  %s28_s25 = sadd.s32 1, %s2102_s21 }
   0xb   : > { %s41_s26 = sadd.s32 1, %s2086_s17  ;;  %p48_p1 = scmp.ne.s32.totalorder %s2086_s17, %s2082_s16 }
   0xc   : > { %s2634_s24 = smov (%p26_p0, %s25_s24), 0  ;;  %s2636_s25 = smov (!%p26_p0, %s28_s25), %s2102_s21 }
   0xd   : > { %s37_s27 = ssub.s32 %s2098_s20, %s2634_s24  ;;  %p49_p2 = scmp.eq.s32.totalorder %s2106_s22, 0 }
   0xe   : > { %p30_p3 = scmp.ge.s32.totalorder %s2636_s25, 2  ;;  %p39_p4 = scmp.eq.s32.totalorder %s37_s27, 0 }
   0xf   : > { %p2196_p5 = por %p49_p2, %p48_p1  ;;  %s69_s29 = sadd.s32 1, %s2078_s15 }
  0x10   : > { %s2638_s25 = smov (%p30_p3, %s2636_s25), 0  ;;  %p76_p6 = scmp.ne.s32.totalorder %s2078_s15, %s2074_s14 }
  0x11   : > { %2617 = sst [smem:[#allocation6_spill]] %s2638_s25  ;;  %s65_s4 = ssub.s32 %s2102_s21, %s2638_s25 }
  0x12   : > { %s2204_s30 = scalar_select %p39_p4, %s2086_s17, %s41_s26  }
  0x13   : > { %s66_s5 = sor.u32 %s65_s4, %s37_s27  ;;  %p121_p7 = scmp.eq.s32.totalorder %s65_s4, 0 }
  0x14   : > { %p67_p8 = scmp.eq.s32.totalorder %s66_s5, 0  ;;  %p2210_p9 = por %p76_p6, %p49_p2 }
  0x15   : > { %s123_s7 = sadd.s32 1, %s2070_s13  ;;  %p133_p10 = scmp.ne.s32.totalorder %s2070_s13, %s2066_s12 }
  0x16   : > { %s2218_s8 = scalar_select %p67_p8, %s2078_s15, %s69_s29  }
  0x17   : > { %s2221_s9 = scalar_select %p121_p7, %s2070_s13, %s123_s7  }
  0x18   : > { %p134_p11 = scmp.eq.s32.totalorder %s1647_s23, 11  ;;  %p1650_p13 = scmp.ge.s32.totalorder %s2106_s22, 12 }
  0x1a   : > { %p2223_p12 = por %p134_p11, %p133_p10  ;;  %156 = sbr.rel (%p1650_p13) target bundleno = 101 (0x65), region = 16 }
  0x1f   : > { %159 = sbr.rel (!%p2196_p5) target bundleno = 43 (0x2b), region = 20  ;;  %s161_s11 = sand.u32 (%p2196_p5), 1, %s2086_s17  }
  0x20   : > { %s1769_s26 = smul.u32 (%p2196_p5), 24, %s2098_s20  ;;  %s2620_s0 = sld [smem:[#allocation7_spill]] (%p2196_p5) }
  0x21   : > { %s1774_s27 = smul.u32 (%p2196_p5), 48, %s161_s11 }
  0x23   : > { %s163_s23 = scalar_lea.vmem (%p2196_p5), [#allocation3], %s1774_s27 }
  0x26   : > { %s169_s5 = scalar_lea.vmem %s2620_s0, %s1769_s26 }
  0x27   : > { %v182_v0 = vld [vmem:[%s169_s5] sm:$0xff]  ;;  %v184_v1 = vld [vmem:[%s169_s5 + $0x8] sm:$0xff]  ;;  %v186_v2 = vld [vmem:[%s169_s5 + $0x10] sm:$0xff] }
  0x28   : > { %183 = vst [vmem:[%s163_s23] sm:$0xff] %v182_v0  ;;  %185 = vst [vmem:[%s163_s23 + $0x8] sm:$0xff] %v184_v1  ;;  %v188_v3 = vld [vmem:[%s169_s5 + $0x90] sm:$0xff]  ;;  %v190_v4 = vld [vmem:[%s169_s5 + $0x98] sm:$0xff] }
  0x29   : > { %187 = vst [vmem:[%s163_s23 + $0x10] sm:$0xff] %v186_v2  ;;  %v192_v5 = vld [vmem:[%s169_s5 + $0xa0] sm:$0xff]  ;;  %189 = vst [vmem:[%s163_s23 + $0x18] sm:$0xff] %v188_v3 }
  0x2a   : > { %191 = vst [vmem:[%s163_s23 + $0x20] sm:$0xff] %v190_v4  ;;  %193 = vst [vmem:[%s163_s23 + $0x28] sm:$0xff] %v192_v5 }
  0x2b PF: > { %199 = sbr.rel (!%p2210_p9) target bundleno = 101 (0x65), region = 43  ;;  %s201_s28 = sand.u32 (%p2210_p9), 1, %s2078_s15  }
  0x2c   : > { %s1775_s7 = smul.u32 (%p2210_p9), 768, %s201_s28  ;;  %s1652_s11 = sshll.u32 (%p2210_p9), %s2102_s21, 1 }
  0x2d   : > { %s1770_s26 = smul.u32 (%p2210_p9), 384, %s2098_s20  ;;  %s2621_s1 = sld [smem:[#allocation8_spill]] (%p2210_p9) }
  0x2e   : > { %s2248_s6 = scalar_lea.vmem (%p2210_p9), [#allocation4], %s1775_s7 }
  0x2f   : > { %s207_s27 = sadd.s32 (%p2210_p9), %s1770_s26, %s1652_s11 }
  0x30   : > { %s1654_s29 = sshll.u32 %s207_s27, 2 }
  0x33   : > { %s2243_s5 = scalar_lea.vmem %s2621_s1, %s1654_s29 }
  0x34   : > { %v428_v6 = vld [vmem:[%s2243_s5] sm:$0xff]  ;;  %v430_v7 = vld [vmem:[%s2243_s5 + $0x10] sm:$0xff] }
  0x35   : > { %v432_v8 = vld [vmem:[%s2243_s5 + $0x20] sm:$0xff]  ;;  %429 = vst [vmem:[%s2248_s6] sm:$0xff] %v428_v6  ;;  %431 = vst [vmem:[%s2248_s6 + $0x8] sm:$0xff] %v430_v7  ;;  %v434_v9 = vld [vmem:[%s2243_s5 + $0x30] sm:$0xff] }
  0x36   : > { %433 = vst [vmem:[%s2248_s6 + $0x10] sm:$0xff] %v432_v8  ;;  %v436_v10 = vld [vmem:[%s2243_s5 + $0x40] sm:$0xff]  ;;  %v438_v11 = vld [vmem:[%s2243_s5 + $0x50] sm:$0xff]  ;;  %435 = vst [vmem:[%s2248_s6 + $0x18] sm:$0xff] %v434_v9 }
  0x37   : > { %437 = vst [vmem:[%s2248_s6 + $0x20] sm:$0xff] %v436_v10  ;;  %439 = vst [vmem:[%s2248_s6 + $0x28] sm:$0xff] %v438_v11  ;;  %v440_v12 = vld [vmem:[%s2243_s5 + $0x60] sm:$0xff]  ;;  %v442_v13 = vld [vmem:[%s2243_s5 + $0x70] sm:$0xff] }
  0x38   : > { %v444_v14 = vld [vmem:[%s2243_s5 + $0x80] sm:$0xff]  ;;  %441 = vst [vmem:[%s2248_s6 + $0x30] sm:$0xff] %v440_v12  ;;  %443 = vst [vmem:[%s2248_s6 + $0x38] sm:$0xff] %v442_v13  ;;  %v446_v15 = vld [vmem:[%s2243_s5 + $0x90] sm:$0xff] }
  0x39   : > { %445 = vst [vmem:[%s2248_s6 + $0x40] sm:$0xff] %v444_v14  ;;  %v448_v16 = vld [vmem:[%s2243_s5 + $0xa0] sm:$0xff]  ;;  %v450_v17 = vld [vmem:[%s2243_s5 + $0xb0] sm:$0xff]  ;;  %447 = vst [vmem:[%s2248_s6 + $0x48] sm:$0xff] %v446_v15 }
  0x3a   : > { %449 = vst [vmem:[%s2248_s6 + $0x50] sm:$0xff] %v448_v16  ;;  %451 = vst [vmem:[%s2248_s6 + $0x58] sm:$0xff] %v450_v17  ;;  %v452_v18 = vld [vmem:[%s2243_s5 + $0xc0] sm:$0xff]  ;;  %v454_v19 = vld [vmem:[%s2243_s5 + $0xd0] sm:$0xff] }
  0x3b   : > { %v456_v20 = vld [vmem:[%s2243_s5 + $0xe0] sm:$0xff]  ;;  %453 = vst [vmem:[%s2248_s6 + $0x60] sm:$0xff] %v452_v18  ;;  %455 = vst [vmem:[%s2248_s6 + $0x68] sm:$0xff] %v454_v19  ;;  %v458_v21 = vld [vmem:[%s2243_s5 + $0xf0] sm:$0xff] }
  0x3c   : > { %457 = vst [vmem:[%s2248_s6 + $0x70] sm:$0xff] %v456_v20  ;;  %v460_v22 = vld [vmem:[%s2243_s5 + $0x100] sm:$0xff]  ;;  %v462_v23 = vld [vmem:[%s2243_s5 + $0x110] sm:$0xff]  ;;  %459 = vst [vmem:[%s2248_s6 + $0x78] sm:$0xff] %v458_v21 }
  0x3d   : > { %461 = vst [vmem:[%s2248_s6 + $0x80] sm:$0xff] %v460_v22  ;;  %463 = vst [vmem:[%s2248_s6 + $0x88] sm:$0xff] %v462_v23  ;;  %v464_v24 = vld [vmem:[%s2243_s5 + $0x120] sm:$0xff]  ;;  %v466_v25 = vld [vmem:[%s2243_s5 + $0x130] sm:$0xff] }
  0x3e   : > { %v468_v26 = vld [vmem:[%s2243_s5 + $0x140] sm:$0xff]  ;;  %465 = vst [vmem:[%s2248_s6 + $0x90] sm:$0xff] %v464_v24  ;;  %467 = vst [vmem:[%s2248_s6 + $0x98] sm:$0xff] %v466_v25  ;;  %v470_v27 = vld [vmem:[%s2243_s5 + $0x150] sm:$0xff] }
  0x3f   : > { %469 = vst [vmem:[%s2248_s6 + $0xa0] sm:$0xff] %v468_v26  ;;  %v472_v28 = vld [vmem:[%s2243_s5 + $0x160] sm:$0xff]  ;;  %v474_v29 = vld [vmem:[%s2243_s5 + $0x170] sm:$0xff]  ;;  %471 = vst [vmem:[%s2248_s6 + $0xa8] sm:$0xff] %v470_v27 }
  0x40   : > { %473 = vst [vmem:[%s2248_s6 + $0xb0] sm:$0xff] %v472_v28  ;;  %475 = vst [vmem:[%s2248_s6 + $0xb8] sm:$0xff] %v474_v29  ;;  %v476_v30 = vld [vmem:[%s2243_s5 + $0x180] sm:$0xff]  ;;  %v478_v31 = vld [vmem:[%s2243_s5 + $0x190] sm:$0xff] }
  0x41   : > { %v480_v32 = vld [vmem:[%s2243_s5 + $0x1a0] sm:$0xff]  ;;  %477 = vst [vmem:[%s2248_s6 + $0xc0] sm:$0xff] %v476_v30  ;;  %479 = vst [vmem:[%s2248_s6 + $0xc8] sm:$0xff] %v478_v31  ;;  %v482_v33 = vld [vmem:[%s2243_s5 + $0x1b0] sm:$0xff] }
  0x42   : > { %481 = vst [vmem:[%s2248_s6 + $0xd0] sm:$0xff] %v480_v32  ;;  %v484_v34 = vld [vmem:[%s2243_s5 + $0x1c0] sm:$0xff]  ;;  %v486_v35 = vld [vmem:[%s2243_s5 + $0x1d0] sm:$0xff]  ;;  %483 = vst [vmem:[%s2248_s6 + $0xd8] sm:$0xff] %v482_v33 }
  0x43   : > { %485 = vst [vmem:[%s2248_s6 + $0xe0] sm:$0xff] %v484_v34  ;;  %487 = vst [vmem:[%s2248_s6 + $0xe8] sm:$0xff] %v486_v35  ;;  %v488_v36 = vld [vmem:[%s2243_s5 + $0x1e0] sm:$0xff]  ;;  %v490_v37 = vld [vmem:[%s2243_s5 + $0x1f0] sm:$0xff] }
  0x44   : > { %v492_v38 = vld [vmem:[%s2243_s5 + $0x200] sm:$0xff]  ;;  %489 = vst [vmem:[%s2248_s6 + $0xf0] sm:$0xff] %v488_v36  ;;  %491 = vst [vmem:[%s2248_s6 + $0xf8] sm:$0xff] %v490_v37  ;;  %v494_v39 = vld [vmem:[%s2243_s5 + $0x210] sm:$0xff] }
  0x45   : > { %493 = vst [vmem:[%s2248_s6 + $0x100] sm:$0xff] %v492_v38  ;;  %v496_v40 = vld [vmem:[%s2243_s5 + $0x220] sm:$0xff]  ;;  %v498_v41 = vld [vmem:[%s2243_s5 + $0x230] sm:$0xff]  ;;  %495 = vst [vmem:[%s2248_s6 + $0x108] sm:$0xff] %v494_v39 }
  0x46   : > { %497 = vst [vmem:[%s2248_s6 + $0x110] sm:$0xff] %v496_v40  ;;  %499 = vst [vmem:[%s2248_s6 + $0x118] sm:$0xff] %v498_v41  ;;  %v500_v42 = vld [vmem:[%s2243_s5 + $0x240] sm:$0xff]  ;;  %v502_v43 = vld [vmem:[%s2243_s5 + $0x250] sm:$0xff] }
  0x47   : > { %v504_v44 = vld [vmem:[%s2243_s5 + $0x260] sm:$0xff]  ;;  %501 = vst [vmem:[%s2248_s6 + $0x120] sm:$0xff] %v500_v42  ;;  %503 = vst [vmem:[%s2248_s6 + $0x128] sm:$0xff] %v502_v43  ;;  %v506_v45 = vld [vmem:[%s2243_s5 + $0x270] sm:$0xff] }
  0x48   : > { %505 = vst [vmem:[%s2248_s6 + $0x130] sm:$0xff] %v504_v44  ;;  %v508_v46 = vld [vmem:[%s2243_s5 + $0x280] sm:$0xff]  ;;  %v510_v47 = vld [vmem:[%s2243_s5 + $0x290] sm:$0xff]  ;;  %507 = vst [vmem:[%s2248_s6 + $0x138] sm:$0xff] %v506_v45 }
  0x49   : > { %509 = vst [vmem:[%s2248_s6 + $0x140] sm:$0xff] %v508_v46  ;;  %511 = vst [vmem:[%s2248_s6 + $0x148] sm:$0xff] %v510_v47  ;;  %v512_v48 = vld [vmem:[%s2243_s5 + $0x2a0] sm:$0xff]  ;;  %v514_v49 = vld [vmem:[%s2243_s5 + $0x2b0] sm:$0xff] }
  0x4a   : > { %v516_v50 = vld [vmem:[%s2243_s5 + $0x2c0] sm:$0xff]  ;;  %513 = vst [vmem:[%s2248_s6 + $0x150] sm:$0xff] %v512_v48  ;;  %515 = vst [vmem:[%s2248_s6 + $0x158] sm:$0xff] %v514_v49  ;;  %v518_v51 = vld [vmem:[%s2243_s5 + $0x2d0] sm:$0xff] }
  0x4b   : > { %517 = vst [vmem:[%s2248_s6 + $0x160] sm:$0xff] %v516_v50  ;;  %v520_v52 = vld [vmem:[%s2243_s5 + $0x2e0] sm:$0xff]  ;;  %v522_v53 = vld [vmem:[%s2243_s5 + $0x2f0] sm:$0xff]  ;;  %519 = vst [vmem:[%s2248_s6 + $0x168] sm:$0xff] %v518_v51 }
  0x4c   : > { %521 = vst [vmem:[%s2248_s6 + $0x170] sm:$0xff] %v520_v52  ;;  %523 = vst [vmem:[%s2248_s6 + $0x178] sm:$0xff] %v522_v53  ;;  %v524_v54 = vld [vmem:[%s2243_s5 + $0x300] sm:$0xff]  ;;  %v526_v55 = vld [vmem:[%s2243_s5 + $0x310] sm:$0xff] }
  0x4d   : > { %v528_v56 = vld [vmem:[%s2243_s5 + $0x320] sm:$0xff]  ;;  %525 = vst [vmem:[%s2248_s6 + $0x180] sm:$0xff] %v524_v54  ;;  %527 = vst [vmem:[%s2248_s6 + $0x188] sm:$0xff] %v526_v55  ;;  %v530_v57 = vld [vmem:[%s2243_s5 + $0x330] sm:$0xff] }
  0x4e   : > { %529 = vst [vmem:[%s2248_s6 + $0x190] sm:$0xff] %v528_v56  ;;  %v532_v58 = vld [vmem:[%s2243_s5 + $0x340] sm:$0xff]  ;;  %v534_v59 = vld [vmem:[%s2243_s5 + $0x350] sm:$0xff]  ;;  %531 = vst [vmem:[%s2248_s6 + $0x198] sm:$0xff] %v530_v57 }
  0x4f   : > { %533 = vst [vmem:[%s2248_s6 + $0x1a0] sm:$0xff] %v532_v58  ;;  %535 = vst [vmem:[%s2248_s6 + $0x1a8] sm:$0xff] %v534_v59  ;;  %v536_v60 = vld [vmem:[%s2243_s5 + $0x360] sm:$0xff]  ;;  %v538_v61 = vld [vmem:[%s2243_s5 + $0x370] sm:$0xff] }
  0x50   : > { %v540_v62 = vld [vmem:[%s2243_s5 + $0x380] sm:$0xff]  ;;  %537 = vst [vmem:[%s2248_s6 + $0x1b0] sm:$0xff] %v536_v60  ;;  %539 = vst [vmem:[%s2248_s6 + $0x1b8] sm:$0xff] %v538_v61  ;;  %v542_v63 = vld [vmem:[%s2243_s5 + $0x390] sm:$0xff] }
  0x51   : > { %541 = vst [vmem:[%s2248_s6 + $0x1c0] sm:$0xff] %v540_v62  ;;  %v544_v0 = vld [vmem:[%s2243_s5 + $0x3a0] sm:$0xff]  ;;  %v546_v1 = vld [vmem:[%s2243_s5 + $0x3b0] sm:$0xff]  ;;  %543 = vst [vmem:[%s2248_s6 + $0x1c8] sm:$0xff] %v542_v63 }
  0x52   : > { %545 = vst [vmem:[%s2248_s6 + $0x1d0] sm:$0xff] %v544_v0  ;;  %547 = vst [vmem:[%s2248_s6 + $0x1d8] sm:$0xff] %v546_v1  ;;  %v548_v2 = vld [vmem:[%s2243_s5 + $0x3c0] sm:$0xff]  ;;  %v550_v3 = vld [vmem:[%s2243_s5 + $0x3d0] sm:$0xff] }
  0x53   : > { %v552_v4 = vld [vmem:[%s2243_s5 + $0x3e0] sm:$0xff]  ;;  %549 = vst [vmem:[%s2248_s6 + $0x1e0] sm:$0xff] %v548_v2  ;;  %551 = vst [vmem:[%s2248_s6 + $0x1e8] sm:$0xff] %v550_v3  ;;  %v554_v5 = vld [vmem:[%s2243_s5 + $0x3f0] sm:$0xff] }
  0x54   : > { %553 = vst [vmem:[%s2248_s6 + $0x1f0] sm:$0xff] %v552_v4  ;;  %v556_v6 = vld [vmem:[%s2243_s5 + $0x400] sm:$0xff]  ;;  %v558_v7 = vld [vmem:[%s2243_s5 + $0x410] sm:$0xff]  ;;  %555 = vst [vmem:[%s2248_s6 + $0x1f8] sm:$0xff] %v554_v5 }
  0x55   : > { %557 = vst [vmem:[%s2248_s6 + $0x200] sm:$0xff] %v556_v6  ;;  %559 = vst [vmem:[%s2248_s6 + $0x208] sm:$0xff] %v558_v7  ;;  %v560_v8 = vld [vmem:[%s2243_s5 + $0x420] sm:$0xff]  ;;  %v562_v9 = vld [vmem:[%s2243_s5 + $0x430] sm:$0xff] }
  0x56   : > { %v564_v10 = vld [vmem:[%s2243_s5 + $0x440] sm:$0xff]  ;;  %561 = vst [vmem:[%s2248_s6 + $0x210] sm:$0xff] %v560_v8  ;;  %563 = vst [vmem:[%s2248_s6 + $0x218] sm:$0xff] %v562_v9  ;;  %v566_v11 = vld [vmem:[%s2243_s5 + $0x450] sm:$0xff] }
  0x57   : > { %565 = vst [vmem:[%s2248_s6 + $0x220] sm:$0xff] %v564_v10  ;;  %v568_v12 = vld [vmem:[%s2243_s5 + $0x460] sm:$0xff]  ;;  %v570_v13 = vld [vmem:[%s2243_s5 + $0x470] sm:$0xff]  ;;  %567 = vst [vmem:[%s2248_s6 + $0x228] sm:$0xff] %v566_v11 }
  0x58   : > { %569 = vst [vmem:[%s2248_s6 + $0x230] sm:$0xff] %v568_v12  ;;  %571 = vst [vmem:[%s2248_s6 + $0x238] sm:$0xff] %v570_v13  ;;  %v572_v14 = vld [vmem:[%s2243_s5 + $0x480] sm:$0xff]  ;;  %v574_v15 = vld [vmem:[%s2243_s5 + $0x490] sm:$0xff] }
  0x59   : > { %v576_v16 = vld [vmem:[%s2243_s5 + $0x4a0] sm:$0xff]  ;;  %573 = vst [vmem:[%s2248_s6 + $0x240] sm:$0xff] %v572_v14  ;;  %575 = vst [vmem:[%s2248_s6 + $0x248] sm:$0xff] %v574_v15  ;;  %v578_v17 = vld [vmem:[%s2243_s5 + $0x4b0] sm:$0xff] }
  0x5a   : > { %577 = vst [vmem:[%s2248_s6 + $0x250] sm:$0xff] %v576_v16  ;;  %v580_v18 = vld [vmem:[%s2243_s5 + $0x4c0] sm:$0xff]  ;;  %v582_v19 = vld [vmem:[%s2243_s5 + $0x4d0] sm:$0xff]  ;;  %579 = vst [vmem:[%s2248_s6 + $0x258] sm:$0xff] %v578_v17 }
  0x5b   : > { %581 = vst [vmem:[%s2248_s6 + $0x260] sm:$0xff] %v580_v18  ;;  %583 = vst [vmem:[%s2248_s6 + $0x268] sm:$0xff] %v582_v19  ;;  %v584_v20 = vld [vmem:[%s2243_s5 + $0x4e0] sm:$0xff]  ;;  %v586_v21 = vld [vmem:[%s2243_s5 + $0x4f0] sm:$0xff] }
  0x5c   : > { %v588_v22 = vld [vmem:[%s2243_s5 + $0x500] sm:$0xff]  ;;  %585 = vst [vmem:[%s2248_s6 + $0x270] sm:$0xff] %v584_v20  ;;  %587 = vst [vmem:[%s2248_s6 + $0x278] sm:$0xff] %v586_v21  ;;  %v590_v23 = vld [vmem:[%s2243_s5 + $0x510] sm:$0xff] }
  0x5d   : > { %589 = vst [vmem:[%s2248_s6 + $0x280] sm:$0xff] %v588_v22  ;;  %v592_v24 = vld [vmem:[%s2243_s5 + $0x520] sm:$0xff]  ;;  %v594_v25 = vld [vmem:[%s2243_s5 + $0x530] sm:$0xff]  ;;  %591 = vst [vmem:[%s2248_s6 + $0x288] sm:$0xff] %v590_v23 }
  0x5e   : > { %593 = vst [vmem:[%s2248_s6 + $0x290] sm:$0xff] %v592_v24  ;;  %595 = vst [vmem:[%s2248_s6 + $0x298] sm:$0xff] %v594_v25  ;;  %v596_v26 = vld [vmem:[%s2243_s5 + $0x540] sm:$0xff]  ;;  %v598_v27 = vld [vmem:[%s2243_s5 + $0x550] sm:$0xff] }
  0x5f   : > { %v600_v28 = vld [vmem:[%s2243_s5 + $0x560] sm:$0xff]  ;;  %597 = vst [vmem:[%s2248_s6 + $0x2a0] sm:$0xff] %v596_v26  ;;  %599 = vst [vmem:[%s2248_s6 + $0x2a8] sm:$0xff] %v598_v27  ;;  %v602_v29 = vld [vmem:[%s2243_s5 + $0x570] sm:$0xff] }
  0x60   : > { %601 = vst [vmem:[%s2248_s6 + $0x2b0] sm:$0xff] %v600_v28  ;;  %v604_v30 = vld [vmem:[%s2243_s5 + $0x580] sm:$0xff]  ;;  %v606_v31 = vld [vmem:[%s2243_s5 + $0x590] sm:$0xff]  ;;  %603 = vst [vmem:[%s2248_s6 + $0x2b8] sm:$0xff] %v602_v29 }
  0x61   : > { %605 = vst [vmem:[%s2248_s6 + $0x2c0] sm:$0xff] %v604_v30  ;;  %607 = vst [vmem:[%s2248_s6 + $0x2c8] sm:$0xff] %v606_v31  ;;  %v608_v32 = vld [vmem:[%s2243_s5 + $0x5a0] sm:$0xff]  ;;  %v610_v33 = vld [vmem:[%s2243_s5 + $0x5b0] sm:$0xff] }
  0x62   : > { %v612_v34 = vld [vmem:[%s2243_s5 + $0x5c0] sm:$0xff]  ;;  %609 = vst [vmem:[%s2248_s6 + $0x2d0] sm:$0xff] %v608_v32  ;;  %611 = vst [vmem:[%s2248_s6 + $0x2d8] sm:$0xff] %v610_v33  ;;  %v614_v35 = vld [vmem:[%s2243_s5 + $0x5d0] sm:$0xff] }
  0x63   : > { %613 = vst [vmem:[%s2248_s6 + $0x2e0] sm:$0xff] %v612_v34  ;;  %v616_v36 = vld [vmem:[%s2243_s5 + $0x5e0] sm:$0xff]  ;;  %v618_v37 = vld [vmem:[%s2243_s5 + $0x5f0] sm:$0xff]  ;;  %615 = vst [vmem:[%s2248_s6 + $0x2e8] sm:$0xff] %v614_v35 }
  0x64   : > { %617 = vst [vmem:[%s2248_s6 + $0x2f0] sm:$0xff] %v616_v36  ;;  %619 = vst [vmem:[%s2248_s6 + $0x2f8] sm:$0xff] %v618_v37 }
  0x65 PF: > { %p1655_p0 = scmp.ge.s32.totalorder %s2106_s22, 1  ;;  %p632_p1 = scmp.lt.s32.totalorder %s2106_s22, 13 }
  0x67   : > { %p633_p2 = pnand %p1655_p0, %p632_p1 }
  0x68   : > { %s639_s0 = sand.u32 (!%p633_p2), 1, %s2082_s16   ;;  %s646_s23 = sand.u32 (!%p633_p2), 1, %s2074_s14  }
  0x69   : > { %636 = sbr.rel (%p633_p2) target bundleno = 476 (0x1dc), region = 85  ;;  %s673_s7 = sand.u32 (!%p633_p2), 1, %s2066_s12  }
  0x6a   : > { %s1776_s28 = smul.u32 (!%p633_p2), 48, %s639_s0  ;;  %s1656_s26 = sshll.u32 (!%p633_p2), %s673_s7, 4 }
  0x6b   : > { %s1777_s11 = smul.u32 (!%p633_p2), 768, %s646_s23  ;;  %s1657_s27 = sshll.u32 (!%p633_p2), %s2094_s19, 1 }
  0x6c   : > { %p681_p3 = scmp.lt.s32.totalorder (!%p633_p2), %s1657_s27, 3  ;;  %s2451_s6 = scalar_lea.vmem (!%p633_p2), [#allocation3], %s1776_s28 }
  0x6d   : > { %s2453_s1 = scalar_lea.vmem (!%p633_p2), [#allocation4], %s1777_s11  ;;  %s2455_s25 = scalar_lea.vmem (!%p633_p2), [#allocation5], %s1656_s26 }
  0x6e   : > { %s2640_s27 = smov (!%p681_p3, %s1657_s27), 3  ;;  %p1658_p4 = scmp.ne.s32.totalorder %s2090_s18, 0 }
  0x6f   : > { %s683_s5 = scalar_lea.vmem %s2611_s2, %s2640_s27 }
  0x70   : > { %690 = sbr.rel (%p1658_p4) target bundleno = 120 (0x78), region = 97 }
  0x75   : > { %v2108_v38 = vmov 0.0  }
  0x76   : > { %691 = vst [vmem:[#allocation2 + $0x10] sm:$0xff] %v2108_v38  ;;  %692 = vst [vmem:[#allocation2] sm:$0xff] %v2108_v38 }
  0x77   : > { %693 = vst [vmem:[#allocation2 + $0x18] sm:$0xff] %v2108_v38  ;;  %694 = vst [vmem:[#allocation2 + $0x8] sm:$0xff] %v2108_v38 }
  0x78 PF: > { %v1867_v39 = vld [vmem:[%s2453_s1 + $0x74] ss:$8 sps:$4 sm:$0xff]   ;;  %v1871_v41 = vld [vmem:[%s2453_s1 + $0x70] ss:$8 sps:$4 sm:$0xff]   ;;  %v1873_v43 = vld [vmem:[%s2453_s1 + $0x64] ss:$8 sps:$4 sm:$0xff]  }
  0x79   : > { %v1869_v40 = vld [vmem:[%s2453_s1 + $0x174] ss:$8 sps:$4 sm:$0xff]   ;;  %1311 = vmatprep.subr.bf16.mxu0 %v1867_v39  ;;  %v1872_v42 = vld [vmem:[%s2453_s1 + $0x170] ss:$8 sps:$4 sm:$0xff]   ;;  %v1875_v44 = vld [vmem:[%s2453_s1 + $0x164] ss:$8 sps:$4 sm:$0xff]  }
  0x7a   : > { %1354 = vmatprep.subr.bf16.mxu1 %v1869_v40  ;;  %1312 = vmatpush1.bf16.msra.mxu0 %v1871_v41  ;;  %v1877_v45 = vld [vmem:[%s2453_s1 + $0x60] ss:$8 sps:$4 sm:$0xff]   ;;  %v1879_v47 = vld [vmem:[%s2453_s1 + $0x54] ss:$8 sps:$4 sm:$0xff]   ;;  %v1883_v49 = vld [vmem:[%s2453_s1 + $0x50] ss:$8 sps:$4 sm:$0xff]  }
  0x7b   : > { %1355 = vmatpush1.bf16.msra.mxu1 %v1872_v42  ;;  %1313 = vmatprep.subr.bf16.mxu0 %v1873_v43  ;;  %v1878_v46 = vld [vmem:[%s2453_s1 + $0x160] ss:$8 sps:$4 sm:$0xff]   ;;  %v1881_v48 = vld [vmem:[%s2453_s1 + $0x154] ss:$8 sps:$4 sm:$0xff]   ;;  %v1884_v50 = vld [vmem:[%s2453_s1 + $0x150] ss:$8 sps:$4 sm:$0xff]  }
  0x7c   : > { %1356 = vmatprep.subr.bf16.mxu1 %v1875_v44  ;;  %v1885_v51 = vld [vmem:[%s2453_s1 + $0x44] ss:$8 sps:$4 sm:$0xff]   ;;  %v1889_v53 = vld [vmem:[%s2453_s1 + $0x40] ss:$8 sps:$4 sm:$0xff]   ;;  %v1891_v55 = vld [vmem:[%s2453_s1 + $0x34] ss:$8 sps:$4 sm:$0xff]  }
  0x7d   : > { %v1887_v52 = vld [vmem:[%s2453_s1 + $0x144] ss:$8 sps:$4 sm:$0xff]   ;;  %v1890_v54 = vld [vmem:[%s2453_s1 + $0x140] ss:$8 sps:$4 sm:$0xff]   ;;  %v1893_v56 = vld [vmem:[%s2453_s1 + $0x134] ss:$8 sps:$4 sm:$0xff]  }
  0x7e   : > { %1314 = vmatpush1.bf16.msra.mxu0 %v1877_v45  ;;  %v1895_v57 = vld [vmem:[%s2453_s1 + $0x30] ss:$8 sps:$4 sm:$0xff]   ;;  %v1897_v59 = vld [vmem:[%s2453_s1 + $0x24] ss:$8 sps:$4 sm:$0xff]   ;;  %v1901_v61 = vld [vmem:[%s2453_s1 + $0x20] ss:$8 sps:$4 sm:$0xff]  }
  0x7f   : > { %1357 = vmatpush1.bf16.msra.mxu1 %v1878_v46  ;;  %1315 = vmatprep.subr.bf16.mxu0 %v1879_v47  ;;  %v1896_v58 = vld [vmem:[%s2453_s1 + $0x130] ss:$8 sps:$4 sm:$0xff]   ;;  %v1899_v60 = vld [vmem:[%s2453_s1 + $0x124] ss:$8 sps:$4 sm:$0xff]   ;;  %v1902_v62 = vld [vmem:[%s2453_s1 + $0x120] ss:$8 sps:$4 sm:$0xff]  }
  0x80   : > { %1358 = vmatprep.subr.bf16.mxu1 %v1881_v48  ;;  %v1903_v63 = vld [vmem:[%s2453_s1 + $0x14] ss:$8 sps:$4 sm:$0xff]   ;;  %v1907_v1 = vld [vmem:[%s2453_s1 + $0x10] ss:$8 sps:$4 sm:$0xff]   ;;  %v1909_v3 = vld [vmem:[%s2453_s1 + $0x4] ss:$8 sps:$4 sm:$0xff]  }
  0x81   : > { %v1905_v0 = vld [vmem:[%s2453_s1 + $0x114] ss:$8 sps:$4 sm:$0xff]   ;;  %v1908_v2 = vld [vmem:[%s2453_s1 + $0x110] ss:$8 sps:$4 sm:$0xff]   ;;  %v1911_v4 = vld [vmem:[%s2453_s1 + $0x104] ss:$8 sps:$4 sm:$0xff]  }
  0x82   : > { %1316 = vmatpush1.bf16.msra.mxu0 %v1883_v49  ;;  %v1913_v5 = vld [vmem:[%s2453_s1] ss:$8 sps:$4 sm:$0xff]   ;;  %v1915_v7 = vld [vmem:[%s2453_s1 + $0xf4] ss:$8 sps:$4 sm:$0xff]   ;;  %v1919_v9 = vld [vmem:[%s2453_s1 + $0xf0] ss:$8 sps:$4 sm:$0xff]  }
  0x83   : > { %1359 = vmatpush1.bf16.msra.mxu1 %v1884_v50  ;;  %1317 = vmatprep.subr.bf16.mxu0 %v1885_v51  ;;  %v1914_v6 = vld [vmem:[%s2453_s1 + $0x100] ss:$8 sps:$4 sm:$0xff]   ;;  %v1917_v8 = vld [vmem:[%s2453_s1 + $0x1f4] ss:$8 sps:$4 sm:$0xff]   ;;  %v1920_v10 = vld [vmem:[%s2453_s1 + $0x1f0] ss:$8 sps:$4 sm:$0xff]  }
  0x84   : > { %1360 = vmatprep.subr.bf16.mxu1 %v1887_v52  ;;  %v1921_v11 = vld [vmem:[%s2453_s1 + $0xe4] ss:$8 sps:$4 sm:$0xff]   ;;  %v1925_v13 = vld [vmem:[%s2453_s1 + $0xe0] ss:$8 sps:$4 sm:$0xff]   ;;  %v1927_v15 = vld [vmem:[%s2453_s1 + $0xd4] ss:$8 sps:$4 sm:$0xff]  }
  0x85   : > { %v1923_v12 = vld [vmem:[%s2453_s1 + $0x1e4] ss:$8 sps:$4 sm:$0xff]   ;;  %v1926_v14 = vld [vmem:[%s2453_s1 + $0x1e0] ss:$8 sps:$4 sm:$0xff]   ;;  %v1929_v16 = vld [vmem:[%s2453_s1 + $0x1d4] ss:$8 sps:$4 sm:$0xff]  }
  0x86   : > { %1318 = vmatpush1.bf16.msra.mxu0 %v1889_v53  ;;  %v1931_v17 = vld [vmem:[%s2453_s1 + $0xd0] ss:$8 sps:$4 sm:$0xff]   ;;  %v1933_v19 = vld [vmem:[%s2453_s1 + $0xc4] ss:$8 sps:$4 sm:$0xff]   ;;  %v1937_v21 = vld [vmem:[%s2453_s1 + $0xc0] ss:$8 sps:$4 sm:$0xff]  }
  0x87   : > { %1361 = vmatpush1.bf16.msra.mxu1 %v1890_v54  ;;  %1319 = vmatprep.subr.bf16.mxu0 %v1891_v55  ;;  %v1932_v18 = vld [vmem:[%s2453_s1 + $0x1d0] ss:$8 sps:$4 sm:$0xff]   ;;  %v1935_v20 = vld [vmem:[%s2453_s1 + $0x1c4] ss:$8 sps:$4 sm:$0xff]   ;;  %v1938_v22 = vld [vmem:[%s2453_s1 + $0x1c0] ss:$8 sps:$4 sm:$0xff]  }
  0x88   : > { %1362 = vmatprep.subr.bf16.mxu1 %v1893_v56  ;;  %v1939_v23 = vld [vmem:[%s2453_s1 + $0xb4] ss:$8 sps:$4 sm:$0xff]   ;;  %v1943_v27 = vld [vmem:[%s2453_s1 + $0xb0] ss:$8 sps:$4 sm:$0xff]   ;;  %v1945_v29 = vld [vmem:[%s2453_s1 + $0xa4] ss:$8 sps:$4 sm:$0xff]  }
  0x89   : > { %v1965_v24 = vld [vmem:[%s2451_s6 + $0x4] ss:$24 sps:$4 sm:$0xff]   ;;  %v1944_v28 = vld [vmem:[%s2453_s1 + $0x1b0] ss:$8 sps:$4 sm:$0xff]   ;;  %v1949_v31 = vld [vmem:[%s2453_s1 + $0xa0] ss:$8 sps:$4 sm:$0xff]  }
  0x8a   : > { %1320 = vmatpush1.bf16.msra.mxu0 %v1895_v57  ;;  %v1941_v25 = vld [vmem:[%s2453_s1 + $0x1b4] ss:$8 sps:$4 sm:$0xff]   ;;  %1343 = vmatprep.mubr.bf16.mxu0 %v1965_v24  ;;  %v1947_v30 = vld [vmem:[%s2453_s1 + $0x1a4] ss:$8 sps:$4 sm:$0xff]   ;;  %v1950_v32 = vld [vmem:[%s2453_s1 + $0x1a0] ss:$8 sps:$4 sm:$0xff]  }
  0x8b   : > { %1363 = vmatpush1.bf16.msra.mxu1 %v1896_v58  ;;  %1321 = vmatprep.subr.bf16.mxu0 %v1897_v59  ;;  %v1968_v26 = vld [vmem:[%s2451_s6 + $0xc] ss:$24 sps:$4 sm:$0xff]   ;;  %v1955_v35 = vld [vmem:[%s2453_s1 + $0x90] ss:$8 sps:$4 sm:$0xff]   ;;  %v1961_v39 = vld [vmem:[%s2453_s1 + $0x80] ss:$8 sps:$4 sm:$0xff]  }
  0x8c   : > { %1364 = vmatprep.subr.bf16.mxu1 %v1899_v60  ;;  %1386 = vmatprep.mubr.bf16.mxu1 %v1968_v26  ;;  %v1951_v33 = vld [vmem:[%s2453_s1 + $0x94] ss:$8 sps:$4 sm:$0xff]   ;;  %v1956_v36 = vld [vmem:[%s2453_s1 + $0x190] ss:$8 sps:$4 sm:$0xff]   ;;  %v1957_v37 = vld [vmem:[%s2453_s1 + $0x84] ss:$8 sps:$4 sm:$0xff]  }
  0x8d   : > { %v1953_v34 = vld [vmem:[%s2453_s1 + $0x194] ss:$8 sps:$4 sm:$0xff]   ;;  %v1959_v38 = vld [vmem:[%s2453_s1 + $0x184] ss:$8 sps:$4 sm:$0xff]   ;;  %v1962_v40 = vld [vmem:[%s2453_s1 + $0x180] ss:$8 sps:$4 sm:$0xff]  }
  0x8e   : > { %1322 = vmatpush1.bf16.msra.mxu0 %v1901_v61  ;;  %v1971_v41 = vld [vmem:[%s2453_s1 + $0x274] ss:$8 sps:$4 sm:$0xff]   ;;  %v1963_v42 = vld [vmem:[%s2451_s6] ss:$24 sps:$4 sm:$0xff]   ;;  %v1974_v45 = vld [vmem:[%s2453_s1 + $0x264] ss:$8 sps:$4 sm:$0xff]  }
  0x8f   : > { %1365 = vmatpush1.bf16.msra.mxu1 %v1902_v62  ;;  %1323 = vmatprep.subr.bf16.mxu0 %v1903_v63  ;;  %v1966_v43 = vld [vmem:[%s2451_s6 + $0x8] ss:$24 sps:$4 sm:$0xff]   ;;  %v2019_v46 = vld [vmem:[%s2451_s6 + $0x14] ss:$24 sps:$4 sm:$0xff]   ;;  %p1761_p5 = scmp.ne.s32.totalorder %s2090_s18, 5 }
  0x90   : > { %1366 = vmatprep.subr.bf16.mxu1 %v1905_v0  ;;  %v1969_v44 = vld [vmem:[%s2453_s1 + $0x270] ss:$8 sps:$4 sm:$0xff]   ;;  %v1972_v47 = vld [vmem:[%s2453_s1 + $0x260] ss:$8 sps:$4 sm:$0xff]   ;;  %v1977_v48 = vld [vmem:[%s2453_s1 + $0x254] ss:$8 sps:$4 sm:$0xff]  }
  0x91   : > { %v1975_v49 = vld [vmem:[%s2453_s1 + $0x250] ss:$8 sps:$4 sm:$0xff]   ;;  %v1980_v50 = vld [vmem:[%s2453_s1 + $0x244] ss:$8 sps:$4 sm:$0xff]   ;;  %v1978_v51 = vld [vmem:[%s2453_s1 + $0x240] ss:$8 sps:$4 sm:$0xff]  }
  0x92   : > { %1324 = vmatpush1.bf16.msra.mxu0 %v1907_v1  ;;  %v1983_v52 = vld [vmem:[%s2453_s1 + $0x234] ss:$8 sps:$4 sm:$0xff]   ;;  %v1981_v53 = vld [vmem:[%s2453_s1 + $0x230] ss:$8 sps:$4 sm:$0xff]   ;;  %v1986_v54 = vld [vmem:[%s2453_s1 + $0x224] ss:$8 sps:$4 sm:$0xff]  }
  0x93   : > { %1367 = vmatpush1.bf16.msra.mxu1 %v1908_v2  ;;  %1325 = vmatprep.subr.bf16.mxu0 %v1909_v3  ;;  %v1984_v55 = vld [vmem:[%s2453_s1 + $0x220] ss:$8 sps:$4 sm:$0xff]   ;;  %v1989_v56 = vld [vmem:[%s2453_s1 + $0x214] ss:$8 sps:$4 sm:$0xff]   ;;  %v1987_v57 = vld [vmem:[%s2453_s1 + $0x210] ss:$8 sps:$4 sm:$0xff]  }
  0x94   : > { %1368 = vmatprep.subr.bf16.mxu1 %v1911_v4  ;;  %v1992_v58 = vld [vmem:[%s2453_s1 + $0x204] ss:$8 sps:$4 sm:$0xff]   ;;  %v1990_v59 = vld [vmem:[%s2453_s1 + $0x200] ss:$8 sps:$4 sm:$0xff]   ;;  %v1995_v60 = vld [vmem:[%s2453_s1 + $0x2f4] ss:$8 sps:$4 sm:$0xff]  }
  0x95   : > { %v1993_v61 = vld [vmem:[%s2453_s1 + $0x2f0] ss:$8 sps:$4 sm:$0xff]   ;;  %v1998_v62 = vld [vmem:[%s2453_s1 + $0x2e4] ss:$8 sps:$4 sm:$0xff]   ;;  %v1996_v63 = vld [vmem:[%s2453_s1 + $0x2e0] ss:$8 sps:$4 sm:$0xff]  }
  0x96   : > { %1326 = vmatpush1.bf16.msra.mxu0 %v1913_v5  ;;  %v2001_v0 = vld [vmem:[%s2453_s1 + $0x2d4] ss:$8 sps:$4 sm:$0xff]   ;;  %v1999_v1 = vld [vmem:[%s2453_s1 + $0x2d0] ss:$8 sps:$4 sm:$0xff]   ;;  %v2004_v2 = vld [vmem:[%s2453_s1 + $0x2c4] ss:$8 sps:$4 sm:$0xff]  }
  0x97   : > { %1369 = vmatpush1.bf16.msra.mxu1 %v1914_v6  ;;  %1327 = vmatprep.subr.bf16.mxu0 %v1915_v7  ;;  %v2002_v3 = vld [vmem:[%s2453_s1 + $0x2c0] ss:$8 sps:$4 sm:$0xff]   ;;  %v2007_v4 = vld [vmem:[%s2453_s1 + $0x2b4] ss:$8 sps:$4 sm:$0xff]   ;;  %v2005_v5 = vld [vmem:[%s2453_s1 + $0x2b0] ss:$8 sps:$4 sm:$0xff]  }
  0x98   : > { %1370 = vmatprep.subr.bf16.mxu1 %v1917_v8  ;;  %v2010_v6 = vld [vmem:[%s2453_s1 + $0x2a4] ss:$8 sps:$4 sm:$0xff]   ;;  %v2008_v7 = vld [vmem:[%s2453_s1 + $0x2a0] ss:$8 sps:$4 sm:$0xff]   ;;  %v2013_v8 = vld [vmem:[%s2453_s1 + $0x294] ss:$8 sps:$4 sm:$0xff]  }
  0x99   : > { %v696_v26 = vld [vmem:[#allocation2] sm:$0xff] }
  0x9a   : > { %1328 = vmatpush2.bf16.msra.mxu0 %v1919_v9  ;;  %v2011_v9 = vld [vmem:[%s2453_s1 + $0x290] ss:$8 sps:$4 sm:$0xff]  }
  0x9b   : > { %1371 = vmatpush2.bf16.msra.mxu1 %v1920_v10  ;;  %1329 = vmatprep.subr.bf16.mxu0 %v1921_v11  ;;  %v2016_v10 = vld [vmem:[%s2453_s1 + $0x284] ss:$8 sps:$4 sm:$0xff]   ;;  %v2014_v11 = vld [vmem:[%s2453_s1 + $0x280] ss:$8 sps:$4 sm:$0xff]  }
  0x9c   : > { %1372 = vmatprep.subr.bf16.mxu1 %v1923_v12  ;;  %v2017_v12 = vld [vmem:[%s2451_s6 + $0x10] ss:$24 sps:$4 sm:$0xff]  }
  0x9e   : > { %1330 = vmatpush2.bf16.msra.mxu0 %v1925_v13 }
  0x9f   : > { %1373 = vmatpush2.bf16.msra.mxu1 %v1926_v14  ;;  %1331 = vmatprep.subr.bf16.mxu0 %v1927_v15 }
  0xa0   : > { %1374 = vmatprep.subr.bf16.mxu1 %v1929_v16 }
  0xa2   : > { %1332 = vmatpush2.bf16.msra.mxu0 %v1931_v17 }
  0xa3   : > { %1375 = vmatpush2.bf16.msra.mxu1 %v1932_v18  ;;  %1333 = vmatprep.subr.bf16.mxu0 %v1933_v19 }
  0xa4   : > { %1376 = vmatprep.subr.bf16.mxu1 %v1935_v20 }
  0xa6   : > { %1334 = vmatpush2.bf16.msra.mxu0 %v1937_v21  ;;  %v695_v21 = vld [vmem:[#allocation2 + $0x10] sm:$0xff] }
  0xa7   : > { %1377 = vmatpush2.bf16.msra.mxu1 %v1938_v22  ;;  %1335 = vmatprep.subr.bf16.mxu0 %v1939_v23 }
  0xa8   : > { %1378 = vmatprep.subr.bf16.mxu1 %v1941_v25 }
  0xaa   : > { %1336 = vmatpush2.bf16.msra.mxu0 %v1943_v27 }
  0xab   : > { %1379 = vmatpush2.bf16.msra.mxu1 %v1944_v28  ;;  %1337 = vmatprep.subr.bf16.mxu0 %v1945_v29 }
  0xac   : > { %1380 = vmatprep.subr.bf16.mxu1 %v1947_v30 }
  0xae   : > { %1338 = vmatpush2.bf16.msra.mxu0 %v1949_v31  ;;  %v697_v31 = vld [vmem:[#allocation2 + $0x18] sm:$0xff] }
  0xaf   : > { %1381 = vmatpush2.bf16.msra.mxu1 %v1950_v32  ;;  %1339 = vmatprep.subr.bf16.mxu0 %v1951_v33 }
  0xb0   : > { %1382 = vmatprep.subr.bf16.mxu1 %v1953_v34 }
  0xb2   : > { %1340 = vmatpush2.bf16.msra.mxu0 %v1955_v35 }
  0xb3   : > { %1383 = vmatpush2.bf16.msra.mxu1 %v1956_v36  ;;  %1341 = vmatprep.subr.bf16.mxu0 %v1957_v37  ;;  %v698_v36 = vld [vmem:[#allocation2 + $0x8] sm:$0xff] }
  0xb4   : > { %1384 = vmatprep.subr.bf16.mxu1 %v1959_v38 }
  0xb6   : > { %1342 = vmatpush2.bf16.msra.mxu0 %v1961_v39 }
  0xb7   : > { %1385 = vmatpush2.bf16.msra.mxu1 %v1962_v40  ;;  %1397 = vmatprep.subr.bf16.mxu0 %v1971_v41 }
  0xb9   : > { %1344 = vmatmul.mubr.bf16.vlgmr.msra.gmra.mxu0 %v1963_v42 }
  0xba   : > { %1387 = vmatmul.mubr.bf16.vlgmr.msra.gmra.mxu1 %v1966_v43  ;;  %1398 = vmatpush1.bf16.msra.mxu0 %v1969_v44 }
  0xbb   : > { %1399 = vmatprep.subr.bf16.mxu0 %v1974_v45  ;;  %1429 = vmatprep.mubr.bf16.mxu0 %v2019_v46 }
  0xbe   : > { %1400 = vmatpush1.bf16.msra.mxu0 %v1972_v47 }
  0xbf   : > { %1401 = vmatprep.subr.bf16.mxu0 %v1977_v48 }
  0xc2   : > { %1402 = vmatpush1.bf16.msra.mxu0 %v1975_v49 }
  0xc3   : > { %1403 = vmatprep.subr.bf16.mxu0 %v1980_v50 }
  0xc6   : > { %1404 = vmatpush1.bf16.msra.mxu0 %v1978_v51 }
  0xc7   : > { %1405 = vmatprep.subr.bf16.mxu0 %v1983_v52 }
  0xca   : > { %1406 = vmatpush1.bf16.msra.mxu0 %v1981_v53 }
  0xcb   : > { %1407 = vmatprep.subr.bf16.mxu0 %v1986_v54 }
  0xce   : > { %1408 = vmatpush1.bf16.msra.mxu0 %v1984_v55 }
  0xcf   : > { %1409 = vmatprep.subr.bf16.mxu0 %v1989_v56 }
  0xd2   : > { %1410 = vmatpush1.bf16.msra.mxu0 %v1987_v57 }
  0xd3   : > { %1411 = vmatprep.subr.bf16.mxu0 %v1992_v58 }
  0xd6   : > { %1412 = vmatpush1.bf16.msra.mxu0 %v1990_v59 }
  0xd7   : > { %1413 = vmatprep.subr.bf16.mxu0 %v1995_v60 }
  0xda   : > { %1414 = vmatpush2.bf16.msra.mxu0 %v1993_v61 }
  0xdb   : > { %1415 = vmatprep.subr.bf16.mxu0 %v1998_v62 }
  0xde   : > { %1416 = vmatpush2.bf16.msra.mxu0 %v1996_v63 }
  0xdf   : > { %1417 = vmatprep.subr.bf16.mxu0 %v2001_v0 }
  0xe2   : > { %1418 = vmatpush2.bf16.msra.mxu0 %v1999_v1 }
  0xe3   : > { %1419 = vmatprep.subr.bf16.mxu0 %v2004_v2 }
  0xe6   : > { %1420 = vmatpush2.bf16.msra.mxu0 %v2002_v3 }
  0xe7   : > { %1421 = vmatprep.subr.bf16.mxu0 %v2007_v4 }
  0xea   : > { %1422 = vmatpush2.bf16.msra.mxu0 %v2005_v5 }
  0xeb   : > { %1423 = vmatprep.subr.bf16.mxu0 %v2010_v6 }
  0xee   : > { %1424 = vmatpush2.bf16.msra.mxu0 %v2008_v7 }
  0xef   : > { %1425 = vmatprep.subr.bf16.mxu0 %v2013_v8 }
  0xf2   : > { %1426 = vmatpush2.bf16.msra.mxu0 %v2011_v9 }
  0xf3   : > { %1427 = vmatprep.subr.bf16.mxu0 %v2016_v10 }
  0xf6   : > { %1428 = vmatpush2.bf16.msra.mxu0 %v2014_v11 }
  0xf9   : > { %1430 = vmatmul.mubr.bf16.vlgmr.msra.gmra.mxu0 %v2017_v12 }
 0x179   : > { %v1345_v13 = vpop.f32.mrf.mxu0 }
 0x17a   : > { %v1388_v14 = vpop.f32.mrf.mxu1 }
 0x17b   : > { %v1347_v15 = vpop.f32.mrf.mxu0  ;;  %v1389_v20 = vadd.f32 %v1388_v14, %v1345_v13 }
 0x17c   : > { %v1390_v16 = vpop.f32.mrf.mxu1 }
 0x17d   : > { %v1349_v17 = vpop.f32.mrf.mxu0  ;;  %v1391_v23 = vadd.f32 %v1390_v16, %v1347_v15 }
 0x17e   : > { %v1392_v18 = vpop.f32.mrf.mxu1 }
 0x17f   : > { %v1351_v19 = vpop.f32.mrf.mxu0  ;;  %v1393_v28 = vadd.f32 %v1392_v18, %v1349_v17 }
 0x180   : > { %v1394_v25 = vpop.f32.mrf.mxu1 }
 0x181   : > { %v1395_v33 = vadd.f32 %v1394_v25, %v1351_v19 }
 0x1b9   : > { %v1431_v22 = vpop.f32.mrf.mxu0 }
 0x1ba   : > { %v1432_v24 = vadd.f32 %v1431_v22, %v1389_v20 }
 0x1bb   : > { %v1433_v27 = vpop.f32.mrf.mxu0 }
 0x1bc   : > { %v1440_v29 = vadd.f32 %v1432_v24, %v695_v21  ;;  %v1434_v30 = vadd.f32 %v1433_v27, %v1391_v23 }
 0x1bd   : > { %v1435_v32 = vpop.f32.mrf.mxu0 }
 0x1be   : > { %1444 = vst [vmem:[#allocation2 + $0x10] sm:$0xff] %v1440_v29  ;;  %v1441_v34 = vadd.f32 %v1434_v30, %v696_v26  ;;  %v1436_v35 = vadd.f32 %v1435_v32, %v1393_v28 }
 0x1bf   : > { %v1437_v37 = vpop.f32.mrf.mxu0 }
 0x1c0   : > { %1445 = vst [vmem:[#allocation2] sm:$0xff] %v1441_v34  ;;  %v1442_v38 = vadd.f32 %v1436_v35, %v697_v31  ;;  %v1438_v39 = vadd.f32 %v1437_v37, %v1395_v33  ;;  %1451 = sbr.rel (%p1761_p5) target bundleno = 468 (0x1d4), region = 101 }
 0x1c2   : > { %1446 = vst [vmem:[#allocation2 + $0x18] sm:$0xff] %v1442_v38  ;;  %v1443_v40 = vadd.f32 %v1438_v39, %v698_v36 }
 0x1c4   : > { %1447 = vst [vmem:[#allocation2 + $0x8] sm:$0xff] %v1443_v40 }
 0x1c5   : > { %v1458_v41 = vlaneseq  ;;  %v1456_v43 = vld [vmem:[%s683_s5] sm:$0x3]  ;;  %v1452_v44 = vld [vmem:[#allocation2 + $0x10] sm:$0xff] }
 0x1c7   : > { %v1459_v42 = vshrl.u32 %v1458_v41, 7  ;;  %v1453_v47 = vld [vmem:[#allocation2] sm:$0xff] }
 0x1c9   : > { %v1460_v45 = vsub.s32 0, %v1459_v42  ;;  %v1464_v46 = vsub.s32 1, %v1459_v42  ;;  %v1454_v48 = vld [vmem:[#allocation2 + $0x18] sm:$0xff] }
 0x1cb   : > { %v1455_v49 = vld [vmem:[#allocation2 + $0x8] sm:$0xff]  ;;  %v1461_v50 = vrot.slane %v1456_v43, %v1460_v45  ;;  %v1465_v51 = vrot.slane %v1456_v43, %v1464_v46 }
 0x1cd   : > { %v1468_v52 = vadd.f32 %v1461_v50, %v1452_v44  ;;  %v1469_v53 = vadd.f32 %v1465_v51, %v1453_v47  ;;  %v1470_v54 = vadd.f32 %v1461_v50, %v1454_v48  ;;  %v1471_v55 = vadd.f32 %v1465_v51, %v1455_v49 }
 0x1cf   : > { %v1472_v56 = vmax.f32 %v1468_v52, 0.0  ;;  %v1473_v57 = vmax.f32 %v1469_v53, 0.0  ;;  %v1474_v58 = vmax.f32 %v1470_v54, 0.0  ;;  %v1475_v59 = vmax.f32 %v1471_v55, 0.0 }
 0x1d1   : > { %v1771_v60 = vpack.c.bf16 %v1473_v57, %v1472_v56  ;;  %v1772_v61 = vpack.c.bf16 %v1475_v59, %v1474_v58 }
 0x1d3   : > { %1488 = vst [vmem:[%s2455_s25] sm:$0xff] %v1771_v60  ;;  %1489 = vst [vmem:[%s2455_s25 + $0x8] sm:$0xff] %v1772_v61 }
 0x1d4 PF: > { %1496 = sbr.rel (!%p2223_p12) target bundleno = 476 (0x1dc), region = 105  ;;  %s1773_s14 = sshll.u32 (%p2223_p12), %s2094_s19, 3 }
 0x1d5   : > { %s1502_s0 = scalar_lea.vmem (%p2223_p12), %s2612_s3, %s1773_s14 }
 0x1da   : > { %v1533_v62 = vld [vmem:[%s2455_s25] sm:$0xff]  ;;  %v1535_v63 = vld [vmem:[%s2455_s25 + $0x8] sm:$0xff] }
 0x1db   : > { %1534 = vst [vmem:[%s1502_s0] sm:$0xff] %v1533_v62  ;;  %1536 = vst [vmem:[%s1502_s0 + $0x10] sm:$0xff] %v1535_v63 }
 0x1dc PF: > { %s13_s22 = sadd.s32 1, %s2106_s22   ;;  %s2622_s25 = sld [smem:[#allocation6_spill]] }
 0x1dd   : > { %p10_p6 = scmp.ge.s32.totalorder %s13_s22, 14   ;;  %s2623_s12 = smov %s2070_s13 }
 0x1de   : > { %s2624_s13 = smov %s2221_s9  ;;  %s2625_s14 = smov %s2078_s15 }
 0x1df   : > { %s2626_s15 = smov %s2218_s8  ;;  %s2627_s16 = smov %s2086_s17 }
 0x1e0   : > { %s2628_s17 = smov %s2204_s30  ;;  %s2629_s18 = smov %s2098_s20 }
 0x1e1   : > { %s2630_s19 = smov %s2102_s21  ;;  %s2631_s20 = smov %s2634_s24 }
 0x1e2   : > { %s2632_s21 = smov %s2622_s25  ;;  %12 = sbr.rel (!%p10_p6) target bundleno = 9 (0x9), region = 185 }

// kernel: resnet18_transfer_forward.40
= control target key start
LH: loop header
LB: loop body
LE: loop exit
PB: predicated region body
PF: predicated region fallthrough
CT: control target
= control target key end

     0   :  { %s2769_s0 = inlined_call_operand.vmem [shape: bf16[16,4608], index: 0, kind: input, shape index: {}]   ;;  %s2770_s1 = inlined_call_operand.vmem [shape: bf16[4608,512], index: 1, kind: input, shape index: {}]   ;;  %s2771_s2 = inlined_call_operand.vmem [shape: f32[1,512], index: 2, kind: input, shape index: {}]   ;;  %s2772_s3 = inlined_call_operand.vmem [shape: bf16[16,512], index: 3, kind: input, shape index: {}]   ;;  %s2773_s4 = inlined_call_operand.vmem [shape: bf16[16,512], index: 4, kind: output, shape index: {}]  }
   0x1   :  { %2776 = sst [smem:[#allocation9_spill]] %s2769_s0 }
   0x2   :  { %s2264_s15 = smov 0   ;;  %s2266_s16 = smov 0  }
   0x3   :  { %s2268_s17 = smov 0   ;;  %s2270_s18 = smov 0  }
   0x4   :  { %s2272_s19 = smov 0   ;;  %s2274_s20 = smov 0  }
   0x5   :  { %s2276_s21 = smov 0   ;;  %s2278_s22 = smov 0  }
   0x6   :  { %s2280_s23 = smov 0   ;;  %s2282_s24 = smov 0  }
   0x7   :  { %s2284_s25 = smov 0  }
   0x8 LB: > { %s1772_s26 = sadd.s32 4294967295, %s2236_s25   ;;  %s26_s27 = sadd.s32 1, %s2228_s23  ;;  %s2236_s25 = sphi %s2284_s25, %s14_s25   ;;  %s2232_s24 = sphi %s2282_s24, %s2795_s24   ;;  %s2228_s23 = sphi %s2280_s23, %s2794_s23   ;;  %s2224_s22 = sphi %s2278_s22, %s2793_s22   ;;  %s2220_s21 = sphi %s2276_s21, %s2792_s21   ;;  %s2216_s20 = sphi %s2274_s20, %s2791_s20   ;;  %s2212_s19 = sphi %s2272_s19, %s2790_s19   ;;  %s2208_s18 = sphi %s2270_s18, %s2789_s18   ;;  %s2204_s17 = sphi %s2268_s17, %s2788_s17   ;;  %s2200_s16 = sphi %s2266_s16, %s2787_s16   ;;  %s2196_s15 = sphi %s2264_s15, %s2786_s15  }
   0x9   : > { %p27_p0 = scmp.ge.s32.totalorder %s26_s27, 6  ;;  %s29_s28 = sadd.s32 1, %s2232_s24 }
   0xa   : > { %s42_s29 = sadd.s32 1, %s2216_s20  ;;  %p49_p1 = scmp.ne.s32.totalorder %s2216_s20, %s2212_s19 }
   0xb   : > { %s2797_s27 = smov (%p27_p0, %s26_s27), 0  ;;  %s2799_s28 = smov (!%p27_p0, %s29_s28), %s2232_s24 }
   0xc   : > { %2777 = sst [smem:[#allocation7_spill]] %s2797_s27  ;;  %s38_s30 = ssub.s32 %s2228_s23, %s2797_s27 }
   0xd   : > { %p50_p2 = scmp.eq.s32.totalorder %s2236_s25, 0  ;;  %p31_p3 = scmp.ge.s32.totalorder %s2799_s28, 2 }
   0xe   : > { %p40_p4 = scmp.eq.s32.totalorder %s38_s30, 0  ;;  %s70_s6 = sadd.s32 1, %s2208_s18 }
   0xf   : > { %p2333_p5 = por %p50_p2, %p49_p1  ;;  %s2801_s28 = smov (%p31_p3, %s2799_s28), 0 }
  0x10   : > { %2779 = sst [smem:[#allocation8_spill]] %s2801_s28  ;;  %s66_s8 = ssub.s32 %s2232_s24, %s2801_s28 }
  0x11   : > { %s2341_s7 = scalar_select %p40_p4, %s2216_s20, %s42_s29  }
  0x12   : > { %p77_p6 = scmp.ne.s32.totalorder %s2208_s18, %s2204_s17  ;;  %s67_s9 = sor.u32 %s66_s8, %s38_s30 }
  0x13   : > { %p122_p7 = scmp.eq.s32.totalorder %s66_s8, 0  ;;  %p68_p8 = scmp.eq.s32.totalorder %s67_s9, 0 }
  0x14   : > { %p2349_p9 = por %p77_p6, %p50_p2  ;;  %s124_s11 = sadd.s32 1, %s2200_s16 }
  0x15   : > { %p131_p10 = scmp.ne.s32.totalorder %s2200_s16, %s2196_s15  ;;  %p163_p12 = scmp.eq.s32.totalorder %s1772_s26, 11 }
  0x16   : > { %s2357_s12 = scalar_select %p68_p8, %s2208_s18, %s70_s6  }
  0x17   : > { %s2360_s13 = scalar_select %p122_p7, %s2200_s16, %s124_s11  }
  0x18   : > { %p2364_p11 = por %p131_p10, %p50_p2  ;;  %p2368_p13 = por %p163_p12, %p131_p10 }
  0x19   : > { %p1775_p0 = scmp.ge.s32.totalorder %s2236_s25, 12 }
  0x1b   : > { %185 = sbr.rel (%p1775_p0) target bundleno = 105 (0x69), region = 16 }
  0x20   : > { %188 = sbr.rel (!%p2333_p5) target bundleno = 44 (0x2c), region = 20  ;;  %s190_s30 = sand.u32 (%p2333_p5), 1, %s2216_s20  }
  0x21   : > { %s1898_s6 = smul.u32 (%p2333_p5), 24, %s2228_s23  ;;  %s2783_s0 = sld [smem:[#allocation9_spill]] (%p2333_p5) }
  0x22   : > { %s1904_s8 = smul.u32 (%p2333_p5), 48, %s190_s30 }
  0x24   : > { %s192_s26 = scalar_lea.vmem (%p2333_p5), [#allocation3], %s1904_s8 }
  0x27   : > { %s198_s28 = scalar_lea.vmem %s2783_s0, %s1898_s6 }
  0x28   : > { %v211_v0 = vld [vmem:[%s198_s28] sm:$0xff]  ;;  %v213_v1 = vld [vmem:[%s198_s28 + $0x8] sm:$0xff]  ;;  %v215_v2 = vld [vmem:[%s198_s28 + $0x10] sm:$0xff] }
  0x29   : > { %212 = vst [vmem:[%s192_s26] sm:$0xff] %v211_v0  ;;  %214 = vst [vmem:[%s192_s26 + $0x8] sm:$0xff] %v213_v1  ;;  %v217_v3 = vld [vmem:[%s198_s28 + $0x90] sm:$0xff]  ;;  %v219_v4 = vld [vmem:[%s198_s28 + $0x98] sm:$0xff] }
  0x2a   : > { %216 = vst [vmem:[%s192_s26 + $0x10] sm:$0xff] %v215_v2  ;;  %v221_v5 = vld [vmem:[%s198_s28 + $0xa0] sm:$0xff]  ;;  %218 = vst [vmem:[%s192_s26 + $0x18] sm:$0xff] %v217_v3 }
  0x2b   : > { %220 = vst [vmem:[%s192_s26 + $0x20] sm:$0xff] %v219_v4  ;;  %222 = vst [vmem:[%s192_s26 + $0x28] sm:$0xff] %v221_v5 }
  0x2c PF: > { %228 = sbr.rel (!%p2349_p9) target bundleno = 100 (0x64), region = 43  ;;  %s230_s5 = sand.u32 (%p2349_p9), 1, %s2208_s18  }
  0x2d   : > { %s1905_s30 = smul.u32 (%p2349_p9), 768, %s230_s5  ;;  %s1777_s6 = sshll.u32 (%p2349_p9), %s2232_s24, 1 }
  0x2e   : > { %s1899_s8 = smul.u32 (%p2349_p9), 384, %s2228_s23 }
  0x2f   : > { %s2393_s10 = scalar_lea.vmem (%p2349_p9), [#allocation4], %s1905_s30 }
  0x30   : > { %s236_s9 = sadd.s32 (%p2349_p9), %s1899_s8, %s1777_s6 }
  0x31   : > { %s1779_s11 = sshll.u32 %s236_s9, 2 }
  0x32   : > { %s2388_s28 = scalar_lea.vmem %s2770_s1, %s1779_s11 }
  0x33   : > { %v457_v6 = vld [vmem:[%s2388_s28] sm:$0xff]  ;;  %v459_v7 = vld [vmem:[%s2388_s28 + $0x10] sm:$0xff] }
  0x34   : > { %v461_v8 = vld [vmem:[%s2388_s28 + $0x20] sm:$0xff]  ;;  %458 = vst [vmem:[%s2393_s10] sm:$0xff] %v457_v6  ;;  %460 = vst [vmem:[%s2393_s10 + $0x8] sm:$0xff] %v459_v7  ;;  %v463_v9 = vld [vmem:[%s2388_s28 + $0x30] sm:$0xff] }
  0x35   : > { %462 = vst [vmem:[%s2393_s10 + $0x10] sm:$0xff] %v461_v8  ;;  %v465_v10 = vld [vmem:[%s2388_s28 + $0x40] sm:$0xff]  ;;  %v467_v11 = vld [vmem:[%s2388_s28 + $0x50] sm:$0xff]  ;;  %464 = vst [vmem:[%s2393_s10 + $0x18] sm:$0xff] %v463_v9 }
  0x36   : > { %466 = vst [vmem:[%s2393_s10 + $0x20] sm:$0xff] %v465_v10  ;;  %468 = vst [vmem:[%s2393_s10 + $0x28] sm:$0xff] %v467_v11  ;;  %v469_v12 = vld [vmem:[%s2388_s28 + $0x60] sm:$0xff]  ;;  %v471_v13 = vld [vmem:[%s2388_s28 + $0x70] sm:$0xff] }
  0x37   : > { %v473_v14 = vld [vmem:[%s2388_s28 + $0x80] sm:$0xff]  ;;  %470 = vst [vmem:[%s2393_s10 + $0x30] sm:$0xff] %v469_v12  ;;  %472 = vst [vmem:[%s2393_s10 + $0x38] sm:$0xff] %v471_v13  ;;  %v475_v15 = vld [vmem:[%s2388_s28 + $0x90] sm:$0xff] }
  0x38   : > { %474 = vst [vmem:[%s2393_s10 + $0x40] sm:$0xff] %v473_v14  ;;  %v477_v16 = vld [vmem:[%s2388_s28 + $0xa0] sm:$0xff]  ;;  %v479_v17 = vld [vmem:[%s2388_s28 + $0xb0] sm:$0xff]  ;;  %476 = vst [vmem:[%s2393_s10 + $0x48] sm:$0xff] %v475_v15 }
  0x39   : > { %478 = vst [vmem:[%s2393_s10 + $0x50] sm:$0xff] %v477_v16  ;;  %480 = vst [vmem:[%s2393_s10 + $0x58] sm:$0xff] %v479_v17  ;;  %v481_v18 = vld [vmem:[%s2388_s28 + $0xc0] sm:$0xff]  ;;  %v483_v19 = vld [vmem:[%s2388_s28 + $0xd0] sm:$0xff] }
  0x3a   : > { %v485_v20 = vld [vmem:[%s2388_s28 + $0xe0] sm:$0xff]  ;;  %482 = vst [vmem:[%s2393_s10 + $0x60] sm:$0xff] %v481_v18  ;;  %484 = vst [vmem:[%s2393_s10 + $0x68] sm:$0xff] %v483_v19  ;;  %v487_v21 = vld [vmem:[%s2388_s28 + $0xf0] sm:$0xff] }
  0x3b   : > { %486 = vst [vmem:[%s2393_s10 + $0x70] sm:$0xff] %v485_v20  ;;  %v489_v22 = vld [vmem:[%s2388_s28 + $0x100] sm:$0xff]  ;;  %v491_v23 = vld [vmem:[%s2388_s28 + $0x110] sm:$0xff]  ;;  %488 = vst [vmem:[%s2393_s10 + $0x78] sm:$0xff] %v487_v21 }
  0x3c   : > { %490 = vst [vmem:[%s2393_s10 + $0x80] sm:$0xff] %v489_v22  ;;  %492 = vst [vmem:[%s2393_s10 + $0x88] sm:$0xff] %v491_v23  ;;  %v493_v24 = vld [vmem:[%s2388_s28 + $0x120] sm:$0xff]  ;;  %v495_v25 = vld [vmem:[%s2388_s28 + $0x130] sm:$0xff] }
  0x3d   : > { %v497_v26 = vld [vmem:[%s2388_s28 + $0x140] sm:$0xff]  ;;  %494 = vst [vmem:[%s2393_s10 + $0x90] sm:$0xff] %v493_v24  ;;  %496 = vst [vmem:[%s2393_s10 + $0x98] sm:$0xff] %v495_v25  ;;  %v499_v27 = vld [vmem:[%s2388_s28 + $0x150] sm:$0xff] }
  0x3e   : > { %498 = vst [vmem:[%s2393_s10 + $0xa0] sm:$0xff] %v497_v26  ;;  %v501_v28 = vld [vmem:[%s2388_s28 + $0x160] sm:$0xff]  ;;  %v503_v29 = vld [vmem:[%s2388_s28 + $0x170] sm:$0xff]  ;;  %500 = vst [vmem:[%s2393_s10 + $0xa8] sm:$0xff] %v499_v27 }
  0x3f   : > { %502 = vst [vmem:[%s2393_s10 + $0xb0] sm:$0xff] %v501_v28  ;;  %504 = vst [vmem:[%s2393_s10 + $0xb8] sm:$0xff] %v503_v29  ;;  %v505_v30 = vld [vmem:[%s2388_s28 + $0x180] sm:$0xff]  ;;  %v507_v31 = vld [vmem:[%s2388_s28 + $0x190] sm:$0xff] }
  0x40   : > { %v509_v32 = vld [vmem:[%s2388_s28 + $0x1a0] sm:$0xff]  ;;  %506 = vst [vmem:[%s2393_s10 + $0xc0] sm:$0xff] %v505_v30  ;;  %508 = vst [vmem:[%s2393_s10 + $0xc8] sm:$0xff] %v507_v31  ;;  %v511_v33 = vld [vmem:[%s2388_s28 + $0x1b0] sm:$0xff] }
  0x41   : > { %510 = vst [vmem:[%s2393_s10 + $0xd0] sm:$0xff] %v509_v32  ;;  %v513_v34 = vld [vmem:[%s2388_s28 + $0x1c0] sm:$0xff]  ;;  %v515_v35 = vld [vmem:[%s2388_s28 + $0x1d0] sm:$0xff]  ;;  %512 = vst [vmem:[%s2393_s10 + $0xd8] sm:$0xff] %v511_v33 }
  0x42   : > { %514 = vst [vmem:[%s2393_s10 + $0xe0] sm:$0xff] %v513_v34  ;;  %516 = vst [vmem:[%s2393_s10 + $0xe8] sm:$0xff] %v515_v35  ;;  %v517_v36 = vld [vmem:[%s2388_s28 + $0x1e0] sm:$0xff]  ;;  %v519_v37 = vld [vmem:[%s2388_s28 + $0x1f0] sm:$0xff] }
  0x43   : > { %v521_v38 = vld [vmem:[%s2388_s28 + $0x200] sm:$0xff]  ;;  %518 = vst [vmem:[%s2393_s10 + $0xf0] sm:$0xff] %v517_v36  ;;  %520 = vst [vmem:[%s2393_s10 + $0xf8] sm:$0xff] %v519_v37  ;;  %v523_v39 = vld [vmem:[%s2388_s28 + $0x210] sm:$0xff] }
  0x44   : > { %522 = vst [vmem:[%s2393_s10 + $0x100] sm:$0xff] %v521_v38  ;;  %v525_v40 = vld [vmem:[%s2388_s28 + $0x220] sm:$0xff]  ;;  %v527_v41 = vld [vmem:[%s2388_s28 + $0x230] sm:$0xff]  ;;  %524 = vst [vmem:[%s2393_s10 + $0x108] sm:$0xff] %v523_v39 }
  0x45   : > { %526 = vst [vmem:[%s2393_s10 + $0x110] sm:$0xff] %v525_v40  ;;  %528 = vst [vmem:[%s2393_s10 + $0x118] sm:$0xff] %v527_v41  ;;  %v529_v42 = vld [vmem:[%s2388_s28 + $0x240] sm:$0xff]  ;;  %v531_v43 = vld [vmem:[%s2388_s28 + $0x250] sm:$0xff] }
  0x46   : > { %v533_v44 = vld [vmem:[%s2388_s28 + $0x260] sm:$0xff]  ;;  %530 = vst [vmem:[%s2393_s10 + $0x120] sm:$0xff] %v529_v42  ;;  %532 = vst [vmem:[%s2393_s10 + $0x128] sm:$0xff] %v531_v43  ;;  %v535_v45 = vld [vmem:[%s2388_s28 + $0x270] sm:$0xff] }
  0x47   : > { %534 = vst [vmem:[%s2393_s10 + $0x130] sm:$0xff] %v533_v44  ;;  %v537_v46 = vld [vmem:[%s2388_s28 + $0x280] sm:$0xff]  ;;  %v539_v47 = vld [vmem:[%s2388_s28 + $0x290] sm:$0xff]  ;;  %536 = vst [vmem:[%s2393_s10 + $0x138] sm:$0xff] %v535_v45 }
  0x48   : > { %538 = vst [vmem:[%s2393_s10 + $0x140] sm:$0xff] %v537_v46  ;;  %540 = vst [vmem:[%s2393_s10 + $0x148] sm:$0xff] %v539_v47  ;;  %v541_v48 = vld [vmem:[%s2388_s28 + $0x2a0] sm:$0xff]  ;;  %v543_v49 = vld [vmem:[%s2388_s28 + $0x2b0] sm:$0xff] }
  0x49   : > { %v545_v50 = vld [vmem:[%s2388_s28 + $0x2c0] sm:$0xff]  ;;  %542 = vst [vmem:[%s2393_s10 + $0x150] sm:$0xff] %v541_v48  ;;  %544 = vst [vmem:[%s2393_s10 + $0x158] sm:$0xff] %v543_v49  ;;  %v547_v51 = vld [vmem:[%s2388_s28 + $0x2d0] sm:$0xff] }
  0x4a   : > { %546 = vst [vmem:[%s2393_s10 + $0x160] sm:$0xff] %v545_v50  ;;  %v549_v52 = vld [vmem:[%s2388_s28 + $0x2e0] sm:$0xff]  ;;  %v551_v53 = vld [vmem:[%s2388_s28 + $0x2f0] sm:$0xff]  ;;  %548 = vst [vmem:[%s2393_s10 + $0x168] sm:$0xff] %v547_v51 }
  0x4b   : > { %550 = vst [vmem:[%s2393_s10 + $0x170] sm:$0xff] %v549_v52  ;;  %552 = vst [vmem:[%s2393_s10 + $0x178] sm:$0xff] %v551_v53  ;;  %v553_v54 = vld [vmem:[%s2388_s28 + $0x300] sm:$0xff]  ;;  %v555_v55 = vld [vmem:[%s2388_s28 + $0x310] sm:$0xff] }
  0x4c   : > { %v557_v56 = vld [vmem:[%s2388_s28 + $0x320] sm:$0xff]  ;;  %554 = vst [vmem:[%s2393_s10 + $0x180] sm:$0xff] %v553_v54  ;;  %556 = vst [vmem:[%s2393_s10 + $0x188] sm:$0xff] %v555_v55  ;;  %v559_v57 = vld [vmem:[%s2388_s28 + $0x330] sm:$0xff] }
  0x4d   : > { %558 = vst [vmem:[%s2393_s10 + $0x190] sm:$0xff] %v557_v56  ;;  %v561_v58 = vld [vmem:[%s2388_s28 + $0x340] sm:$0xff]  ;;  %v563_v59 = vld [vmem:[%s2388_s28 + $0x350] sm:$0xff]  ;;  %560 = vst [vmem:[%s2393_s10 + $0x198] sm:$0xff] %v559_v57 }
  0x4e   : > { %562 = vst [vmem:[%s2393_s10 + $0x1a0] sm:$0xff] %v561_v58  ;;  %564 = vst [vmem:[%s2393_s10 + $0x1a8] sm:$0xff] %v563_v59  ;;  %v565_v60 = vld [vmem:[%s2388_s28 + $0x360] sm:$0xff]  ;;  %v567_v61 = vld [vmem:[%s2388_s28 + $0x370] sm:$0xff] }
  0x4f   : > { %v569_v62 = vld [vmem:[%s2388_s28 + $0x380] sm:$0xff]  ;;  %566 = vst [vmem:[%s2393_s10 + $0x1b0] sm:$0xff] %v565_v60  ;;  %568 = vst [vmem:[%s2393_s10 + $0x1b8] sm:$0xff] %v567_v61  ;;  %v571_v63 = vld [vmem:[%s2388_s28 + $0x390] sm:$0xff] }
  0x50   : > { %570 = vst [vmem:[%s2393_s10 + $0x1c0] sm:$0xff] %v569_v62  ;;  %v573_v0 = vld [vmem:[%s2388_s28 + $0x3a0] sm:$0xff]  ;;  %v575_v1 = vld [vmem:[%s2388_s28 + $0x3b0] sm:$0xff]  ;;  %572 = vst [vmem:[%s2393_s10 + $0x1c8] sm:$0xff] %v571_v63 }
  0x51   : > { %574 = vst [vmem:[%s2393_s10 + $0x1d0] sm:$0xff] %v573_v0  ;;  %576 = vst [vmem:[%s2393_s10 + $0x1d8] sm:$0xff] %v575_v1  ;;  %v577_v2 = vld [vmem:[%s2388_s28 + $0x3c0] sm:$0xff]  ;;  %v579_v3 = vld [vmem:[%s2388_s28 + $0x3d0] sm:$0xff] }
  0x52   : > { %v581_v4 = vld [vmem:[%s2388_s28 + $0x3e0] sm:$0xff]  ;;  %578 = vst [vmem:[%s2393_s10 + $0x1e0] sm:$0xff] %v577_v2  ;;  %580 = vst [vmem:[%s2393_s10 + $0x1e8] sm:$0xff] %v579_v3  ;;  %v583_v5 = vld [vmem:[%s2388_s28 + $0x3f0] sm:$0xff] }
  0x53   : > { %582 = vst [vmem:[%s2393_s10 + $0x1f0] sm:$0xff] %v581_v4  ;;  %v585_v6 = vld [vmem:[%s2388_s28 + $0x400] sm:$0xff]  ;;  %v587_v7 = vld [vmem:[%s2388_s28 + $0x410] sm:$0xff]  ;;  %584 = vst [vmem:[%s2393_s10 + $0x1f8] sm:$0xff] %v583_v5 }
  0x54   : > { %586 = vst [vmem:[%s2393_s10 + $0x200] sm:$0xff] %v585_v6  ;;  %588 = vst [vmem:[%s2393_s10 + $0x208] sm:$0xff] %v587_v7  ;;  %v589_v8 = vld [vmem:[%s2388_s28 + $0x420] sm:$0xff]  ;;  %v591_v9 = vld [vmem:[%s2388_s28 + $0x430] sm:$0xff] }
  0x55   : > { %v593_v10 = vld [vmem:[%s2388_s28 + $0x440] sm:$0xff]  ;;  %590 = vst [vmem:[%s2393_s10 + $0x210] sm:$0xff] %v589_v8  ;;  %592 = vst [vmem:[%s2393_s10 + $0x218] sm:$0xff] %v591_v9  ;;  %v595_v11 = vld [vmem:[%s2388_s28 + $0x450] sm:$0xff] }
  0x56   : > { %594 = vst [vmem:[%s2393_s10 + $0x220] sm:$0xff] %v593_v10  ;;  %v597_v12 = vld [vmem:[%s2388_s28 + $0x460] sm:$0xff]  ;;  %v599_v13 = vld [vmem:[%s2388_s28 + $0x470] sm:$0xff]  ;;  %596 = vst [vmem:[%s2393_s10 + $0x228] sm:$0xff] %v595_v11 }
  0x57   : > { %598 = vst [vmem:[%s2393_s10 + $0x230] sm:$0xff] %v597_v12  ;;  %600 = vst [vmem:[%s2393_s10 + $0x238] sm:$0xff] %v599_v13  ;;  %v601_v14 = vld [vmem:[%s2388_s28 + $0x480] sm:$0xff]  ;;  %v603_v15 = vld [vmem:[%s2388_s28 + $0x490] sm:$0xff] }
  0x58   : > { %v605_v16 = vld [vmem:[%s2388_s28 + $0x4a0] sm:$0xff]  ;;  %602 = vst [vmem:[%s2393_s10 + $0x240] sm:$0xff] %v601_v14  ;;  %604 = vst [vmem:[%s2393_s10 + $0x248] sm:$0xff] %v603_v15  ;;  %v607_v17 = vld [vmem:[%s2388_s28 + $0x4b0] sm:$0xff] }
  0x59   : > { %606 = vst [vmem:[%s2393_s10 + $0x250] sm:$0xff] %v605_v16  ;;  %v609_v18 = vld [vmem:[%s2388_s28 + $0x4c0] sm:$0xff]  ;;  %v611_v19 = vld [vmem:[%s2388_s28 + $0x4d0] sm:$0xff]  ;;  %608 = vst [vmem:[%s2393_s10 + $0x258] sm:$0xff] %v607_v17 }
  0x5a   : > { %610 = vst [vmem:[%s2393_s10 + $0x260] sm:$0xff] %v609_v18  ;;  %612 = vst [vmem:[%s2393_s10 + $0x268] sm:$0xff] %v611_v19  ;;  %v613_v20 = vld [vmem:[%s2388_s28 + $0x4e0] sm:$0xff]  ;;  %v615_v21 = vld [vmem:[%s2388_s28 + $0x4f0] sm:$0xff] }
  0x5b   : > { %v617_v22 = vld [vmem:[%s2388_s28 + $0x500] sm:$0xff]  ;;  %614 = vst [vmem:[%s2393_s10 + $0x270] sm:$0xff] %v613_v20  ;;  %616 = vst [vmem:[%s2393_s10 + $0x278] sm:$0xff] %v615_v21  ;;  %v619_v23 = vld [vmem:[%s2388_s28 + $0x510] sm:$0xff] }
  0x5c   : > { %618 = vst [vmem:[%s2393_s10 + $0x280] sm:$0xff] %v617_v22  ;;  %v621_v24 = vld [vmem:[%s2388_s28 + $0x520] sm:$0xff]  ;;  %v623_v25 = vld [vmem:[%s2388_s28 + $0x530] sm:$0xff]  ;;  %620 = vst [vmem:[%s2393_s10 + $0x288] sm:$0xff] %v619_v23 }
  0x5d   : > { %622 = vst [vmem:[%s2393_s10 + $0x290] sm:$0xff] %v621_v24  ;;  %624 = vst [vmem:[%s2393_s10 + $0x298] sm:$0xff] %v623_v25  ;;  %v625_v26 = vld [vmem:[%s2388_s28 + $0x540] sm:$0xff]  ;;  %v627_v27 = vld [vmem:[%s2388_s28 + $0x550] sm:$0xff] }
  0x5e   : > { %v629_v28 = vld [vmem:[%s2388_s28 + $0x560] sm:$0xff]  ;;  %626 = vst [vmem:[%s2393_s10 + $0x2a0] sm:$0xff] %v625_v26  ;;  %628 = vst [vmem:[%s2393_s10 + $0x2a8] sm:$0xff] %v627_v27  ;;  %v631_v29 = vld [vmem:[%s2388_s28 + $0x570] sm:$0xff] }
  0x5f   : > { %630 = vst [vmem:[%s2393_s10 + $0x2b0] sm:$0xff] %v629_v28  ;;  %v633_v30 = vld [vmem:[%s2388_s28 + $0x580] sm:$0xff]  ;;  %v635_v31 = vld [vmem:[%s2388_s28 + $0x590] sm:$0xff]  ;;  %632 = vst [vmem:[%s2393_s10 + $0x2b8] sm:$0xff] %v631_v29 }
  0x60   : > { %634 = vst [vmem:[%s2393_s10 + $0x2c0] sm:$0xff] %v633_v30  ;;  %636 = vst [vmem:[%s2393_s10 + $0x2c8] sm:$0xff] %v635_v31  ;;  %v637_v32 = vld [vmem:[%s2388_s28 + $0x5a0] sm:$0xff]  ;;  %v639_v33 = vld [vmem:[%s2388_s28 + $0x5b0] sm:$0xff] }
  0x61   : > { %v641_v34 = vld [vmem:[%s2388_s28 + $0x5c0] sm:$0xff]  ;;  %638 = vst [vmem:[%s2393_s10 + $0x2d0] sm:$0xff] %v637_v32  ;;  %640 = vst [vmem:[%s2393_s10 + $0x2d8] sm:$0xff] %v639_v33  ;;  %v643_v35 = vld [vmem:[%s2388_s28 + $0x5d0] sm:$0xff] }
  0x62   : > { %642 = vst [vmem:[%s2393_s10 + $0x2e0] sm:$0xff] %v641_v34  ;;  %v645_v36 = vld [vmem:[%s2388_s28 + $0x5e0] sm:$0xff]  ;;  %v647_v37 = vld [vmem:[%s2388_s28 + $0x5f0] sm:$0xff]  ;;  %644 = vst [vmem:[%s2393_s10 + $0x2e8] sm:$0xff] %v643_v35 }
  0x63   : > { %646 = vst [vmem:[%s2393_s10 + $0x2f0] sm:$0xff] %v645_v36  ;;  %648 = vst [vmem:[%s2393_s10 + $0x2f8] sm:$0xff] %v647_v37 }
  0x64 PF: > { %662 = sbr.rel (!%p2364_p11) target bundleno = 105 (0x69), region = 85  ;;  %s664_s0 = sand.u32 (%p2364_p11), 1, %s2200_s16  }
  0x65   : > { %s1900_s27 = sshll.u32 (%p2364_p11), %s2232_s24, 3  ;;  %s1780_s26 = sshll.u32 (%p2364_p11), %s664_s0, 4 }
  0x66   : > { %s672_s6 = scalar_lea.vmem (%p2364_p11), %s2772_s3, %s1900_s27  ;;  %s666_s8 = scalar_lea.vmem (%p2364_p11), [#allocation5], %s1780_s26 }
  0x67   : > { %v703_v38 = vld [vmem:[%s672_s6] sm:$0xff] (%p2364_p11)  ;;  %v705_v39 = vld [vmem:[%s672_s6 + $0x10] sm:$0xff] (%p2364_p11) }
  0x68   : > { %704 = vst [vmem:[%s666_s8] sm:$0xff] (%p2364_p11), %v703_v38  ;;  %706 = vst [vmem:[%s666_s8 + $0x8] sm:$0xff] (%p2364_p11), %v705_v39 }
  0x69 PF: > { %p1783_p1 = scmp.ge.s32.totalorder %s2236_s25, 1  ;;  %p711_p2 = scmp.lt.s32.totalorder %s2236_s25, 13 }
  0x6b   : > { %p712_p3 = pnand %p1783_p1, %p711_p2 }
  0x6c   : > { %s718_s14 = sand.u32 (!%p712_p3), 1, %s2212_s19   ;;  %s725_s9 = sand.u32 (!%p712_p3), 1, %s2204_s17  }
  0x6d   : > { %715 = sbr.rel (%p712_p3) target bundleno = 483 (0x1e3), region = 123  ;;  %s732_s28 = sand.u32 (!%p712_p3), 1, %s2196_s15  }
  0x6e   : > { %s1906_s11 = smul.u32 (!%p712_p3), 48, %s718_s14  ;;  %s2596_s0 = sshll.u32 (!%p712_p3), %s732_s28, 4 }
  0x6f   : > { %s1907_s10 = smul.u32 (!%p712_p3), 768, %s725_s9  ;;  %s1786_s27 = sshll.u32 (!%p712_p3), %s2224_s22, 1 }
  0x70   : > { %p773_p4 = scmp.lt.s32.totalorder (!%p712_p3), %s1786_s27, 3  ;;  %s2605_s6 = scalar_lea.vmem (!%p712_p3), [#allocation3], %s1906_s11 }
  0x71   : > { %s2607_s19 = scalar_lea.vmem (!%p712_p3), [#allocation4], %s1907_s10  ;;  %s734_s17 = scalar_lea.vmem (!%p712_p3), [#allocation5], %s2596_s0 }
  0x72   : > { %s2803_s27 = smov (!%p773_p4, %s1786_s27), 3  ;;  %s2611_s15 = scalar_lea.vmem [#allocation6], %s2596_s0 }
  0x73   : > { %s775_s30 = scalar_lea.vmem %s2771_s2, %s2803_s27  ;;  %p1787_p5 = scmp.ne.s32.totalorder %s2220_s21, 0 }
  0x75   : > { %784 = sbr.rel (%p1787_p5) target bundleno = 125 (0x7d), region = 139 }
  0x7a   : > { %v2238_v40 = vmov 0.0  }
  0x7b   : > { %785 = vst [vmem:[#allocation2 + $0x10] sm:$0xff] %v2238_v40  ;;  %786 = vst [vmem:[#allocation2] sm:$0xff] %v2238_v40 }
  0x7c   : > { %787 = vst [vmem:[#allocation2 + $0x18] sm:$0xff] %v2238_v40  ;;  %788 = vst [vmem:[#allocation2 + $0x8] sm:$0xff] %v2238_v40 }
  0x7d PF: > { %v1997_v41 = vld [vmem:[%s2607_s19 + $0x74] ss:$8 sps:$4 sm:$0xff]   ;;  %v2001_v43 = vld [vmem:[%s2607_s19 + $0x70] ss:$8 sps:$4 sm:$0xff]   ;;  %v2003_v45 = vld [vmem:[%s2607_s19 + $0x64] ss:$8 sps:$4 sm:$0xff]  }
  0x7e   : > { %v1999_v42 = vld [vmem:[%s2607_s19 + $0x174] ss:$8 sps:$4 sm:$0xff]   ;;  %1405 = vmatprep.subr.bf16.mxu0 %v1997_v41  ;;  %v2002_v44 = vld [vmem:[%s2607_s19 + $0x170] ss:$8 sps:$4 sm:$0xff]   ;;  %v2005_v46 = vld [vmem:[%s2607_s19 + $0x164] ss:$8 sps:$4 sm:$0xff]  }
  0x7f   : > { %1448 = vmatprep.subr.bf16.mxu1 %v1999_v42  ;;  %1406 = vmatpush1.bf16.msra.mxu0 %v2001_v43  ;;  %v2007_v47 = vld [vmem:[%s2607_s19 + $0x60] ss:$8 sps:$4 sm:$0xff]   ;;  %v2009_v49 = vld [vmem:[%s2607_s19 + $0x54] ss:$8 sps:$4 sm:$0xff]   ;;  %v2013_v51 = vld [vmem:[%s2607_s19 + $0x50] ss:$8 sps:$4 sm:$0xff]  }
  0x80   : > { %1449 = vmatpush1.bf16.msra.mxu1 %v2002_v44  ;;  %1407 = vmatprep.subr.bf16.mxu0 %v2003_v45  ;;  %v2008_v48 = vld [vmem:[%s2607_s19 + $0x160] ss:$8 sps:$4 sm:$0xff]   ;;  %v2011_v50 = vld [vmem:[%s2607_s19 + $0x154] ss:$8 sps:$4 sm:$0xff]   ;;  %v2014_v52 = vld [vmem:[%s2607_s19 + $0x150] ss:$8 sps:$4 sm:$0xff]  }
  0x81   : > { %1450 = vmatprep.subr.bf16.mxu1 %v2005_v46  ;;  %v2015_v53 = vld [vmem:[%s2607_s19 + $0x44] ss:$8 sps:$4 sm:$0xff]   ;;  %v2019_v55 = vld [vmem:[%s2607_s19 + $0x40] ss:$8 sps:$4 sm:$0xff]   ;;  %v2021_v57 = vld [vmem:[%s2607_s19 + $0x34] ss:$8 sps:$4 sm:$0xff]  }
  0x82   : > { %v2017_v54 = vld [vmem:[%s2607_s19 + $0x144] ss:$8 sps:$4 sm:$0xff]   ;;  %v2020_v56 = vld [vmem:[%s2607_s19 + $0x140] ss:$8 sps:$4 sm:$0xff]   ;;  %v2023_v58 = vld [vmem:[%s2607_s19 + $0x134] ss:$8 sps:$4 sm:$0xff]  }
  0x83   : > { %1408 = vmatpush1.bf16.msra.mxu0 %v2007_v47  ;;  %v2025_v59 = vld [vmem:[%s2607_s19 + $0x30] ss:$8 sps:$4 sm:$0xff]   ;;  %v2027_v61 = vld [vmem:[%s2607_s19 + $0x24] ss:$8 sps:$4 sm:$0xff]   ;;  %v2031_v63 = vld [vmem:[%s2607_s19 + $0x20] ss:$8 sps:$4 sm:$0xff]  }
  0x84   : > { %1451 = vmatpush1.bf16.msra.mxu1 %v2008_v48  ;;  %1409 = vmatprep.subr.bf16.mxu0 %v2009_v49  ;;  %v2026_v60 = vld [vmem:[%s2607_s19 + $0x130] ss:$8 sps:$4 sm:$0xff]   ;;  %v2029_v62 = vld [vmem:[%s2607_s19 + $0x124] ss:$8 sps:$4 sm:$0xff]   ;;  %v2032_v0 = vld [vmem:[%s2607_s19 + $0x120] ss:$8 sps:$4 sm:$0xff]  }
  0x85   : > { %1452 = vmatprep.subr.bf16.mxu1 %v2011_v50  ;;  %v2033_v1 = vld [vmem:[%s2607_s19 + $0x14] ss:$8 sps:$4 sm:$0xff]   ;;  %v2037_v3 = vld [vmem:[%s2607_s19 + $0x10] ss:$8 sps:$4 sm:$0xff]   ;;  %v2039_v5 = vld [vmem:[%s2607_s19 + $0x4] ss:$8 sps:$4 sm:$0xff]  }
  0x86   : > { %v2035_v2 = vld [vmem:[%s2607_s19 + $0x114] ss:$8 sps:$4 sm:$0xff]   ;;  %v2038_v4 = vld [vmem:[%s2607_s19 + $0x110] ss:$8 sps:$4 sm:$0xff]   ;;  %v2041_v6 = vld [vmem:[%s2607_s19 + $0x104] ss:$8 sps:$4 sm:$0xff]  }
  0x87   : > { %1410 = vmatpush1.bf16.msra.mxu0 %v2013_v51  ;;  %v2043_v7 = vld [vmem:[%s2607_s19] ss:$8 sps:$4 sm:$0xff]   ;;  %v2045_v9 = vld [vmem:[%s2607_s19 + $0xf4] ss:$8 sps:$4 sm:$0xff]   ;;  %v2049_v11 = vld [vmem:[%s2607_s19 + $0xf0] ss:$8 sps:$4 sm:$0xff]  }
  0x88   : > { %1453 = vmatpush1.bf16.msra.mxu1 %v2014_v52  ;;  %1411 = vmatprep.subr.bf16.mxu0 %v2015_v53  ;;  %v2044_v8 = vld [vmem:[%s2607_s19 + $0x100] ss:$8 sps:$4 sm:$0xff]   ;;  %v2047_v10 = vld [vmem:[%s2607_s19 + $0x1f4] ss:$8 sps:$4 sm:$0xff]   ;;  %v2050_v12 = vld [vmem:[%s2607_s19 + $0x1f0] ss:$8 sps:$4 sm:$0xff]  }
  0x89   : > { %1454 = vmatprep.subr.bf16.mxu1 %v2017_v54  ;;  %v2051_v13 = vld [vmem:[%s2607_s19 + $0xe4] ss:$8 sps:$4 sm:$0xff]   ;;  %v2055_v15 = vld [vmem:[%s2607_s19 + $0xe0] ss:$8 sps:$4 sm:$0xff]   ;;  %v2057_v17 = vld [vmem:[%s2607_s19 + $0xd4] ss:$8 sps:$4 sm:$0xff]  }
  0x8a   : > { %v2053_v14 = vld [vmem:[%s2607_s19 + $0x1e4] ss:$8 sps:$4 sm:$0xff]   ;;  %v2056_v16 = vld [vmem:[%s2607_s19 + $0x1e0] ss:$8 sps:$4 sm:$0xff]   ;;  %v2059_v18 = vld [vmem:[%s2607_s19 + $0x1d4] ss:$8 sps:$4 sm:$0xff]  }
  0x8b   : > { %1412 = vmatpush1.bf16.msra.mxu0 %v2019_v55  ;;  %v2061_v19 = vld [vmem:[%s2607_s19 + $0xd0] ss:$8 sps:$4 sm:$0xff]   ;;  %v2063_v21 = vld [vmem:[%s2607_s19 + $0xc4] ss:$8 sps:$4 sm:$0xff]   ;;  %v2067_v23 = vld [vmem:[%s2607_s19 + $0xc0] ss:$8 sps:$4 sm:$0xff]  }
  0x8c   : > { %1455 = vmatpush1.bf16.msra.mxu1 %v2020_v56  ;;  %1413 = vmatprep.subr.bf16.mxu0 %v2021_v57  ;;  %v2062_v20 = vld [vmem:[%s2607_s19 + $0x1d0] ss:$8 sps:$4 sm:$0xff]   ;;  %v2065_v22 = vld [vmem:[%s2607_s19 + $0x1c4] ss:$8 sps:$4 sm:$0xff]   ;;  %v2068_v24 = vld [vmem:[%s2607_s19 + $0x1c0] ss:$8 sps:$4 sm:$0xff]  }
  0x8d   : > { %1456 = vmatprep.subr.bf16.mxu1 %v2023_v58  ;;  %v2069_v25 = vld [vmem:[%s2607_s19 + $0xb4] ss:$8 sps:$4 sm:$0xff]   ;;  %v2073_v29 = vld [vmem:[%s2607_s19 + $0xb0] ss:$8 sps:$4 sm:$0xff]   ;;  %v2075_v31 = vld [vmem:[%s2607_s19 + $0xa4] ss:$8 sps:$4 sm:$0xff]  }
  0x8e   : > { %v2095_v26 = vld [vmem:[%s2605_s6 + $0x4] ss:$24 sps:$4 sm:$0xff]   ;;  %v2074_v30 = vld [vmem:[%s2607_s19 + $0x1b0] ss:$8 sps:$4 sm:$0xff]   ;;  %v2079_v33 = vld [vmem:[%s2607_s19 + $0xa0] ss:$8 sps:$4 sm:$0xff]  }
  0x8f   : > { %1414 = vmatpush1.bf16.msra.mxu0 %v2025_v59  ;;  %v2071_v27 = vld [vmem:[%s2607_s19 + $0x1b4] ss:$8 sps:$4 sm:$0xff]   ;;  %1437 = vmatprep.mubr.bf16.mxu0 %v2095_v26  ;;  %v2077_v32 = vld [vmem:[%s2607_s19 + $0x1a4] ss:$8 sps:$4 sm:$0xff]   ;;  %v2080_v34 = vld [vmem:[%s2607_s19 + $0x1a0] ss:$8 sps:$4 sm:$0xff]  }
  0x90   : > { %1457 = vmatpush1.bf16.msra.mxu1 %v2026_v60  ;;  %1415 = vmatprep.subr.bf16.mxu0 %v2027_v61  ;;  %v2098_v28 = vld [vmem:[%s2605_s6 + $0xc] ss:$24 sps:$4 sm:$0xff]   ;;  %v2085_v37 = vld [vmem:[%s2607_s19 + $0x90] ss:$8 sps:$4 sm:$0xff]   ;;  %v2091_v41 = vld [vmem:[%s2607_s19 + $0x80] ss:$8 sps:$4 sm:$0xff]  }
  0x91   : > { %1458 = vmatprep.subr.bf16.mxu1 %v2029_v62  ;;  %1480 = vmatprep.mubr.bf16.mxu1 %v2098_v28  ;;  %v2081_v35 = vld [vmem:[%s2607_s19 + $0x94] ss:$8 sps:$4 sm:$0xff]   ;;  %v2086_v38 = vld [vmem:[%s2607_s19 + $0x190] ss:$8 sps:$4 sm:$0xff]   ;;  %v2087_v39 = vld [vmem:[%s2607_s19 + $0x84] ss:$8 sps:$4 sm:$0xff]  }
  0x92   : > { %v2083_v36 = vld [vmem:[%s2607_s19 + $0x194] ss:$8 sps:$4 sm:$0xff]   ;;  %v2089_v40 = vld [vmem:[%s2607_s19 + $0x184] ss:$8 sps:$4 sm:$0xff]   ;;  %v2092_v42 = vld [vmem:[%s2607_s19 + $0x180] ss:$8 sps:$4 sm:$0xff]  }
  0x93   : > { %1416 = vmatpush1.bf16.msra.mxu0 %v2031_v63  ;;  %v2101_v43 = vld [vmem:[%s2607_s19 + $0x274] ss:$8 sps:$4 sm:$0xff]   ;;  %v2093_v44 = vld [vmem:[%s2605_s6] ss:$24 sps:$4 sm:$0xff]   ;;  %v2104_v47 = vld [vmem:[%s2607_s19 + $0x264] ss:$8 sps:$4 sm:$0xff]  }
  0x94   : > { %1459 = vmatpush1.bf16.msra.mxu1 %v2032_v0  ;;  %1417 = vmatprep.subr.bf16.mxu0 %v2033_v1  ;;  %v2096_v45 = vld [vmem:[%s2605_s6 + $0x8] ss:$24 sps:$4 sm:$0xff]   ;;  %v2149_v48 = vld [vmem:[%s2605_s6 + $0x14] ss:$24 sps:$4 sm:$0xff]   ;;  %p1890_p6 = scmp.ne.s32.totalorder %s2220_s21, 5 }
  0x95   : > { %1460 = vmatprep.subr.bf16.mxu1 %v2035_v2  ;;  %v2099_v46 = vld [vmem:[%s2607_s19 + $0x270] ss:$8 sps:$4 sm:$0xff]   ;;  %v2102_v49 = vld [vmem:[%s2607_s19 + $0x260] ss:$8 sps:$4 sm:$0xff]   ;;  %v2107_v50 = vld [vmem:[%s2607_s19 + $0x254] ss:$8 sps:$4 sm:$0xff]  }
  0x96   : > { %v2105_v51 = vld [vmem:[%s2607_s19 + $0x250] ss:$8 sps:$4 sm:$0xff]   ;;  %v2110_v52 = vld [vmem:[%s2607_s19 + $0x244] ss:$8 sps:$4 sm:$0xff]   ;;  %v2108_v53 = vld [vmem:[%s2607_s19 + $0x240] ss:$8 sps:$4 sm:$0xff]  }
  0x97   : > { %1418 = vmatpush1.bf16.msra.mxu0 %v2037_v3  ;;  %v2113_v54 = vld [vmem:[%s2607_s19 + $0x234] ss:$8 sps:$4 sm:$0xff]   ;;  %v2111_v55 = vld [vmem:[%s2607_s19 + $0x230] ss:$8 sps:$4 sm:$0xff]   ;;  %v2116_v56 = vld [vmem:[%s2607_s19 + $0x224] ss:$8 sps:$4 sm:$0xff]  }
  0x98   : > { %1461 = vmatpush1.bf16.msra.mxu1 %v2038_v4  ;;  %1419 = vmatprep.subr.bf16.mxu0 %v2039_v5  ;;  %v2114_v57 = vld [vmem:[%s2607_s19 + $0x220] ss:$8 sps:$4 sm:$0xff]   ;;  %v2119_v58 = vld [vmem:[%s2607_s19 + $0x214] ss:$8 sps:$4 sm:$0xff]   ;;  %v2117_v59 = vld [vmem:[%s2607_s19 + $0x210] ss:$8 sps:$4 sm:$0xff]  }
  0x99   : > { %1462 = vmatprep.subr.bf16.mxu1 %v2041_v6  ;;  %v2122_v60 = vld [vmem:[%s2607_s19 + $0x204] ss:$8 sps:$4 sm:$0xff]   ;;  %v2120_v61 = vld [vmem:[%s2607_s19 + $0x200] ss:$8 sps:$4 sm:$0xff]   ;;  %v2125_v62 = vld [vmem:[%s2607_s19 + $0x2f4] ss:$8 sps:$4 sm:$0xff]  }
  0x9a   : > { %v2123_v63 = vld [vmem:[%s2607_s19 + $0x2f0] ss:$8 sps:$4 sm:$0xff]   ;;  %v2128_v0 = vld [vmem:[%s2607_s19 + $0x2e4] ss:$8 sps:$4 sm:$0xff]   ;;  %v2126_v1 = vld [vmem:[%s2607_s19 + $0x2e0] ss:$8 sps:$4 sm:$0xff]  }
  0x9b   : > { %1420 = vmatpush1.bf16.msra.mxu0 %v2043_v7  ;;  %v2131_v2 = vld [vmem:[%s2607_s19 + $0x2d4] ss:$8 sps:$4 sm:$0xff]   ;;  %v2129_v3 = vld [vmem:[%s2607_s19 + $0x2d0] ss:$8 sps:$4 sm:$0xff]   ;;  %v2134_v4 = vld [vmem:[%s2607_s19 + $0x2c4] ss:$8 sps:$4 sm:$0xff]  }
  0x9c   : > { %1463 = vmatpush1.bf16.msra.mxu1 %v2044_v8  ;;  %1421 = vmatprep.subr.bf16.mxu0 %v2045_v9  ;;  %v2132_v5 = vld [vmem:[%s2607_s19 + $0x2c0] ss:$8 sps:$4 sm:$0xff]   ;;  %v2137_v6 = vld [vmem:[%s2607_s19 + $0x2b4] ss:$8 sps:$4 sm:$0xff]   ;;  %v2135_v7 = vld [vmem:[%s2607_s19 + $0x2b0] ss:$8 sps:$4 sm:$0xff]  }
  0x9d   : > { %1464 = vmatprep.subr.bf16.mxu1 %v2047_v10  ;;  %v2140_v8 = vld [vmem:[%s2607_s19 + $0x2a4] ss:$8 sps:$4 sm:$0xff]   ;;  %v2138_v9 = vld [vmem:[%s2607_s19 + $0x2a0] ss:$8 sps:$4 sm:$0xff]   ;;  %v2143_v10 = vld [vmem:[%s2607_s19 + $0x294] ss:$8 sps:$4 sm:$0xff]  }
  0x9e   : > { %v790_v28 = vld [vmem:[#allocation2] sm:$0xff] }
  0x9f   : > { %1422 = vmatpush2.bf16.msra.mxu0 %v2049_v11  ;;  %v2141_v11 = vld [vmem:[%s2607_s19 + $0x290] ss:$8 sps:$4 sm:$0xff]  }
  0xa0   : > { %1465 = vmatpush2.bf16.msra.mxu1 %v2050_v12  ;;  %1423 = vmatprep.subr.bf16.mxu0 %v2051_v13  ;;  %v2146_v12 = vld [vmem:[%s2607_s19 + $0x284] ss:$8 sps:$4 sm:$0xff]   ;;  %v2144_v13 = vld [vmem:[%s2607_s19 + $0x280] ss:$8 sps:$4 sm:$0xff]  }
  0xa1   : > { %1466 = vmatprep.subr.bf16.mxu1 %v2053_v14  ;;  %v2147_v14 = vld [vmem:[%s2605_s6 + $0x10] ss:$24 sps:$4 sm:$0xff]  }
  0xa3   : > { %1424 = vmatpush2.bf16.msra.mxu0 %v2055_v15 }
  0xa4   : > { %1467 = vmatpush2.bf16.msra.mxu1 %v2056_v16  ;;  %1425 = vmatprep.subr.bf16.mxu0 %v2057_v17 }
  0xa5   : > { %1468 = vmatprep.subr.bf16.mxu1 %v2059_v18 }
  0xa7   : > { %1426 = vmatpush2.bf16.msra.mxu0 %v2061_v19 }
  0xa8   : > { %1469 = vmatpush2.bf16.msra.mxu1 %v2062_v20  ;;  %1427 = vmatprep.subr.bf16.mxu0 %v2063_v21 }
  0xa9   : > { %1470 = vmatprep.subr.bf16.mxu1 %v2065_v22 }
  0xab   : > { %1428 = vmatpush2.bf16.msra.mxu0 %v2067_v23  ;;  %v789_v23 = vld [vmem:[#allocation2 + $0x10] sm:$0xff] }
  0xac   : > { %1471 = vmatpush2.bf16.msra.mxu1 %v2068_v24  ;;  %1429 = vmatprep.subr.bf16.mxu0 %v2069_v25 }
  0xad   : > { %1472 = vmatprep.subr.bf16.mxu1 %v2071_v27 }
  0xaf   : > { %1430 = vmatpush2.bf16.msra.mxu0 %v2073_v29 }
  0xb0   : > { %1473 = vmatpush2.bf16.msra.mxu1 %v2074_v30  ;;  %1431 = vmatprep.subr.bf16.mxu0 %v2075_v31 }
  0xb1   : > { %1474 = vmatprep.subr.bf16.mxu1 %v2077_v32 }
  0xb3   : > { %1432 = vmatpush2.bf16.msra.mxu0 %v2079_v33  ;;  %v791_v33 = vld [vmem:[#allocation2 + $0x18] sm:$0xff] }
  0xb4   : > { %1475 = vmatpush2.bf16.msra.mxu1 %v2080_v34  ;;  %1433 = vmatprep.subr.bf16.mxu0 %v2081_v35 }
  0xb5   : > { %1476 = vmatprep.subr.bf16.mxu1 %v2083_v36 }
  0xb7   : > { %1434 = vmatpush2.bf16.msra.mxu0 %v2085_v37 }
  0xb8   : > { %1477 = vmatpush2.bf16.msra.mxu1 %v2086_v38  ;;  %1435 = vmatprep.subr.bf16.mxu0 %v2087_v39  ;;  %v792_v38 = vld [vmem:[#allocation2 + $0x8] sm:$0xff] }
  0xb9   : > { %1478 = vmatprep.subr.bf16.mxu1 %v2089_v40 }
  0xbb   : > { %1436 = vmatpush2.bf16.msra.mxu0 %v2091_v41 }
  0xbc   : > { %1479 = vmatpush2.bf16.msra.mxu1 %v2092_v42  ;;  %1491 = vmatprep.subr.bf16.mxu0 %v2101_v43 }
  0xbe   : > { %1438 = vmatmul.mubr.bf16.vlgmr.msra.gmra.mxu0 %v2093_v44 }
  0xbf   : > { %1481 = vmatmul.mubr.bf16.vlgmr.msra.gmra.mxu1 %v2096_v45  ;;  %1492 = vmatpush1.bf16.msra.mxu0 %v2099_v46 }
  0xc0   : > { %1493 = vmatprep.subr.bf16.mxu0 %v2104_v47  ;;  %1523 = vmatprep.mubr.bf16.mxu0 %v2149_v48 }
  0xc3   : > { %1494 = vmatpush1.bf16.msra.mxu0 %v2102_v49 }
  0xc4   : > { %1495 = vmatprep.subr.bf16.mxu0 %v2107_v50 }
  0xc7   : > { %1496 = vmatpush1.bf16.msra.mxu0 %v2105_v51 }
  0xc8   : > { %1497 = vmatprep.subr.bf16.mxu0 %v2110_v52 }
  0xcb   : > { %1498 = vmatpush1.bf16.msra.mxu0 %v2108_v53 }
  0xcc   : > { %1499 = vmatprep.subr.bf16.mxu0 %v2113_v54 }
  0xcf   : > { %1500 = vmatpush1.bf16.msra.mxu0 %v2111_v55 }
  0xd0   : > { %1501 = vmatprep.subr.bf16.mxu0 %v2116_v56 }
  0xd3   : > { %1502 = vmatpush1.bf16.msra.mxu0 %v2114_v57 }
  0xd4   : > { %1503 = vmatprep.subr.bf16.mxu0 %v2119_v58 }
  0xd7   : > { %1504 = vmatpush1.bf16.msra.mxu0 %v2117_v59 }
  0xd8   : > { %1505 = vmatprep.subr.bf16.mxu0 %v2122_v60 }
  0xdb   : > { %1506 = vmatpush1.bf16.msra.mxu0 %v2120_v61 }
  0xdc   : > { %1507 = vmatprep.subr.bf16.mxu0 %v2125_v62 }
  0xdf   : > { %1508 = vmatpush2.bf16.msra.mxu0 %v2123_v63 }
  0xe0   : > { %1509 = vmatprep.subr.bf16.mxu0 %v2128_v0 }
  0xe3   : > { %1510 = vmatpush2.bf16.msra.mxu0 %v2126_v1 }
  0xe4   : > { %1511 = vmatprep.subr.bf16.mxu0 %v2131_v2 }
  0xe7   : > { %1512 = vmatpush2.bf16.msra.mxu0 %v2129_v3 }
  0xe8   : > { %1513 = vmatprep.subr.bf16.mxu0 %v2134_v4 }
  0xeb   : > { %1514 = vmatpush2.bf16.msra.mxu0 %v2132_v5 }
  0xec   : > { %1515 = vmatprep.subr.bf16.mxu0 %v2137_v6 }
  0xef   : > { %1516 = vmatpush2.bf16.msra.mxu0 %v2135_v7 }
  0xf0   : > { %1517 = vmatprep.subr.bf16.mxu0 %v2140_v8 }
  0xf3   : > { %1518 = vmatpush2.bf16.msra.mxu0 %v2138_v9 }
  0xf4   : > { %1519 = vmatprep.subr.bf16.mxu0 %v2143_v10 }
  0xf7   : > { %1520 = vmatpush2.bf16.msra.mxu0 %v2141_v11 }
  0xf8   : > { %1521 = vmatprep.subr.bf16.mxu0 %v2146_v12 }
  0xfb   : > { %1522 = vmatpush2.bf16.msra.mxu0 %v2144_v13 }
  0xfe   : > { %1524 = vmatmul.mubr.bf16.vlgmr.msra.gmra.mxu0 %v2147_v14 }
 0x17e   : > { %v1439_v15 = vpop.f32.mrf.mxu0 }
 0x17f   : > { %v1482_v16 = vpop.f32.mrf.mxu1 }
 0x180   : > { %v1441_v17 = vpop.f32.mrf.mxu0  ;;  %v1483_v22 = vadd.f32 %v1482_v16, %v1439_v15 }
 0x181   : > { %v1484_v18 = vpop.f32.mrf.mxu1 }
 0x182   : > { %v1443_v19 = vpop.f32.mrf.mxu0  ;;  %v1485_v25 = vadd.f32 %v1484_v18, %v1441_v17 }
 0x183   : > { %v1486_v20 = vpop.f32.mrf.mxu1 }
 0x184   : > { %v1445_v21 = vpop.f32.mrf.mxu0  ;;  %v1487_v30 = vadd.f32 %v1486_v20, %v1443_v19 }
 0x185   : > { %v1488_v27 = vpop.f32.mrf.mxu1 }
 0x186   : > { %v1489_v35 = vadd.f32 %v1488_v27, %v1445_v21 }
 0x1be   : > { %v1525_v24 = vpop.f32.mrf.mxu0 }
 0x1bf   : > { %v1526_v26 = vadd.f32 %v1525_v24, %v1483_v22 }
 0x1c0   : > { %v1527_v29 = vpop.f32.mrf.mxu0 }
 0x1c1   : > { %v1534_v31 = vadd.f32 %v1526_v26, %v789_v23  ;;  %v1528_v32 = vadd.f32 %v1527_v29, %v1485_v25 }
 0x1c2   : > { %v1529_v34 = vpop.f32.mrf.mxu0 }
 0x1c3   : > { %1538 = vst [vmem:[#allocation2 + $0x10] sm:$0xff] %v1534_v31  ;;  %v1535_v36 = vadd.f32 %v1528_v32, %v790_v28  ;;  %v1530_v37 = vadd.f32 %v1529_v34, %v1487_v30 }
 0x1c4   : > { %v1531_v39 = vpop.f32.mrf.mxu0 }
 0x1c5   : > { %1539 = vst [vmem:[#allocation2] sm:$0xff] %v1535_v36  ;;  %v1536_v40 = vadd.f32 %v1530_v37, %v791_v33  ;;  %v1532_v41 = vadd.f32 %v1531_v39, %v1489_v35  ;;  %1545 = sbr.rel (%p1890_p6) target bundleno = 475 (0x1db), region = 143 }
 0x1c7   : > { %1540 = vst [vmem:[#allocation2 + $0x18] sm:$0xff] %v1536_v40  ;;  %v1537_v42 = vadd.f32 %v1532_v41, %v792_v38 }
 0x1c9   : > { %1541 = vst [vmem:[#allocation2 + $0x8] sm:$0xff] %v1537_v42 }
 0x1ca   : > { %v1552_v43 = vlaneseq  ;;  %v1566_v45 = vld [vmem:[%s734_s17] sm:$0xff]  ;;  %v1567_v47 = vld [vmem:[%s734_s17 + $0x8] sm:$0xff] }
 0x1cb   : > { %v1550_v46 = vld [vmem:[%s775_s30] sm:$0x3]  ;;  %v1546_v48 = vld [vmem:[#allocation2 + $0x10] sm:$0xff]  ;;  %v1568_v52 = vunpack.c.l.bf16 %v1566_v45  ;;  %v1569_v53 = vunpack.c.h.bf16 %v1566_v45  ;;  %v1570_v58 = vunpack.c.l.bf16 %v1567_v47  ;;  %v1571_v59 = vunpack.c.h.bf16 %v1567_v47 }
 0x1cc   : > { %v1553_v44 = vshrl.u32 %v1552_v43, 7  ;;  %v1547_v51 = vld [vmem:[#allocation2] sm:$0xff] }
 0x1ce   : > { %v1554_v49 = vsub.s32 0, %v1553_v44  ;;  %v1558_v50 = vsub.s32 1, %v1553_v44  ;;  %v1548_v54 = vld [vmem:[#allocation2 + $0x18] sm:$0xff] }
 0x1d0   : > { %v1549_v55 = vld [vmem:[#allocation2 + $0x8] sm:$0xff]  ;;  %v1555_v56 = vrot.slane %v1550_v46, %v1554_v49  ;;  %v1559_v57 = vrot.slane %v1550_v46, %v1558_v50 }
 0x1d2   : > { %v1562_v60 = vadd.f32 %v1555_v56, %v1546_v48  ;;  %v1563_v61 = vadd.f32 %v1559_v57, %v1547_v51  ;;  %v1564_v62 = vadd.f32 %v1555_v56, %v1548_v54  ;;  %v1565_v63 = vadd.f32 %v1559_v57, %v1549_v55 }
 0x1d4   : > { %v1572_v0 = vadd.f32 %v1568_v52, %v1562_v60  ;;  %v1573_v1 = vadd.f32 %v1569_v53, %v1563_v61  ;;  %v1574_v2 = vadd.f32 %v1570_v58, %v1564_v62  ;;  %v1575_v3 = vadd.f32 %v1571_v59, %v1565_v63 }
 0x1d6   : > { %v1576_v4 = vmax.f32 %v1572_v0, 0.0  ;;  %v1577_v5 = vmax.f32 %v1573_v1, 0.0  ;;  %v1578_v6 = vmax.f32 %v1574_v2, 0.0  ;;  %v1579_v7 = vmax.f32 %v1575_v3, 0.0 }
 0x1d8   : > { %v1901_v8 = vpack.c.bf16 %v1577_v5, %v1576_v4  ;;  %v1902_v9 = vpack.c.bf16 %v1579_v7, %v1578_v6 }
 0x1da   : > { %1592 = vst [vmem:[%s2611_s15] sm:$0xff] %v1901_v8  ;;  %1593 = vst [vmem:[%s2611_s15 + $0x8] sm:$0xff] %v1902_v9 }
 0x1db PF: > { %1600 = sbr.rel (!%p2368_p13) target bundleno = 483 (0x1e3), region = 147  ;;  %s1903_s21 = sshll.u32 (%p2368_p13), %s2224_s22, 3 }
 0x1dc   : > { %s1606_s28 = scalar_lea.vmem (%p2368_p13), %s2773_s4, %s1903_s21 }
 0x1e1   : > { %v1637_v10 = vld [vmem:[%s2611_s15] sm:$0xff]  ;;  %v1639_v11 = vld [vmem:[%s2611_s15 + $0x8] sm:$0xff] }
 0x1e2   : > { %1638 = vst [vmem:[%s1606_s28] sm:$0xff] %v1637_v10  ;;  %1640 = vst [vmem:[%s1606_s28 + $0x10] sm:$0xff] %v1639_v11 }
 0x1e3 PF: > { %s14_s25 = sadd.s32 1, %s2236_s25   ;;  %s2784_s29 = sld [smem:[#allocation7_spill]] }
 0x1e4   : > { %p11_p7 = scmp.ge.s32.totalorder %s14_s25, 14   ;;  %s2785_s10 = sld [smem:[#allocation8_spill]] }
 0x1e5   : > { %s2786_s15 = smov %s2200_s16  ;;  %s2787_s16 = smov %s2360_s13 }
 0x1e6   : > { %s2788_s17 = smov %s2208_s18  ;;  %s2789_s18 = smov %s2357_s12 }
 0x1e7   : > { %s2790_s19 = smov %s2216_s20  ;;  %s2791_s20 = smov %s2341_s7 }
 0x1e8   : > { %s2792_s21 = smov %s2228_s23  ;;  %s2793_s22 = smov %s2232_s24 }
 0x1e9   : > { %s2794_s23 = smov %s2784_s29  ;;  %13 = sbr.rel (!%p11_p7) target bundleno = 8 (0x8), region = 235 }
 0x1ea   : > { %s2795_s24 = smov %s2785_s10 }

// kernel: resnet18_transfer_forward.43
= control target key start
LH: loop header
LB: loop body
LE: loop exit
PB: predicated region body
PF: predicated region fallthrough
CT: control target
= control target key end

     0   :  { %v93_v32 = vlaneseq  ;;  %vm125_vm0 = vcmask 1041409   ;;  %s579_s1 = inlined_call_operand.vmem [shape: f32[512,128], index: 1, kind: input, shape index: {}]   ;;  %s580_s0 = inlined_call_operand.vmem [shape: bf16[2,1,512], index: 0, kind: input, shape index: {}]   ;;  %s581_s2 = inlined_call_operand.vmem [shape: f32[1,128], index: 2, kind: input, shape index: {}]   ;;  %s582_s3 = inlined_call_operand.vmem [shape: f32[2,128], index: 3, kind: output, shape index: {}]  }
   0x1   :  { %v51_v0 = vld [vmem:[%s579_s1 + $0xf8] sm:$0xff]  ;;  %v50_v4 = vld [vmem:[%s579_s1 + $0xf0] sm:$0xff]  ;;  %v49_v8 = vld [vmem:[%s579_s1 + $0xe8] sm:$0xff] }
   0x2   :  { %v83_v1 = vld [vmem:[%s579_s1 + $0x1f8] sm:$0xff]  ;;  %284 = vmatprep.subr.mxu0 %v51_v0  ;;  %v82_v5 = vld [vmem:[%s579_s1 + $0x1f0] sm:$0xff]  ;;  %v81_v9 = vld [vmem:[%s579_s1 + $0x1e8] sm:$0xff]  ;;  %v94_v41 = vshrl.u32 %v93_v32, 7 }
   0x3   :  { %v35_v2 = vld [vmem:[%s579_s1 + $0x78] sm:$0xff]  ;;  %319 = vmatprep.subr.mxu1 %v83_v1  ;;  %v34_v6 = vld [vmem:[%s579_s1 + $0x70] sm:$0xff]  ;;  %v33_v10 = vld [vmem:[%s579_s1 + $0x68] sm:$0xff] }
   0x4   :  { %v67_v3 = vld [vmem:[%s579_s1 + $0x178] sm:$0xff]  ;;  %285 = vmatpush3.msra.mxu0 %v35_v2  ;;  %v66_v7 = vld [vmem:[%s579_s1 + $0x170] sm:$0xff]  ;;  %v65_v11 = vld [vmem:[%s579_s1 + $0x168] sm:$0xff]  ;;  %v99_v51 = vsub.s32 2, %v94_v41  ;;  %v107_v56 = vsub.s32 6, %v94_v41  ;;  %v95_v57 = vsub.s32 0, %v94_v41 }
   0x5   :  { %320 = vmatpush3.msra.mxu1 %v67_v3  ;;  %286 = vmatprep.subr.mxu0 %v50_v4  ;;  %v48_v12 = vld [vmem:[%s579_s1 + $0xe0] sm:$0xff]  ;;  %v47_v16 = vld [vmem:[%s579_s1 + $0xd8] sm:$0xff]  ;;  %v46_v20 = vld [vmem:[%s579_s1 + $0xd0] sm:$0xff]  ;;  %v103_v60 = vsub.s32 4, %v94_v41 }
   0x6   :  { %321 = vmatprep.subr.mxu1 %v82_v5  ;;  %287 = vmatpush3.msra.mxu0 %v34_v6  ;;  %v80_v13 = vld [vmem:[%s579_s1 + $0x1e0] sm:$0xff]  ;;  %v79_v17 = vld [vmem:[%s579_s1 + $0x1d8] sm:$0xff]  ;;  %v78_v21 = vld [vmem:[%s579_s1 + $0x1d0] sm:$0xff] }
   0x7   :  { %322 = vmatpush3.msra.mxu1 %v66_v7  ;;  %288 = vmatprep.subr.mxu0 %v49_v8  ;;  %v32_v14 = vld [vmem:[%s579_s1 + $0x60] sm:$0xff]  ;;  %v31_v18 = vld [vmem:[%s579_s1 + $0x58] sm:$0xff]  ;;  %v30_v22 = vld [vmem:[%s579_s1 + $0x50] sm:$0xff] }
   0x8   :  { %323 = vmatprep.subr.mxu1 %v81_v9  ;;  %v64_v15 = vld [vmem:[%s579_s1 + $0x160] sm:$0xff]  ;;  %289 = vmatpush3.msra.mxu0 %v33_v10  ;;  %v63_v19 = vld [vmem:[%s579_s1 + $0x158] sm:$0xff]  ;;  %v62_v23 = vld [vmem:[%s579_s1 + $0x150] sm:$0xff] }
   0x9   :  { %324 = vmatpush3.msra.mxu1 %v65_v11  ;;  %290 = vmatprep.subr.mxu0 %v48_v12  ;;  %v45_v24 = vld [vmem:[%s579_s1 + $0xc8] sm:$0xff]  ;;  %v44_v28 = vld [vmem:[%s579_s1 + $0xc0] sm:$0xff]  ;;  %v43_v33 = vld [vmem:[%s579_s1 + $0xb8] sm:$0xff] }
   0xa   :  { %325 = vmatprep.subr.mxu1 %v80_v13  ;;  %291 = vmatpush3.msra.mxu0 %v32_v14  ;;  %v77_v25 = vld [vmem:[%s579_s1 + $0x1c8] sm:$0xff]  ;;  %v76_v29 = vld [vmem:[%s579_s1 + $0x1c0] sm:$0xff]  ;;  %v75_v34 = vld [vmem:[%s579_s1 + $0x1b8] sm:$0xff] }
   0xb   :  { %326 = vmatpush3.msra.mxu1 %v64_v15  ;;  %292 = vmatprep.subr.mxu0 %v47_v16  ;;  %v29_v26 = vld [vmem:[%s579_s1 + $0x48] sm:$0xff]  ;;  %v28_v30 = vld [vmem:[%s579_s1 + $0x40] sm:$0xff]  ;;  %v27_v35 = vld [vmem:[%s579_s1 + $0x38] sm:$0xff] }
   0xc   :  { %327 = vmatprep.subr.mxu1 %v79_v17  ;;  %293 = vmatpush3.msra.mxu0 %v31_v18  ;;  %v61_v27 = vld [vmem:[%s579_s1 + $0x148] sm:$0xff]  ;;  %v60_v31 = vld [vmem:[%s579_s1 + $0x140] sm:$0xff]  ;;  %v59_v36 = vld [vmem:[%s579_s1 + $0x138] sm:$0xff] }
   0xd   :  { %328 = vmatpush3.msra.mxu1 %v63_v19  ;;  %294 = vmatprep.subr.mxu0 %v46_v20  ;;  %v42_v37 = vld [vmem:[%s579_s1 + $0xb0] sm:$0xff]  ;;  %v41_v42 = vld [vmem:[%s579_s1 + $0xa8] sm:$0xff]  ;;  %v40_v46 = vld [vmem:[%s579_s1 + $0xa0] sm:$0xff] }
   0xe   :  { %329 = vmatprep.subr.mxu1 %v78_v21  ;;  %295 = vmatpush3.msra.mxu0 %v30_v22  ;;  %v74_v38 = vld [vmem:[%s579_s1 + $0x1b0] sm:$0xff]  ;;  %v73_v43 = vld [vmem:[%s579_s1 + $0x1a8] sm:$0xff]  ;;  %v72_v47 = vld [vmem:[%s579_s1 + $0x1a0] sm:$0xff] }
   0xf   :  { %330 = vmatpush3.msra.mxu1 %v62_v23  ;;  %296 = vmatprep.subr.mxu0 %v45_v24  ;;  %v26_v39 = vld [vmem:[%s579_s1 + $0x30] sm:$0xff]  ;;  %v25_v44 = vld [vmem:[%s579_s1 + $0x28] sm:$0xff]  ;;  %v24_v48 = vld [vmem:[%s579_s1 + $0x20] sm:$0xff] }
  0x10   :  { %331 = vmatprep.subr.mxu1 %v77_v25  ;;  %297 = vmatpush3.msra.mxu0 %v29_v26  ;;  %v58_v40 = vld [vmem:[%s579_s1 + $0x130] sm:$0xff]  ;;  %v57_v45 = vld [vmem:[%s579_s1 + $0x128] sm:$0xff]  ;;  %v56_v49 = vld [vmem:[%s579_s1 + $0x120] sm:$0xff] }
  0x11   :  { %332 = vmatpush3.msra.mxu1 %v61_v27  ;;  %298 = vmatprep.subr.mxu0 %v44_v28  ;;  %v281_v50 = vld [vmem:[%s580_s0] sm:$0xff]   ;;  %v39_v52 = vld [vmem:[%s579_s1 + $0x98] sm:$0xff]  ;;  %v38_v61 = vld [vmem:[%s579_s1 + $0x90] sm:$0xff] }
  0x12   :  { %333 = vmatprep.subr.mxu1 %v76_v29  ;;  %299 = vmatpush3.msra.mxu0 %v28_v30  ;;  %v71_v53 = vld [vmem:[%s579_s1 + $0x198] sm:$0xff]  ;;  %v282_v54 = vunpack.c.l.bf16 %v281_v50  ;;  %v283_v55 = vunpack.c.h.bf16 %v281_v50  ;;  %v70_v62 = vld [vmem:[%s579_s1 + $0x190] sm:$0xff]  ;;  %v37_v3 = vld [vmem:[%s579_s1 + $0x88] sm:$0xff] }
  0x13   :  { %334 = vmatpush3.msra.mxu1 %v60_v31  ;;  %300 = vmatprep.subr.mxu0 %v43_v33  ;;  %v23_v58 = vld [vmem:[%s579_s1 + $0x18] sm:$0xff]  ;;  %v22_v63 = vld [vmem:[%s579_s1 + $0x10] sm:$0xff]  ;;  %v69_v4 = vld [vmem:[%s579_s1 + $0x188] sm:$0xff] }
  0x14   :  { %335 = vmatprep.subr.mxu1 %v75_v34  ;;  %301 = vmatpush3.msra.mxu0 %v27_v35  ;;  %v55_v59 = vld [vmem:[%s579_s1 + $0x118] sm:$0xff]  ;;  %v54_v0 = vld [vmem:[%s579_s1 + $0x110] sm:$0xff]  ;;  %v100_v1 = vrot.slane %v282_v54, %v99_v51  ;;  %v116_v2 = vrot.slane %v283_v55, %v99_v51  ;;  %v108_v5 = vrot.slane %v282_v54, %v107_v56  ;;  %v21_v8 = vld [vmem:[%s579_s1 + $0x8] sm:$0xff] }
  0x15   :  { %336 = vmatpush3.msra.mxu1 %v59_v36  ;;  %302 = vmatprep.subr.mxu0 %v42_v37  ;;  %v124_v6 = vrot.slane %v283_v55, %v107_v56  ;;  %v96_v7 = vrot.slane %v282_v54, %v95_v57  ;;  %v53_v9 = vld [vmem:[%s579_s1 + $0x108] sm:$0xff]  ;;  %v112_v10 = vrot.slane %v283_v55, %v95_v57  ;;  %v36_v13 = vld [vmem:[%s579_s1 + $0x80] sm:$0xff] }
  0x16   :  { %337 = vmatprep.subr.mxu1 %v74_v38  ;;  %303 = vmatpush3.msra.mxu0 %v26_v39  ;;  %v104_v11 = vrot.slane %v282_v54, %v103_v60  ;;  %v120_v12 = vrot.slane %v283_v55, %v103_v60  ;;  %v68_v14 = vld [vmem:[%s579_s1 + $0x180] sm:$0xff]  ;;  %v127_v16 = vsel %vm125_vm0, %v116_v2, %v100_v1 }
  0x17   :  { %338 = vmatpush3.msra.mxu1 %v58_v40  ;;  %304 = vmatprep.subr.mxu0 %v41_v42  ;;  %v20_v15 = vld [vmem:[%s579_s1] sm:$0xff]  ;;  %v129_v18 = vsel %vm125_vm0, %v124_v6, %v108_v5  ;;  %v126_v19 = vsel %vm125_vm0, %v112_v10, %v96_v7 }
  0x18   :  { %339 = vmatprep.subr.mxu1 %v73_v43  ;;  %305 = vmatpush3.msra.mxu0 %v25_v44  ;;  %v52_v17 = vld [vmem:[%s579_s1 + $0x100] sm:$0xff]  ;;  %v128_v20 = vsel %vm125_vm0, %v120_v12, %v104_v11 }
  0x19   :  { %340 = vmatpush3.msra.mxu1 %v57_v45  ;;  %306 = vmatprep.subr.mxu0 %v40_v46  ;;  %v279_v23 = vld [vmem:[%s581_s2] ss:$0 sm:$0xff] }
  0x1a   :  { %341 = vmatprep.subr.mxu1 %v72_v47  ;;  %307 = vmatpush3.msra.mxu0 %v24_v48 }
  0x1b   :  { %342 = vmatpush3.msra.mxu1 %v56_v49  ;;  %308 = vmatprep.subr.mxu0 %v39_v52 }
  0x1c   :  { %343 = vmatprep.subr.mxu1 %v71_v53  ;;  %309 = vmatpush3.msra.mxu0 %v23_v58 }
  0x1d   :  { %344 = vmatpush3.msra.mxu1 %v55_v59  ;;  %310 = vmatprep.subr.mxu0 %v38_v61 }
  0x1e   :  { %345 = vmatprep.subr.mxu1 %v70_v62  ;;  %311 = vmatpush3.msra.mxu0 %v22_v63 }
  0x1f   :  { %346 = vmatpush3.msra.mxu1 %v54_v0  ;;  %312 = vmatprep.subr.mxu0 %v37_v3 }
  0x20   :  { %347 = vmatprep.subr.mxu1 %v69_v4  ;;  %313 = vmatpush3.msra.mxu0 %v21_v8 }
  0x21   :  { %348 = vmatpush3.msra.mxu1 %v53_v9  ;;  %314 = vmatprep.subr.mxu0 %v36_v13 }
  0x22   :  { %349 = vmatprep.subr.mxu1 %v68_v14  ;;  %315 = vmatpush3.msra.mxu0 %v20_v15 }
  0x23   :  { %198 = vmatprep.mubr.f32.mxu0 %v127_v16  ;;  %350 = vmatpush3.msra.mxu1 %v52_v17 }
  0x24   :  { %268 = vmatprep.mubr.f32.mxu1 %v129_v18  ;;  %199 = vmatmul.mubr.f32.vlgmr.msra.gmra.mxu0 %v126_v19 }
  0x25   :  { %269 = vmatmul.mubr.f32.vlgmr.msra.gmra.mxu1 %v128_v20 }
  0xe4   :  { %v316_v21 = vpop.f32.mrf.mxu0 }
  0xe5   :  { %v351_v22 = vpop.f32.mrf.mxu1 }
  0xe6   :  { %v317_v24 = vpop.f32.mrf.mxu0 }
  0xe7   :  { %v352_v25 = vpop.f32.mrf.mxu1  ;;  %v318_v26 = vadd.f32 %v317_v24, %v316_v21 }
  0xe8   :  { %v353_v28 = vadd.f32 %v352_v25, %v351_v22 }
  0xe9   :  { %v201_v27 = vadd.f32 %v318_v26, %v279_v23 }
  0xeb   :  { %v271_v29 = vadd.f32 %v353_v28, %v201_v27 }
  0xed   :  { %274 = vst [vmem:[%s582_s3] sm:$0x3] %v271_v29 }

</bundles_post_ra>
